<compile_context>
chip_gen: v7x
topology: tpu7x:2x2x1
jax: 0.10.0
libtpu: 0.0.40
codegen_flags: <defaults>
</compile_context>

<pallas_src>
import functools

import jax
import jax.numpy as jnp
from jax.experimental import pallas as pl
from jax.experimental.pallas import tpu as pltpu


ENC_CH = [(1, 32), (32, 64), (64, 128), (128, 256)]
DEC_CH = [(256, 128), (128, 64), (64, 32), (32, 1)]

# ConvTranspose2d (stride 2, pad 1, k=4) parity decomposition:
#   out[2m+0] = x[m]*w[t=1] + x[m-1]*w[t=3]
#   out[2m+1] = x[m]*w[t=2] + x[m+1]*w[t=0]
_SEL = {0: (3, 1), 1: (2, 0)}   # kernel-tap index per 2-tap window row, per parity
_PAD = {0: (1, 0), 1: (0, 1)}   # (pad_before, pad_after) of the input, per parity


def _num_tensorcores():
    """Best-effort TensorCores per device (v7x: 2, v5e/v6e: 1)."""
    try:
        dev = jax.devices()[0]
    except Exception:
        return 1
    for attr in ("num_cores", "core_count"):
        v = getattr(dev, attr, None)
        if isinstance(v, int) and v > 0:
            return v
    kind = str(getattr(dev, "device_kind", "")).lower()
    if "v7" in kind or "7x" in kind:
        return 2
    return 1


def _pad_cout(cout):
    return max(128, ((cout + 127) // 128) * 128)


# ----------------------------------------------------------------------------
# Pallas kernel: fused batched GEMM + bias + activation
#   a: (G, M, K) bf16, b: (G, K, Np) bf16, bias: (1, Np) f32
#   out[g] = act(a[g] @ b[g] + bias)  -> bf16, Np multiple of 128 (lane-dense).
# Grid = (G, M//tm, Np//tn); full K per step => no reduction carry, all axes
# "parallel" (megacore-shardable).
# ----------------------------------------------------------------------------
def _gemm_bias_act_kernel(a_ref, b_ref, bias_ref, o_ref, *, activation):
    acc = jnp.dot(a_ref[0], b_ref[0], preferred_element_type=jnp.float32)
    acc = acc + bias_ref[...]          # (1, tn) broadcasts over the M tile
    if activation == "relu":
        acc = jnp.maximum(acc, 0.0)
    elif activation == "sigmoid":
        acc = jax.nn.sigmoid(acc)
    o_ref[0] = acc.astype(o_ref.dtype)


def _choose_tm(m, k, g, num_tc):
    """Full-M tile unless (a) splitting feeds an otherwise-idle TensorCore, or
    (b) the bf16 A tile would exceed ~2 MiB.  Keeps tm a multiple of 16."""
    tm = m
    if num_tc > 1 and g < num_tc and m >= 256 and (m // 2) % 16 == 0:
        tm = m // 2
    max_a_bytes = 2 * 1024 * 1024
    while tm * k * 2 > max_a_bytes and tm % 2 == 0 and (tm // 2) % 16 == 0:
        tm //= 2
    if tm % 16 != 0 or m % tm != 0:
        tm = m          # all M used by this model are multiples of 16
    return tm


def batched_gemm_bias_act(a, b, bias, activation, num_tc):
    g, m, k = a.shape
    gb, kb, n = b.shape
    assert gb == g and kb == k and n % 128 == 0
    assert a.dtype == jnp.bfloat16 and b.dtype == jnp.bfloat16

    tm = _choose_tm(m, k, g, num_tc)
    # N split only to feed a second TensorCore when the (g, M) grid collapses
    # to a single step (e.g. the M=32, N=256 encoder layer on v7x).
    tn = n
    if num_tc > 1 and g * (m // tm) < num_tc and n >= 256 and n % 256 == 0:
        tn = n // 2

    kernel = functools.partial(_gemm_bias_act_kernel, activation=activation)
    return pl.pallas_call(
        kernel,
        out_shape=jax.ShapeDtypeStruct((g, m, n), jnp.bfloat16),
        grid_spec=pltpu.PrefetchScalarGridSpec(
            num_scalar_prefetch=0,
            grid=(g, m // tm, n // tn),
            in_specs=[
                pl.BlockSpec((1, tm, k), lambda p, i, j: (p, i, 0)),
                pl.BlockSpec((1, k, tn), lambda p, i, j: (p, 0, j)),
                pl.BlockSpec((1, tn), lambda p, i, j: (0, j)),
            ],
            out_specs=pl.BlockSpec((1, tm, tn), lambda p, i, j: (p, i, j)),
        ),
        compiler_params=pltpu.CompilerParams(
            dimension_semantics=("parallel", "parallel", "parallel"),
        ),
    )(a, b, bias)


# ----------------------------------------------------------------------------
# Conv2d (stride 2, pad 1, k=4) — NHWC im2col + fused Pallas GEMM
# ----------------------------------------------------------------------------
def conv2d_nhwc(x, bmat, bias, cout, num_tc, *, activation="relu",
                k=4, stride=2, pad=1):
    """x: (N,H,W,Cin) bf16; bmat: (1, k*k*Cin, Np) bf16; bias: (1, Np) f32."""
    n, h, wd, cin = x.shape
    xp = jnp.pad(x, ((0, 0), (pad, pad), (pad, pad), (0, 0)))
    ho = (h + 2 * pad - k) // stride + 1
    wo = (wd + 2 * pad - k) // stride + 1
    # TODO(synk): materializing the k*k-duplicated patch matrix in HBM is the
    # remaining XLA glue; move it into the pallas pipeline.
    cols = [
        xp[:, di:di + stride * ho:stride, dj:dj + stride * wo:stride, :]
        for di in range(k) for dj in range(k)
    ]
    a = jnp.concatenate(cols, axis=-1).reshape(1, n * ho * wo, k * k * cin)
    out = batched_gemm_bias_act(a, bmat, bias, activation, num_tc)   # (1,M,Np) bf16
    return out[0, :, :cout].reshape(n, ho, wo, cout)


# ----------------------------------------------------------------------------
# ConvTranspose2d (stride 2, pad 1, k=4) — parity decomposition, no dilation
# ----------------------------------------------------------------------------
def conv_transpose2d_nhwc(x, bmat4, bias, cout, activation, num_tc):
    """x: (N,H,W,Cin) bf16; bmat4: (4, 4*Cin, Np) bf16; bias: (1, Np) f32."""
    n, h, wd, cin = x.shape
    a_list = []
    for py in (0, 1):
        for px in (0, 1):
            xp = jnp.pad(x, ((0, 0), _PAD[py], _PAD[px], (0, 0)))
            cols = [xp[:, r:r + h, c:c + wd, :] for r in range(2) for c in range(2)]
            a_list.append(
                jnp.concatenate(cols, axis=-1).reshape(n * h * wd, 4 * cin))
    a = jnp.stack(a_list, axis=0)                                   # (4, M, 4*Cin)
    out = batched_gemm_bias_act(a, bmat4, bias, activation, num_tc)  # (4, M, Np) bf16
    out = out[:, :, :cout].reshape(2, 2, n, h, wd, cout)            # (py,px,n,h,w,c)
    return out.transpose(2, 3, 0, 4, 1, 5).reshape(n, 2 * h, 2 * wd, cout)


# ----------------------------------------------------------------------------
# Parameters (deterministic, PyTorch-default-style uniform init) + pre-packing
# ----------------------------------------------------------------------------
def _init_layer(key, w_shape, out_channels, fan_in):
    bound = 1.0 / float(fan_in) ** 0.5
    kw, kb = jax.random.split(key)
    w = jax.random.uniform(kw, w_shape, jnp.float32, -bound, bound)
    b = jax.random.uniform(kb, (out_channels,), jnp.float32, -bound, bound)
    return w, b


def init_params(key):
    k = 4
    keys = jax.random.split(key, len(ENC_CH) + len(DEC_CH))
    encoder = []
    for i, (cin, cout) in enumerate(ENC_CH):
        # Conv2d weight: (Cout, Cin, k, k), fan_in = Cin*k*k
        encoder.append(_init_layer(keys[i], (cout, cin, k, k), cout, cin * k * k))
    decoder = []
    for j, (cin, cout) in enumerate(DEC_CH):
        # ConvTranspose2d weight: (Cin, Cout, k, k); PyTorch's (quirky) default
        # uses fan_in = Cout*k*k for ConvTranspose2d — intentional, do not "fix".
        decoder.append(
            _init_layer(keys[len(ENC_CH) + j], (cin, cout, k, k), cout,
                        cout * k * k))
    return {"encoder": encoder, "decoder": decoder}


def pack_params(params):
    """One-time weight packing: GEMM panels, N-padded to 128, bf16; f32 biases."""
    enc = []
    for (w, b) in params["encoder"]:
        cout, cin, k, _ = w.shape
        npad = _pad_cout(cout)
        bmat = w.transpose(2, 3, 1, 0).reshape(k * k * cin, cout)   # (kh,kw,Cin) rows
        bmat = jnp.pad(bmat, ((0, 0), (0, npad - cout)))[None].astype(jnp.bfloat16)
        bias = jnp.pad(b, (0, npad - cout)).reshape(1, npad).astype(jnp.float32)
        enc.append({"b": bmat, "bias": bias})
    dec = []
    for (w, b) in params["decoder"]:
        cin, cout, k, _ = w.shape
        npad = _pad_cout(cout)
        panels = []
        for py in (0, 1):
            for px in (0, 1):
                wsub = jnp.take(jnp.take(w, jnp.array(_SEL[py]), axis=2),
                                jnp.array(_SEL[px]), axis=3)        # (Cin,Cout,2,2)
                bmat = wsub.transpose(2, 3, 0, 1).reshape(4 * cin, cout)
                panels.append(jnp.pad(bmat, ((0, 0), (0, npad - cout))))
        bm = jnp.stack(panels, axis=0).astype(jnp.bfloat16)         # (4, 4*Cin, Np)
        bias = jnp.pad(b, (0, npad - cout)).reshape(1, npad).astype(jnp.float32)
        dec.append({"b": bm, "bias": bias})
    return {"encoder": enc, "decoder": dec}


# ----------------------------------------------------------------------------
# Forward pass (matches Autoencoder.forward: returns (reconstruction, latent))
# ----------------------------------------------------------------------------
def autoencoder_forward(packed, x, *, num_tc=1):
    h = jnp.transpose(x, (0, 2, 3, 1)).astype(jnp.bfloat16)  # NCHW->NHWC, bf16 once
    for layer, (_, cout) in zip(packed["encoder"], ENC_CH):
        h = conv2d_nhwc(h, layer["b"], layer["bias"], cout, num_tc,
                        activation="relu")
    latent_nhwc = h
    for i, (layer, (_, cout)) in enumerate(zip(packed["decoder"], DEC_CH)):
        act = "sigmoid" if i == len(DEC_CH) - 1 else "relu"
        h = conv_transpose2d_nhwc(h, layer["b"], layer["bias"], cout, act, num_tc)
    recon = jnp.transpose(h, (0, 3, 1, 2)).astype(jnp.float32)       # NCHW boundary
    latent = jnp.transpose(latent_nhwc, (0, 3, 1, 2)).astype(jnp.float32)
    return recon, latent


# ----------------------------------------------------------------------------
# Pure-XLA reference with the same bf16 quantization points (correctness check)
# ----------------------------------------------------------------------------
def reference_forward(params, x):
    h = jnp.transpose(x, (0, 2, 3, 1)).astype(jnp.bfloat16)
    for (w, b) in params["encoder"]:
        rhs = jnp.transpose(w, (2, 3, 1, 0)).astype(jnp.bfloat16)    # HWIO
        y = jax.lax.conv_general_dilated(
            h, rhs, window_strides=(2, 2), padding=((1, 1), (1, 1)),
            dimension_numbers=("NHWC", "HWIO", "NHWC"),
            preferred_element_type=jnp.float32)
        h = jnp.maximum(y + b, 0.0).astype(jnp.bfloat16)
    latent = h
    nlayers = len(params["decoder"])
    for i, (w, b) in enumerate(params["decoder"]):
        # ConvTranspose == lhs-dilated conv with spatially flipped kernel.
        rhs = jnp.transpose(w, (2, 3, 0, 1))[::-1, ::-1].astype(jnp.bfloat16)
        y = jax.lax.conv_general_dilated(
            h, rhs, window_strides=(1, 1), padding=((2, 2), (2, 2)),
            lhs_dilation=(2, 2),
            dimension_numbers=("NHWC", "HWIO", "NHWC"),
            preferred_element_type=jnp.float32)
        y = y + b
        h = (jax.nn.sigmoid(y) if i == nlayers - 1
             else jnp.maximum(y, 0.0)).astype(jnp.bfloat16)
    recon = jnp.transpose(h, (0, 3, 1, 2)).astype(jnp.float32)
    latent = jnp.transpose(latent, (0, 3, 1, 2)).astype(jnp.float32)
    return recon, latent


if __name__ == "__main__":
    key = jax.random.PRNGKey(0)
    kp, kx = jax.random.split(key)
    params = init_params(kp)
    packed = pack_params(params)          # one-time weight packing (outside jit)
    # The module implies 1-channel 64x64 inputs (see _calculate_encoder_output_shape).
    x = jax.random.normal(kx, (2, 1, 64, 64), dtype=jnp.float32)

    num_tc = _num_tensorcores()
    fwd = jax.jit(functools.partial(autoencoder_forward, num_tc=num_tc))
    recon, latent = fwd(packed, x)
    jax.block_until_ready((recon, latent))

    assert recon.shape == (2, 1, 64, 64), recon.shape
    assert latent.shape == (2, 256, 4, 4), latent.shape
    assert bool(jnp.all(jnp.isfinite(recon)))
    assert bool(jnp.all((recon >= 0.0) & (recon <= 1.0)))  # sigmoid output range

    # Numerical check vs lax conv / lhs-dilated conv (same bf16 rounding points;
    # remaining diffs are f32 accumulation-order only).
    recon_ref, latent_ref = jax.jit(reference_forward)(params, x)
    jax.block_until_ready((recon_ref, latent_ref))
    assert bool(jnp.allclose(latent, latent_ref, atol=5e-2, rtol=5e-2)), (
        float(jnp.max(jnp.abs(latent - latent_ref))))
    assert bool(jnp.allclose(recon, recon_ref, atol=2e-2, rtol=0.0)), (
        float(jnp.max(jnp.abs(recon - recon_ref))))

    print("KERNEL_OK")
</pallas_src>

<mosaic_0001>
module attributes {stable_mosaic.version = 11 : i64} {
  func.func @_gemm_bias_act_kernel(%arg0: i32, %arg1: i32, %arg2: i32, %arg3: memref<1x2048x16xbf16, #tpu.memory_space<vmem>>, %arg4: memref<1x16x128xbf16, #tpu.memory_space<vmem>>, %arg5: memref<1x128xf32, #tpu.memory_space<vmem>>, %arg6: memref<1x2048x128xbf16, #tpu.memory_space<vmem>>) attributes {dimension_semantics = [#tpu.dimension_semantics<parallel>, #tpu.dimension_semantics<parallel>, #tpu.dimension_semantics<parallel>], iteration_bounds = array<i64: 1, 1, 1>, scalar_prefetch = 0 : i64, scratch_operands = 0 : i64, tpu.core_type = #tpu.core_type<tc>, window_params = [{transform_indices = @transform_0, window_bounds = array<i64: 1, 2048, 16>}, {transform_indices = @transform_1, window_bounds = array<i64: 1, 16, 128>}, {transform_indices = @transform_2, window_bounds = array<i64: 1, 128>}, {transform_indices = @transform_3, window_bounds = array<i64: 1, 2048, 128>}]} {
    %c0 = arith.constant 0 : index
    %c0_0 = arith.constant 0 : index
    %c0_1 = arith.constant 0 : index
    %0 = vector.load %arg3[%c0, %c0_0, %c0_1] : memref<1x2048x16xbf16, #tpu.memory_space<vmem>>, vector<1x2048x16xbf16>
    %1 = vector.shape_cast %0 : vector<1x2048x16xbf16> to vector<2048x16xbf16>
    %c0_2 = arith.constant 0 : index
    %c0_3 = arith.constant 0 : index
    %c0_4 = arith.constant 0 : index
    %2 = vector.load %arg4[%c0_2, %c0_3, %c0_4] : memref<1x16x128xbf16, #tpu.memory_space<vmem>>, vector<1x16x128xbf16>
    %3 = vector.shape_cast %2 : vector<1x16x128xbf16> to vector<16x128xbf16>
    %cst = arith.constant dense<0.000000e+00> : vector<2048x128xf32>
    %4 = tpu.matmul %1, %3, %cst {dimension_numbers = #tpu.dot_dimension_numbers<[1], [0], [0], [1], [0, 0, 1, 1], [], []>} : vector<2048x16xbf16>, vector<16x128xbf16>, vector<2048x128xf32> -> vector<2048x128xf32>
    %c0_5 = arith.constant 0 : index
    %c0_6 = arith.constant 0 : index
    %5 = vector.load %arg5[%c0_5, %c0_6] : memref<1x128xf32, #tpu.memory_space<vmem>>, vector<1x128xf32>
    %6 = vector.broadcast %5 : vector<1x128xf32> to vector<2048x128xf32>
    %7 = arith.addf %4, %6 : vector<2048x128xf32>
    %cst_7 = arith.constant 0.000000e+00 : f32
    %8 = vector.broadcast %cst_7 : f32 to vector<2048x128xf32>
    %9 = arith.maximumf %7, %8 : vector<2048x128xf32>
    %10 = arith.truncf %9 : vector<2048x128xf32> to vector<2048x128xbf16>
    %c0_8 = arith.constant 0 : index
    %c0_9 = arith.constant 0 : index
    %c0_10 = arith.constant 0 : index
    %11 = vector.load %arg6[%c0_8, %c0_9, %c0_10] : memref<1x2048x128xbf16, #tpu.memory_space<vmem>>, vector<1x2048x128xbf16>
    %12 = vector.shape_cast %11 : vector<1x2048x128xbf16> to vector<2048x128xbf16>
    %13 = vector.shape_cast %10 : vector<2048x128xbf16> to vector<1x2048x128xbf16>
    tpu.vector_store %arg6[%c0_8, %c0_9, %c0_10], %13 {strides = array<i32>} : memref<1x2048x128xbf16, #tpu.memory_space<vmem>>, vector<1x2048x128xbf16>,
    return
  }
  func.func @transform_0(%arg0: i32, %arg1: i32, %arg2: i32) -> (i32, i32, i32) {
    %c0_i32 = arith.constant 0 : i32
    %c0_i32_0 = arith.constant 0 : i32
    return %arg0, %arg1, %c0_i32 : i32, i32, i32
  }
  func.func @transform_1(%arg0: i32, %arg1: i32, %arg2: i32) -> (i32, i32, i32) {
    %c0_i32 = arith.constant 0 : i32
    %c0_i32_0 = arith.constant 0 : i32
    return %arg0, %c0_i32, %arg2 : i32, i32, i32
  }
  func.func @transform_2(%arg0: i32, %arg1: i32, %arg2: i32) -> (i32, i32) {
    %c0_i32 = arith.constant 0 : i32
    %c0_i32_0 = arith.constant 0 : i32
    return %c0_i32, %arg2 : i32, i32
  }
  func.func @transform_3(%arg0: i32, %arg1: i32, %arg2: i32) -> (i32, i32, i32) {
    %c0_i32 = arith.constant 0 : i32
    return %arg0, %arg1, %arg2 : i32, i32, i32
  }
}

module attributes {stable_mosaic.version = 11 : i64} {
  func.func @_gemm_bias_act_kernel(%arg0: i32, %arg1: i32, %arg2: i32, %arg3: memref<1x512x512xbf16, #tpu.memory_space<vmem>>, %arg4: memref<1x512x128xbf16, #tpu.memory_space<vmem>>, %arg5: memref<1x128xf32, #tpu.memory_space<vmem>>, %arg6: memref<1x512x128xbf16, #tpu.memory_space<vmem>>) attributes {dimension_semantics = [#tpu.dimension_semantics<parallel>, #tpu.dimension_semantics<parallel>, #tpu.dimension_semantics<parallel>], iteration_bounds = array<i64: 1, 1, 1>, scalar_prefetch = 0 : i64, scratch_operands = 0 : i64, tpu.core_type = #tpu.core_type<tc>, window_params = [{transform_indices = @transform_0, window_bounds = array<i64: 1, 512, 512>}, {transform_indices = @transform_1, window_bounds = array<i64: 1, 512, 128>}, {transform_indices = @transform_2, window_bounds = array<i64: 1, 128>}, {transform_indices = @transform_3, window_bounds = array<i64: 1, 512, 128>}]} {
    %c0 = arith.constant 0 : index
    %c0_0 = arith.constant 0 : index
    %c0_1 = arith.constant 0 : index
    %0 = vector.load %arg3[%c0, %c0_0, %c0_1] : memref<1x512x512xbf16, #tpu.memory_space<vmem>>, vector<1x512x512xbf16>
    %1 = vector.shape_cast %0 : vector<1x512x512xbf16> to vector<512x512xbf16>
    %c0_2 = arith.constant 0 : index
    %c0_3 = arith.constant 0 : index
    %c0_4 = arith.constant 0 : index
    %2 = vector.load %arg4[%c0_2, %c0_3, %c0_4] : memref<1x512x128xbf16, #tpu.memory_space<vmem>>, vector<1x512x128xbf16>
    %3 = vector.shape_cast %2 : vector<1x512x128xbf16> to vector<512x128xbf16>
    %cst = arith.constant dense<0.000000e+00> : vector<512x128xf32>
    %4 = tpu.matmul %1, %3, %cst {dimension_numbers = #tpu.dot_dimension_numbers<[1], [0], [0], [1], [0, 0, 1, 1], [], []>} : vector<512x512xbf16>, vector<512x128xbf16>, vector<512x128xf32> -> vector<512x128xf32>
    %c0_5 = arith.constant 0 : index
    %c0_6 = arith.constant 0 : index
    %5 = vector.load %arg5[%c0_5, %c0_6] : memref<1x128xf32, #tpu.memory_space<vmem>>, vector<1x128xf32>
    %6 = vector.broadcast %5 : vector<1x128xf32> to vector<512x128xf32>
    %7 = arith.addf %4, %6 : vector<512x128xf32>
    %cst_7 = arith.constant 0.000000e+00 : f32
    %8 = vector.broadcast %cst_7 : f32 to vector<512x128xf32>
    %9 = arith.maximumf %7, %8 : vector<512x128xf32>
    %10 = arith.truncf %9 : vector<512x128xf32> to vector<512x128xbf16>
    %c0_8 = arith.constant 0 : index
    %c0_9 = arith.constant 0 : index
    %c0_10 = arith.constant 0 : index
    %11 = vector.load %arg6[%c0_8, %c0_9, %c0_10] : memref<1x512x128xbf16, #tpu.memory_space<vmem>>, vector<1x512x128xbf16>
    %12 = vector.shape_cast %11 : vector<1x512x128xbf16> to vector<512x128xbf16>
    %13 = vector.shape_cast %10 : vector<512x128xbf16> to vector<1x512x128xbf16>
    tpu.vector_store %arg6[%c0_8, %c0_9, %c0_10], %13 {strides = array<i32>} : memref<1x512x128xbf16, #tpu.memory_space<vmem>>, vector<1x512x128xbf16>,
    return
  }
  func.func @transform_0(%arg0: i32, %arg1: i32, %arg2: i32) -> (i32, i32, i32) {
    %c0_i32 = arith.constant 0 : i32
    %c0_i32_0 = arith.constant 0 : i32
    return %arg0, %arg1, %c0_i32 : i32, i32, i32
  }
  func.func @transform_1(%arg0: i32, %arg1: i32, %arg2: i32) -> (i32, i32, i32) {
    %c0_i32 = arith.constant 0 : i32
    %c0_i32_0 = arith.constant 0 : i32
    return %arg0, %c0_i32, %arg2 : i32, i32, i32
  }
  func.func @transform_2(%arg0: i32, %arg1: i32, %arg2: i32) -> (i32, i32) {
    %c0_i32 = arith.constant 0 : i32
    %c0_i32_0 = arith.constant 0 : i32
    return %c0_i32, %arg2 : i32, i32
  }
  func.func @transform_3(%arg0: i32, %arg1: i32, %arg2: i32) -> (i32, i32, i32) {
    %c0_i32 = arith.constant 0 : i32
    return %arg0, %arg1, %arg2 : i32, i32, i32
  }
}

module attributes {stable_mosaic.version = 11 : i64} {
  func.func @_gemm_bias_act_kernel(%arg0: i32, %arg1: i32, %arg2: i32, %arg3: memref<1x128x1024xbf16, #tpu.memory_space<vmem>>, %arg4: memref<1x1024x128xbf16, #tpu.memory_space<vmem>>, %arg5: memref<1x128xf32, #tpu.memory_space<vmem>>, %arg6: memref<1x128x128xbf16, #tpu.memory_space<vmem>>) attributes {dimension_semantics = [#tpu.dimension_semantics<parallel>, #tpu.dimension_semantics<parallel>, #tpu.dimension_semantics<parallel>], iteration_bounds = array<i64: 1, 1, 1>, scalar_prefetch = 0 : i64, scratch_operands = 0 : i64, tpu.core_type = #tpu.core_type<tc>, window_params = [{transform_indices = @transform_0, window_bounds = array<i64: 1, 128, 1024>}, {transform_indices = @transform_1, window_bounds = array<i64: 1, 1024, 128>}, {transform_indices = @transform_2, window_bounds = array<i64: 1, 128>}, {transform_indices = @transform_3, window_bounds = array<i64: 1, 128, 128>}]} {
    %c0 = arith.constant 0 : index
    %c0_0 = arith.constant 0 : index
    %c0_1 = arith.constant 0 : index
    %0 = vector.load %arg3[%c0, %c0_0, %c0_1] : memref<1x128x1024xbf16, #tpu.memory_space<vmem>>, vector<1x128x1024xbf16>
    %1 = vector.shape_cast %0 : vector<1x128x1024xbf16> to vector<128x1024xbf16>
    %c0_2 = arith.constant 0 : index
    %c0_3 = arith.constant 0 : index
    %c0_4 = arith.constant 0 : index
    %2 = vector.load %arg4[%c0_2, %c0_3, %c0_4] : memref<1x1024x128xbf16, #tpu.memory_space<vmem>>, vector<1x1024x128xbf16>
    %3 = vector.shape_cast %2 : vector<1x1024x128xbf16> to vector<1024x128xbf16>
    %cst = arith.constant dense<0.000000e+00> : vector<128x128xf32>
    %4 = tpu.matmul %1, %3, %cst {dimension_numbers = #tpu.dot_dimension_numbers<[1], [0], [0], [1], [0, 0, 1, 1], [], []>} : vector<128x1024xbf16>, vector<1024x128xbf16>, vector<128x128xf32> -> vector<128x128xf32>
    %c0_5 = arith.constant 0 : index
    %c0_6 = arith.constant 0 : index
    %5 = vector.load %arg5[%c0_5, %c0_6] : memref<1x128xf32, #tpu.memory_space<vmem>>, vector<1x128xf32>
    %6 = vector.broadcast %5 : vector<1x128xf32> to vector<128x128xf32>
    %7 = arith.addf %4, %6 : vector<128x128xf32>
    %cst_7 = arith.constant 0.000000e+00 : f32
    %8 = vector.broadcast %cst_7 : f32 to vector<128x128xf32>
    %9 = arith.maximumf %7, %8 : vector<128x128xf32>
    %10 = arith.truncf %9 : vector<128x128xf32> to vector<128x128xbf16>
    %c0_8 = arith.constant 0 : index
    %c0_9 = arith.constant 0 : index
    %c0_10 = arith.constant 0 : index
    %11 = vector.load %arg6[%c0_8, %c0_9, %c0_10] : memref<1x128x128xbf16, #tpu.memory_space<vmem>>, vector<1x128x128xbf16>
    %12 = vector.shape_cast %11 : vector<1x128x128xbf16> to vector<128x128xbf16>
    %13 = vector.shape_cast %10 : vector<128x128xbf16> to vector<1x128x128xbf16>
    tpu.vector_store %arg6[%c0_8, %c0_9, %c0_10], %13 {strides = array<i32>} : memref<1x128x128xbf16, #tpu.memory_space<vmem>>, vector<1x128x128xbf16>,
    return
  }
  func.func @transform_0(%arg0: i32, %arg1: i32, %arg2: i32) -> (i32, i32, i32) {
    %c0_i32 = arith.constant 0 : i32
    %c0_i32_0 = arith.constant 0 : i32
    return %arg0, %arg1, %c0_i32 : i32, i32, i32
  }
  func.func @transform_1(%arg0: i32, %arg1: i32, %arg2: i32) -> (i32, i32, i32) {
    %c0_i32 = arith.constant 0 : i32
    %c0_i32_0 = arith.constant 0 : i32
    return %arg0, %c0_i32, %arg2 : i32, i32, i32
  }
  func.func @transform_2(%arg0: i32, %arg1: i32, %arg2: i32) -> (i32, i32) {
    %c0_i32 = arith.constant 0 : i32
    %c0_i32_0 = arith.constant 0 : i32
    return %c0_i32, %arg2 : i32, i32
  }
  func.func @transform_3(%arg0: i32, %arg1: i32, %arg2: i32) -> (i32, i32, i32) {
    %c0_i32 = arith.constant 0 : i32
    return %arg0, %arg1, %arg2 : i32, i32, i32
  }
}

module attributes {stable_mosaic.version = 11 : i64} {
  func.func @_gemm_bias_act_kernel(%arg0: i32, %arg1: i32, %arg2: i32, %arg3: memref<1x32x2048xbf16, #tpu.memory_space<vmem>>, %arg4: memref<1x2048x256xbf16, #tpu.memory_space<vmem>>, %arg5: memref<1x256xf32, #tpu.memory_space<vmem>>, %arg6: memref<1x32x256xbf16, #tpu.memory_space<vmem>>) attributes {dimension_semantics = [#tpu.dimension_semantics<parallel>, #tpu.dimension_semantics<parallel>, #tpu.dimension_semantics<parallel>], iteration_bounds = array<i64: 1, 1, 1>, scalar_prefetch = 0 : i64, scratch_operands = 0 : i64, tpu.core_type = #tpu.core_type<tc>, window_params = [{transform_indices = @transform_0, window_bounds = array<i64: 1, 32, 2048>}, {transform_indices = @transform_1, window_bounds = array<i64: 1, 2048, 256>}, {transform_indices = @transform_2, window_bounds = array<i64: 1, 256>}, {transform_indices = @transform_3, window_bounds = array<i64: 1, 32, 256>}]} {
    %c0 = arith.constant 0 : index
    %c0_0 = arith.constant 0 : index
    %c0_1 = arith.constant 0 : index
    %0 = vector.load %arg3[%c0, %c0_0, %c0_1] : memref<1x32x2048xbf16, #tpu.memory_space<vmem>>, vector<1x32x2048xbf16>
    %1 = vector.shape_cast %0 : vector<1x32x2048xbf16> to vector<32x2048xbf16>
    %c0_2 = arith.constant 0 : index
    %c0_3 = arith.constant 0 : index
    %c0_4 = arith.constant 0 : index
    %2 = vector.load %arg4[%c0_2, %c0_3, %c0_4] : memref<1x2048x256xbf16, #tpu.memory_space<vmem>>, vector<1x2048x256xbf16>
    %3 = vector.shape_cast %2 : vector<1x2048x256xbf16> to vector<2048x256xbf16>
    %cst = arith.constant dense<0.000000e+00> : vector<32x256xf32>
    %4 = tpu.matmul %1, %3, %cst {dimension_numbers = #tpu.dot_dimension_numbers<[1], [0], [0], [1], [0, 0, 1, 1], [], []>} : vector<32x2048xbf16>, vector<2048x256xbf16>, vector<32x256xf32> -> vector<32x256xf32>
    %c0_5 = arith.constant 0 : index
    %c0_6 = arith.constant 0 : index
    %5 = vector.load %arg5[%c0_5, %c0_6] : memref<1x256xf32, #tpu.memory_space<vmem>>, vector<1x256xf32>
    %6 = vector.broadcast %5 : vector<1x256xf32> to vector<32x256xf32>
    %7 = arith.addf %4, %6 : vector<32x256xf32>
    %cst_7 = arith.constant 0.000000e+00 : f32
    %8 = vector.broadcast %cst_7 : f32 to vector<32x256xf32>
    %9 = arith.maximumf %7, %8 : vector<32x256xf32>
    %10 = arith.truncf %9 : vector<32x256xf32> to vector<32x256xbf16>
    %c0_8 = arith.constant 0 : index
    %c0_9 = arith.constant 0 : index
    %c0_10 = arith.constant 0 : index
    %11 = vector.load %arg6[%c0_8, %c0_9, %c0_10] : memref<1x32x256xbf16, #tpu.memory_space<vmem>>, vector<1x32x256xbf16>
    %12 = vector.shape_cast %11 : vector<1x32x256xbf16> to vector<32x256xbf16>
    %13 = vector.shape_cast %10 : vector<32x256xbf16> to vector<1x32x256xbf16>
    tpu.vector_store %arg6[%c0_8, %c0_9, %c0_10], %13 {strides = array<i32>} : memref<1x32x256xbf16, #tpu.memory_space<vmem>>, vector<1x32x256xbf16>,
    return
  }
  func.func @transform_0(%arg0: i32, %arg1: i32, %arg2: i32) -> (i32, i32, i32) {
    %c0_i32 = arith.constant 0 : i32
    %c0_i32_0 = arith.constant 0 : i32
    return %arg0, %arg1, %c0_i32 : i32, i32, i32
  }
  func.func @transform_1(%arg0: i32, %arg1: i32, %arg2: i32) -> (i32, i32, i32) {
    %c0_i32 = arith.constant 0 : i32
    %c0_i32_0 = arith.constant 0 : i32
    return %arg0, %c0_i32, %arg2 : i32, i32, i32
  }
  func.func @transform_2(%arg0: i32, %arg1: i32, %arg2: i32) -> (i32, i32) {
    %c0_i32 = arith.constant 0 : i32
    %c0_i32_0 = arith.constant 0 : i32
    return %c0_i32, %arg2 : i32, i32
  }
  func.func @transform_3(%arg0: i32, %arg1: i32, %arg2: i32) -> (i32, i32, i32) {
    %c0_i32 = arith.constant 0 : i32
    return %arg0, %arg1, %arg2 : i32, i32, i32
  }
}

module attributes {stable_mosaic.version = 11 : i64} {
  func.func @_gemm_bias_act_kernel(%arg0: i32, %arg1: i32, %arg2: i32, %arg3: memref<1x32x1024xbf16, #tpu.memory_space<vmem>>, %arg4: memref<1x1024x128xbf16, #tpu.memory_space<vmem>>, %arg5: memref<1x128xf32, #tpu.memory_space<vmem>>, %arg6: memref<1x32x128xbf16, #tpu.memory_space<vmem>>) attributes {dimension_semantics = [#tpu.dimension_semantics<parallel>, #tpu.dimension_semantics<parallel>, #tpu.dimension_semantics<parallel>], iteration_bounds = array<i64: 4, 1, 1>, scalar_prefetch = 0 : i64, scratch_operands = 0 : i64, tpu.core_type = #tpu.core_type<tc>, window_params = [{transform_indices = @transform_0, window_bounds = array<i64: 1, 32, 1024>}, {transform_indices = @transform_1, window_bounds = array<i64: 1, 1024, 128>}, {transform_indices = @transform_2, window_bounds = array<i64: 1, 128>}, {transform_indices = @transform_3, window_bounds = array<i64: 1, 32, 128>}]} {
    %c0 = arith.constant 0 : index
    %c0_0 = arith.constant 0 : index
    %c0_1 = arith.constant 0 : index
    %0 = vector.load %arg3[%c0, %c0_0, %c0_1] : memref<1x32x1024xbf16, #tpu.memory_space<vmem>>, vector<1x32x1024xbf16>
    %1 = vector.shape_cast %0 : vector<1x32x1024xbf16> to vector<32x1024xbf16>
    %c0_2 = arith.constant 0 : index
    %c0_3 = arith.constant 0 : index
    %c0_4 = arith.constant 0 : index
    %2 = vector.load %arg4[%c0_2, %c0_3, %c0_4] : memref<1x1024x128xbf16, #tpu.memory_space<vmem>>, vector<1x1024x128xbf16>
    %3 = vector.shape_cast %2 : vector<1x1024x128xbf16> to vector<1024x128xbf16>
    %cst = arith.constant dense<0.000000e+00> : vector<32x128xf32>
    %4 = tpu.matmul %1, %3, %cst {dimension_numbers = #tpu.dot_dimension_numbers<[1], [0], [0], [1], [0, 0, 1, 1], [], []>} : vector<32x1024xbf16>, vector<1024x128xbf16>, vector<32x128xf32> -> vector<32x128xf32>
    %c0_5 = arith.constant 0 : index
    %c0_6 = arith.constant 0 : index
    %5 = vector.load %arg5[%c0_5, %c0_6] : memref<1x128xf32, #tpu.memory_space<vmem>>, vector<1x128xf32>
    %6 = vector.broadcast %5 : vector<1x128xf32> to vector<32x128xf32>
    %7 = arith.addf %4, %6 : vector<32x128xf32>
    %cst_7 = arith.constant 0.000000e+00 : f32
    %8 = vector.broadcast %cst_7 : f32 to vector<32x128xf32>
    %9 = arith.maximumf %7, %8 : vector<32x128xf32>
    %10 = arith.truncf %9 : vector<32x128xf32> to vector<32x128xbf16>
    %c0_8 = arith.constant 0 : index
    %c0_9 = arith.constant 0 : index
    %c0_10 = arith.constant 0 : index
    %11 = vector.load %arg6[%c0_8, %c0_9, %c0_10] : memref<1x32x128xbf16, #tpu.memory_space<vmem>>, vector<1x32x128xbf16>
    %12 = vector.shape_cast %11 : vector<1x32x128xbf16> to vector<32x128xbf16>
    %13 = vector.shape_cast %10 : vector<32x128xbf16> to vector<1x32x128xbf16>
    tpu.vector_store %arg6[%c0_8, %c0_9, %c0_10], %13 {strides = array<i32>} : memref<1x32x128xbf16, #tpu.memory_space<vmem>>, vector<1x32x128xbf16>,
    return
  }
  func.func @transform_0(%arg0: i32, %arg1: i32, %arg2: i32) -> (i32, i32, i32) {
    %c0_i32 = arith.constant 0 : i32
    %c0_i32_0 = arith.constant 0 : i32
    return %arg0, %arg1, %c0_i32 : i32, i32, i32
  }
  func.func @transform_1(%arg0: i32, %arg1: i32, %arg2: i32) -> (i32, i32, i32) {
    %c0_i32 = arith.constant 0 : i32
    %c0_i32_0 = arith.constant 0 : i32
    return %arg0, %c0_i32, %arg2 : i32, i32, i32
  }
  func.func @transform_2(%arg0: i32, %arg1: i32, %arg2: i32) -> (i32, i32) {
    %c0_i32 = arith.constant 0 : i32
    %c0_i32_0 = arith.constant 0 : i32
    return %c0_i32, %arg2 : i32, i32
  }
  func.func @transform_3(%arg0: i32, %arg1: i32, %arg2: i32) -> (i32, i32, i32) {
    %c0_i32 = arith.constant 0 : i32
    return %arg0, %arg1, %arg2 : i32, i32, i32
  }
}

module attributes {stable_mosaic.version = 11 : i64} {
  func.func @_gemm_bias_act_kernel(%arg0: i32, %arg1: i32, %arg2: i32, %arg3: memref<1x128x512xbf16, #tpu.memory_space<vmem>>, %arg4: memref<1x512x128xbf16, #tpu.memory_space<vmem>>, %arg5: memref<1x128xf32, #tpu.memory_space<vmem>>, %arg6: memref<1x128x128xbf16, #tpu.memory_space<vmem>>) attributes {dimension_semantics = [#tpu.dimension_semantics<parallel>, #tpu.dimension_semantics<parallel>, #tpu.dimension_semantics<parallel>], iteration_bounds = array<i64: 4, 1, 1>, scalar_prefetch = 0 : i64, scratch_operands = 0 : i64, tpu.core_type = #tpu.core_type<tc>, window_params = [{transform_indices = @transform_0, window_bounds = array<i64: 1, 128, 512>}, {transform_indices = @transform_1, window_bounds = array<i64: 1, 512, 128>}, {transform_indices = @transform_2, window_bounds = array<i64: 1, 128>}, {transform_indices = @transform_3, window_bounds = array<i64: 1, 128, 128>}]} {
    %c0 = arith.constant 0 : index
    %c0_0 = arith.constant 0 : index
    %c0_1 = arith.constant 0 : index
    %0 = vector.load %arg3[%c0, %c0_0, %c0_1] : memref<1x128x512xbf16, #tpu.memory_space<vmem>>, vector<1x128x512xbf16>
    %1 = vector.shape_cast %0 : vector<1x128x512xbf16> to vector<128x512xbf16>
    %c0_2 = arith.constant 0 : index
    %c0_3 = arith.constant 0 : index
    %c0_4 = arith.constant 0 : index
    %2 = vector.load %arg4[%c0_2, %c0_3, %c0_4] : memref<1x512x128xbf16, #tpu.memory_space<vmem>>, vector<1x512x128xbf16>
    %3 = vector.shape_cast %2 : vector<1x512x128xbf16> to vector<512x128xbf16>
    %cst = arith.constant dense<0.000000e+00> : vector<128x128xf32>
    %4 = tpu.matmul %1, %3, %cst {dimension_numbers = #tpu.dot_dimension_numbers<[1], [0], [0], [1], [0, 0, 1, 1], [], []>} : vector<128x512xbf16>, vector<512x128xbf16>, vector<128x128xf32> -> vector<128x128xf32>
    %c0_5 = arith.constant 0 : index
    %c0_6 = arith.constant 0 : index
    %5 = vector.load %arg5[%c0_5, %c0_6] : memref<1x128xf32, #tpu.memory_space<vmem>>, vector<1x128xf32>
    %6 = vector.broadcast %5 : vector<1x128xf32> to vector<128x128xf32>
    %7 = arith.addf %4, %6 : vector<128x128xf32>
    %cst_7 = arith.constant 0.000000e+00 : f32
    %8 = vector.broadcast %cst_7 : f32 to vector<128x128xf32>
    %9 = arith.maximumf %7, %8 : vector<128x128xf32>
    %10 = arith.truncf %9 : vector<128x128xf32> to vector<128x128xbf16>
    %c0_8 = arith.constant 0 : index
    %c0_9 = arith.constant 0 : index
    %c0_10 = arith.constant 0 : index
    %11 = vector.load %arg6[%c0_8, %c0_9, %c0_10] : memref<1x128x128xbf16, #tpu.memory_space<vmem>>, vector<1x128x128xbf16>
    %12 = vector.shape_cast %11 : vector<1x128x128xbf16> to vector<128x128xbf16>
    %13 = vector.shape_cast %10 : vector<128x128xbf16> to vector<1x128x128xbf16>
    tpu.vector_store %arg6[%c0_8, %c0_9, %c0_10], %13 {strides = array<i32>} : memref<1x128x128xbf16, #tpu.memory_space<vmem>>, vector<1x128x128xbf16>,
    return
  }
  func.func @transform_0(%arg0: i32, %arg1: i32, %arg2: i32) -> (i32, i32, i32) {
    %c0_i32 = arith.constant 0 : i32
    %c0_i32_0 = arith.constant 0 : i32
    return %arg0, %arg1, %c0_i32 : i32, i32, i32
  }
  func.func @transform_1(%arg0: i32, %arg1: i32, %arg2: i32) -> (i32, i32, i32) {
    %c0_i32 = arith.constant 0 : i32
    %c0_i32_0 = arith.constant 0 : i32
    return %arg0, %c0_i32, %arg2 : i32, i32, i32
  }
  func.func @transform_2(%arg0: i32, %arg1: i32, %arg2: i32) -> (i32, i32) {
    %c0_i32 = arith.constant 0 : i32
    %c0_i32_0 = arith.constant 0 : i32
    return %c0_i32, %arg2 : i32, i32
  }
  func.func @transform_3(%arg0: i32, %arg1: i32, %arg2: i32) -> (i32, i32, i32) {
    %c0_i32 = arith.constant 0 : i32
    return %arg0, %arg1, %arg2 : i32, i32, i32
  }
}

module attributes {stable_mosaic.version = 11 : i64} {
  func.func @_gemm_bias_act_kernel(%arg0: i32, %arg1: i32, %arg2: i32, %arg3: memref<1x512x256xbf16, #tpu.memory_space<vmem>>, %arg4: memref<1x256x128xbf16, #tpu.memory_space<vmem>>, %arg5: memref<1x128xf32, #tpu.memory_space<vmem>>, %arg6: memref<1x512x128xbf16, #tpu.memory_space<vmem>>) attributes {dimension_semantics = [#tpu.dimension_semantics<parallel>, #tpu.dimension_semantics<parallel>, #tpu.dimension_semantics<parallel>], iteration_bounds = array<i64: 4, 1, 1>, scalar_prefetch = 0 : i64, scratch_operands = 0 : i64, tpu.core_type = #tpu.core_type<tc>, window_params = [{transform_indices = @transform_0, window_bounds = array<i64: 1, 512, 256>}, {transform_indices = @transform_1, window_bounds = array<i64: 1, 256, 128>}, {transform_indices = @transform_2, window_bounds = array<i64: 1, 128>}, {transform_indices = @transform_3, window_bounds = array<i64: 1, 512, 128>}]} {
    %c0 = arith.constant 0 : index
    %c0_0 = arith.constant 0 : index
    %c0_1 = arith.constant 0 : index
    %0 = vector.load %arg3[%c0, %c0_0, %c0_1] : memref<1x512x256xbf16, #tpu.memory_space<vmem>>, vector<1x512x256xbf16>
    %1 = vector.shape_cast %0 : vector<1x512x256xbf16> to vector<512x256xbf16>
    %c0_2 = arith.constant 0 : index
    %c0_3 = arith.constant 0 : index
    %c0_4 = arith.constant 0 : index
    %2 = vector.load %arg4[%c0_2, %c0_3, %c0_4] : memref<1x256x128xbf16, #tpu.memory_space<vmem>>, vector<1x256x128xbf16>
    %3 = vector.shape_cast %2 : vector<1x256x128xbf16> to vector<256x128xbf16>
    %cst = arith.constant dense<0.000000e+00> : vector<512x128xf32>
    %4 = tpu.matmul %1, %3, %cst {dimension_numbers = #tpu.dot_dimension_numbers<[1], [0], [0], [1], [0, 0, 1, 1], [], []>} : vector<512x256xbf16>, vector<256x128xbf16>, vector<512x128xf32> -> vector<512x128xf32>
    %c0_5 = arith.constant 0 : index
    %c0_6 = arith.constant 0 : index
    %5 = vector.load %arg5[%c0_5, %c0_6] : memref<1x128xf32, #tpu.memory_space<vmem>>, vector<1x128xf32>
    %6 = vector.broadcast %5 : vector<1x128xf32> to vector<512x128xf32>
    %7 = arith.addf %4, %6 : vector<512x128xf32>
    %cst_7 = arith.constant 0.000000e+00 : f32
    %8 = vector.broadcast %cst_7 : f32 to vector<512x128xf32>
    %9 = arith.maximumf %7, %8 : vector<512x128xf32>
    %10 = arith.truncf %9 : vector<512x128xf32> to vector<512x128xbf16>
    %c0_8 = arith.constant 0 : index
    %c0_9 = arith.constant 0 : index
    %c0_10 = arith.constant 0 : index
    %11 = vector.load %arg6[%c0_8, %c0_9, %c0_10] : memref<1x512x128xbf16, #tpu.memory_space<vmem>>, vector<1x512x128xbf16>
    %12 = vector.shape_cast %11 : vector<1x512x128xbf16> to vector<512x128xbf16>
    %13 = vector.shape_cast %10 : vector<512x128xbf16> to vector<1x512x128xbf16>
    tpu.vector_store %arg6[%c0_8, %c0_9, %c0_10], %13 {strides = array<i32>} : memref<1x512x128xbf16, #tpu.memory_space<vmem>>, vector<1x512x128xbf16>,
    return
  }
  func.func @transform_0(%arg0: i32, %arg1: i32, %arg2: i32) -> (i32, i32, i32) {
    %c0_i32 = arith.constant 0 : i32
    %c0_i32_0 = arith.constant 0 : i32
    return %arg0, %arg1, %c0_i32 : i32, i32, i32
  }
  func.func @transform_1(%arg0: i32, %arg1: i32, %arg2: i32) -> (i32, i32, i32) {
    %c0_i32 = arith.constant 0 : i32
    %c0_i32_0 = arith.constant 0 : i32
    return %arg0, %c0_i32, %arg2 : i32, i32, i32
  }
  func.func @transform_2(%arg0: i32, %arg1: i32, %arg2: i32) -> (i32, i32) {
    %c0_i32 = arith.constant 0 : i32
    %c0_i32_0 = arith.constant 0 : i32
    return %c0_i32, %arg2 : i32, i32
  }
  func.func @transform_3(%arg0: i32, %arg1: i32, %arg2: i32) -> (i32, i32, i32) {
    %c0_i32 = arith.constant 0 : i32
    return %arg0, %arg1, %arg2 : i32, i32, i32
  }
}

module attributes {stable_mosaic.version = 11 : i64} {
  func.func @_gemm_bias_act_kernel(%arg0: i32, %arg1: i32, %arg2: i32, %arg3: memref<1x2048x128xbf16, #tpu.memory_space<vmem>>, %arg4: memref<1x128x128xbf16, #tpu.memory_space<vmem>>, %arg5: memref<1x128xf32, #tpu.memory_space<vmem>>, %arg6: memref<1x2048x128xbf16, #tpu.memory_space<vmem>>) attributes {dimension_semantics = [#tpu.dimension_semantics<parallel>, #tpu.dimension_semantics<parallel>, #tpu.dimension_semantics<parallel>], iteration_bounds = array<i64: 4, 1, 1>, scalar_prefetch = 0 : i64, scratch_operands = 0 : i64, tpu.core_type = #tpu.core_type<tc>, window_params = [{transform_indices = @transform_0, window_bounds = array<i64: 1, 2048, 128>}, {transform_indices = @transform_1, window_bounds = array<i64: 1, 128, 128>}, {transform_indices = @transform_2, window_bounds = array<i64: 1, 128>}, {transform_indices = @transform_3, window_bounds = array<i64: 1, 2048, 128>}]} {
    %c0 = arith.constant 0 : index
    %c0_0 = arith.constant 0 : index
    %c0_1 = arith.constant 0 : index
    %0 = vector.load %arg3[%c0, %c0_0, %c0_1] : memref<1x2048x128xbf16, #tpu.memory_space<vmem>>, vector<1x2048x128xbf16>
    %1 = vector.shape_cast %0 : vector<1x2048x128xbf16> to vector<2048x128xbf16>
    %c0_2 = arith.constant 0 : index
    %c0_3 = arith.constant 0 : index
    %c0_4 = arith.constant 0 : index
    %2 = vector.load %arg4[%c0_2, %c0_3, %c0_4] : memref<1x128x128xbf16, #tpu.memory_space<vmem>>, vector<1x128x128xbf16>
    %3 = vector.shape_cast %2 : vector<1x128x128xbf16> to vector<128x128xbf16>
    %cst = arith.constant dense<0.000000e+00> : vector<2048x128xf32>
    %4 = tpu.matmul %1, %3, %cst {dimension_numbers = #tpu.dot_dimension_numbers<[1], [0], [0], [1], [0, 0, 1, 1], [], []>} : vector<2048x128xbf16>, vector<128x128xbf16>, vector<2048x128xf32> -> vector<2048x128xf32>
    %c0_5 = arith.constant 0 : index
    %c0_6 = arith.constant 0 : index
    %5 = vector.load %arg5[%c0_5, %c0_6] : memref<1x128xf32, #tpu.memory_space<vmem>>, vector<1x128xf32>
    %6 = vector.broadcast %5 : vector<1x128xf32> to vector<2048x128xf32>
    %7 = arith.addf %4, %6 : vector<2048x128xf32>
    %8 = arith.negf %7 : vector<2048x128xf32>
    %9 = math.exp %8 : vector<2048x128xf32>
    %cst_7 = arith.constant 1.000000e+00 : f32
    %10 = vector.broadcast %cst_7 : f32 to vector<2048x128xf32>
    %11 = arith.addf %10, %9 : vector<2048x128xf32>
    %12 = arith.divf %10, %11 : vector<2048x128xf32>
    %13 = arith.truncf %12 : vector<2048x128xf32> to vector<2048x128xbf16>
    %c0_8 = arith.constant 0 : index
    %c0_9 = arith.constant 0 : index
    %c0_10 = arith.constant 0 : index
    %14 = vector.load %arg6[%c0_8, %c0_9, %c0_10] : memref<1x2048x128xbf16, #tpu.memory_space<vmem>>, vector<1x2048x128xbf16>
    %15 = vector.shape_cast %14 : vector<1x2048x128xbf16> to vector<2048x128xbf16>
    %16 = vector.shape_cast %13 : vector<2048x128xbf16> to vector<1x2048x128xbf16>
    tpu.vector_store %arg6[%c0_8, %c0_9, %c0_10], %16 {strides = array<i32>} : memref<1x2048x128xbf16, #tpu.memory_space<vmem>>, vector<1x2048x128xbf16>,
    return
  }
  func.func @transform_0(%arg0: i32, %arg1: i32, %arg2: i32) -> (i32, i32, i32) {
    %c0_i32 = arith.constant 0 : i32
    %c0_i32_0 = arith.constant 0 : i32
    return %arg0, %arg1, %c0_i32 : i32, i32, i32
  }
  func.func @transform_1(%arg0: i32, %arg1: i32, %arg2: i32) -> (i32, i32, i32) {
    %c0_i32 = arith.constant 0 : i32
    %c0_i32_0 = arith.constant 0 : i32
    return %arg0, %c0_i32, %arg2 : i32, i32, i32
  }
  func.func @transform_2(%arg0: i32, %arg1: i32, %arg2: i32) -> (i32, i32) {
    %c0_i32 = arith.constant 0 : i32
    %c0_i32_0 = arith.constant 0 : i32
    return %c0_i32, %arg2 : i32, i32
  }
  func.func @transform_3(%arg0: i32, %arg1: i32, %arg2: i32) -> (i32, i32, i32) {
    %c0_i32 = arith.constant 0 : i32
    return %arg0, %arg1, %arg2 : i32, i32, i32
  }
}

</mosaic_0001>

<bundles_post_ra>
// kernel: autoencoder_forward.8
= control target key start
LH: loop header
LB: loop body
LE: loop exit
PB: predicated region body
PF: predicated region fallthrough
CT: control target
= control target key end

     0   :  { %8 = vsyncpa [#allocation3], 0  ;;  %s7241_s0 = inlined_call_operand.vmem [shape: bf16[1,2048,16], index: 0, kind: input, shape index: {}]   ;;  %s7242_s1 = inlined_call_operand.hbm [shape: bf16[1,16,128], index: 1, kind: input, shape index: {}]   ;;  %s7243_s2 = inlined_call_operand.hbm [shape: f32[1,128], index: 2, kind: input, shape index: {}]   ;;  %s7244_s3 = inlined_call_operand.vmem [shape: bf16[1,2048,128], index: 3, kind: output, shape index: {}]  }
   0x1   :  { %9 = vsyncpa [#allocation5], 0  ;;  %s6045_s12 = smov [#allocation2]   ;;  %s5997_s16 = scalar_lea.hbm %s7242_s1, 128 }
   0x2   :  { %s17_s13 = sshll.u32 %s6045_s12, 4  ;;  %p5998_p0 = scmp.ne.s32.totalorder %s7242_s1, %s5997_s16  ;;  %s18_s13 = int_to_ptr.vmem [resolvable:$true] %s17_s13 }
   0x3   :  { %p6001_p1 = scmp.lt.u32.totalorder %s5997_s16, %s7242_s1 }
   0x5   :  { %p6003_p2 = pnand %p6001_p1, %p5998_p0 }
   0x7   :  { %6006 = shalt.err (!%p6003_p2)
}
   0x8   :  { %s6007_s21 = scalar_lea.vmem %s18_s13, 128  ;;  %p6012_p4 = scmp.lt.s32.totalorder %s18_s13, %s18_s13 }
   0x9   :  { %p6008_p3 = scmp.ne.s32.totalorder %s18_s13, %s6007_s21  ;;  %p6013_p5 = scmp.lt.s32.totalorder %s6007_s21, %s6007_s21 }
   0xb   :  { %p6014_p6 = por %p6013_p5, %p6012_p4 }
   0xd   :  { %p6015_p7 = pnand %p6014_p6, %p6008_p3 }
   0xf   :  { %6018 = shalt.err (!%p6015_p7)
}
  0x10   :  { %s6046_s22 = smov 64   ;;  %s6047_s23 = smov 4  }
  0x11   :  { %23 = dma.hbm_to_vmem [thread:$0]  %s7242_s1, 128, %s18_s13, [#allocation3], %s6046_s22, %s6046_s22, %s6047_s23  }
  0x12   :  { %s6048_s26 = smov [#allocation4]   ;;  %s6019_s30 = scalar_lea.hbm %s7243_s2, 16 }
  0x13   :  { %s30_s27 = sshll.u32 %s6048_s26, 4  ;;  %p6020_p8 = scmp.ne.s32.totalorder %s7243_s2, %s6019_s30  ;;  %s31_s27 = int_to_ptr.vmem [resolvable:$true] %s30_s27 }
  0x14   :  { %p6023_p9 = scmp.lt.u32.totalorder %s6019_s30, %s7243_s2 }
  0x16   :  { %p6025_p10 = pnand %p6023_p9, %p6020_p8 }
  0x18   :  { %6028 = shalt.err (!%p6025_p10)
}
  0x19   :  { %s6029_s8 = scalar_lea.vmem %s31_s27, 16  ;;  %s6033_s1 = scalar_lea.vmem %s31_s27, 32 }
  0x1a   :  { %p6030_p11 = scmp.ne.s32.totalorder %s31_s27, %s6029_s8  ;;  %p6034_p12 = scmp.lt.s32.totalorder %s31_s27, %s31_s27 }
  0x1b   :  { %p6035_p13 = scmp.lt.s32.totalorder %s6033_s1, %s6029_s8 }
  0x1d   :  { %p6036_p0 = por %p6035_p13, %p6034_p12 }
  0x1f   :  { %p6037_p1 = pnand %p6036_p0, %p6030_p11 }
  0x21   :  { %6040 = shalt.err (!%p6037_p1)
}
  0x22   :  { %33 = dma.hbm_to_vmem [thread:$0]  %s7243_s2, 16, %s31_s27, [#allocation5]  }
  0x23   :  { %6041 = dma.done.wait [#allocation3], 128  }
  0x24   :  { %6042 = vsyncadd [#allocation3], 4294967168 }
  0x25   :  { %6043 = dma.done.wait [#allocation5], 16  }
  0x26   :  { %6044 = vsyncadd [#allocation5], 4294967280  ;;  %v5866_v0 = vld [vmem:[#allocation2] sm:$0xff]   ;;  %vm952_vm0 = vcmask 130048   ;;  %v5869_v3 = vld [vmem:[%s7241_s0 + $0x8] sm:$0xff]  }
  0x27   :  { %v5867_v1 = vld [vmem:[%s7241_s0] sm:$0xff]   ;;  %5602 = vmatprep.subr.bf16.mxu0 %v5866_v0  ;;  %5860 = vmatprep.subr.bf16.mxu1 %v5866_v0  ;;  %v5870_v4 = vld [vmem:[%s7241_s0 + $0x208] sm:$0xff]   ;;  %v5871_v5 = vld [vmem:[%s7241_s0 + $0x10] sm:$0xff]  }
  0x28   :  { %v5868_v2 = vld [vmem:[%s7241_s0 + $0x200] sm:$0xff]   ;;  %5603 = vmatpush3.bf16.msra.mxu0 %v5866_v0  ;;  %5861 = vmatpush3.bf16.msra.mxu1 %v5866_v0  ;;  %v5872_v6 = vld [vmem:[%s7241_s0 + $0x210] sm:$0xff]   ;;  %v5873_v7 = vld [vmem:[%s7241_s0 + $0x18] sm:$0xff]  }
  0x29   :  { %5604 = vmatprep.mubr.msk.bf16.mxu0 %vm952_vm0, %v5867_v1  ;;  %5732 = vmatprep.mubr.msk.bf16.mxu1 %vm952_vm0, %v5868_v2  ;;  %v5874_v8 = vld [vmem:[%s7241_s0 + $0x218] sm:$0xff]   ;;  %v5875_v9 = vld [vmem:[%s7241_s0 + $0x20] sm:$0xff]   ;;  %v5877_v11 = vld [vmem:[%s7241_s0 + $0x28] sm:$0xff]  }
  0x2a   :  { %v5876_v10 = vld [vmem:[%s7241_s0 + $0x220] sm:$0xff]   ;;  %v5878_v12 = vld [vmem:[%s7241_s0 + $0x228] sm:$0xff]   ;;  %v5879_v13 = vld [vmem:[%s7241_s0 + $0x30] sm:$0xff]  }
  0x2b   :  { %5605 = vmatmul.mubr.msk.bf16.vlgmr.msra.gmra.mrb[0].mxu0 %vm952_vm0, %v5869_v3  ;;  %5733 = vmatmul.mubr.msk.bf16.vlgmr.msra.gmra.mrb[0].mxu1 %vm952_vm0, %v5870_v4  ;;  %v5880_v14 = vld [vmem:[%s7241_s0 + $0x230] sm:$0xff]   ;;  %v5881_v15 = vld [vmem:[%s7241_s0 + $0x38] sm:$0xff]   ;;  %v5883_v17 = vld [vmem:[%s7241_s0 + $0x40] sm:$0xff]  }
  0x2c   :  { %5608 = vmatprep.mubr.msk.bf16.mxu0 %vm952_vm0, %v5871_v5  ;;  %5736 = vmatprep.mubr.msk.bf16.mxu1 %vm952_vm0, %v5872_v6  ;;  %v5882_v16 = vld [vmem:[%s7241_s0 + $0x238] sm:$0xff]   ;;  %v5884_v18 = vld [vmem:[%s7241_s0 + $0x240] sm:$0xff]   ;;  %v5885_v19 = vld [vmem:[%s7241_s0 + $0x48] sm:$0xff]  }
  0x2d   :  { %v5886_v20 = vld [vmem:[%s7241_s0 + $0x248] sm:$0xff]   ;;  %v5887_v21 = vld [vmem:[%s7241_s0 + $0x50] sm:$0xff]   ;;  %v5889_v23 = vld [vmem:[%s7241_s0 + $0x58] sm:$0xff]  }
  0x2e   :  { %v5888_v22 = vld [vmem:[%s7241_s0 + $0x250] sm:$0xff]   ;;  %v5890_v24 = vld [vmem:[%s7241_s0 + $0x258] sm:$0xff]   ;;  %v5891_v25 = vld [vmem:[%s7241_s0 + $0x60] sm:$0xff]  }
  0x2f   :  { %v5892_v26 = vld [vmem:[%s7241_s0 + $0x260] sm:$0xff]   ;;  %v5893_v27 = vld [vmem:[%s7241_s0 + $0x68] sm:$0xff]   ;;  %v5895_v29 = vld [vmem:[%s7241_s0 + $0x70] sm:$0xff]  }
  0x30   :  { %v5894_v28 = vld [vmem:[%s7241_s0 + $0x268] sm:$0xff]   ;;  %v5896_v30 = vld [vmem:[%s7241_s0 + $0x270] sm:$0xff]   ;;  %v5897_v31 = vld [vmem:[%s7241_s0 + $0x78] sm:$0xff]  }
  0x31   :  { %v5898_v32 = vld [vmem:[%s7241_s0 + $0x278] sm:$0xff]   ;;  %v5899_v33 = vld [vmem:[%s7241_s0 + $0x80] sm:$0xff]   ;;  %v5901_v35 = vld [vmem:[%s7241_s0 + $0x88] sm:$0xff]  }
  0x32   :  { %v5900_v34 = vld [vmem:[%s7241_s0 + $0x280] sm:$0xff]   ;;  %v5902_v36 = vld [vmem:[%s7241_s0 + $0x288] sm:$0xff]   ;;  %v5903_v37 = vld [vmem:[%s7241_s0 + $0x90] sm:$0xff]  }
  0x33   :  { %5609 = vmatmul.mubr.msk.bf16.gmra.mrb[4].mxu0 %vm952_vm0, %v5873_v7  ;;  %5737 = vmatmul.mubr.msk.bf16.gmra.mrb[4].mxu1 %vm952_vm0, %v5874_v8  ;;  %v5904_v38 = vld [vmem:[%s7241_s0 + $0x290] sm:$0xff]   ;;  %v5905_v39 = vld [vmem:[%s7241_s0 + $0x98] sm:$0xff]   ;;  %v5907_v41 = vld [vmem:[%s7241_s0 + $0xa0] sm:$0xff]  }
  0x34   :  { %5612 = vmatprep.mubr.msk.bf16.mxu0 %vm952_vm0, %v5875_v9  ;;  %5740 = vmatprep.mubr.msk.bf16.mxu1 %vm952_vm0, %v5876_v10  ;;  %v5906_v40 = vld [vmem:[%s7241_s0 + $0x298] sm:$0xff]   ;;  %v5908_v42 = vld [vmem:[%s7241_s0 + $0x2a0] sm:$0xff]   ;;  %v5909_v43 = vld [vmem:[%s7241_s0 + $0xa8] sm:$0xff]  }
  0x35   :  { %v5910_v44 = vld [vmem:[%s7241_s0 + $0x2a8] sm:$0xff]   ;;  %v5911_v45 = vld [vmem:[%s7241_s0 + $0xb0] sm:$0xff]   ;;  %v5913_v47 = vld [vmem:[%s7241_s0 + $0xb8] sm:$0xff]  }
  0x36   :  { %v5912_v46 = vld [vmem:[%s7241_s0 + $0x2b0] sm:$0xff]   ;;  %v5914_v48 = vld [vmem:[%s7241_s0 + $0x2b8] sm:$0xff]   ;;  %v5915_v49 = vld [vmem:[%s7241_s0 + $0xc0] sm:$0xff]  }
  0x37   :  { %v5916_v50 = vld [vmem:[%s7241_s0 + $0x2c0] sm:$0xff]   ;;  %v5917_v51 = vld [vmem:[%s7241_s0 + $0xc8] sm:$0xff]   ;;  %v5919_v53 = vld [vmem:[%s7241_s0 + $0xd0] sm:$0xff]  }
  0x38   :  { %v5918_v52 = vld [vmem:[%s7241_s0 + $0x2c8] sm:$0xff]   ;;  %v5920_v54 = vld [vmem:[%s7241_s0 + $0x2d0] sm:$0xff]   ;;  %v5921_v55 = vld [vmem:[%s7241_s0 + $0xd8] sm:$0xff]  }
  0x39   :  { %v5922_v56 = vld [vmem:[%s7241_s0 + $0x2d8] sm:$0xff]   ;;  %v5923_v57 = vld [vmem:[%s7241_s0 + $0xe0] sm:$0xff]   ;;  %v5925_v59 = vld [vmem:[%s7241_s0 + $0xe8] sm:$0xff]  }
  0x3a   :  { %v5924_v58 = vld [vmem:[%s7241_s0 + $0x2e0] sm:$0xff]   ;;  %v5926_v60 = vld [vmem:[%s7241_s0 + $0x2e8] sm:$0xff]   ;;  %v5927_v61 = vld [vmem:[%s7241_s0 + $0xf0] sm:$0xff]  }
  0x3b   :  { %5613 = vmatmul.mubr.msk.bf16.gmra.mrb[8].mxu0 %vm952_vm0, %v5877_v11  ;;  %5741 = vmatmul.mubr.msk.bf16.gmra.mrb[8].mxu1 %vm952_vm0, %v5878_v12  ;;  %v5928_v62 = vld [vmem:[%s7241_s0 + $0x2f0] sm:$0xff]   ;;  %v5929_v63 = vld [vmem:[%s7241_s0 + $0xf8] sm:$0xff]   ;;  %v5931_v1 = vld [vmem:[%s7241_s0 + $0x100] sm:$0xff]  }
  0x3c   :  { %5616 = vmatprep.mubr.msk.bf16.mxu0 %vm952_vm0, %v5879_v13  ;;  %5744 = vmatprep.mubr.msk.bf16.mxu1 %vm952_vm0, %v5880_v14  ;;  %v5930_v0 = vld [vmem:[%s7241_s0 + $0x2f8] sm:$0xff]   ;;  %v5932_v2 = vld [vmem:[%s7241_s0 + $0x300] sm:$0xff]   ;;  %v5933_v3 = vld [vmem:[%s7241_s0 + $0x108] sm:$0xff]  }
  0x3d   :  { %v5934_v4 = vld [vmem:[%s7241_s0 + $0x308] sm:$0xff]   ;;  %v5935_v5 = vld [vmem:[%s7241_s0 + $0x110] sm:$0xff]   ;;  %v5937_v7 = vld [vmem:[%s7241_s0 + $0x118] sm:$0xff]  }
  0x3e   :  { %v5936_v6 = vld [vmem:[%s7241_s0 + $0x310] sm:$0xff]   ;;  %v5938_v8 = vld [vmem:[%s7241_s0 + $0x318] sm:$0xff]   ;;  %v5939_v9 = vld [vmem:[%s7241_s0 + $0x120] sm:$0xff]  }
  0x3f   :  { %v5940_v10 = vld [vmem:[%s7241_s0 + $0x320] sm:$0xff]   ;;  %v5941_v11 = vld [vmem:[%s7241_s0 + $0x128] sm:$0xff]   ;;  %v5943_v13 = vld [vmem:[%s7241_s0 + $0x130] sm:$0xff]  }
  0x40   :  { %v5942_v12 = vld [vmem:[%s7241_s0 + $0x328] sm:$0xff]   ;;  %v5944_v14 = vld [vmem:[%s7241_s0 + $0x330] sm:$0xff]  }
  0x43   :  { %5617 = vmatmul.mubr.msk.bf16.gmra.mrb[12].mxu0 %vm952_vm0, %v5881_v15  ;;  %5745 = vmatmul.mubr.msk.bf16.gmra.mrb[12].mxu1 %vm952_vm0, %v5882_v16  ;;  %v5945_v15 = vld [vmem:[%s7241_s0 + $0x138] sm:$0xff]  }
  0x44   :  { %5620 = vmatprep.mubr.msk.bf16.mxu0 %vm952_vm0, %v5883_v17  ;;  %5748 = vmatprep.mubr.msk.bf16.mxu1 %vm952_vm0, %v5884_v18  ;;  %v5946_v16 = vld [vmem:[%s7241_s0 + $0x338] sm:$0xff]   ;;  %v5947_v17 = vld [vmem:[%s7241_s0 + $0x140] sm:$0xff]  }
  0x45   :  { %v5948_v18 = vld [vmem:[%s7241_s0 + $0x340] sm:$0xff]  }
  0x4b   :  { %5621 = vmatmul.mubr.msk.bf16.gmra.mrb[16].mxu0 %vm952_vm0, %v5885_v19  ;;  %5749 = vmatmul.mubr.msk.bf16.gmra.mrb[16].mxu1 %vm952_vm0, %v5886_v20  ;;  %v5949_v19 = vld [vmem:[%s7241_s0 + $0x148] sm:$0xff]  }
  0x4c   :  { %5624 = vmatprep.mubr.msk.bf16.mxu0 %vm952_vm0, %v5887_v21  ;;  %5752 = vmatprep.mubr.msk.bf16.mxu1 %vm952_vm0, %v5888_v22  ;;  %v5950_v20 = vld [vmem:[%s7241_s0 + $0x348] sm:$0xff]   ;;  %v5951_v21 = vld [vmem:[%s7241_s0 + $0x150] sm:$0xff]  }
  0x4d   :  { %v5952_v22 = vld [vmem:[%s7241_s0 + $0x350] sm:$0xff]  }
  0x53   :  { %5625 = vmatmul.mubr.msk.bf16.gmra.mrb[20].mxu0 %vm952_vm0, %v5889_v23  ;;  %5753 = vmatmul.mubr.msk.bf16.gmra.mrb[20].mxu1 %vm952_vm0, %v5890_v24  ;;  %v5953_v23 = vld [vmem:[%s7241_s0 + $0x158] sm:$0xff]  }
  0x54   :  { %5628 = vmatprep.mubr.msk.bf16.mxu0 %vm952_vm0, %v5891_v25  ;;  %5756 = vmatprep.mubr.msk.bf16.mxu1 %vm952_vm0, %v5892_v26  ;;  %v5954_v24 = vld [vmem:[%s7241_s0 + $0x358] sm:$0xff]   ;;  %v5955_v25 = vld [vmem:[%s7241_s0 + $0x160] sm:$0xff]  }
  0x55   :  { %v5956_v26 = vld [vmem:[%s7241_s0 + $0x360] sm:$0xff]  }
  0x5b   :  { %5629 = vmatmul.mubr.msk.bf16.gmra.mrb[24].mxu0 %vm952_vm0, %v5893_v27  ;;  %5757 = vmatmul.mubr.msk.bf16.gmra.mrb[24].mxu1 %vm952_vm0, %v5894_v28  ;;  %v5957_v27 = vld [vmem:[%s7241_s0 + $0x168] sm:$0xff]  }
  0x5c   :  { %5632 = vmatprep.mubr.msk.bf16.mxu0 %vm952_vm0, %v5895_v29  ;;  %5760 = vmatprep.mubr.msk.bf16.mxu1 %vm952_vm0, %v5896_v30  ;;  %v5958_v28 = vld [vmem:[%s7241_s0 + $0x368] sm:$0xff]   ;;  %v5959_v29 = vld [vmem:[%s7241_s0 + $0x170] sm:$0xff]  }
  0x5d   :  { %v5960_v30 = vld [vmem:[%s7241_s0 + $0x370] sm:$0xff]  }
  0x63   :  { %5633 = vmatmul.mubr.msk.bf16.gmra.mrb[28].mxu0 %vm952_vm0, %v5897_v31  ;;  %5761 = vmatmul.mubr.msk.bf16.gmra.mrb[28].mxu1 %vm952_vm0, %v5898_v32  ;;  %v5961_v31 = vld [vmem:[%s7241_s0 + $0x178] sm:$0xff]  }
  0x64   :  { %5636 = vmatprep.mubr.msk.bf16.mxu0 %vm952_vm0, %v5899_v33  ;;  %5764 = vmatprep.mubr.msk.bf16.mxu1 %vm952_vm0, %v5900_v34  ;;  %v5962_v32 = vld [vmem:[%s7241_s0 + $0x378] sm:$0xff]   ;;  %v5963_v33 = vld [vmem:[%s7241_s0 + $0x180] sm:$0xff]  }
  0x65   :  { %v5964_v34 = vld [vmem:[%s7241_s0 + $0x380] sm:$0xff]  }
  0x6b   :  { %5637 = vmatmul.mubr.msk.bf16.gmra.mrb[32].mxu0 %vm952_vm0, %v5901_v35  ;;  %5765 = vmatmul.mubr.msk.bf16.gmra.mrb[32].mxu1 %vm952_vm0, %v5902_v36  ;;  %v5965_v35 = vld [vmem:[%s7241_s0 + $0x188] sm:$0xff]  }
  0x6c   :  { %5640 = vmatprep.mubr.msk.bf16.mxu0 %vm952_vm0, %v5903_v37  ;;  %5768 = vmatprep.mubr.msk.bf16.mxu1 %vm952_vm0, %v5904_v38  ;;  %v5966_v36 = vld [vmem:[%s7241_s0 + $0x388] sm:$0xff]   ;;  %v5967_v37 = vld [vmem:[%s7241_s0 + $0x190] sm:$0xff]  }
  0x6d   :  { %v5968_v38 = vld [vmem:[%s7241_s0 + $0x390] sm:$0xff]  }
  0x73   :  { %5641 = vmatmul.mubr.msk.bf16.gmra.mrb[36].mxu0 %vm952_vm0, %v5905_v39  ;;  %5769 = vmatmul.mubr.msk.bf16.gmra.mrb[36].mxu1 %vm952_vm0, %v5906_v40  ;;  %v5969_v39 = vld [vmem:[%s7241_s0 + $0x198] sm:$0xff]  }
  0x74   :  { %5644 = vmatprep.mubr.msk.bf16.mxu0 %vm952_vm0, %v5907_v41  ;;  %5772 = vmatprep.mubr.msk.bf16.mxu1 %vm952_vm0, %v5908_v42  ;;  %v5970_v40 = vld [vmem:[%s7241_s0 + $0x398] sm:$0xff]   ;;  %v5971_v41 = vld [vmem:[%s7241_s0 + $0x1a0] sm:$0xff]  }
  0x75   :  { %v5972_v42 = vld [vmem:[%s7241_s0 + $0x3a0] sm:$0xff]  }
  0x7b   :  { %5645 = vmatmul.mubr.msk.bf16.gmra.mrb[40].mxu0 %vm952_vm0, %v5909_v43  ;;  %5773 = vmatmul.mubr.msk.bf16.gmra.mrb[40].mxu1 %vm952_vm0, %v5910_v44  ;;  %v5973_v43 = vld [vmem:[%s7241_s0 + $0x1a8] sm:$0xff]  }
  0x7c   :  { %5648 = vmatprep.mubr.msk.bf16.mxu0 %vm952_vm0, %v5911_v45  ;;  %5776 = vmatprep.mubr.msk.bf16.mxu1 %vm952_vm0, %v5912_v46  ;;  %v5974_v44 = vld [vmem:[%s7241_s0 + $0x3a8] sm:$0xff]   ;;  %v5975_v45 = vld [vmem:[%s7241_s0 + $0x1b0] sm:$0xff]  }
  0x7d   :  { %v5976_v46 = vld [vmem:[%s7241_s0 + $0x3b0] sm:$0xff]  }
  0x83   :  { %5649 = vmatmul.mubr.msk.bf16.gmra.mrb[44].mxu0 %vm952_vm0, %v5913_v47  ;;  %5777 = vmatmul.mubr.msk.bf16.gmra.mrb[44].mxu1 %vm952_vm0, %v5914_v48  ;;  %v6531_v47 = vld [vmem:[#allocation4] ss:$0 sm:$0xff] }
  0x84   :  { %5652 = vmatprep.mubr.msk.bf16.mxu0 %vm952_vm0, %v5915_v49  ;;  %5780 = vmatprep.mubr.msk.bf16.mxu1 %vm952_vm0, %v5916_v50 }
  0x8b   :  { %5653 = vmatmul.mubr.msk.bf16.gmra.mrb[48].mxu0 %vm952_vm0, %v5917_v51  ;;  %5781 = vmatmul.mubr.msk.bf16.gmra.mrb[48].mxu1 %vm952_vm0, %v5918_v52 }
  0x8c   :  { %5656 = vmatprep.mubr.msk.bf16.mxu0 %vm952_vm0, %v5919_v53  ;;  %5784 = vmatprep.mubr.msk.bf16.mxu1 %vm952_vm0, %v5920_v54  ;;  %v5977_v54 = vld [vmem:[%s7241_s0 + $0x1b8] sm:$0xff]  }
  0x93   :  { %5657 = vmatmul.mubr.msk.bf16.gmra.mrb[52].mxu0 %vm952_vm0, %v5921_v55  ;;  %5785 = vmatmul.mubr.msk.bf16.gmra.mrb[52].mxu1 %vm952_vm0, %v5922_v56  ;;  %v5978_v55 = vld [vmem:[%s7241_s0 + $0x3b8] sm:$0xff]  }
  0x94   :  { %5660 = vmatprep.mubr.msk.bf16.mxu0 %vm952_vm0, %v5923_v57  ;;  %5788 = vmatprep.mubr.msk.bf16.mxu1 %vm952_vm0, %v5924_v58 }
  0x9b   :  { %5661 = vmatmul.mubr.msk.bf16.gmra.mrb[56].mxu0 %vm952_vm0, %v5925_v59  ;;  %5789 = vmatmul.mubr.msk.bf16.gmra.mrb[56].mxu1 %vm952_vm0, %v5926_v60  ;;  %v5979_v60 = vld [vmem:[%s7241_s0 + $0x1c0] sm:$0xff]  }
  0x9c   :  { %5664 = vmatprep.mubr.msk.bf16.mxu0 %vm952_vm0, %v5927_v61  ;;  %5792 = vmatprep.mubr.msk.bf16.mxu1 %vm952_vm0, %v5928_v62  ;;  %v5980_v61 = vld [vmem:[%s7241_s0 + $0x3c0] sm:$0xff]  }
  0xa3   :  { %5665 = vmatmul.mubr.msk.bf16.gmra.mrb[60].mxu0 %vm952_vm0, %v5929_v63  ;;  %5793 = vmatmul.mubr.msk.bf16.gmra.mrb[60].mxu1 %vm952_vm0, %v5930_v0 }
  0xa4   :  { %5668 = vmatprep.mubr.msk.bf16.mxu0 %vm952_vm0, %v5931_v1  ;;  %5796 = vmatprep.mubr.msk.bf16.mxu1 %vm952_vm0, %v5932_v2 }
  0xab   :  { %5669 = vmatmul.mubr.msk.bf16.gmra.mrb[64].mxu0 %vm952_vm0, %v5933_v3  ;;  %5797 = vmatmul.mubr.msk.bf16.gmra.mrb[64].mxu1 %vm952_vm0, %v5934_v4 }
  0xac   :  { %5672 = vmatprep.mubr.msk.bf16.mxu0 %vm952_vm0, %v5935_v5  ;;  %5800 = vmatprep.mubr.msk.bf16.mxu1 %vm952_vm0, %v5936_v6 }
  0xb3   :  { %5673 = vmatmul.mubr.msk.bf16.gmra.mrb[68].mxu0 %vm952_vm0, %v5937_v7  ;;  %5801 = vmatmul.mubr.msk.bf16.gmra.mrb[68].mxu1 %vm952_vm0, %v5938_v8 }
  0xb4   :  { %5676 = vmatprep.mubr.msk.bf16.mxu0 %vm952_vm0, %v5939_v9  ;;  %5804 = vmatprep.mubr.msk.bf16.mxu1 %vm952_vm0, %v5940_v10 }
  0xbb   :  { %5677 = vmatmul.mubr.msk.bf16.gmra.mrb[72].mxu0 %vm952_vm0, %v5941_v11  ;;  %5805 = vmatmul.mubr.msk.bf16.gmra.mrb[72].mxu1 %vm952_vm0, %v5942_v12 }
  0xbc   :  { %5680 = vmatprep.mubr.msk.bf16.mxu0 %vm952_vm0, %v5943_v13  ;;  %5808 = vmatprep.mubr.msk.bf16.mxu1 %vm952_vm0, %v5944_v14 }
  0xc3   :  { %5681 = vmatmul.mubr.msk.bf16.gmra.mrb[76].mxu0 %vm952_vm0, %v5945_v15  ;;  %5809 = vmatmul.mubr.msk.bf16.gmra.mrb[76].mxu1 %vm952_vm0, %v5946_v16 }
  0xc4   :  { %5684 = vmatprep.mubr.msk.bf16.mxu0 %vm952_vm0, %v5947_v17  ;;  %5812 = vmatprep.mubr.msk.bf16.mxu1 %vm952_vm0, %v5948_v18 }
  0xcb   :  { %5685 = vmatmul.mubr.msk.bf16.gmra.mrb[80].mxu0 %vm952_vm0, %v5949_v19  ;;  %5813 = vmatmul.mubr.msk.bf16.gmra.mrb[80].mxu1 %vm952_vm0, %v5950_v20 }
  0xcc   :  { %5688 = vmatprep.mubr.msk.bf16.mxu0 %vm952_vm0, %v5951_v21  ;;  %5816 = vmatprep.mubr.msk.bf16.mxu1 %vm952_vm0, %v5952_v22  ;;  %v5981_v22 = vld [vmem:[%s7241_s0 + $0x1c8] sm:$0xff]  }
  0xd3   :  { %5689 = vmatmul.mubr.msk.bf16.gmra.mrb[84].mxu0 %vm952_vm0, %v5953_v23  ;;  %5817 = vmatmul.mubr.msk.bf16.gmra.mrb[84].mxu1 %vm952_vm0, %v5954_v24  ;;  %v5982_v23 = vld [vmem:[%s7241_s0 + $0x3c8] sm:$0xff]  }
  0xd4   :  { %5692 = vmatprep.mubr.msk.bf16.mxu0 %vm952_vm0, %v5955_v25  ;;  %5820 = vmatprep.mubr.msk.bf16.mxu1 %vm952_vm0, %v5956_v26 }
  0xdb   :  { %5693 = vmatmul.mubr.msk.bf16.gmra.mrb[88].mxu0 %vm952_vm0, %v5957_v27  ;;  %5821 = vmatmul.mubr.msk.bf16.gmra.mrb[88].mxu1 %vm952_vm0, %v5958_v28  ;;  %v5983_v28 = vld [vmem:[%s7241_s0 + $0x1d0] sm:$0xff]  }
  0xdc   :  { %5696 = vmatprep.mubr.msk.bf16.mxu0 %vm952_vm0, %v5959_v29  ;;  %5824 = vmatprep.mubr.msk.bf16.mxu1 %vm952_vm0, %v5960_v30  ;;  %v5984_v29 = vld [vmem:[%s7241_s0 + $0x3d0] sm:$0xff]  }
  0xe3   :  { %5697 = vmatmul.mubr.msk.bf16.gmra.mrb[92].mxu0 %vm952_vm0, %v5961_v31  ;;  %5825 = vmatmul.mubr.msk.bf16.gmra.mrb[92].mxu1 %vm952_vm0, %v5962_v32 }
  0xe4   :  { %5700 = vmatprep.mubr.msk.bf16.mxu0 %vm952_vm0, %v5963_v33  ;;  %5828 = vmatprep.mubr.msk.bf16.mxu1 %vm952_vm0, %v5964_v34 }
  0xeb   :  { %5701 = vmatmul.mubr.msk.bf16.gmra.mrb[96].mxu0 %vm952_vm0, %v5965_v35  ;;  %5829 = vmatmul.mubr.msk.bf16.gmra.mrb[96].mxu1 %vm952_vm0, %v5966_v36 }
  0xec   :  { %5704 = vmatprep.mubr.msk.bf16.mxu0 %vm952_vm0, %v5967_v37  ;;  %5832 = vmatprep.mubr.msk.bf16.mxu1 %vm952_vm0, %v5968_v38 }
  0xf3   :  { %5705 = vmatmul.mubr.msk.bf16.gmra.mrb[100].mxu0 %vm952_vm0, %v5969_v39  ;;  %5833 = vmatmul.mubr.msk.bf16.gmra.mrb[100].mxu1 %vm952_vm0, %v5970_v40 }
  0xf4   :  { %5708 = vmatprep.mubr.msk.bf16.mxu0 %vm952_vm0, %v5971_v41  ;;  %5836 = vmatprep.mubr.msk.bf16.mxu1 %vm952_vm0, %v5972_v42 }
  0xfb   :  { %5709 = vmatmul.mubr.msk.bf16.gmra.mrb[104].mxu0 %vm952_vm0, %v5973_v43  ;;  %5837 = vmatmul.mubr.msk.bf16.gmra.mrb[104].mxu1 %vm952_vm0, %v5974_v44 }
  0xfc   :  { %5712 = vmatprep.mubr.msk.bf16.mxu0 %vm952_vm0, %v5975_v45  ;;  %5840 = vmatprep.mubr.msk.bf16.mxu1 %vm952_vm0, %v5976_v46 }
  0xfe   :  { %v5606_v48 = vpop.f32.mrb[0].mxu0  ;;  %v5734_v49 = vpop.f32.mrb[0].mxu1 }
  0xff   :  { %v1380_v50 = vadd.f32 %v5606_v48, %v6531_v47  ;;  %v1892_v51 = vadd.f32 %v5734_v49, %v6531_v47  ;;  %v1371_v52 = vpop.f32.mrb[1].mxu0  ;;  %v1883_v53 = vpop.f32.mrb[1].mxu1 }
 0x100   :  { %v1372_v56 = vadd.f32 %v6531_v47, %v1371_v52  ;;  %v1884_v57 = vadd.f32 %v6531_v47, %v1883_v53  ;;  %v5607_v58 = vpop.f32.mrb[2].mxu0  ;;  %v5735_v59 = vpop.f32.mrb[2].mxu1 }
 0x101   :  { %v1383_v62 = vadd.f32 %v5607_v58, %v6531_v47  ;;  %v1895_v63 = vadd.f32 %v5735_v59, %v6531_v47  ;;  %v1374_v0 = vpop.f32.mrb[3].mxu0  ;;  %v1886_v1 = vpop.f32.mrb[3].mxu1  ;;  %v2396_v4 = vmax.f32 %v1380_v50, 0.0  ;;  %v2524_v5 = vmax.f32 %v1892_v51, 0.0 }
 0x102   :  { %v1375_v2 = vadd.f32 %v6531_v47, %v1374_v0  ;;  %v1887_v3 = vadd.f32 %v6531_v47, %v1886_v1  ;;  %v2394_v8 = vmax.f32 %v1372_v56, 0.0  ;;  %v2522_v9 = vmax.f32 %v1884_v57, 0.0  ;;  %v5986_v56 = vld [vmem:[%s7241_s0 + $0x3d8] sm:$0xff]  }
 0x103   :  { %v2397_v6 = vmax.f32 %v1383_v62, 0.0  ;;  %v2525_v7 = vmax.f32 %v1895_v63, 0.0  ;;  %5713 = vmatmul.mubr.msk.bf16.gmra.mrb[108].mxu0 %vm952_vm0, %v5977_v54  ;;  %5841 = vmatmul.mubr.msk.bf16.gmra.mrb[108].mxu1 %vm952_vm0, %v5978_v55  ;;  %v5985_v55 = vld [vmem:[%s7241_s0 + $0x1d8] sm:$0xff]   ;;  %v5988_v62 = vld [vmem:[%s7241_s0 + $0x3e0] sm:$0xff]  }
 0x104   :  { %v2395_v10 = vmax.f32 %v1375_v2, 0.0  ;;  %v2523_v11 = vmax.f32 %v1887_v3, 0.0  ;;  %5716 = vmatprep.mubr.msk.bf16.mxu0 %vm952_vm0, %v5979_v60  ;;  %5844 = vmatprep.mubr.msk.bf16.mxu1 %vm952_vm0, %v5980_v61  ;;  %v5987_v61 = vld [vmem:[%s7241_s0 + $0x1e0] sm:$0xff]  }
 0x105   :  { %v4714_v12 = vpack.c.bf16 %v2397_v6, %v2396_v4  ;;  %v5034_v13 = vpack.c.bf16 %v2525_v7, %v2524_v5 }
 0x106   :  { %v4709_v14 = vpack.c.bf16 %v2395_v10, %v2394_v8  ;;  %v5029_v15 = vpack.c.bf16 %v2523_v11, %v2522_v9  ;;  %v5610_v16 = vpop.f32.mrb[4].mxu0  ;;  %v5738_v17 = vpop.f32.mrb[4].mxu1 }
 0x107   :  { %5346 = vst [vmem:[%s7244_s3 + $0x8] sm:$0xff] %v4714_v12   ;;  %5410 = vst [vmem:[%s7244_s3 + $0x208] sm:$0xff] %v5034_v13   ;;  %v1396_v18 = vadd.f32 %v5610_v16, %v6531_v47  ;;  %v1908_v19 = vadd.f32 %v5738_v17, %v6531_v47  ;;  %v1387_v20 = vpop.f32.mrb[5].mxu0  ;;  %v1899_v21 = vpop.f32.mrb[5].mxu1 }
 0x108   :  { %4710 = vst [vmem:[%s7244_s3] sm:$0xff] %v4709_v14   ;;  %5409 = vst [vmem:[%s7244_s3 + $0x200] sm:$0xff] %v5029_v15   ;;  %v1388_v24 = vadd.f32 %v6531_v47, %v1387_v20  ;;  %v1900_v25 = vadd.f32 %v6531_v47, %v1899_v21  ;;  %v5611_v26 = vpop.f32.mrb[6].mxu0  ;;  %v5739_v27 = vpop.f32.mrb[6].mxu1 }
 0x109   :  { %v1399_v30 = vadd.f32 %v5611_v26, %v6531_v47  ;;  %v1911_v31 = vadd.f32 %v5739_v27, %v6531_v47  ;;  %v1390_v32 = vpop.f32.mrb[7].mxu0  ;;  %v1902_v33 = vpop.f32.mrb[7].mxu1  ;;  %v2400_v36 = vmax.f32 %v1396_v18, 0.0  ;;  %v2528_v37 = vmax.f32 %v1908_v19, 0.0 }
 0x10a   :  { %v1391_v34 = vadd.f32 %v6531_v47, %v1390_v32  ;;  %v1903_v35 = vadd.f32 %v6531_v47, %v1902_v33  ;;  %v2398_v40 = vmax.f32 %v1388_v24, 0.0  ;;  %v2526_v41 = vmax.f32 %v1900_v25, 0.0  ;;  %v5990_v24 = vld [vmem:[%s7241_s0 + $0x3e8] sm:$0xff]  }
 0x10b   :  { %v2401_v38 = vmax.f32 %v1399_v30, 0.0  ;;  %v2529_v39 = vmax.f32 %v1911_v31, 0.0  ;;  %5717 = vmatmul.mubr.msk.bf16.gmra.mrb[112].mxu0 %vm952_vm0, %v5981_v22  ;;  %5845 = vmatmul.mubr.msk.bf16.gmra.mrb[112].mxu1 %vm952_vm0, %v5982_v23  ;;  %v5989_v23 = vld [vmem:[%s7241_s0 + $0x1e8] sm:$0xff]   ;;  %v5992_v30 = vld [vmem:[%s7241_s0 + $0x3f0] sm:$0xff]  }
 0x10c   :  { %v2399_v42 = vmax.f32 %v1391_v34, 0.0  ;;  %v2527_v43 = vmax.f32 %v1903_v35, 0.0  ;;  %5720 = vmatprep.mubr.msk.bf16.mxu0 %vm952_vm0, %v5983_v28  ;;  %5848 = vmatprep.mubr.msk.bf16.mxu1 %vm952_vm0, %v5984_v29  ;;  %v5991_v29 = vld [vmem:[%s7241_s0 + $0x1f0] sm:$0xff]  }
 0x10d   :  { %v4724_v44 = vpack.c.bf16 %v2401_v38, %v2400_v36  ;;  %v5044_v45 = vpack.c.bf16 %v2529_v39, %v2528_v37 }
 0x10e   :  { %v4719_v46 = vpack.c.bf16 %v2399_v42, %v2398_v40  ;;  %v5039_v48 = vpack.c.bf16 %v2527_v43, %v2526_v41  ;;  %v5614_v49 = vpop.f32.mrb[8].mxu0  ;;  %v5742_v50 = vpop.f32.mrb[8].mxu1 }
 0x10f   :  { %5348 = vst [vmem:[%s7244_s3 + $0x18] sm:$0xff] %v4724_v44   ;;  %5412 = vst [vmem:[%s7244_s3 + $0x218] sm:$0xff] %v5044_v45   ;;  %v1412_v51 = vadd.f32 %v5614_v49, %v6531_v47  ;;  %v1924_v52 = vadd.f32 %v5742_v50, %v6531_v47  ;;  %v1403_v53 = vpop.f32.mrb[9].mxu0  ;;  %v1915_v54 = vpop.f32.mrb[9].mxu1 }
 0x110   :  { %5347 = vst [vmem:[%s7244_s3 + $0x10] sm:$0xff] %v4719_v46   ;;  %5411 = vst [vmem:[%s7244_s3 + $0x210] sm:$0xff] %v5039_v48   ;;  %v1404_v57 = vadd.f32 %v6531_v47, %v1403_v53  ;;  %v1916_v58 = vadd.f32 %v6531_v47, %v1915_v54  ;;  %v5615_v59 = vpop.f32.mrb[10].mxu0  ;;  %v5743_v60 = vpop.f32.mrb[10].mxu1 }
 0x111   :  { %v1415_v63 = vadd.f32 %v5615_v59, %v6531_v47  ;;  %v1927_v0 = vadd.f32 %v5743_v60, %v6531_v47  ;;  %v1406_v1 = vpop.f32.mrb[11].mxu0  ;;  %v1918_v2 = vpop.f32.mrb[11].mxu1  ;;  %v2404_v5 = vmax.f32 %v1412_v51, 0.0  ;;  %v2532_v6 = vmax.f32 %v1924_v52, 0.0 }
 0x112   :  { %v1407_v3 = vadd.f32 %v6531_v47, %v1406_v1  ;;  %v1919_v4 = vadd.f32 %v6531_v47, %v1918_v2  ;;  %v2402_v9 = vmax.f32 %v1404_v57, 0.0  ;;  %v2530_v10 = vmax.f32 %v1916_v58, 0.0  ;;  %v5994_v57 = vld [vmem:[%s7241_s0 + $0x3f8] sm:$0xff]  }
 0x113   :  { %v2405_v7 = vmax.f32 %v1415_v63, 0.0  ;;  %v2533_v8 = vmax.f32 %v1927_v0, 0.0  ;;  %5721 = vmatmul.mubr.msk.bf16.gmra.mrb[116].mxu0 %vm952_vm0, %v5985_v55  ;;  %5849 = vmatmul.mubr.msk.bf16.gmra.mrb[116].mxu1 %vm952_vm0, %v5986_v56  ;;  %v5993_v56 = vld [vmem:[%s7241_s0 + $0x1f8] sm:$0xff]  }
 0x114   :  { %v2403_v11 = vmax.f32 %v1407_v3, 0.0  ;;  %v2531_v12 = vmax.f32 %v1919_v4, 0.0  ;;  %5724 = vmatprep.mubr.msk.bf16.mxu0 %vm952_vm0, %v5987_v61  ;;  %5852 = vmatprep.mubr.msk.bf16.mxu1 %vm952_vm0, %v5988_v62 }
 0x115   :  { %v4734_v13 = vpack.c.bf16 %v2405_v7, %v2404_v5  ;;  %v5054_v14 = vpack.c.bf16 %v2533_v8, %v2532_v6 }
 0x116   :  { %v4729_v15 = vpack.c.bf16 %v2403_v11, %v2402_v9  ;;  %v5049_v16 = vpack.c.bf16 %v2531_v12, %v2530_v10  ;;  %v5618_v17 = vpop.f32.mrb[12].mxu0  ;;  %v5746_v18 = vpop.f32.mrb[12].mxu1 }
 0x117   :  { %5350 = vst [vmem:[%s7244_s3 + $0x28] sm:$0xff] %v4734_v13   ;;  %5414 = vst [vmem:[%s7244_s3 + $0x228] sm:$0xff] %v5054_v14   ;;  %v1428_v19 = vadd.f32 %v5618_v17, %v6531_v47  ;;  %v1940_v20 = vadd.f32 %v5746_v18, %v6531_v47  ;;  %v1419_v21 = vpop.f32.mrb[13].mxu0  ;;  %v1931_v22 = vpop.f32.mrb[13].mxu1 }
 0x118   :  { %5349 = vst [vmem:[%s7244_s3 + $0x20] sm:$0xff] %v4729_v15   ;;  %5413 = vst [vmem:[%s7244_s3 + $0x220] sm:$0xff] %v5049_v16   ;;  %v1420_v25 = vadd.f32 %v6531_v47, %v1419_v21  ;;  %v1932_v26 = vadd.f32 %v6531_v47, %v1931_v22  ;;  %v5619_v27 = vpop.f32.mrb[14].mxu0  ;;  %v5747_v28 = vpop.f32.mrb[14].mxu1 }
 0x119   :  { %v1431_v31 = vadd.f32 %v5619_v27, %v6531_v47  ;;  %v1943_v32 = vadd.f32 %v5747_v28, %v6531_v47  ;;  %v1422_v33 = vpop.f32.mrb[15].mxu0  ;;  %v1934_v34 = vpop.f32.mrb[15].mxu1  ;;  %v2408_v37 = vmax.f32 %v1428_v19, 0.0  ;;  %v2536_v38 = vmax.f32 %v1940_v20, 0.0 }
 0x11a   :  { %v1423_v35 = vadd.f32 %v6531_v47, %v1422_v33  ;;  %v1935_v36 = vadd.f32 %v6531_v47, %v1934_v34  ;;  %v2406_v41 = vmax.f32 %v1420_v25, 0.0  ;;  %v2534_v42 = vmax.f32 %v1932_v26, 0.0 }
 0x11b   :  { %v2409_v39 = vmax.f32 %v1431_v31, 0.0  ;;  %v2537_v40 = vmax.f32 %v1943_v32, 0.0  ;;  %5725 = vmatmul.mubr.msk.bf16.gmra.mrb[120].mxu0 %vm952_vm0, %v5989_v23  ;;  %5853 = vmatmul.mubr.msk.bf16.gmra.mrb[120].mxu1 %vm952_vm0, %v5990_v24 }
 0x11c   :  { %v2407_v43 = vmax.f32 %v1423_v35, 0.0  ;;  %v2535_v44 = vmax.f32 %v1935_v36, 0.0  ;;  %5728 = vmatprep.mubr.msk.bf16.mxu0 %vm952_vm0, %v5991_v29  ;;  %5856 = vmatprep.mubr.msk.bf16.mxu1 %vm952_vm0, %v5992_v30 }
 0x11d   :  { %v4744_v45 = vpack.c.bf16 %v2409_v39, %v2408_v37  ;;  %v5064_v46 = vpack.c.bf16 %v2537_v40, %v2536_v38 }
 0x11e   :  { %v4739_v48 = vpack.c.bf16 %v2407_v43, %v2406_v41  ;;  %v5059_v49 = vpack.c.bf16 %v2535_v44, %v2534_v42  ;;  %v5622_v50 = vpop.f32.mrb[16].mxu0  ;;  %v5750_v51 = vpop.f32.mrb[16].mxu1 }
 0x11f   :  { %5352 = vst [vmem:[%s7244_s3 + $0x38] sm:$0xff] %v4744_v45   ;;  %5416 = vst [vmem:[%s7244_s3 + $0x238] sm:$0xff] %v5064_v46   ;;  %v1444_v52 = vadd.f32 %v5622_v50, %v6531_v47  ;;  %v1956_v53 = vadd.f32 %v5750_v51, %v6531_v47  ;;  %v1435_v54 = vpop.f32.mrb[17].mxu0  ;;  %v1947_v55 = vpop.f32.mrb[17].mxu1 }
 0x120   :  { %5351 = vst [vmem:[%s7244_s3 + $0x30] sm:$0xff] %v4739_v48   ;;  %5415 = vst [vmem:[%s7244_s3 + $0x230] sm:$0xff] %v5059_v49   ;;  %v1436_v58 = vadd.f32 %v6531_v47, %v1435_v54  ;;  %v1948_v59 = vadd.f32 %v6531_v47, %v1947_v55  ;;  %v5623_v60 = vpop.f32.mrb[18].mxu0  ;;  %v5751_v61 = vpop.f32.mrb[18].mxu1 }
 0x121   :  { %v1447_v62 = vadd.f32 %v5623_v60, %v6531_v47  ;;  %v1959_v63 = vadd.f32 %v5751_v61, %v6531_v47  ;;  %v1438_v0 = vpop.f32.mrb[19].mxu0  ;;  %v1950_v1 = vpop.f32.mrb[19].mxu1  ;;  %v2412_v4 = vmax.f32 %v1444_v52, 0.0  ;;  %v2540_v5 = vmax.f32 %v1956_v53, 0.0 }
 0x122   :  { %v1439_v2 = vadd.f32 %v6531_v47, %v1438_v0  ;;  %v1951_v3 = vadd.f32 %v6531_v47, %v1950_v1  ;;  %v2410_v8 = vmax.f32 %v1436_v58, 0.0  ;;  %v2538_v9 = vmax.f32 %v1948_v59, 0.0 }
 0x123   :  { %v2413_v6 = vmax.f32 %v1447_v62, 0.0  ;;  %v2541_v7 = vmax.f32 %v1959_v63, 0.0  ;;  %5729 = vmatmul.mubr.msk.bf16.gmra.mrb[124].mxu0 %vm952_vm0, %v5993_v56  ;;  %5857 = vmatmul.mubr.msk.bf16.gmra.mrb[124].mxu1 %vm952_vm0, %v5994_v57 }
 0x124   :  { %v2411_v10 = vmax.f32 %v1439_v2, 0.0  ;;  %v2539_v11 = vmax.f32 %v1951_v3, 0.0 }
 0x125   :  { %v4754_v12 = vpack.c.bf16 %v2413_v6, %v2412_v4  ;;  %v5074_v13 = vpack.c.bf16 %v2541_v7, %v2540_v5 }
 0x126   :  { %v4749_v14 = vpack.c.bf16 %v2411_v10, %v2410_v8  ;;  %v5069_v15 = vpack.c.bf16 %v2539_v11, %v2538_v9  ;;  %v5626_v16 = vpop.f32.mrb[20].mxu0  ;;  %v5754_v17 = vpop.f32.mrb[20].mxu1 }
 0x127   :  { %5354 = vst [vmem:[%s7244_s3 + $0x48] sm:$0xff] %v4754_v12   ;;  %5418 = vst [vmem:[%s7244_s3 + $0x248] sm:$0xff] %v5074_v13   ;;  %v1460_v18 = vadd.f32 %v5626_v16, %v6531_v47  ;;  %v1972_v19 = vadd.f32 %v5754_v17, %v6531_v47  ;;  %v1451_v20 = vpop.f32.mrb[21].mxu0  ;;  %v1963_v21 = vpop.f32.mrb[21].mxu1 }
 0x128   :  { %5353 = vst [vmem:[%s7244_s3 + $0x40] sm:$0xff] %v4749_v14   ;;  %5417 = vst [vmem:[%s7244_s3 + $0x240] sm:$0xff] %v5069_v15   ;;  %v1452_v22 = vadd.f32 %v6531_v47, %v1451_v20  ;;  %v1964_v23 = vadd.f32 %v6531_v47, %v1963_v21  ;;  %v5627_v24 = vpop.f32.mrb[22].mxu0  ;;  %v5755_v25 = vpop.f32.mrb[22].mxu1 }
 0x129   :  { %v1463_v26 = vadd.f32 %v5627_v24, %v6531_v47  ;;  %v1975_v27 = vadd.f32 %v5755_v25, %v6531_v47  ;;  %v1454_v28 = vpop.f32.mrb[23].mxu0  ;;  %v1966_v29 = vpop.f32.mrb[23].mxu1  ;;  %v2416_v32 = vmax.f32 %v1460_v18, 0.0  ;;  %v2544_v33 = vmax.f32 %v1972_v19, 0.0 }
 0x12a   :  { %v1455_v30 = vadd.f32 %v6531_v47, %v1454_v28  ;;  %v1967_v31 = vadd.f32 %v6531_v47, %v1966_v29  ;;  %v2414_v36 = vmax.f32 %v1452_v22, 0.0  ;;  %v2542_v37 = vmax.f32 %v1964_v23, 0.0 }
 0x12b   :  { %v2417_v34 = vmax.f32 %v1463_v26, 0.0  ;;  %v2545_v35 = vmax.f32 %v1975_v27, 0.0 }
 0x12c   :  { %v2415_v38 = vmax.f32 %v1455_v30, 0.0  ;;  %v2543_v39 = vmax.f32 %v1967_v31, 0.0 }
 0x12d   :  { %v4764_v40 = vpack.c.bf16 %v2417_v34, %v2416_v32  ;;  %v5084_v41 = vpack.c.bf16 %v2545_v35, %v2544_v33 }
 0x12e   :  { %v4759_v42 = vpack.c.bf16 %v2415_v38, %v2414_v36  ;;  %v5079_v43 = vpack.c.bf16 %v2543_v39, %v2542_v37  ;;  %v5630_v44 = vpop.f32.mrb[24].mxu0  ;;  %v5758_v45 = vpop.f32.mrb[24].mxu1 }
 0x12f   :  { %5356 = vst [vmem:[%s7244_s3 + $0x58] sm:$0xff] %v4764_v40   ;;  %5420 = vst [vmem:[%s7244_s3 + $0x258] sm:$0xff] %v5084_v41   ;;  %v1476_v46 = vadd.f32 %v5630_v44, %v6531_v47  ;;  %v1988_v48 = vadd.f32 %v5758_v45, %v6531_v47  ;;  %v1467_v49 = vpop.f32.mrb[25].mxu0  ;;  %v1979_v50 = vpop.f32.mrb[25].mxu1 }
 0x130   :  { %5355 = vst [vmem:[%s7244_s3 + $0x50] sm:$0xff] %v4759_v42   ;;  %5419 = vst [vmem:[%s7244_s3 + $0x250] sm:$0xff] %v5079_v43   ;;  %v1468_v51 = vadd.f32 %v6531_v47, %v1467_v49  ;;  %v1980_v52 = vadd.f32 %v6531_v47, %v1979_v50  ;;  %v5631_v53 = vpop.f32.mrb[26].mxu0  ;;  %v5759_v54 = vpop.f32.mrb[26].mxu1 }
 0x131   :  { %v1479_v55 = vadd.f32 %v5631_v53, %v6531_v47  ;;  %v1991_v56 = vadd.f32 %v5759_v54, %v6531_v47  ;;  %v1470_v57 = vpop.f32.mrb[27].mxu0  ;;  %v1982_v58 = vpop.f32.mrb[27].mxu1  ;;  %v2420_v61 = vmax.f32 %v1476_v46, 0.0  ;;  %v2548_v62 = vmax.f32 %v1988_v48, 0.0 }
 0x132   :  { %v1471_v59 = vadd.f32 %v6531_v47, %v1470_v57  ;;  %v1983_v60 = vadd.f32 %v6531_v47, %v1982_v58  ;;  %v2418_v1 = vmax.f32 %v1468_v51, 0.0  ;;  %v2546_v2 = vmax.f32 %v1980_v52, 0.0 }
 0x133   :  { %v2421_v63 = vmax.f32 %v1479_v55, 0.0  ;;  %v2549_v0 = vmax.f32 %v1991_v56, 0.0 }
 0x134   :  { %v2419_v3 = vmax.f32 %v1471_v59, 0.0  ;;  %v2547_v4 = vmax.f32 %v1983_v60, 0.0 }
 0x135   :  { %v4774_v5 = vpack.c.bf16 %v2421_v63, %v2420_v61  ;;  %v5094_v6 = vpack.c.bf16 %v2549_v0, %v2548_v62 }
 0x136   :  { %v4769_v7 = vpack.c.bf16 %v2419_v3, %v2418_v1  ;;  %v5089_v8 = vpack.c.bf16 %v2547_v4, %v2546_v2  ;;  %v5634_v9 = vpop.f32.mrb[28].mxu0  ;;  %v5762_v10 = vpop.f32.mrb[28].mxu1 }
 0x137   :  { %5358 = vst [vmem:[%s7244_s3 + $0x68] sm:$0xff] %v4774_v5   ;;  %5422 = vst [vmem:[%s7244_s3 + $0x268] sm:$0xff] %v5094_v6   ;;  %v1492_v11 = vadd.f32 %v5634_v9, %v6531_v47  ;;  %v2004_v12 = vadd.f32 %v5762_v10, %v6531_v47  ;;  %v1483_v13 = vpop.f32.mrb[29].mxu0  ;;  %v1995_v14 = vpop.f32.mrb[29].mxu1 }
 0x138   :  { %5357 = vst [vmem:[%s7244_s3 + $0x60] sm:$0xff] %v4769_v7   ;;  %5421 = vst [vmem:[%s7244_s3 + $0x260] sm:$0xff] %v5089_v8   ;;  %v1484_v15 = vadd.f32 %v6531_v47, %v1483_v13  ;;  %v1996_v16 = vadd.f32 %v6531_v47, %v1995_v14  ;;  %v5635_v17 = vpop.f32.mrb[30].mxu0  ;;  %v5763_v18 = vpop.f32.mrb[30].mxu1 }
 0x139   :  { %v1495_v19 = vadd.f32 %v5635_v17, %v6531_v47  ;;  %v2007_v20 = vadd.f32 %v5763_v18, %v6531_v47  ;;  %v1486_v21 = vpop.f32.mrb[31].mxu0  ;;  %v1998_v22 = vpop.f32.mrb[31].mxu1  ;;  %v2424_v25 = vmax.f32 %v1492_v11, 0.0  ;;  %v2552_v26 = vmax.f32 %v2004_v12, 0.0 }
 0x13a   :  { %v1487_v23 = vadd.f32 %v6531_v47, %v1486_v21  ;;  %v1999_v24 = vadd.f32 %v6531_v47, %v1998_v22  ;;  %v2422_v29 = vmax.f32 %v1484_v15, 0.0  ;;  %v2550_v30 = vmax.f32 %v1996_v16, 0.0 }
 0x13b   :  { %v2425_v27 = vmax.f32 %v1495_v19, 0.0  ;;  %v2553_v28 = vmax.f32 %v2007_v20, 0.0 }
 0x13c   :  { %v2423_v31 = vmax.f32 %v1487_v23, 0.0  ;;  %v2551_v32 = vmax.f32 %v1999_v24, 0.0 }
 0x13d   :  { %v4784_v33 = vpack.c.bf16 %v2425_v27, %v2424_v25  ;;  %v5104_v34 = vpack.c.bf16 %v2553_v28, %v2552_v26 }
 0x13e   :  { %v4779_v35 = vpack.c.bf16 %v2423_v31, %v2422_v29  ;;  %v5099_v36 = vpack.c.bf16 %v2551_v32, %v2550_v30  ;;  %v5638_v37 = vpop.f32.mrb[32].mxu0  ;;  %v5766_v38 = vpop.f32.mrb[32].mxu1 }
 0x13f   :  { %5360 = vst [vmem:[%s7244_s3 + $0x78] sm:$0xff] %v4784_v33   ;;  %5424 = vst [vmem:[%s7244_s3 + $0x278] sm:$0xff] %v5104_v34   ;;  %v1508_v39 = vadd.f32 %v5638_v37, %v6531_v47  ;;  %v2020_v40 = vadd.f32 %v5766_v38, %v6531_v47  ;;  %v1499_v41 = vpop.f32.mrb[33].mxu0  ;;  %v2011_v42 = vpop.f32.mrb[33].mxu1 }
 0x140   :  { %5359 = vst [vmem:[%s7244_s3 + $0x70] sm:$0xff] %v4779_v35   ;;  %5423 = vst [vmem:[%s7244_s3 + $0x270] sm:$0xff] %v5099_v36   ;;  %v1500_v43 = vadd.f32 %v6531_v47, %v1499_v41  ;;  %v2012_v44 = vadd.f32 %v6531_v47, %v2011_v42  ;;  %v5639_v45 = vpop.f32.mrb[34].mxu0  ;;  %v5767_v46 = vpop.f32.mrb[34].mxu1 }
 0x141   :  { %v1511_v48 = vadd.f32 %v5639_v45, %v6531_v47  ;;  %v2023_v49 = vadd.f32 %v5767_v46, %v6531_v47  ;;  %v1502_v50 = vpop.f32.mrb[35].mxu0  ;;  %v2014_v51 = vpop.f32.mrb[35].mxu1  ;;  %v2428_v54 = vmax.f32 %v1508_v39, 0.0  ;;  %v2556_v55 = vmax.f32 %v2020_v40, 0.0 }
 0x142   :  { %v1503_v52 = vadd.f32 %v6531_v47, %v1502_v50  ;;  %v2015_v53 = vadd.f32 %v6531_v47, %v2014_v51  ;;  %v2426_v58 = vmax.f32 %v1500_v43, 0.0  ;;  %v2554_v59 = vmax.f32 %v2012_v44, 0.0 }
 0x143   :  { %v2429_v56 = vmax.f32 %v1511_v48, 0.0  ;;  %v2557_v57 = vmax.f32 %v2023_v49, 0.0 }
 0x144   :  { %v2427_v60 = vmax.f32 %v1503_v52, 0.0  ;;  %v2555_v61 = vmax.f32 %v2015_v53, 0.0 }
 0x145   :  { %v4794_v62 = vpack.c.bf16 %v2429_v56, %v2428_v54  ;;  %v5114_v63 = vpack.c.bf16 %v2557_v57, %v2556_v55 }
 0x146   :  { %v4789_v0 = vpack.c.bf16 %v2427_v60, %v2426_v58  ;;  %v5109_v1 = vpack.c.bf16 %v2555_v61, %v2554_v59  ;;  %v5642_v2 = vpop.f32.mrb[36].mxu0  ;;  %v5770_v3 = vpop.f32.mrb[36].mxu1 }
 0x147   :  { %5362 = vst [vmem:[%s7244_s3 + $0x88] sm:$0xff] %v4794_v62   ;;  %5426 = vst [vmem:[%s7244_s3 + $0x288] sm:$0xff] %v5114_v63   ;;  %v1524_v4 = vadd.f32 %v5642_v2, %v6531_v47  ;;  %v2036_v5 = vadd.f32 %v5770_v3, %v6531_v47  ;;  %v1515_v6 = vpop.f32.mrb[37].mxu0  ;;  %v2027_v7 = vpop.f32.mrb[37].mxu1 }
 0x148   :  { %5361 = vst [vmem:[%s7244_s3 + $0x80] sm:$0xff] %v4789_v0   ;;  %5425 = vst [vmem:[%s7244_s3 + $0x280] sm:$0xff] %v5109_v1   ;;  %v1516_v8 = vadd.f32 %v6531_v47, %v1515_v6  ;;  %v2028_v9 = vadd.f32 %v6531_v47, %v2027_v7  ;;  %v5643_v10 = vpop.f32.mrb[38].mxu0  ;;  %v5771_v11 = vpop.f32.mrb[38].mxu1 }
 0x149   :  { %v1527_v12 = vadd.f32 %v5643_v10, %v6531_v47  ;;  %v2039_v13 = vadd.f32 %v5771_v11, %v6531_v47  ;;  %v1518_v14 = vpop.f32.mrb[39].mxu0  ;;  %v2030_v15 = vpop.f32.mrb[39].mxu1  ;;  %v2432_v18 = vmax.f32 %v1524_v4, 0.0  ;;  %v2560_v19 = vmax.f32 %v2036_v5, 0.0 }
 0x14a   :  { %v1519_v16 = vadd.f32 %v6531_v47, %v1518_v14  ;;  %v2031_v17 = vadd.f32 %v6531_v47, %v2030_v15  ;;  %v2430_v22 = vmax.f32 %v1516_v8, 0.0  ;;  %v2558_v23 = vmax.f32 %v2028_v9, 0.0 }
 0x14b   :  { %v2433_v20 = vmax.f32 %v1527_v12, 0.0  ;;  %v2561_v21 = vmax.f32 %v2039_v13, 0.0 }
 0x14c   :  { %v2431_v24 = vmax.f32 %v1519_v16, 0.0  ;;  %v2559_v25 = vmax.f32 %v2031_v17, 0.0 }
 0x14d   :  { %v4804_v26 = vpack.c.bf16 %v2433_v20, %v2432_v18  ;;  %v5124_v27 = vpack.c.bf16 %v2561_v21, %v2560_v19 }
 0x14e   :  { %v4799_v28 = vpack.c.bf16 %v2431_v24, %v2430_v22  ;;  %v5119_v29 = vpack.c.bf16 %v2559_v25, %v2558_v23  ;;  %v5646_v30 = vpop.f32.mrb[40].mxu0  ;;  %v5774_v31 = vpop.f32.mrb[40].mxu1 }
 0x14f   :  { %5364 = vst [vmem:[%s7244_s3 + $0x98] sm:$0xff] %v4804_v26   ;;  %5428 = vst [vmem:[%s7244_s3 + $0x298] sm:$0xff] %v5124_v27   ;;  %v1540_v32 = vadd.f32 %v5646_v30, %v6531_v47  ;;  %v2052_v33 = vadd.f32 %v5774_v31, %v6531_v47  ;;  %v1531_v34 = vpop.f32.mrb[41].mxu0  ;;  %v2043_v35 = vpop.f32.mrb[41].mxu1 }
 0x150   :  { %5363 = vst [vmem:[%s7244_s3 + $0x90] sm:$0xff] %v4799_v28   ;;  %5427 = vst [vmem:[%s7244_s3 + $0x290] sm:$0xff] %v5119_v29   ;;  %v1532_v36 = vadd.f32 %v6531_v47, %v1531_v34  ;;  %v2044_v37 = vadd.f32 %v6531_v47, %v2043_v35  ;;  %v5647_v38 = vpop.f32.mrb[42].mxu0  ;;  %v5775_v39 = vpop.f32.mrb[42].mxu1 }
 0x151   :  { %v1543_v40 = vadd.f32 %v5647_v38, %v6531_v47  ;;  %v2055_v41 = vadd.f32 %v5775_v39, %v6531_v47  ;;  %v1534_v42 = vpop.f32.mrb[43].mxu0  ;;  %v2046_v43 = vpop.f32.mrb[43].mxu1  ;;  %v2436_v46 = vmax.f32 %v1540_v32, 0.0  ;;  %v2564_v48 = vmax.f32 %v2052_v33, 0.0 }
 0x152   :  { %v1535_v44 = vadd.f32 %v6531_v47, %v1534_v42  ;;  %v2047_v45 = vadd.f32 %v6531_v47, %v2046_v43  ;;  %v2434_v51 = vmax.f32 %v1532_v36, 0.0  ;;  %v2562_v52 = vmax.f32 %v2044_v37, 0.0 }
 0x153   :  { %v2437_v49 = vmax.f32 %v1543_v40, 0.0  ;;  %v2565_v50 = vmax.f32 %v2055_v41, 0.0 }
 0x154   :  { %v2435_v53 = vmax.f32 %v1535_v44, 0.0  ;;  %v2563_v54 = vmax.f32 %v2047_v45, 0.0 }
 0x155   :  { %v4814_v55 = vpack.c.bf16 %v2437_v49, %v2436_v46  ;;  %v5134_v56 = vpack.c.bf16 %v2565_v50, %v2564_v48 }
 0x156   :  { %v4809_v57 = vpack.c.bf16 %v2435_v53, %v2434_v51  ;;  %v5129_v58 = vpack.c.bf16 %v2563_v54, %v2562_v52  ;;  %v5650_v59 = vpop.f32.mrb[44].mxu0  ;;  %v5778_v60 = vpop.f32.mrb[44].mxu1 }
 0x157   :  { %5366 = vst [vmem:[%s7244_s3 + $0xa8] sm:$0xff] %v4814_v55   ;;  %5430 = vst [vmem:[%s7244_s3 + $0x2a8] sm:$0xff] %v5134_v56   ;;  %v1556_v61 = vadd.f32 %v5650_v59, %v6531_v47  ;;  %v2068_v62 = vadd.f32 %v5778_v60, %v6531_v47  ;;  %v1547_v63 = vpop.f32.mrb[45].mxu0  ;;  %v2059_v0 = vpop.f32.mrb[45].mxu1 }
 0x158   :  { %5365 = vst [vmem:[%s7244_s3 + $0xa0] sm:$0xff] %v4809_v57   ;;  %5429 = vst [vmem:[%s7244_s3 + $0x2a0] sm:$0xff] %v5129_v58   ;;  %v1548_v1 = vadd.f32 %v6531_v47, %v1547_v63  ;;  %v2060_v2 = vadd.f32 %v6531_v47, %v2059_v0  ;;  %v5651_v3 = vpop.f32.mrb[46].mxu0  ;;  %v5779_v4 = vpop.f32.mrb[46].mxu1 }
 0x159   :  { %v1559_v5 = vadd.f32 %v5651_v3, %v6531_v47  ;;  %v2071_v6 = vadd.f32 %v5779_v4, %v6531_v47  ;;  %v1550_v7 = vpop.f32.mrb[47].mxu0  ;;  %v2062_v8 = vpop.f32.mrb[47].mxu1  ;;  %v2440_v11 = vmax.f32 %v1556_v61, 0.0  ;;  %v2568_v12 = vmax.f32 %v2068_v62, 0.0 }
 0x15a   :  { %v1551_v9 = vadd.f32 %v6531_v47, %v1550_v7  ;;  %v2063_v10 = vadd.f32 %v6531_v47, %v2062_v8  ;;  %v2438_v15 = vmax.f32 %v1548_v1, 0.0  ;;  %v2566_v16 = vmax.f32 %v2060_v2, 0.0 }
 0x15b   :  { %v2441_v13 = vmax.f32 %v1559_v5, 0.0  ;;  %v2569_v14 = vmax.f32 %v2071_v6, 0.0 }
 0x15c   :  { %v2439_v17 = vmax.f32 %v1551_v9, 0.0  ;;  %v2567_v18 = vmax.f32 %v2063_v10, 0.0 }
 0x15d   :  { %v4824_v19 = vpack.c.bf16 %v2441_v13, %v2440_v11  ;;  %v5144_v20 = vpack.c.bf16 %v2569_v14, %v2568_v12 }
 0x15e   :  { %v4819_v21 = vpack.c.bf16 %v2439_v17, %v2438_v15  ;;  %v5139_v22 = vpack.c.bf16 %v2567_v18, %v2566_v16  ;;  %v5654_v23 = vpop.f32.mrb[48].mxu0  ;;  %v5782_v24 = vpop.f32.mrb[48].mxu1 }
 0x15f   :  { %5368 = vst [vmem:[%s7244_s3 + $0xb8] sm:$0xff] %v4824_v19   ;;  %5432 = vst [vmem:[%s7244_s3 + $0x2b8] sm:$0xff] %v5144_v20   ;;  %v1572_v25 = vadd.f32 %v5654_v23, %v6531_v47  ;;  %v2084_v26 = vadd.f32 %v5782_v24, %v6531_v47  ;;  %v1563_v27 = vpop.f32.mrb[49].mxu0  ;;  %v2075_v28 = vpop.f32.mrb[49].mxu1 }
 0x160   :  { %5367 = vst [vmem:[%s7244_s3 + $0xb0] sm:$0xff] %v4819_v21   ;;  %5431 = vst [vmem:[%s7244_s3 + $0x2b0] sm:$0xff] %v5139_v22   ;;  %v1564_v29 = vadd.f32 %v6531_v47, %v1563_v27  ;;  %v2076_v30 = vadd.f32 %v6531_v47, %v2075_v28  ;;  %v5655_v31 = vpop.f32.mrb[50].mxu0  ;;  %v5783_v32 = vpop.f32.mrb[50].mxu1 }
 0x161   :  { %v1575_v33 = vadd.f32 %v5655_v31, %v6531_v47  ;;  %v2087_v34 = vadd.f32 %v5783_v32, %v6531_v47  ;;  %v1566_v35 = vpop.f32.mrb[51].mxu0  ;;  %v2078_v36 = vpop.f32.mrb[51].mxu1  ;;  %v2444_v39 = vmax.f32 %v1572_v25, 0.0  ;;  %v2572_v40 = vmax.f32 %v2084_v26, 0.0 }
 0x162   :  { %v1567_v37 = vadd.f32 %v6531_v47, %v1566_v35  ;;  %v2079_v38 = vadd.f32 %v6531_v47, %v2078_v36  ;;  %v2442_v43 = vmax.f32 %v1564_v29, 0.0  ;;  %v2570_v44 = vmax.f32 %v2076_v30, 0.0 }
 0x163   :  { %v2445_v41 = vmax.f32 %v1575_v33, 0.0  ;;  %v2573_v42 = vmax.f32 %v2087_v34, 0.0 }
 0x164   :  { %v2443_v45 = vmax.f32 %v1567_v37, 0.0  ;;  %v2571_v46 = vmax.f32 %v2079_v38, 0.0 }
 0x165   :  { %v4834_v48 = vpack.c.bf16 %v2445_v41, %v2444_v39  ;;  %v5154_v49 = vpack.c.bf16 %v2573_v42, %v2572_v40 }
 0x166   :  { %v4829_v50 = vpack.c.bf16 %v2443_v45, %v2442_v43  ;;  %v5149_v51 = vpack.c.bf16 %v2571_v46, %v2570_v44  ;;  %v5658_v52 = vpop.f32.mrb[52].mxu0  ;;  %v5786_v53 = vpop.f32.mrb[52].mxu1 }
 0x167   :  { %5370 = vst [vmem:[%s7244_s3 + $0xc8] sm:$0xff] %v4834_v48   ;;  %5434 = vst [vmem:[%s7244_s3 + $0x2c8] sm:$0xff] %v5154_v49   ;;  %v1588_v54 = vadd.f32 %v5658_v52, %v6531_v47  ;;  %v2100_v55 = vadd.f32 %v5786_v53, %v6531_v47  ;;  %v1579_v56 = vpop.f32.mrb[53].mxu0  ;;  %v2091_v57 = vpop.f32.mrb[53].mxu1 }
 0x168   :  { %5369 = vst [vmem:[%s7244_s3 + $0xc0] sm:$0xff] %v4829_v50   ;;  %5433 = vst [vmem:[%s7244_s3 + $0x2c0] sm:$0xff] %v5149_v51   ;;  %v1580_v58 = vadd.f32 %v6531_v47, %v1579_v56  ;;  %v2092_v59 = vadd.f32 %v6531_v47, %v2091_v57  ;;  %v5659_v60 = vpop.f32.mrb[54].mxu0  ;;  %v5787_v61 = vpop.f32.mrb[54].mxu1 }
 0x169   :  { %v1591_v62 = vadd.f32 %v5659_v60, %v6531_v47  ;;  %v2103_v63 = vadd.f32 %v5787_v61, %v6531_v47  ;;  %v1582_v0 = vpop.f32.mrb[55].mxu0  ;;  %v2094_v1 = vpop.f32.mrb[55].mxu1  ;;  %v2448_v4 = vmax.f32 %v1588_v54, 0.0  ;;  %v2576_v5 = vmax.f32 %v2100_v55, 0.0 }
 0x16a   :  { %v1583_v2 = vadd.f32 %v6531_v47, %v1582_v0  ;;  %v2095_v3 = vadd.f32 %v6531_v47, %v2094_v1  ;;  %v2446_v8 = vmax.f32 %v1580_v58, 0.0  ;;  %v2574_v9 = vmax.f32 %v2092_v59, 0.0 }
 0x16b   :  { %v2449_v6 = vmax.f32 %v1591_v62, 0.0  ;;  %v2577_v7 = vmax.f32 %v2103_v63, 0.0 }
 0x16c   :  { %v2447_v10 = vmax.f32 %v1583_v2, 0.0  ;;  %v2575_v11 = vmax.f32 %v2095_v3, 0.0 }
 0x16d   :  { %v4844_v12 = vpack.c.bf16 %v2449_v6, %v2448_v4  ;;  %v5164_v13 = vpack.c.bf16 %v2577_v7, %v2576_v5 }
 0x16e   :  { %v4839_v14 = vpack.c.bf16 %v2447_v10, %v2446_v8  ;;  %v5159_v15 = vpack.c.bf16 %v2575_v11, %v2574_v9  ;;  %v5662_v16 = vpop.f32.mrb[56].mxu0  ;;  %v5790_v17 = vpop.f32.mrb[56].mxu1 }
 0x16f   :  { %5372 = vst [vmem:[%s7244_s3 + $0xd8] sm:$0xff] %v4844_v12   ;;  %5436 = vst [vmem:[%s7244_s3 + $0x2d8] sm:$0xff] %v5164_v13   ;;  %v1604_v18 = vadd.f32 %v5662_v16, %v6531_v47  ;;  %v2116_v19 = vadd.f32 %v5790_v17, %v6531_v47  ;;  %v1595_v20 = vpop.f32.mrb[57].mxu0  ;;  %v2107_v21 = vpop.f32.mrb[57].mxu1 }
 0x170   :  { %5371 = vst [vmem:[%s7244_s3 + $0xd0] sm:$0xff] %v4839_v14   ;;  %5435 = vst [vmem:[%s7244_s3 + $0x2d0] sm:$0xff] %v5159_v15   ;;  %v1596_v22 = vadd.f32 %v6531_v47, %v1595_v20  ;;  %v2108_v23 = vadd.f32 %v6531_v47, %v2107_v21  ;;  %v5663_v24 = vpop.f32.mrb[58].mxu0  ;;  %v5791_v25 = vpop.f32.mrb[58].mxu1 }
 0x171   :  { %v1607_v26 = vadd.f32 %v5663_v24, %v6531_v47  ;;  %v2119_v27 = vadd.f32 %v5791_v25, %v6531_v47  ;;  %v1598_v28 = vpop.f32.mrb[59].mxu0  ;;  %v2110_v29 = vpop.f32.mrb[59].mxu1  ;;  %v2452_v32 = vmax.f32 %v1604_v18, 0.0  ;;  %v2580_v33 = vmax.f32 %v2116_v19, 0.0 }
 0x172   :  { %v1599_v30 = vadd.f32 %v6531_v47, %v1598_v28  ;;  %v2111_v31 = vadd.f32 %v6531_v47, %v2110_v29  ;;  %v2450_v36 = vmax.f32 %v1596_v22, 0.0  ;;  %v2578_v37 = vmax.f32 %v2108_v23, 0.0  ;;  %v6901_v47 = vld [vmem:[#allocation4] ss:$0 sm:$0xff] }
 0x173   :  { %v2453_v34 = vmax.f32 %v1607_v26, 0.0  ;;  %v2581_v35 = vmax.f32 %v2119_v27, 0.0 }
 0x174   :  { %v2451_v38 = vmax.f32 %v1599_v30, 0.0  ;;  %v2579_v39 = vmax.f32 %v2111_v31, 0.0 }
 0x175   :  { %v4854_v40 = vpack.c.bf16 %v2453_v34, %v2452_v32  ;;  %v5174_v41 = vpack.c.bf16 %v2581_v35, %v2580_v33 }
 0x176   :  { %v4849_v42 = vpack.c.bf16 %v2451_v38, %v2450_v36  ;;  %v5169_v43 = vpack.c.bf16 %v2579_v39, %v2578_v37  ;;  %v5666_v44 = vpop.f32.mrb[60].mxu0  ;;  %v5794_v45 = vpop.f32.mrb[60].mxu1 }
 0x177   :  { %5374 = vst [vmem:[%s7244_s3 + $0xe8] sm:$0xff] %v4854_v40   ;;  %5438 = vst [vmem:[%s7244_s3 + $0x2e8] sm:$0xff] %v5174_v41   ;;  %v1620_v46 = vadd.f32 %v6901_v47, %v5666_v44  ;;  %v2132_v48 = vadd.f32 %v6901_v47, %v5794_v45  ;;  %v1611_v49 = vpop.f32.mrb[61].mxu0  ;;  %v2123_v50 = vpop.f32.mrb[61].mxu1 }
 0x178   :  { %5373 = vst [vmem:[%s7244_s3 + $0xe0] sm:$0xff] %v4849_v42   ;;  %5437 = vst [vmem:[%s7244_s3 + $0x2e0] sm:$0xff] %v5169_v43   ;;  %v1612_v51 = vadd.f32 %v6901_v47, %v1611_v49  ;;  %v2124_v52 = vadd.f32 %v6901_v47, %v2123_v50  ;;  %v5667_v53 = vpop.f32.mrb[62].mxu0  ;;  %v5795_v54 = vpop.f32.mrb[62].mxu1 }
 0x179   :  { %v1623_v55 = vadd.f32 %v6901_v47, %v5667_v53  ;;  %v2135_v56 = vadd.f32 %v6901_v47, %v5795_v54  ;;  %v1614_v57 = vpop.f32.mrb[63].mxu0  ;;  %v2126_v58 = vpop.f32.mrb[63].mxu1  ;;  %v2456_v61 = vmax.f32 %v1620_v46, 0.0  ;;  %v2584_v62 = vmax.f32 %v2132_v48, 0.0 }
 0x17a   :  { %v1615_v59 = vadd.f32 %v6901_v47, %v1614_v57  ;;  %v2127_v60 = vadd.f32 %v6901_v47, %v2126_v58  ;;  %v2454_v1 = vmax.f32 %v1612_v51, 0.0  ;;  %v2582_v2 = vmax.f32 %v2124_v52, 0.0 }
 0x17b   :  { %v2457_v63 = vmax.f32 %v1623_v55, 0.0  ;;  %v2585_v0 = vmax.f32 %v2135_v56, 0.0 }
 0x17c   :  { %v2455_v3 = vmax.f32 %v1615_v59, 0.0  ;;  %v2583_v4 = vmax.f32 %v2127_v60, 0.0 }
 0x17d   :  { %v4864_v5 = vpack.c.bf16 %v2457_v63, %v2456_v61  ;;  %v5184_v6 = vpack.c.bf16 %v2585_v0, %v2584_v62 }
 0x17e   :  { %v4859_v7 = vpack.c.bf16 %v2455_v3, %v2454_v1  ;;  %v5179_v8 = vpack.c.bf16 %v2583_v4, %v2582_v2  ;;  %v5670_v9 = vpop.f32.mrb[64].mxu0  ;;  %v5798_v10 = vpop.f32.mrb[64].mxu1 }
 0x17f   :  { %5376 = vst [vmem:[%s7244_s3 + $0xf8] sm:$0xff] %v4864_v5   ;;  %5440 = vst [vmem:[%s7244_s3 + $0x2f8] sm:$0xff] %v5184_v6   ;;  %v1636_v11 = vadd.f32 %v6901_v47, %v5670_v9  ;;  %v2148_v12 = vadd.f32 %v6901_v47, %v5798_v10  ;;  %v1627_v13 = vpop.f32.mrb[65].mxu0  ;;  %v2139_v14 = vpop.f32.mrb[65].mxu1 }
 0x180   :  { %5375 = vst [vmem:[%s7244_s3 + $0xf0] sm:$0xff] %v4859_v7   ;;  %5439 = vst [vmem:[%s7244_s3 + $0x2f0] sm:$0xff] %v5179_v8   ;;  %v1628_v15 = vadd.f32 %v6901_v47, %v1627_v13  ;;  %v2140_v16 = vadd.f32 %v6901_v47, %v2139_v14  ;;  %v5671_v17 = vpop.f32.mrb[66].mxu0  ;;  %v5799_v18 = vpop.f32.mrb[66].mxu1 }
 0x181   :  { %v1639_v19 = vadd.f32 %v6901_v47, %v5671_v17  ;;  %v2151_v20 = vadd.f32 %v6901_v47, %v5799_v18  ;;  %v1630_v21 = vpop.f32.mrb[67].mxu0  ;;  %v2142_v22 = vpop.f32.mrb[67].mxu1  ;;  %v2460_v25 = vmax.f32 %v1636_v11, 0.0  ;;  %v2588_v26 = vmax.f32 %v2148_v12, 0.0 }
 0x182   :  { %v1631_v23 = vadd.f32 %v6901_v47, %v1630_v21  ;;  %v2143_v24 = vadd.f32 %v6901_v47, %v2142_v22  ;;  %v2458_v29 = vmax.f32 %v1628_v15, 0.0  ;;  %v2586_v30 = vmax.f32 %v2140_v16, 0.0 }
 0x183   :  { %v2461_v27 = vmax.f32 %v1639_v19, 0.0  ;;  %v2589_v28 = vmax.f32 %v2151_v20, 0.0 }
 0x184   :  { %v2459_v31 = vmax.f32 %v1631_v23, 0.0  ;;  %v2587_v32 = vmax.f32 %v2143_v24, 0.0 }
 0x185   :  { %v4874_v33 = vpack.c.bf16 %v2461_v27, %v2460_v25  ;;  %v5194_v34 = vpack.c.bf16 %v2589_v28, %v2588_v26 }
 0x186   :  { %v4869_v35 = vpack.c.bf16 %v2459_v31, %v2458_v29  ;;  %v5189_v36 = vpack.c.bf16 %v2587_v32, %v2586_v30  ;;  %v5674_v37 = vpop.f32.mrb[68].mxu0  ;;  %v5802_v38 = vpop.f32.mrb[68].mxu1 }
 0x187   :  { %5378 = vst [vmem:[%s7244_s3 + $0x108] sm:$0xff] %v4874_v33   ;;  %5442 = vst [vmem:[%s7244_s3 + $0x308] sm:$0xff] %v5194_v34   ;;  %v1652_v39 = vadd.f32 %v6901_v47, %v5674_v37  ;;  %v2164_v40 = vadd.f32 %v6901_v47, %v5802_v38  ;;  %v1643_v41 = vpop.f32.mrb[69].mxu0  ;;  %v2155_v42 = vpop.f32.mrb[69].mxu1 }
 0x188   :  { %5377 = vst [vmem:[%s7244_s3 + $0x100] sm:$0xff] %v4869_v35   ;;  %5441 = vst [vmem:[%s7244_s3 + $0x300] sm:$0xff] %v5189_v36   ;;  %v1644_v43 = vadd.f32 %v6901_v47, %v1643_v41  ;;  %v2156_v44 = vadd.f32 %v6901_v47, %v2155_v42  ;;  %v5675_v45 = vpop.f32.mrb[70].mxu0  ;;  %v5803_v46 = vpop.f32.mrb[70].mxu1 }
 0x189   :  { %v1655_v48 = vadd.f32 %v6901_v47, %v5675_v45  ;;  %v2167_v49 = vadd.f32 %v6901_v47, %v5803_v46  ;;  %v1646_v50 = vpop.f32.mrb[71].mxu0  ;;  %v2158_v51 = vpop.f32.mrb[71].mxu1  ;;  %v2464_v54 = vmax.f32 %v1652_v39, 0.0  ;;  %v2592_v55 = vmax.f32 %v2164_v40, 0.0 }
 0x18a   :  { %v1647_v52 = vadd.f32 %v6901_v47, %v1646_v50  ;;  %v2159_v53 = vadd.f32 %v6901_v47, %v2158_v51  ;;  %v2462_v58 = vmax.f32 %v1644_v43, 0.0  ;;  %v2590_v59 = vmax.f32 %v2156_v44, 0.0 }
 0x18b   :  { %v2465_v56 = vmax.f32 %v1655_v48, 0.0  ;;  %v2593_v57 = vmax.f32 %v2167_v49, 0.0 }
 0x18c   :  { %v2463_v60 = vmax.f32 %v1647_v52, 0.0  ;;  %v2591_v61 = vmax.f32 %v2159_v53, 0.0 }
 0x18d   :  { %v4884_v62 = vpack.c.bf16 %v2465_v56, %v2464_v54  ;;  %v5204_v63 = vpack.c.bf16 %v2593_v57, %v2592_v55 }
 0x18e   :  { %v4879_v0 = vpack.c.bf16 %v2463_v60, %v2462_v58  ;;  %v5199_v1 = vpack.c.bf16 %v2591_v61, %v2590_v59  ;;  %v5678_v2 = vpop.f32.mrb[72].mxu0  ;;  %v5806_v3 = vpop.f32.mrb[72].mxu1 }
 0x18f   :  { %5380 = vst [vmem:[%s7244_s3 + $0x118] sm:$0xff] %v4884_v62   ;;  %5444 = vst [vmem:[%s7244_s3 + $0x318] sm:$0xff] %v5204_v63   ;;  %v1668_v4 = vadd.f32 %v6901_v47, %v5678_v2  ;;  %v2180_v5 = vadd.f32 %v6901_v47, %v5806_v3  ;;  %v1659_v6 = vpop.f32.mrb[73].mxu0  ;;  %v2171_v7 = vpop.f32.mrb[73].mxu1 }
 0x190   :  { %5379 = vst [vmem:[%s7244_s3 + $0x110] sm:$0xff] %v4879_v0   ;;  %5443 = vst [vmem:[%s7244_s3 + $0x310] sm:$0xff] %v5199_v1   ;;  %v1660_v8 = vadd.f32 %v6901_v47, %v1659_v6  ;;  %v2172_v9 = vadd.f32 %v6901_v47, %v2171_v7  ;;  %v5679_v10 = vpop.f32.mrb[74].mxu0  ;;  %v5807_v11 = vpop.f32.mrb[74].mxu1 }
 0x191   :  { %v1671_v12 = vadd.f32 %v6901_v47, %v5679_v10  ;;  %v2183_v13 = vadd.f32 %v6901_v47, %v5807_v11  ;;  %v1662_v14 = vpop.f32.mrb[75].mxu0  ;;  %v2174_v15 = vpop.f32.mrb[75].mxu1  ;;  %v2468_v18 = vmax.f32 %v1668_v4, 0.0  ;;  %v2596_v19 = vmax.f32 %v2180_v5, 0.0 }
 0x192   :  { %v1663_v16 = vadd.f32 %v6901_v47, %v1662_v14  ;;  %v2175_v17 = vadd.f32 %v6901_v47, %v2174_v15  ;;  %v2466_v22 = vmax.f32 %v1660_v8, 0.0  ;;  %v2594_v23 = vmax.f32 %v2172_v9, 0.0 }
 0x193   :  { %v2469_v20 = vmax.f32 %v1671_v12, 0.0  ;;  %v2597_v21 = vmax.f32 %v2183_v13, 0.0 }
 0x194   :  { %v2467_v24 = vmax.f32 %v1663_v16, 0.0  ;;  %v2595_v25 = vmax.f32 %v2175_v17, 0.0 }
 0x195   :  { %v4894_v26 = vpack.c.bf16 %v2469_v20, %v2468_v18  ;;  %v5214_v27 = vpack.c.bf16 %v2597_v21, %v2596_v19 }
 0x196   :  { %v4889_v28 = vpack.c.bf16 %v2467_v24, %v2466_v22  ;;  %v5209_v29 = vpack.c.bf16 %v2595_v25, %v2594_v23  ;;  %v5682_v30 = vpop.f32.mrb[76].mxu0  ;;  %v5810_v31 = vpop.f32.mrb[76].mxu1 }
 0x197   :  { %5382 = vst [vmem:[%s7244_s3 + $0x128] sm:$0xff] %v4894_v26   ;;  %5446 = vst [vmem:[%s7244_s3 + $0x328] sm:$0xff] %v5214_v27   ;;  %v1684_v32 = vadd.f32 %v6901_v47, %v5682_v30  ;;  %v2196_v33 = vadd.f32 %v6901_v47, %v5810_v31  ;;  %v1675_v34 = vpop.f32.mrb[77].mxu0  ;;  %v2187_v35 = vpop.f32.mrb[77].mxu1 }
 0x198   :  { %5381 = vst [vmem:[%s7244_s3 + $0x120] sm:$0xff] %v4889_v28   ;;  %5445 = vst [vmem:[%s7244_s3 + $0x320] sm:$0xff] %v5209_v29   ;;  %v1676_v36 = vadd.f32 %v6901_v47, %v1675_v34  ;;  %v2188_v37 = vadd.f32 %v6901_v47, %v2187_v35  ;;  %v5683_v38 = vpop.f32.mrb[78].mxu0  ;;  %v5811_v39 = vpop.f32.mrb[78].mxu1 }
 0x199   :  { %v1687_v40 = vadd.f32 %v6901_v47, %v5683_v38  ;;  %v2199_v41 = vadd.f32 %v6901_v47, %v5811_v39  ;;  %v1678_v42 = vpop.f32.mrb[79].mxu0  ;;  %v2190_v43 = vpop.f32.mrb[79].mxu1  ;;  %v2472_v46 = vmax.f32 %v1684_v32, 0.0  ;;  %v2600_v48 = vmax.f32 %v2196_v33, 0.0 }
 0x19a   :  { %v1679_v44 = vadd.f32 %v6901_v47, %v1678_v42  ;;  %v2191_v45 = vadd.f32 %v6901_v47, %v2190_v43  ;;  %v2470_v51 = vmax.f32 %v1676_v36, 0.0  ;;  %v2598_v52 = vmax.f32 %v2188_v37, 0.0 }
 0x19b   :  { %v2473_v49 = vmax.f32 %v1687_v40, 0.0  ;;  %v2601_v50 = vmax.f32 %v2199_v41, 0.0 }
 0x19c   :  { %v2471_v53 = vmax.f32 %v1679_v44, 0.0  ;;  %v2599_v54 = vmax.f32 %v2191_v45, 0.0 }
 0x19d   :  { %v4904_v55 = vpack.c.bf16 %v2473_v49, %v2472_v46  ;;  %v5224_v56 = vpack.c.bf16 %v2601_v50, %v2600_v48 }
 0x19e   :  { %v4899_v57 = vpack.c.bf16 %v2471_v53, %v2470_v51  ;;  %v5219_v58 = vpack.c.bf16 %v2599_v54, %v2598_v52  ;;  %v5686_v59 = vpop.f32.mrb[80].mxu0  ;;  %v5814_v60 = vpop.f32.mrb[80].mxu1 }
 0x19f   :  { %5384 = vst [vmem:[%s7244_s3 + $0x138] sm:$0xff] %v4904_v55   ;;  %5448 = vst [vmem:[%s7244_s3 + $0x338] sm:$0xff] %v5224_v56   ;;  %v1700_v61 = vadd.f32 %v6901_v47, %v5686_v59  ;;  %v2212_v62 = vadd.f32 %v6901_v47, %v5814_v60  ;;  %v1691_v63 = vpop.f32.mrb[81].mxu0  ;;  %v2203_v0 = vpop.f32.mrb[81].mxu1 }
 0x1a0   :  { %5383 = vst [vmem:[%s7244_s3 + $0x130] sm:$0xff] %v4899_v57   ;;  %5447 = vst [vmem:[%s7244_s3 + $0x330] sm:$0xff] %v5219_v58   ;;  %v1692_v1 = vadd.f32 %v6901_v47, %v1691_v63  ;;  %v2204_v2 = vadd.f32 %v6901_v47, %v2203_v0  ;;  %v5687_v3 = vpop.f32.mrb[82].mxu0  ;;  %v5815_v4 = vpop.f32.mrb[82].mxu1 }
 0x1a1   :  { %v1703_v5 = vadd.f32 %v6901_v47, %v5687_v3  ;;  %v2215_v6 = vadd.f32 %v6901_v47, %v5815_v4  ;;  %v1694_v7 = vpop.f32.mrb[83].mxu0  ;;  %v2206_v8 = vpop.f32.mrb[83].mxu1  ;;  %v2476_v11 = vmax.f32 %v1700_v61, 0.0  ;;  %v2604_v12 = vmax.f32 %v2212_v62, 0.0 }
 0x1a2   :  { %v1695_v9 = vadd.f32 %v6901_v47, %v1694_v7  ;;  %v2207_v10 = vadd.f32 %v6901_v47, %v2206_v8  ;;  %v2474_v15 = vmax.f32 %v1692_v1, 0.0  ;;  %v2602_v16 = vmax.f32 %v2204_v2, 0.0 }
 0x1a3   :  { %v2477_v13 = vmax.f32 %v1703_v5, 0.0  ;;  %v2605_v14 = vmax.f32 %v2215_v6, 0.0 }
 0x1a4   :  { %v2475_v17 = vmax.f32 %v1695_v9, 0.0  ;;  %v2603_v18 = vmax.f32 %v2207_v10, 0.0 }
 0x1a5   :  { %v4914_v19 = vpack.c.bf16 %v2477_v13, %v2476_v11  ;;  %v5234_v20 = vpack.c.bf16 %v2605_v14, %v2604_v12 }
 0x1a6   :  { %v4909_v21 = vpack.c.bf16 %v2475_v17, %v2474_v15  ;;  %v5229_v22 = vpack.c.bf16 %v2603_v18, %v2602_v16  ;;  %v5690_v23 = vpop.f32.mrb[84].mxu0  ;;  %v5818_v24 = vpop.f32.mrb[84].mxu1 }
 0x1a7   :  { %5386 = vst [vmem:[%s7244_s3 + $0x148] sm:$0xff] %v4914_v19   ;;  %5450 = vst [vmem:[%s7244_s3 + $0x348] sm:$0xff] %v5234_v20   ;;  %v1716_v25 = vadd.f32 %v6901_v47, %v5690_v23  ;;  %v2228_v26 = vadd.f32 %v6901_v47, %v5818_v24  ;;  %v1707_v27 = vpop.f32.mrb[85].mxu0  ;;  %v2219_v28 = vpop.f32.mrb[85].mxu1 }
 0x1a8   :  { %5385 = vst [vmem:[%s7244_s3 + $0x140] sm:$0xff] %v4909_v21   ;;  %5449 = vst [vmem:[%s7244_s3 + $0x340] sm:$0xff] %v5229_v22   ;;  %v1708_v29 = vadd.f32 %v6901_v47, %v1707_v27  ;;  %v2220_v30 = vadd.f32 %v6901_v47, %v2219_v28  ;;  %v5691_v31 = vpop.f32.mrb[86].mxu0  ;;  %v5819_v32 = vpop.f32.mrb[86].mxu1 }
 0x1a9   :  { %v1719_v33 = vadd.f32 %v6901_v47, %v5691_v31  ;;  %v2231_v34 = vadd.f32 %v6901_v47, %v5819_v32  ;;  %v1710_v35 = vpop.f32.mrb[87].mxu0  ;;  %v2222_v36 = vpop.f32.mrb[87].mxu1  ;;  %v2480_v39 = vmax.f32 %v1716_v25, 0.0  ;;  %v2608_v40 = vmax.f32 %v2228_v26, 0.0 }
 0x1aa   :  { %v1711_v37 = vadd.f32 %v6901_v47, %v1710_v35  ;;  %v2223_v38 = vadd.f32 %v6901_v47, %v2222_v36  ;;  %v2478_v43 = vmax.f32 %v1708_v29, 0.0  ;;  %v2606_v44 = vmax.f32 %v2220_v30, 0.0 }
 0x1ab   :  { %v2481_v41 = vmax.f32 %v1719_v33, 0.0  ;;  %v2609_v42 = vmax.f32 %v2231_v34, 0.0 }
 0x1ac   :  { %v2479_v45 = vmax.f32 %v1711_v37, 0.0  ;;  %v2607_v46 = vmax.f32 %v2223_v38, 0.0 }
 0x1ad   :  { %v4924_v48 = vpack.c.bf16 %v2481_v41, %v2480_v39  ;;  %v5244_v49 = vpack.c.bf16 %v2609_v42, %v2608_v40 }
 0x1ae   :  { %v4919_v50 = vpack.c.bf16 %v2479_v45, %v2478_v43  ;;  %v5239_v51 = vpack.c.bf16 %v2607_v46, %v2606_v44  ;;  %v5694_v52 = vpop.f32.mrb[88].mxu0  ;;  %v5822_v53 = vpop.f32.mrb[88].mxu1 }
 0x1af   :  { %5388 = vst [vmem:[%s7244_s3 + $0x158] sm:$0xff] %v4924_v48   ;;  %5452 = vst [vmem:[%s7244_s3 + $0x358] sm:$0xff] %v5244_v49   ;;  %v1732_v54 = vadd.f32 %v6901_v47, %v5694_v52  ;;  %v2244_v55 = vadd.f32 %v6901_v47, %v5822_v53  ;;  %v1723_v56 = vpop.f32.mrb[89].mxu0  ;;  %v2235_v57 = vpop.f32.mrb[89].mxu1 }
 0x1b0   :  { %5387 = vst [vmem:[%s7244_s3 + $0x150] sm:$0xff] %v4919_v50   ;;  %5451 = vst [vmem:[%s7244_s3 + $0x350] sm:$0xff] %v5239_v51   ;;  %v1724_v58 = vadd.f32 %v6901_v47, %v1723_v56  ;;  %v2236_v59 = vadd.f32 %v6901_v47, %v2235_v57  ;;  %v5695_v60 = vpop.f32.mrb[90].mxu0  ;;  %v5823_v61 = vpop.f32.mrb[90].mxu1 }
 0x1b1   :  { %v1735_v62 = vadd.f32 %v6901_v47, %v5695_v60  ;;  %v2247_v63 = vadd.f32 %v6901_v47, %v5823_v61  ;;  %v1726_v0 = vpop.f32.mrb[91].mxu0  ;;  %v2238_v1 = vpop.f32.mrb[91].mxu1  ;;  %v2484_v4 = vmax.f32 %v1732_v54, 0.0  ;;  %v2612_v5 = vmax.f32 %v2244_v55, 0.0 }
 0x1b2   :  { %v1727_v2 = vadd.f32 %v6901_v47, %v1726_v0  ;;  %v2239_v3 = vadd.f32 %v6901_v47, %v2238_v1  ;;  %v2482_v8 = vmax.f32 %v1724_v58, 0.0  ;;  %v2610_v9 = vmax.f32 %v2236_v59, 0.0 }
 0x1b3   :  { %v2485_v6 = vmax.f32 %v1735_v62, 0.0  ;;  %v2613_v7 = vmax.f32 %v2247_v63, 0.0 }
 0x1b4   :  { %v2483_v10 = vmax.f32 %v1727_v2, 0.0  ;;  %v2611_v11 = vmax.f32 %v2239_v3, 0.0 }
 0x1b5   :  { %v4934_v12 = vpack.c.bf16 %v2485_v6, %v2484_v4  ;;  %v5254_v13 = vpack.c.bf16 %v2613_v7, %v2612_v5 }
 0x1b6   :  { %v4929_v14 = vpack.c.bf16 %v2483_v10, %v2482_v8  ;;  %v5249_v15 = vpack.c.bf16 %v2611_v11, %v2610_v9  ;;  %v5698_v16 = vpop.f32.mrb[92].mxu0  ;;  %v5826_v17 = vpop.f32.mrb[92].mxu1 }
 0x1b7   :  { %5390 = vst [vmem:[%s7244_s3 + $0x168] sm:$0xff] %v4934_v12   ;;  %5454 = vst [vmem:[%s7244_s3 + $0x368] sm:$0xff] %v5254_v13   ;;  %v1748_v18 = vadd.f32 %v6901_v47, %v5698_v16  ;;  %v2260_v19 = vadd.f32 %v6901_v47, %v5826_v17  ;;  %v1739_v20 = vpop.f32.mrb[93].mxu0  ;;  %v2251_v21 = vpop.f32.mrb[93].mxu1 }
 0x1b8   :  { %5389 = vst [vmem:[%s7244_s3 + $0x160] sm:$0xff] %v4929_v14   ;;  %5453 = vst [vmem:[%s7244_s3 + $0x360] sm:$0xff] %v5249_v15   ;;  %v1740_v22 = vadd.f32 %v6901_v47, %v1739_v20  ;;  %v2252_v23 = vadd.f32 %v6901_v47, %v2251_v21  ;;  %v5699_v24 = vpop.f32.mrb[94].mxu0  ;;  %v5827_v25 = vpop.f32.mrb[94].mxu1 }
 0x1b9   :  { %v1751_v26 = vadd.f32 %v6901_v47, %v5699_v24  ;;  %v2263_v27 = vadd.f32 %v6901_v47, %v5827_v25  ;;  %v1742_v28 = vpop.f32.mrb[95].mxu0  ;;  %v2254_v29 = vpop.f32.mrb[95].mxu1  ;;  %v2488_v32 = vmax.f32 %v1748_v18, 0.0  ;;  %v2616_v33 = vmax.f32 %v2260_v19, 0.0 }
 0x1ba   :  { %v1743_v30 = vadd.f32 %v6901_v47, %v1742_v28  ;;  %v2255_v31 = vadd.f32 %v6901_v47, %v2254_v29  ;;  %v2486_v36 = vmax.f32 %v1740_v22, 0.0  ;;  %v2614_v37 = vmax.f32 %v2252_v23, 0.0 }
 0x1bb   :  { %v2489_v34 = vmax.f32 %v1751_v26, 0.0  ;;  %v2617_v35 = vmax.f32 %v2263_v27, 0.0 }
 0x1bc   :  { %v2487_v38 = vmax.f32 %v1743_v30, 0.0  ;;  %v2615_v39 = vmax.f32 %v2255_v31, 0.0 }
 0x1bd   :  { %v4944_v40 = vpack.c.bf16 %v2489_v34, %v2488_v32  ;;  %v5264_v41 = vpack.c.bf16 %v2617_v35, %v2616_v33 }
 0x1be   :  { %v4939_v42 = vpack.c.bf16 %v2487_v38, %v2486_v36  ;;  %v5259_v43 = vpack.c.bf16 %v2615_v39, %v2614_v37  ;;  %v5702_v44 = vpop.f32.mrb[96].mxu0  ;;  %v5830_v45 = vpop.f32.mrb[96].mxu1 }
 0x1bf   :  { %5392 = vst [vmem:[%s7244_s3 + $0x178] sm:$0xff] %v4944_v40   ;;  %5456 = vst [vmem:[%s7244_s3 + $0x378] sm:$0xff] %v5264_v41   ;;  %v1764_v46 = vadd.f32 %v6901_v47, %v5702_v44  ;;  %v2276_v48 = vadd.f32 %v6901_v47, %v5830_v45  ;;  %v1755_v49 = vpop.f32.mrb[97].mxu0  ;;  %v2267_v50 = vpop.f32.mrb[97].mxu1 }
 0x1c0   :  { %5391 = vst [vmem:[%s7244_s3 + $0x170] sm:$0xff] %v4939_v42   ;;  %5455 = vst [vmem:[%s7244_s3 + $0x370] sm:$0xff] %v5259_v43   ;;  %v1756_v51 = vadd.f32 %v6901_v47, %v1755_v49  ;;  %v2268_v52 = vadd.f32 %v6901_v47, %v2267_v50  ;;  %v5703_v53 = vpop.f32.mrb[98].mxu0  ;;  %v5831_v54 = vpop.f32.mrb[98].mxu1 }
 0x1c1   :  { %v1767_v55 = vadd.f32 %v6901_v47, %v5703_v53  ;;  %v2279_v56 = vadd.f32 %v6901_v47, %v5831_v54  ;;  %v1758_v57 = vpop.f32.mrb[99].mxu0  ;;  %v2270_v58 = vpop.f32.mrb[99].mxu1  ;;  %v2492_v61 = vmax.f32 %v1764_v46, 0.0  ;;  %v2620_v62 = vmax.f32 %v2276_v48, 0.0 }
 0x1c2   :  { %v1759_v59 = vadd.f32 %v6901_v47, %v1758_v57  ;;  %v2271_v60 = vadd.f32 %v6901_v47, %v2270_v58  ;;  %v2490_v1 = vmax.f32 %v1756_v51, 0.0  ;;  %v2618_v2 = vmax.f32 %v2268_v52, 0.0 }
 0x1c3   :  { %v2493_v63 = vmax.f32 %v1767_v55, 0.0  ;;  %v2621_v0 = vmax.f32 %v2279_v56, 0.0 }
 0x1c4   :  { %v2491_v3 = vmax.f32 %v1759_v59, 0.0  ;;  %v2619_v4 = vmax.f32 %v2271_v60, 0.0 }
 0x1c5   :  { %v4954_v5 = vpack.c.bf16 %v2493_v63, %v2492_v61  ;;  %v5274_v6 = vpack.c.bf16 %v2621_v0, %v2620_v62 }
 0x1c6   :  { %v4949_v7 = vpack.c.bf16 %v2491_v3, %v2490_v1  ;;  %v5269_v8 = vpack.c.bf16 %v2619_v4, %v2618_v2  ;;  %v5706_v9 = vpop.f32.mrb[100].mxu0  ;;  %v5834_v10 = vpop.f32.mrb[100].mxu1 }
 0x1c7   :  { %5394 = vst [vmem:[%s7244_s3 + $0x188] sm:$0xff] %v4954_v5   ;;  %5458 = vst [vmem:[%s7244_s3 + $0x388] sm:$0xff] %v5274_v6   ;;  %v1780_v11 = vadd.f32 %v6901_v47, %v5706_v9  ;;  %v2292_v12 = vadd.f32 %v6901_v47, %v5834_v10  ;;  %v1771_v13 = vpop.f32.mrb[101].mxu0  ;;  %v2283_v14 = vpop.f32.mrb[101].mxu1 }
 0x1c8   :  { %5393 = vst [vmem:[%s7244_s3 + $0x180] sm:$0xff] %v4949_v7   ;;  %5457 = vst [vmem:[%s7244_s3 + $0x380] sm:$0xff] %v5269_v8   ;;  %v1772_v15 = vadd.f32 %v6901_v47, %v1771_v13  ;;  %v2284_v16 = vadd.f32 %v6901_v47, %v2283_v14  ;;  %v5707_v17 = vpop.f32.mrb[102].mxu0  ;;  %v5835_v18 = vpop.f32.mrb[102].mxu1 }
 0x1c9   :  { %v1783_v19 = vadd.f32 %v6901_v47, %v5707_v17  ;;  %v2295_v20 = vadd.f32 %v6901_v47, %v5835_v18  ;;  %v1774_v21 = vpop.f32.mrb[103].mxu0  ;;  %v2286_v22 = vpop.f32.mrb[103].mxu1  ;;  %v2496_v25 = vmax.f32 %v1780_v11, 0.0  ;;  %v2624_v26 = vmax.f32 %v2292_v12, 0.0 }
 0x1ca   :  { %v1775_v23 = vadd.f32 %v6901_v47, %v1774_v21  ;;  %v2287_v24 = vadd.f32 %v6901_v47, %v2286_v22  ;;  %v2494_v29 = vmax.f32 %v1772_v15, 0.0  ;;  %v2622_v30 = vmax.f32 %v2284_v16, 0.0 }
 0x1cb   :  { %v2497_v27 = vmax.f32 %v1783_v19, 0.0  ;;  %v2625_v28 = vmax.f32 %v2295_v20, 0.0 }
 0x1cc   :  { %v2495_v31 = vmax.f32 %v1775_v23, 0.0  ;;  %v2623_v32 = vmax.f32 %v2287_v24, 0.0 }
 0x1cd   :  { %v4964_v33 = vpack.c.bf16 %v2497_v27, %v2496_v25  ;;  %v5284_v34 = vpack.c.bf16 %v2625_v28, %v2624_v26 }
 0x1ce   :  { %v4959_v35 = vpack.c.bf16 %v2495_v31, %v2494_v29  ;;  %v5279_v36 = vpack.c.bf16 %v2623_v32, %v2622_v30  ;;  %v5710_v37 = vpop.f32.mrb[104].mxu0  ;;  %v5838_v38 = vpop.f32.mrb[104].mxu1 }
 0x1cf   :  { %5396 = vst [vmem:[%s7244_s3 + $0x198] sm:$0xff] %v4964_v33   ;;  %5460 = vst [vmem:[%s7244_s3 + $0x398] sm:$0xff] %v5284_v34   ;;  %v1796_v39 = vadd.f32 %v6901_v47, %v5710_v37  ;;  %v2308_v40 = vadd.f32 %v6901_v47, %v5838_v38  ;;  %v1787_v41 = vpop.f32.mrb[105].mxu0  ;;  %v2299_v42 = vpop.f32.mrb[105].mxu1 }
 0x1d0   :  { %5395 = vst [vmem:[%s7244_s3 + $0x190] sm:$0xff] %v4959_v35   ;;  %5459 = vst [vmem:[%s7244_s3 + $0x390] sm:$0xff] %v5279_v36   ;;  %v1788_v43 = vadd.f32 %v6901_v47, %v1787_v41  ;;  %v2300_v44 = vadd.f32 %v6901_v47, %v2299_v42  ;;  %v5711_v45 = vpop.f32.mrb[106].mxu0  ;;  %v5839_v46 = vpop.f32.mrb[106].mxu1 }
 0x1d1   :  { %v1799_v48 = vadd.f32 %v6901_v47, %v5711_v45  ;;  %v2311_v49 = vadd.f32 %v6901_v47, %v5839_v46  ;;  %v1790_v50 = vpop.f32.mrb[107].mxu0  ;;  %v2302_v51 = vpop.f32.mrb[107].mxu1  ;;  %v2500_v54 = vmax.f32 %v1796_v39, 0.0  ;;  %v2628_v55 = vmax.f32 %v2308_v40, 0.0 }
 0x1d2   :  { %v1791_v52 = vadd.f32 %v6901_v47, %v1790_v50  ;;  %v2303_v53 = vadd.f32 %v6901_v47, %v2302_v51  ;;  %v2498_v58 = vmax.f32 %v1788_v43, 0.0  ;;  %v2626_v59 = vmax.f32 %v2300_v44, 0.0 }
 0x1d3   :  { %v2501_v56 = vmax.f32 %v1799_v48, 0.0  ;;  %v2629_v57 = vmax.f32 %v2311_v49, 0.0 }
 0x1d4   :  { %v2499_v60 = vmax.f32 %v1791_v52, 0.0  ;;  %v2627_v61 = vmax.f32 %v2303_v53, 0.0 }
 0x1d5   :  { %v4974_v62 = vpack.c.bf16 %v2501_v56, %v2500_v54  ;;  %v5294_v63 = vpack.c.bf16 %v2629_v57, %v2628_v55 }
 0x1d6   :  { %v4969_v0 = vpack.c.bf16 %v2499_v60, %v2498_v58  ;;  %v5289_v1 = vpack.c.bf16 %v2627_v61, %v2626_v59  ;;  %v5714_v2 = vpop.f32.mrb[108].mxu0  ;;  %v5842_v3 = vpop.f32.mrb[108].mxu1 }
 0x1d7   :  { %5398 = vst [vmem:[%s7244_s3 + $0x1a8] sm:$0xff] %v4974_v62   ;;  %5462 = vst [vmem:[%s7244_s3 + $0x3a8] sm:$0xff] %v5294_v63   ;;  %v1812_v4 = vadd.f32 %v6901_v47, %v5714_v2  ;;  %v2324_v5 = vadd.f32 %v6901_v47, %v5842_v3  ;;  %v1803_v6 = vpop.f32.mrb[109].mxu0  ;;  %v2315_v7 = vpop.f32.mrb[109].mxu1 }
 0x1d8   :  { %5397 = vst [vmem:[%s7244_s3 + $0x1a0] sm:$0xff] %v4969_v0   ;;  %5461 = vst [vmem:[%s7244_s3 + $0x3a0] sm:$0xff] %v5289_v1   ;;  %v1804_v8 = vadd.f32 %v6901_v47, %v1803_v6  ;;  %v2316_v9 = vadd.f32 %v6901_v47, %v2315_v7  ;;  %v5715_v10 = vpop.f32.mrb[110].mxu0  ;;  %v5843_v11 = vpop.f32.mrb[110].mxu1 }
 0x1d9   :  { %v1815_v12 = vadd.f32 %v6901_v47, %v5715_v10  ;;  %v2327_v13 = vadd.f32 %v6901_v47, %v5843_v11  ;;  %v1806_v14 = vpop.f32.mrb[111].mxu0  ;;  %v2318_v15 = vpop.f32.mrb[111].mxu1  ;;  %v2504_v18 = vmax.f32 %v1812_v4, 0.0  ;;  %v2632_v19 = vmax.f32 %v2324_v5, 0.0 }
 0x1da   :  { %v1807_v16 = vadd.f32 %v6901_v47, %v1806_v14  ;;  %v2319_v17 = vadd.f32 %v6901_v47, %v2318_v15  ;;  %v2502_v22 = vmax.f32 %v1804_v8, 0.0  ;;  %v2630_v23 = vmax.f32 %v2316_v9, 0.0 }
 0x1db   :  { %v2505_v20 = vmax.f32 %v1815_v12, 0.0  ;;  %v2633_v21 = vmax.f32 %v2327_v13, 0.0 }
 0x1dc   :  { %v2503_v24 = vmax.f32 %v1807_v16, 0.0  ;;  %v2631_v25 = vmax.f32 %v2319_v17, 0.0 }
 0x1dd   :  { %v4984_v26 = vpack.c.bf16 %v2505_v20, %v2504_v18  ;;  %v5304_v27 = vpack.c.bf16 %v2633_v21, %v2632_v19 }
 0x1de   :  { %v4979_v28 = vpack.c.bf16 %v2503_v24, %v2502_v22  ;;  %v5299_v29 = vpack.c.bf16 %v2631_v25, %v2630_v23  ;;  %v5718_v30 = vpop.f32.mrb[112].mxu0  ;;  %v5846_v31 = vpop.f32.mrb[112].mxu1 }
 0x1df   :  { %5400 = vst [vmem:[%s7244_s3 + $0x1b8] sm:$0xff] %v4984_v26   ;;  %5464 = vst [vmem:[%s7244_s3 + $0x3b8] sm:$0xff] %v5304_v27   ;;  %v1828_v32 = vadd.f32 %v6901_v47, %v5718_v30  ;;  %v2340_v33 = vadd.f32 %v6901_v47, %v5846_v31  ;;  %v1819_v34 = vpop.f32.mrb[113].mxu0  ;;  %v2331_v35 = vpop.f32.mrb[113].mxu1 }
 0x1e0   :  { %5399 = vst [vmem:[%s7244_s3 + $0x1b0] sm:$0xff] %v4979_v28   ;;  %5463 = vst [vmem:[%s7244_s3 + $0x3b0] sm:$0xff] %v5299_v29   ;;  %v1820_v36 = vadd.f32 %v6901_v47, %v1819_v34  ;;  %v2332_v37 = vadd.f32 %v6901_v47, %v2331_v35  ;;  %v5719_v38 = vpop.f32.mrb[114].mxu0  ;;  %v5847_v39 = vpop.f32.mrb[114].mxu1 }
 0x1e1   :  { %v1831_v40 = vadd.f32 %v6901_v47, %v5719_v38  ;;  %v2343_v41 = vadd.f32 %v6901_v47, %v5847_v39  ;;  %v1822_v42 = vpop.f32.mrb[115].mxu0  ;;  %v2334_v43 = vpop.f32.mrb[115].mxu1  ;;  %v2508_v46 = vmax.f32 %v1828_v32, 0.0  ;;  %v2636_v48 = vmax.f32 %v2340_v33, 0.0 }
 0x1e2   :  { %v1823_v44 = vadd.f32 %v6901_v47, %v1822_v42  ;;  %v2335_v45 = vadd.f32 %v6901_v47, %v2334_v43  ;;  %v2506_v51 = vmax.f32 %v1820_v36, 0.0  ;;  %v2634_v52 = vmax.f32 %v2332_v37, 0.0 }
 0x1e3   :  { %v2509_v49 = vmax.f32 %v1831_v40, 0.0  ;;  %v2637_v50 = vmax.f32 %v2343_v41, 0.0 }
 0x1e4   :  { %v2507_v53 = vmax.f32 %v1823_v44, 0.0  ;;  %v2635_v54 = vmax.f32 %v2335_v45, 0.0 }
 0x1e5   :  { %v4994_v55 = vpack.c.bf16 %v2509_v49, %v2508_v46  ;;  %v5314_v56 = vpack.c.bf16 %v2637_v50, %v2636_v48 }
 0x1e6   :  { %v4989_v57 = vpack.c.bf16 %v2507_v53, %v2506_v51  ;;  %v5309_v58 = vpack.c.bf16 %v2635_v54, %v2634_v52  ;;  %v5722_v59 = vpop.f32.mrb[116].mxu0  ;;  %v5850_v60 = vpop.f32.mrb[116].mxu1 }
 0x1e7   :  { %5402 = vst [vmem:[%s7244_s3 + $0x1c8] sm:$0xff] %v4994_v55   ;;  %5466 = vst [vmem:[%s7244_s3 + $0x3c8] sm:$0xff] %v5314_v56   ;;  %v1844_v61 = vadd.f32 %v6901_v47, %v5722_v59  ;;  %v2356_v62 = vadd.f32 %v6901_v47, %v5850_v60  ;;  %v1835_v63 = vpop.f32.mrb[117].mxu0  ;;  %v2347_v0 = vpop.f32.mrb[117].mxu1 }
 0x1e8   :  { %5401 = vst [vmem:[%s7244_s3 + $0x1c0] sm:$0xff] %v4989_v57   ;;  %5465 = vst [vmem:[%s7244_s3 + $0x3c0] sm:$0xff] %v5309_v58   ;;  %v1836_v1 = vadd.f32 %v6901_v47, %v1835_v63  ;;  %v2348_v2 = vadd.f32 %v6901_v47, %v2347_v0  ;;  %v5723_v3 = vpop.f32.mrb[118].mxu0  ;;  %v5851_v4 = vpop.f32.mrb[118].mxu1 }
 0x1e9   :  { %v1847_v5 = vadd.f32 %v6901_v47, %v5723_v3  ;;  %v2359_v6 = vadd.f32 %v6901_v47, %v5851_v4  ;;  %v1838_v7 = vpop.f32.mrb[119].mxu0  ;;  %v2350_v8 = vpop.f32.mrb[119].mxu1  ;;  %v2512_v11 = vmax.f32 %v1844_v61, 0.0  ;;  %v2640_v12 = vmax.f32 %v2356_v62, 0.0 }
 0x1ea   :  { %v1839_v9 = vadd.f32 %v6901_v47, %v1838_v7  ;;  %v2351_v10 = vadd.f32 %v6901_v47, %v2350_v8  ;;  %v2510_v15 = vmax.f32 %v1836_v1, 0.0  ;;  %v2638_v16 = vmax.f32 %v2348_v2, 0.0 }
 0x1eb   :  { %v2513_v13 = vmax.f32 %v1847_v5, 0.0  ;;  %v2641_v14 = vmax.f32 %v2359_v6, 0.0 }
 0x1ec   :  { %v2511_v17 = vmax.f32 %v1839_v9, 0.0  ;;  %v2639_v18 = vmax.f32 %v2351_v10, 0.0 }
 0x1ed   :  { %v5004_v19 = vpack.c.bf16 %v2513_v13, %v2512_v11  ;;  %v5324_v20 = vpack.c.bf16 %v2641_v14, %v2640_v12 }
 0x1ee   :  { %v4999_v21 = vpack.c.bf16 %v2511_v17, %v2510_v15  ;;  %v5319_v22 = vpack.c.bf16 %v2639_v18, %v2638_v16  ;;  %v5726_v23 = vpop.f32.mrb[120].mxu0  ;;  %v5854_v24 = vpop.f32.mrb[120].mxu1 }
 0x1ef   :  { %5404 = vst [vmem:[%s7244_s3 + $0x1d8] sm:$0xff] %v5004_v19   ;;  %5468 = vst [vmem:[%s7244_s3 + $0x3d8] sm:$0xff] %v5324_v20   ;;  %v1860_v25 = vadd.f32 %v6901_v47, %v5726_v23  ;;  %v2372_v26 = vadd.f32 %v6901_v47, %v5854_v24  ;;  %v1851_v27 = vpop.f32.mrb[121].mxu0  ;;  %v2363_v28 = vpop.f32.mrb[121].mxu1 }
 0x1f0   :  { %5403 = vst [vmem:[%s7244_s3 + $0x1d0] sm:$0xff] %v4999_v21   ;;  %5467 = vst [vmem:[%s7244_s3 + $0x3d0] sm:$0xff] %v5319_v22   ;;  %v1852_v29 = vadd.f32 %v6901_v47, %v1851_v27  ;;  %v2364_v30 = vadd.f32 %v6901_v47, %v2363_v28  ;;  %v5727_v31 = vpop.f32.mrb[122].mxu0  ;;  %v5855_v32 = vpop.f32.mrb[122].mxu1 }
 0x1f1   :  { %v1863_v33 = vadd.f32 %v6901_v47, %v5727_v31  ;;  %v2375_v34 = vadd.f32 %v6901_v47, %v5855_v32  ;;  %v1854_v35 = vpop.f32.mrb[123].mxu0  ;;  %v2366_v36 = vpop.f32.mrb[123].mxu1  ;;  %v2516_v39 = vmax.f32 %v1860_v25, 0.0  ;;  %v2644_v40 = vmax.f32 %v2372_v26, 0.0 }
 0x1f2   :  { %v1855_v37 = vadd.f32 %v6901_v47, %v1854_v35  ;;  %v2367_v38 = vadd.f32 %v6901_v47, %v2366_v36  ;;  %v2514_v43 = vmax.f32 %v1852_v29, 0.0  ;;  %v2642_v44 = vmax.f32 %v2364_v30, 0.0  ;;  %v5996_v47 = vld [vmem:[#allocation4] ss:$0 sm:$0xff] }
 0x1f3   :  { %v2517_v41 = vmax.f32 %v1863_v33, 0.0  ;;  %v2645_v42 = vmax.f32 %v2375_v34, 0.0 }
 0x1f4   :  { %v2515_v45 = vmax.f32 %v1855_v37, 0.0  ;;  %v2643_v46 = vmax.f32 %v2367_v38, 0.0 }
 0x1f5   :  { %v5014_v48 = vpack.c.bf16 %v2517_v41, %v2516_v39  ;;  %v5334_v49 = vpack.c.bf16 %v2645_v42, %v2644_v40 }
 0x1f6   :  { %v5009_v50 = vpack.c.bf16 %v2515_v45, %v2514_v43  ;;  %v5329_v51 = vpack.c.bf16 %v2643_v46, %v2642_v44  ;;  %v5730_v52 = vpop.f32.mrb[124].mxu0  ;;  %v5858_v53 = vpop.f32.mrb[124].mxu1 }
 0x1f7   :  { %5406 = vst [vmem:[%s7244_s3 + $0x1e8] sm:$0xff] %v5014_v48   ;;  %5470 = vst [vmem:[%s7244_s3 + $0x3e8] sm:$0xff] %v5334_v49   ;;  %v1876_v54 = vadd.f32 %v5996_v47, %v5730_v52  ;;  %v2388_v55 = vadd.f32 %v5996_v47, %v5858_v53  ;;  %v1867_v56 = vpop.f32.mrb[125].mxu0  ;;  %v2379_v57 = vpop.f32.mrb[125].mxu1 }
 0x1f8   :  { %5405 = vst [vmem:[%s7244_s3 + $0x1e0] sm:$0xff] %v5009_v50   ;;  %5469 = vst [vmem:[%s7244_s3 + $0x3e0] sm:$0xff] %v5329_v51   ;;  %v1868_v58 = vadd.f32 %v5996_v47, %v1867_v56  ;;  %v2380_v59 = vadd.f32 %v5996_v47, %v2379_v57  ;;  %v5731_v60 = vpop.f32.mrb[126].mxu0  ;;  %v5859_v61 = vpop.f32.mrb[126].mxu1 }
 0x1f9   :  { %v1879_v62 = vadd.f32 %v5996_v47, %v5731_v60  ;;  %v2391_v63 = vadd.f32 %v5996_v47, %v5859_v61  ;;  %v1870_v0 = vpop.f32.mrb[127].mxu0  ;;  %v2382_v1 = vpop.f32.mrb[127].mxu1  ;;  %v2520_v4 = vmax.f32 %v1876_v54, 0.0  ;;  %v2648_v5 = vmax.f32 %v2388_v55, 0.0 }
 0x1fa   :  { %v1871_v2 = vadd.f32 %v5996_v47, %v1870_v0  ;;  %v2383_v3 = vadd.f32 %v5996_v47, %v2382_v1  ;;  %v2518_v8 = vmax.f32 %v1868_v58, 0.0  ;;  %v2646_v9 = vmax.f32 %v2380_v59, 0.0 }
 0x1fb   :  { %v2521_v6 = vmax.f32 %v1879_v62, 0.0  ;;  %v2649_v7 = vmax.f32 %v2391_v63, 0.0 }
 0x1fc   :  { %v2519_v10 = vmax.f32 %v1871_v2, 0.0  ;;  %v2647_v11 = vmax.f32 %v2383_v3, 0.0 }
 0x1fd   :  { %v5024_v12 = vpack.c.bf16 %v2521_v6, %v2520_v4  ;;  %v5344_v13 = vpack.c.bf16 %v2649_v7, %v2648_v5 }
 0x1fe   :  { %v5019_v14 = vpack.c.bf16 %v2519_v10, %v2518_v8  ;;  %v5339_v15 = vpack.c.bf16 %v2647_v11, %v2646_v9 }
 0x1ff   :  { %5408 = vst [vmem:[%s7244_s3 + $0x1f8] sm:$0xff] %v5024_v12   ;;  %5472 = vst [vmem:[%s7244_s3 + $0x3f8] sm:$0xff] %v5344_v13  }
 0x200   :  { %5407 = vst [vmem:[%s7244_s3 + $0x1f0] sm:$0xff] %v5019_v14   ;;  %5471 = vst [vmem:[%s7244_s3 + $0x3f0] sm:$0xff] %v5339_v15  }
 0x201   :  { %3934 = vsyncpa [#allocation3], 1 }
 0x202   :  { %3935 = vsyncpa [#allocation5], 1 }

// kernel: autoencoder_forward.9
= control target key start
LH: loop header
LB: loop body
LE: loop exit
PB: predicated region body
PF: predicated region fallthrough
CT: control target
= control target key end

     0   :  { %v2846_v0 = vmov 0   ;;  %s3543_s1 = inlined_call_operand.vmem [shape: bf16[1,512,128], index: 1, kind: input, shape index: {}]   ;;  %s3544_s0 = inlined_call_operand.vmem [shape: bf16[1,512,512], index: 0, kind: input, shape index: {}]   ;;  %s3545_s2 = inlined_call_operand.vmem [shape: f32[1,128], index: 2, kind: input, shape index: {}]   ;;  %s3546_s3 = inlined_call_operand.vmem [shape: bf16[1,512,128], index: 3, kind: output, shape index: {}]  }
   0x1   :  { %1046 = vmatprep.subr.bf16.mxu1 %v2846_v0  ;;  %1335 = vmatprep.subr.bf16.mxu0 %v2846_v0  ;;  %v2621_v1 = vld [vmem:[%s3543_s1] sm:$0xff]   ;;  %v2623_v3 = vld [vmem:[%s3543_s1 + $0x8] sm:$0xff]   ;;  %v2625_v5 = vld [vmem:[%s3543_s1 + $0x10] sm:$0xff]  }
   0x2   :  { %v2622_v2 = vld [vmem:[%s3543_s1 + $0x80] sm:$0xff]   ;;  %1047 = vmatpush1.bf16.msra.mxu1 %v2621_v1  ;;  %v2624_v4 = vld [vmem:[%s3543_s1 + $0x88] sm:$0xff]   ;;  %v2626_v6 = vld [vmem:[%s3543_s1 + $0x90] sm:$0xff]  }
   0x3   :  { %1336 = vmatpush1.bf16.msra.mxu0 %v2622_v2  ;;  %1048 = vmatprep.subr.bf16.mxu1 %v2846_v0  ;;  %v2627_v7 = vld [vmem:[%s3543_s1 + $0x18] sm:$0xff]   ;;  %v2629_v9 = vld [vmem:[%s3543_s1 + $0x20] sm:$0xff]   ;;  %v2631_v11 = vld [vmem:[%s3543_s1 + $0x28] sm:$0xff]  }
   0x4   :  { %1337 = vmatprep.subr.bf16.mxu0 %v2846_v0  ;;  %v2628_v8 = vld [vmem:[%s3543_s1 + $0x98] sm:$0xff]   ;;  %v2630_v10 = vld [vmem:[%s3543_s1 + $0xa0] sm:$0xff]   ;;  %v2632_v12 = vld [vmem:[%s3543_s1 + $0xa8] sm:$0xff]  }
   0x5   :  { %v2633_v13 = vld [vmem:[%s3543_s1 + $0x30] sm:$0xff]   ;;  %v2635_v15 = vld [vmem:[%s3543_s1 + $0x38] sm:$0xff]   ;;  %v2637_v17 = vld [vmem:[%s3543_s1 + $0x40] sm:$0xff]  }
   0x6   :  { %1049 = vmatpush1.bf16.msra.mxu1 %v2623_v3  ;;  %v2634_v14 = vld [vmem:[%s3543_s1 + $0xb0] sm:$0xff]   ;;  %v2636_v16 = vld [vmem:[%s3543_s1 + $0xb8] sm:$0xff]   ;;  %v2638_v18 = vld [vmem:[%s3543_s1 + $0xc0] sm:$0xff]  }
   0x7   :  { %1338 = vmatpush1.bf16.msra.mxu0 %v2624_v4  ;;  %1050 = vmatprep.subr.bf16.mxu1 %v2846_v0  ;;  %v2655_v19 = vld [vmem:[%s3544_s0 + $0x4] ss:$16 sps:$4 sm:$0xff]   ;;  %v2639_v20 = vld [vmem:[%s3543_s1 + $0x48] sm:$0xff]   ;;  %v2643_v25 = vld [vmem:[%s3543_s1 + $0x58] sm:$0xff]  }
   0x8   :  { %1339 = vmatprep.subr.bf16.mxu0 %v2846_v0  ;;  %v2658_v21 = vld [vmem:[%s3544_s0 + $0xc] ss:$16 sps:$4 sm:$0xff]   ;;  %1078 = vmatprep.mubr.bf16.mxu1 %v2655_v19  ;;  %v2641_v23 = vld [vmem:[%s3543_s1 + $0x50] sm:$0xff]   ;;  %v2645_v27 = vld [vmem:[%s3543_s1 + $0x60] sm:$0xff]  }
   0x9   :  { %v2640_v22 = vld [vmem:[%s3543_s1 + $0xc8] sm:$0xff]   ;;  %1367 = vmatprep.mubr.bf16.mxu0 %v2658_v21  ;;  %v2642_v24 = vld [vmem:[%s3543_s1 + $0xd0] sm:$0xff]   ;;  %v2644_v26 = vld [vmem:[%s3543_s1 + $0xd8] sm:$0xff]  }
   0xa   :  { %1051 = vmatpush1.bf16.msra.mxu1 %v2625_v5  ;;  %v2646_v28 = vld [vmem:[%s3543_s1 + $0xe0] sm:$0xff]   ;;  %v2647_v29 = vld [vmem:[%s3543_s1 + $0x68] sm:$0xff]   ;;  %v2649_v31 = vld [vmem:[%s3543_s1 + $0x70] sm:$0xff]  }
   0xb   :  { %1340 = vmatpush1.bf16.msra.mxu0 %v2626_v6  ;;  %1052 = vmatprep.subr.bf16.mxu1 %v2846_v0  ;;  %v2648_v30 = vld [vmem:[%s3543_s1 + $0xe8] sm:$0xff]   ;;  %v2650_v32 = vld [vmem:[%s3543_s1 + $0xf0] sm:$0xff]   ;;  %v2651_v33 = vld [vmem:[%s3543_s1 + $0x78] sm:$0xff]  }
   0xc   :  { %1341 = vmatprep.subr.bf16.mxu0 %v2846_v0  ;;  %v2652_v34 = vld [vmem:[%s3543_s1 + $0xf8] sm:$0xff]   ;;  %v2653_v35 = vld [vmem:[%s3544_s0] ss:$16 sps:$4 sm:$0xff]   ;;  %v2659_v37 = vld [vmem:[%s3544_s0 + $0x24] ss:$16 sps:$4 sm:$0xff]  }
   0xd   :  { %v2656_v36 = vld [vmem:[%s3544_s0 + $0x8] ss:$16 sps:$4 sm:$0xff]   ;;  %v2661_v38 = vld [vmem:[%s3544_s0 + $0x2c] ss:$16 sps:$4 sm:$0xff]   ;;  %v2663_v39 = vld [vmem:[%s3544_s0 + $0x20] ss:$16 sps:$4 sm:$0xff]  }
   0xe   :  { %1053 = vmatpush1.bf16.msra.mxu1 %v2627_v7  ;;  %v2664_v40 = vld [vmem:[%s3544_s0 + $0x28] ss:$16 sps:$4 sm:$0xff]   ;;  %v2665_v41 = vld [vmem:[%s3544_s0 + $0x44] ss:$16 sps:$4 sm:$0xff]   ;;  %v2667_v42 = vld [vmem:[%s3544_s0 + $0x4c] ss:$16 sps:$4 sm:$0xff]  }
   0xf   :  { %1342 = vmatpush1.bf16.msra.mxu0 %v2628_v8  ;;  %1054 = vmatprep.subr.bf16.mxu1 %v2846_v0  ;;  %v2669_v43 = vld [vmem:[%s3544_s0 + $0x40] ss:$16 sps:$4 sm:$0xff]   ;;  %v2670_v44 = vld [vmem:[%s3544_s0 + $0x48] ss:$16 sps:$4 sm:$0xff]   ;;  %v2671_v45 = vld [vmem:[%s3544_s0 + $0x64] ss:$16 sps:$4 sm:$0xff]  }
  0x10   :  { %1343 = vmatprep.subr.bf16.mxu0 %v2846_v0  ;;  %v2673_v46 = vld [vmem:[%s3544_s0 + $0x6c] ss:$16 sps:$4 sm:$0xff]   ;;  %v2675_v47 = vld [vmem:[%s3544_s0 + $0x60] ss:$16 sps:$4 sm:$0xff]   ;;  %v2676_v48 = vld [vmem:[%s3544_s0 + $0x68] ss:$16 sps:$4 sm:$0xff]  }
  0x11   :  { %v2677_v49 = vld [vmem:[%s3544_s0 + $0x84] ss:$16 sps:$4 sm:$0xff]   ;;  %v2679_v50 = vld [vmem:[%s3544_s0 + $0x8c] ss:$16 sps:$4 sm:$0xff]   ;;  %v2681_v51 = vld [vmem:[%s3544_s0 + $0x80] ss:$16 sps:$4 sm:$0xff]  }
  0x12   :  { %1055 = vmatpush1.bf16.msra.mxu1 %v2629_v9  ;;  %v2682_v52 = vld [vmem:[%s3544_s0 + $0x88] ss:$16 sps:$4 sm:$0xff]   ;;  %v2683_v53 = vld [vmem:[%s3544_s0 + $0xa4] ss:$16 sps:$4 sm:$0xff]   ;;  %v2685_v54 = vld [vmem:[%s3544_s0 + $0xac] ss:$16 sps:$4 sm:$0xff]  }
  0x13   :  { %1344 = vmatpush1.bf16.msra.mxu0 %v2630_v10  ;;  %1056 = vmatprep.subr.bf16.mxu1 %v2846_v0  ;;  %v2687_v55 = vld [vmem:[%s3544_s0 + $0xa0] ss:$16 sps:$4 sm:$0xff]   ;;  %v2688_v56 = vld [vmem:[%s3544_s0 + $0xa8] ss:$16 sps:$4 sm:$0xff]   ;;  %v2689_v57 = vld [vmem:[%s3544_s0 + $0xc4] ss:$16 sps:$4 sm:$0xff]  }
  0x14   :  { %1345 = vmatprep.subr.bf16.mxu0 %v2846_v0  ;;  %v2691_v58 = vld [vmem:[%s3544_s0 + $0xcc] ss:$16 sps:$4 sm:$0xff]   ;;  %v2693_v59 = vld [vmem:[%s3544_s0 + $0xc0] ss:$16 sps:$4 sm:$0xff]   ;;  %v2694_v60 = vld [vmem:[%s3544_s0 + $0xc8] ss:$16 sps:$4 sm:$0xff]  }
  0x15   :  { %v2695_v61 = vld [vmem:[%s3544_s0 + $0xe4] ss:$16 sps:$4 sm:$0xff]   ;;  %v2697_v62 = vld [vmem:[%s3544_s0 + $0xec] ss:$16 sps:$4 sm:$0xff]   ;;  %v2699_v63 = vld [vmem:[%s3544_s0 + $0xe0] ss:$16 sps:$4 sm:$0xff]  }
  0x16   :  { %1057 = vmatpush1.bf16.msra.mxu1 %v2631_v11  ;;  %v2701_v1 = vld [vmem:[%s3544_s0 + $0x104] ss:$16 sps:$4 sm:$0xff]   ;;  %v2703_v2 = vld [vmem:[%s3544_s0 + $0x10c] ss:$16 sps:$4 sm:$0xff]   ;;  %v2705_v3 = vld [vmem:[%s3544_s0 + $0x100] ss:$16 sps:$4 sm:$0xff]  }
  0x17   :  { %1346 = vmatpush1.bf16.msra.mxu0 %v2632_v12  ;;  %1058 = vmatprep.subr.bf16.mxu1 %v2846_v0  ;;  %v2706_v4 = vld [vmem:[%s3544_s0 + $0x108] ss:$16 sps:$4 sm:$0xff]   ;;  %v2707_v5 = vld [vmem:[%s3544_s0 + $0x124] ss:$16 sps:$4 sm:$0xff]   ;;  %v2709_v6 = vld [vmem:[%s3544_s0 + $0x12c] ss:$16 sps:$4 sm:$0xff]  }
  0x18   :  { %1347 = vmatprep.subr.bf16.mxu0 %v2846_v0  ;;  %v2711_v7 = vld [vmem:[%s3544_s0 + $0x120] ss:$16 sps:$4 sm:$0xff]   ;;  %v2712_v8 = vld [vmem:[%s3544_s0 + $0x128] ss:$16 sps:$4 sm:$0xff]   ;;  %v2713_v9 = vld [vmem:[%s3544_s0 + $0x144] ss:$16 sps:$4 sm:$0xff]  }
  0x19   :  { %v2715_v10 = vld [vmem:[%s3544_s0 + $0x14c] ss:$16 sps:$4 sm:$0xff]   ;;  %v2717_v11 = vld [vmem:[%s3544_s0 + $0x140] ss:$16 sps:$4 sm:$0xff]   ;;  %v2718_v12 = vld [vmem:[%s3544_s0 + $0x148] ss:$16 sps:$4 sm:$0xff]  }
  0x1a   :  { %1059 = vmatpush1.bf16.msra.mxu1 %v2633_v13  ;;  %v2719_v13 = vld [vmem:[%s3544_s0 + $0x164] ss:$16 sps:$4 sm:$0xff]   ;;  %v2729_v19 = vld [vmem:[%s3544_s0 + $0x180] ss:$16 sps:$4 sm:$0xff]  }
  0x1b   :  { %1348 = vmatpush1.bf16.msra.mxu0 %v2634_v14  ;;  %1060 = vmatprep.subr.bf16.mxu1 %v2846_v0  ;;  %v2721_v14 = vld [vmem:[%s3544_s0 + $0x16c] ss:$16 sps:$4 sm:$0xff]   ;;  %v2731_v21 = vld [vmem:[%s3544_s0 + $0x1a4] ss:$16 sps:$4 sm:$0xff]  }
  0x1c   :  { %1349 = vmatprep.subr.bf16.mxu0 %v2846_v0 }
  0x1e   :  { %1061 = vmatpush1.bf16.msra.mxu1 %v2635_v15  ;;  %v2723_v15 = vld [vmem:[%s3544_s0 + $0x160] ss:$16 sps:$4 sm:$0xff]  }
  0x1f   :  { %1350 = vmatpush1.bf16.msra.mxu0 %v2636_v16  ;;  %1062 = vmatprep.subr.bf16.mxu1 %v2846_v0  ;;  %v2724_v16 = vld [vmem:[%s3544_s0 + $0x168] ss:$16 sps:$4 sm:$0xff]  }
  0x20   :  { %1351 = vmatprep.subr.bf16.mxu0 %v2846_v0 }
  0x22   :  { %1063 = vmatpush1.bf16.msra.mxu1 %v2637_v17  ;;  %v2725_v17 = vld [vmem:[%s3544_s0 + $0x184] ss:$16 sps:$4 sm:$0xff]  }
  0x23   :  { %1352 = vmatpush1.bf16.msra.mxu0 %v2638_v18  ;;  %1064 = vmatprep.subr.bf16.mxu1 %v2846_v0  ;;  %v2727_v18 = vld [vmem:[%s3544_s0 + $0x18c] ss:$16 sps:$4 sm:$0xff]  }
  0x24   :  { %1353 = vmatprep.subr.bf16.mxu0 %v2846_v0 }
  0x26   :  { %1065 = vmatpush1.bf16.msra.mxu1 %v2639_v20  ;;  %v2730_v20 = vld [vmem:[%s3544_s0 + $0x188] ss:$16 sps:$4 sm:$0xff]  }
  0x27   :  { %1354 = vmatpush1.bf16.msra.mxu0 %v2640_v22  ;;  %1066 = vmatprep.subr.bf16.mxu1 %v2846_v0  ;;  %v2733_v22 = vld [vmem:[%s3544_s0 + $0x1ac] ss:$16 sps:$4 sm:$0xff]  }
  0x28   :  { %1355 = vmatprep.subr.bf16.mxu0 %v2846_v0 }
  0x2a   :  { %1067 = vmatpush1.bf16.msra.mxu1 %v2641_v23  ;;  %v2735_v23 = vld [vmem:[%s3544_s0 + $0x1a0] ss:$16 sps:$4 sm:$0xff]  }
  0x2b   :  { %1356 = vmatpush1.bf16.msra.mxu0 %v2642_v24  ;;  %1068 = vmatprep.subr.bf16.mxu1 %v2846_v0  ;;  %v2736_v24 = vld [vmem:[%s3544_s0 + $0x1a8] ss:$16 sps:$4 sm:$0xff]  }
  0x2c   :  { %1357 = vmatprep.subr.bf16.mxu0 %v2846_v0 }
  0x2e   :  { %1069 = vmatpush1.bf16.msra.mxu1 %v2643_v25  ;;  %v2737_v25 = vld [vmem:[%s3544_s0 + $0x1c4] ss:$16 sps:$4 sm:$0xff]  }
  0x2f   :  { %1358 = vmatpush1.bf16.msra.mxu0 %v2644_v26  ;;  %1070 = vmatprep.subr.bf16.mxu1 %v2846_v0  ;;  %v2739_v26 = vld [vmem:[%s3544_s0 + $0x1cc] ss:$16 sps:$4 sm:$0xff]  }
  0x30   :  { %1359 = vmatprep.subr.bf16.mxu0 %v2846_v0 }
  0x32   :  { %1071 = vmatpush1.bf16.msra.mxu1 %v2645_v27  ;;  %v2741_v27 = vld [vmem:[%s3544_s0 + $0x1c0] ss:$16 sps:$4 sm:$0xff]  }
  0x33   :  { %1360 = vmatpush1.bf16.msra.mxu0 %v2646_v28  ;;  %1072 = vmatprep.subr.bf16.mxu1 %v2846_v0  ;;  %v2742_v28 = vld [vmem:[%s3544_s0 + $0x1c8] ss:$16 sps:$4 sm:$0xff]  }
  0x34   :  { %1361 = vmatprep.subr.bf16.mxu0 %v2846_v0 }
  0x36   :  { %1073 = vmatpush1.bf16.msra.mxu1 %v2647_v29  ;;  %v2743_v29 = vld [vmem:[%s3544_s0 + $0x1e4] ss:$16 sps:$4 sm:$0xff]  }
  0x37   :  { %1362 = vmatpush1.bf16.msra.mxu0 %v2648_v30  ;;  %1074 = vmatprep.subr.bf16.mxu1 %v2846_v0  ;;  %v2745_v30 = vld [vmem:[%s3544_s0 + $0x1ec] ss:$16 sps:$4 sm:$0xff]  }
  0x38   :  { %1363 = vmatprep.subr.bf16.mxu0 %v2846_v0 }
  0x3a   :  { %1075 = vmatpush1.bf16.msra.mxu1 %v2649_v31  ;;  %v2747_v31 = vld [vmem:[%s3544_s0 + $0x1e0] ss:$16 sps:$4 sm:$0xff]  }
  0x3b   :  { %1364 = vmatpush1.bf16.msra.mxu0 %v2650_v32  ;;  %1076 = vmatprep.subr.bf16.mxu1 %v2846_v0  ;;  %v2748_v32 = vld [vmem:[%s3544_s0 + $0x1e8] ss:$16 sps:$4 sm:$0xff]  }
  0x3c   :  { %1365 = vmatprep.subr.bf16.mxu0 %v2846_v0  ;;  %v2700_v0 = vld [vmem:[%s3544_s0 + $0xe8] ss:$16 sps:$4 sm:$0xff]  }
  0x3e   :  { %1077 = vmatpush1.bf16.msra.mxu1 %v2651_v33  ;;  %v2749_v33 = vld [vmem:[%s3544_s0 + $0x204] ss:$16 sps:$4 sm:$0xff]  }
  0x3f   :  { %1366 = vmatpush1.bf16.msra.mxu0 %v2652_v34  ;;  %v2751_v34 = vld [vmem:[%s3544_s0 + $0x20c] ss:$16 sps:$4 sm:$0xff]  }
  0x41   :  { %1079 = vmatmul.mubr.bf16.vlgmr.msra.gmra.mrb[0].mxu1 %v2653_v35  ;;  %v2753_v35 = vld [vmem:[%s3544_s0 + $0x200] ss:$16 sps:$4 sm:$0xff]  }
  0x42   :  { %1368 = vmatmul.mubr.bf16.vlgmr.msra.gmra.mrb[0].mxu0 %v2656_v36  ;;  %1086 = vmatprep.mubr.bf16.mxu1 %v2659_v37  ;;  %v2754_v36 = vld [vmem:[%s3544_s0 + $0x208] ss:$16 sps:$4 sm:$0xff]   ;;  %v2755_v37 = vld [vmem:[%s3544_s0 + $0x224] ss:$16 sps:$4 sm:$0xff]  }
  0x43   :  { %1375 = vmatprep.mubr.bf16.mxu0 %v2661_v38  ;;  %v2757_v38 = vld [vmem:[%s3544_s0 + $0x22c] ss:$16 sps:$4 sm:$0xff]  }
  0x49   :  { %1087 = vmatmul.mubr.bf16.gmra.mrb[4].mxu1 %v2663_v39  ;;  %v2759_v39 = vld [vmem:[%s3544_s0 + $0x220] ss:$16 sps:$4 sm:$0xff]  }
  0x4a   :  { %1376 = vmatmul.mubr.bf16.gmra.mrb[4].mxu0 %v2664_v40  ;;  %1094 = vmatprep.mubr.bf16.mxu1 %v2665_v41  ;;  %v2760_v40 = vld [vmem:[%s3544_s0 + $0x228] ss:$16 sps:$4 sm:$0xff]   ;;  %v2761_v41 = vld [vmem:[%s3544_s0 + $0x244] ss:$16 sps:$4 sm:$0xff]  }
  0x4b   :  { %1383 = vmatprep.mubr.bf16.mxu0 %v2667_v42  ;;  %v2763_v42 = vld [vmem:[%s3544_s0 + $0x24c] ss:$16 sps:$4 sm:$0xff]  }
  0x51   :  { %1095 = vmatmul.mubr.bf16.gmra.mrb[8].mxu1 %v2669_v43  ;;  %v2765_v43 = vld [vmem:[%s3544_s0 + $0x240] ss:$16 sps:$4 sm:$0xff]  }
  0x52   :  { %1384 = vmatmul.mubr.bf16.gmra.mrb[8].mxu0 %v2670_v44  ;;  %1102 = vmatprep.mubr.bf16.mxu1 %v2671_v45  ;;  %v2766_v44 = vld [vmem:[%s3544_s0 + $0x248] ss:$16 sps:$4 sm:$0xff]   ;;  %v2767_v45 = vld [vmem:[%s3544_s0 + $0x264] ss:$16 sps:$4 sm:$0xff]  }
  0x53   :  { %1391 = vmatprep.mubr.bf16.mxu0 %v2673_v46  ;;  %v2769_v46 = vld [vmem:[%s3544_s0 + $0x26c] ss:$16 sps:$4 sm:$0xff]  }
  0x59   :  { %1103 = vmatmul.mubr.bf16.gmra.mrb[12].mxu1 %v2675_v47  ;;  %v2771_v47 = vld [vmem:[%s3544_s0 + $0x260] ss:$16 sps:$4 sm:$0xff]  }
  0x5a   :  { %1392 = vmatmul.mubr.bf16.gmra.mrb[12].mxu0 %v2676_v48  ;;  %1110 = vmatprep.mubr.bf16.mxu1 %v2677_v49  ;;  %v2772_v48 = vld [vmem:[%s3544_s0 + $0x268] ss:$16 sps:$4 sm:$0xff]   ;;  %v2773_v49 = vld [vmem:[%s3544_s0 + $0x284] ss:$16 sps:$4 sm:$0xff]  }
  0x5b   :  { %1399 = vmatprep.mubr.bf16.mxu0 %v2679_v50  ;;  %v2775_v50 = vld [vmem:[%s3544_s0 + $0x28c] ss:$16 sps:$4 sm:$0xff]  }
  0x61   :  { %1111 = vmatmul.mubr.bf16.gmra.mrb[16].mxu1 %v2681_v51  ;;  %v2777_v51 = vld [vmem:[%s3544_s0 + $0x280] ss:$16 sps:$4 sm:$0xff]  }
  0x62   :  { %1400 = vmatmul.mubr.bf16.gmra.mrb[16].mxu0 %v2682_v52  ;;  %1118 = vmatprep.mubr.bf16.mxu1 %v2683_v53  ;;  %v2778_v52 = vld [vmem:[%s3544_s0 + $0x288] ss:$16 sps:$4 sm:$0xff]   ;;  %v2779_v53 = vld [vmem:[%s3544_s0 + $0x2a4] ss:$16 sps:$4 sm:$0xff]  }
  0x63   :  { %1407 = vmatprep.mubr.bf16.mxu0 %v2685_v54  ;;  %v2781_v54 = vld [vmem:[%s3544_s0 + $0x2ac] ss:$16 sps:$4 sm:$0xff]  }
  0x69   :  { %1119 = vmatmul.mubr.bf16.gmra.mrb[20].mxu1 %v2687_v55  ;;  %v2783_v55 = vld [vmem:[%s3544_s0 + $0x2a0] ss:$16 sps:$4 sm:$0xff]  }
  0x6a   :  { %1408 = vmatmul.mubr.bf16.gmra.mrb[20].mxu0 %v2688_v56  ;;  %1126 = vmatprep.mubr.bf16.mxu1 %v2689_v57  ;;  %v2784_v56 = vld [vmem:[%s3544_s0 + $0x2a8] ss:$16 sps:$4 sm:$0xff]   ;;  %v2785_v57 = vld [vmem:[%s3544_s0 + $0x2c4] ss:$16 sps:$4 sm:$0xff]  }
  0x6b   :  { %1415 = vmatprep.mubr.bf16.mxu0 %v2691_v58  ;;  %v2787_v58 = vld [vmem:[%s3544_s0 + $0x2cc] ss:$16 sps:$4 sm:$0xff]  }
  0x71   :  { %1127 = vmatmul.mubr.bf16.gmra.mrb[24].mxu1 %v2693_v59  ;;  %v2789_v59 = vld [vmem:[%s3544_s0 + $0x2c0] ss:$16 sps:$4 sm:$0xff]  }
  0x72   :  { %1416 = vmatmul.mubr.bf16.gmra.mrb[24].mxu0 %v2694_v60  ;;  %1134 = vmatprep.mubr.bf16.mxu1 %v2695_v61  ;;  %v2790_v60 = vld [vmem:[%s3544_s0 + $0x2c8] ss:$16 sps:$4 sm:$0xff]   ;;  %v2791_v61 = vld [vmem:[%s3544_s0 + $0x2e4] ss:$16 sps:$4 sm:$0xff]  }
  0x73   :  { %1423 = vmatprep.mubr.bf16.mxu0 %v2697_v62  ;;  %v2793_v62 = vld [vmem:[%s3544_s0 + $0x2ec] ss:$16 sps:$4 sm:$0xff]  }
  0x79   :  { %1135 = vmatmul.mubr.bf16.gmra.mrb[28].mxu1 %v2699_v63  ;;  %v2795_v63 = vld [vmem:[%s3544_s0 + $0x2e0] ss:$16 sps:$4 sm:$0xff]  }
  0x7a   :  { %1424 = vmatmul.mubr.bf16.gmra.mrb[28].mxu0 %v2700_v0  ;;  %1142 = vmatprep.mubr.bf16.mxu1 %v2701_v1  ;;  %v2796_v0 = vld [vmem:[%s3544_s0 + $0x2e8] ss:$16 sps:$4 sm:$0xff]   ;;  %v2797_v1 = vld [vmem:[%s3544_s0 + $0x304] ss:$16 sps:$4 sm:$0xff]  }
  0x7b   :  { %1431 = vmatprep.mubr.bf16.mxu0 %v2703_v2  ;;  %v2799_v2 = vld [vmem:[%s3544_s0 + $0x30c] ss:$16 sps:$4 sm:$0xff]  }
  0x81   :  { %1143 = vmatmul.mubr.bf16.gmra.mrb[32].mxu1 %v2705_v3  ;;  %v2801_v3 = vld [vmem:[%s3544_s0 + $0x300] ss:$16 sps:$4 sm:$0xff]  }
  0x82   :  { %1432 = vmatmul.mubr.bf16.gmra.mrb[32].mxu0 %v2706_v4  ;;  %1150 = vmatprep.mubr.bf16.mxu1 %v2707_v5  ;;  %v2802_v4 = vld [vmem:[%s3544_s0 + $0x308] ss:$16 sps:$4 sm:$0xff]   ;;  %v2803_v5 = vld [vmem:[%s3544_s0 + $0x324] ss:$16 sps:$4 sm:$0xff]  }
  0x83   :  { %1439 = vmatprep.mubr.bf16.mxu0 %v2709_v6  ;;  %v2805_v6 = vld [vmem:[%s3544_s0 + $0x32c] ss:$16 sps:$4 sm:$0xff]  }
  0x89   :  { %1151 = vmatmul.mubr.bf16.gmra.mrb[36].mxu1 %v2711_v7  ;;  %v2807_v7 = vld [vmem:[%s3544_s0 + $0x320] ss:$16 sps:$4 sm:$0xff]  }
  0x8a   :  { %1440 = vmatmul.mubr.bf16.gmra.mrb[36].mxu0 %v2712_v8  ;;  %1158 = vmatprep.mubr.bf16.mxu1 %v2713_v9  ;;  %v2808_v8 = vld [vmem:[%s3544_s0 + $0x328] ss:$16 sps:$4 sm:$0xff]   ;;  %v2809_v9 = vld [vmem:[%s3544_s0 + $0x344] ss:$16 sps:$4 sm:$0xff]  }
  0x8b   :  { %1447 = vmatprep.mubr.bf16.mxu0 %v2715_v10  ;;  %v2811_v10 = vld [vmem:[%s3544_s0 + $0x34c] ss:$16 sps:$4 sm:$0xff]  }
  0x91   :  { %1159 = vmatmul.mubr.bf16.gmra.mrb[40].mxu1 %v2717_v11  ;;  %v2813_v11 = vld [vmem:[%s3544_s0 + $0x340] ss:$16 sps:$4 sm:$0xff]  }
  0x92   :  { %1448 = vmatmul.mubr.bf16.gmra.mrb[40].mxu0 %v2718_v12  ;;  %1166 = vmatprep.mubr.bf16.mxu1 %v2719_v13  ;;  %v2814_v12 = vld [vmem:[%s3544_s0 + $0x348] ss:$16 sps:$4 sm:$0xff]   ;;  %v2815_v13 = vld [vmem:[%s3544_s0 + $0x364] ss:$16 sps:$4 sm:$0xff]  }
  0x93   :  { %1455 = vmatprep.mubr.bf16.mxu0 %v2721_v14  ;;  %v2817_v14 = vld [vmem:[%s3544_s0 + $0x36c] ss:$16 sps:$4 sm:$0xff]  }
  0x99   :  { %1167 = vmatmul.mubr.bf16.gmra.mrb[44].mxu1 %v2723_v15  ;;  %v3328_v15 = vld [vmem:[%s3545_s2] ss:$0 sm:$0xff] }
  0x9a   :  { %1456 = vmatmul.mubr.bf16.gmra.mrb[44].mxu0 %v2724_v16  ;;  %1174 = vmatprep.mubr.bf16.mxu1 %v2725_v17 }
  0x9b   :  { %1463 = vmatprep.mubr.bf16.mxu0 %v2727_v18 }
  0xa1   :  { %1175 = vmatmul.mubr.bf16.gmra.mrb[48].mxu1 %v2729_v19 }
  0xa2   :  { %1464 = vmatmul.mubr.bf16.gmra.mrb[48].mxu0 %v2730_v20  ;;  %1182 = vmatprep.mubr.bf16.mxu1 %v2731_v21  ;;  %v2819_v20 = vld [vmem:[%s3544_s0 + $0x360] ss:$16 sps:$4 sm:$0xff]  }
  0xa3   :  { %1471 = vmatprep.mubr.bf16.mxu0 %v2733_v22 }
  0xa9   :  { %1183 = vmatmul.mubr.bf16.gmra.mrb[52].mxu1 %v2735_v23  ;;  %v2820_v23 = vld [vmem:[%s3544_s0 + $0x368] ss:$16 sps:$4 sm:$0xff]  }
  0xaa   :  { %1472 = vmatmul.mubr.bf16.gmra.mrb[52].mxu0 %v2736_v24  ;;  %1190 = vmatprep.mubr.bf16.mxu1 %v2737_v25  ;;  %v2821_v24 = vld [vmem:[%s3544_s0 + $0x384] ss:$16 sps:$4 sm:$0xff]  }
  0xab   :  { %1479 = vmatprep.mubr.bf16.mxu0 %v2739_v26 }
  0xb1   :  { %1191 = vmatmul.mubr.bf16.gmra.mrb[56].mxu1 %v2741_v27 }
  0xb2   :  { %1480 = vmatmul.mubr.bf16.gmra.mrb[56].mxu0 %v2742_v28  ;;  %1198 = vmatprep.mubr.bf16.mxu1 %v2743_v29  ;;  %v2823_v29 = vld [vmem:[%s3544_s0 + $0x38c] ss:$16 sps:$4 sm:$0xff]  }
  0xb3   :  { %1487 = vmatprep.mubr.bf16.mxu0 %v2745_v30 }
  0xb9   :  { %1199 = vmatmul.mubr.bf16.gmra.mrb[60].mxu1 %v2747_v31 }
  0xba   :  { %1488 = vmatmul.mubr.bf16.gmra.mrb[60].mxu0 %v2748_v32  ;;  %1206 = vmatprep.mubr.bf16.mxu1 %v2749_v33 }
  0xbb   :  { %1495 = vmatprep.mubr.bf16.mxu0 %v2751_v34 }
  0xc1   :  { %1207 = vmatmul.mubr.bf16.gmra.mrb[64].mxu1 %v2753_v35 }
  0xc2   :  { %1496 = vmatmul.mubr.bf16.gmra.mrb[64].mxu0 %v2754_v36  ;;  %1214 = vmatprep.mubr.bf16.mxu1 %v2755_v37 }
  0xc3   :  { %1503 = vmatprep.mubr.bf16.mxu0 %v2757_v38 }
  0xc9   :  { %1215 = vmatmul.mubr.bf16.gmra.mrb[68].mxu1 %v2759_v39  ;;  %v2825_v39 = vld [vmem:[%s3544_s0 + $0x380] ss:$16 sps:$4 sm:$0xff]  }
  0xca   :  { %1504 = vmatmul.mubr.bf16.gmra.mrb[68].mxu0 %v2760_v40  ;;  %1222 = vmatprep.mubr.bf16.mxu1 %v2761_v41 }
  0xcb   :  { %1511 = vmatprep.mubr.bf16.mxu0 %v2763_v42  ;;  %v2826_v42 = vld [vmem:[%s3544_s0 + $0x388] ss:$16 sps:$4 sm:$0xff]  }
  0xd1   :  { %1223 = vmatmul.mubr.bf16.gmra.mrb[72].mxu1 %v2765_v43  ;;  %v2827_v43 = vld [vmem:[%s3544_s0 + $0x3a4] ss:$16 sps:$4 sm:$0xff]  }
  0xd2   :  { %1512 = vmatmul.mubr.bf16.gmra.mrb[72].mxu0 %v2766_v44  ;;  %1230 = vmatprep.mubr.bf16.mxu1 %v2767_v45 }
  0xd3   :  { %1519 = vmatprep.mubr.bf16.mxu0 %v2769_v46 }
  0xd9   :  { %1231 = vmatmul.mubr.bf16.gmra.mrb[76].mxu1 %v2771_v47 }
  0xda   :  { %1520 = vmatmul.mubr.bf16.gmra.mrb[76].mxu0 %v2772_v48  ;;  %1238 = vmatprep.mubr.bf16.mxu1 %v2773_v49  ;;  %v2829_v48 = vld [vmem:[%s3544_s0 + $0x3ac] ss:$16 sps:$4 sm:$0xff]  }
  0xdb   :  { %1527 = vmatprep.mubr.bf16.mxu0 %v2775_v50 }
  0xe1   :  { %1239 = vmatmul.mubr.bf16.gmra.mrb[80].mxu1 %v2777_v51 }
  0xe2   :  { %1528 = vmatmul.mubr.bf16.gmra.mrb[80].mxu0 %v2778_v52  ;;  %1246 = vmatprep.mubr.bf16.mxu1 %v2779_v53 }
  0xe3   :  { %1535 = vmatprep.mubr.bf16.mxu0 %v2781_v54 }
  0xe9   :  { %1247 = vmatmul.mubr.bf16.gmra.mrb[84].mxu1 %v2783_v55 }
  0xea   :  { %1536 = vmatmul.mubr.bf16.gmra.mrb[84].mxu0 %v2784_v56  ;;  %1254 = vmatprep.mubr.bf16.mxu1 %v2785_v57 }
  0xeb   :  { %1543 = vmatprep.mubr.bf16.mxu0 %v2787_v58  ;;  %v2831_v58 = vld [vmem:[%s3544_s0 + $0x3a0] ss:$16 sps:$4 sm:$0xff]  }
  0xf1   :  { %1255 = vmatmul.mubr.bf16.gmra.mrb[88].mxu1 %v2789_v59 }
  0xf2   :  { %1544 = vmatmul.mubr.bf16.gmra.mrb[88].mxu0 %v2790_v60  ;;  %1262 = vmatprep.mubr.bf16.mxu1 %v2791_v61  ;;  %v2832_v61 = vld [vmem:[%s3544_s0 + $0x3a8] ss:$16 sps:$4 sm:$0xff]  }
  0xf3   :  { %1551 = vmatprep.mubr.bf16.mxu0 %v2793_v62  ;;  %v2833_v62 = vld [vmem:[%s3544_s0 + $0x3c4] ss:$16 sps:$4 sm:$0xff]  }
  0xf9   :  { %1263 = vmatmul.mubr.bf16.gmra.mrb[92].mxu1 %v2795_v63 }
  0xfa   :  { %1552 = vmatmul.mubr.bf16.gmra.mrb[92].mxu0 %v2796_v0  ;;  %1270 = vmatprep.mubr.bf16.mxu1 %v2797_v1 }
  0xfb   :  { %1559 = vmatprep.mubr.bf16.mxu0 %v2799_v2 }
 0x101   :  { %1271 = vmatmul.mubr.bf16.gmra.mrb[96].mxu1 %v2801_v3  ;;  %v2835_v3 = vld [vmem:[%s3544_s0 + $0x3cc] ss:$16 sps:$4 sm:$0xff]  }
 0x102   :  { %1560 = vmatmul.mubr.bf16.gmra.mrb[96].mxu0 %v2802_v4  ;;  %1278 = vmatprep.mubr.bf16.mxu1 %v2803_v5 }
 0x103   :  { %1567 = vmatprep.mubr.bf16.mxu0 %v2805_v6 }
 0x109   :  { %1279 = vmatmul.mubr.bf16.gmra.mrb[100].mxu1 %v2807_v7 }
 0x10a   :  { %1568 = vmatmul.mubr.bf16.gmra.mrb[100].mxu0 %v2808_v8  ;;  %1286 = vmatprep.mubr.bf16.mxu1 %v2809_v9 }
 0x10b   :  { %1575 = vmatprep.mubr.bf16.mxu0 %v2811_v10 }
 0x111   :  { %1287 = vmatmul.mubr.bf16.gmra.mrb[104].mxu1 %v2813_v11 }
 0x112   :  { %1576 = vmatmul.mubr.bf16.gmra.mrb[104].mxu0 %v2814_v12  ;;  %1294 = vmatprep.mubr.bf16.mxu1 %v2815_v13  ;;  %v2837_v13 = vld [vmem:[%s3544_s0 + $0x3c0] ss:$16 sps:$4 sm:$0xff]  }
 0x113   :  { %1583 = vmatprep.mubr.bf16.mxu0 %v2817_v14 }
 0x114   :  { %v1080_v16 = vpop.f32.mrb[0].mxu1 }
 0x115   :  { %v1081_v17 = vadd.f32 %v3328_v15, %v1080_v16  ;;  %v1369_v18 = vpop.f32.mrb[0].mxu0  ;;  %v1082_v19 = vpop.f32.mrb[1].mxu1 }
 0x116   :  { %v1371_v21 = vpop.f32.mrb[1].mxu0  ;;  %v1083_v22 = vpop.f32.mrb[2].mxu1 }
 0x117   :  { %v1370_v25 = vadd.f32 %v1369_v18, %v1081_v17  ;;  %v1084_v26 = vadd.f32 %v3328_v15, %v1083_v22  ;;  %v1372_v27 = vpop.f32.mrb[2].mxu0  ;;  %v1085_v28 = vpop.f32.mrb[3].mxu1  ;;  %v2838_v17 = vld [vmem:[%s3544_s0 + $0x3c8] ss:$16 sps:$4 sm:$0xff]   ;;  %v2839_v18 = vld [vmem:[%s3544_s0 + $0x3e4] ss:$16 sps:$4 sm:$0xff]  }
 0x118   :  { %v1374_v30 = vpop.f32.mrb[3].mxu0 }
 0x119   :  { %v1373_v31 = vadd.f32 %v1372_v27, %v1084_v26  ;;  %1295 = vmatmul.mubr.bf16.gmra.mrb[108].mxu1 %v2819_v20  ;;  %v1624_v32 = vmax.f32 %v1370_v25, 0.0 }
 0x11a   :  { %1584 = vmatmul.mubr.bf16.gmra.mrb[108].mxu0 %v2820_v23  ;;  %1302 = vmatprep.mubr.bf16.mxu1 %v2821_v24  ;;  %v2841_v23 = vld [vmem:[%s3544_s0 + $0x3ec] ss:$16 sps:$4 sm:$0xff]  }
 0x11b   :  { %v1625_v33 = vmax.f32 %v1373_v31, 0.0  ;;  %1591 = vmatprep.mubr.bf16.mxu0 %v2823_v29 }
 0x11c   :  { %v1088_v34 = vpop.f32.mrb[4].mxu1 }
 0x11d   :  { %v2304_v35 = vpack.c.bf16 %v1625_v33, %v1624_v32  ;;  %v1089_v36 = vadd.f32 %v3328_v15, %v1088_v34  ;;  %v1377_v37 = vpop.f32.mrb[4].mxu0  ;;  %v1090_v38 = vpop.f32.mrb[5].mxu1  ;;  %v2843_v33 = vld [vmem:[%s3544_s0 + $0x3e0] ss:$16 sps:$4 sm:$0xff]  }
 0x11e   :  { %v1379_v40 = vpop.f32.mrb[5].mxu0  ;;  %v1091_v41 = vpop.f32.mrb[6].mxu1 }
 0x11f   :  { %2305 = vst [vmem:[%s3546_s3] sm:$0xff] %v2304_v35   ;;  %v1378_v44 = vadd.f32 %v1377_v37, %v1089_v36  ;;  %v1092_v45 = vadd.f32 %v3328_v15, %v1091_v41  ;;  %v1380_v46 = vpop.f32.mrb[6].mxu0  ;;  %v1093_v47 = vpop.f32.mrb[7].mxu1  ;;  %v2844_v36 = vld [vmem:[%s3544_s0 + $0x3e8] ss:$16 sps:$4 sm:$0xff]  }
 0x120   :  { %v1382_v49 = vpop.f32.mrb[7].mxu0 }
 0x121   :  { %v1381_v50 = vadd.f32 %v1380_v46, %v1092_v45  ;;  %1303 = vmatmul.mubr.bf16.gmra.mrb[112].mxu1 %v2825_v39  ;;  %v1626_v51 = vmax.f32 %v1378_v44, 0.0 }
 0x122   :  { %1592 = vmatmul.mubr.bf16.gmra.mrb[112].mxu0 %v2826_v42  ;;  %1310 = vmatprep.mubr.bf16.mxu1 %v2827_v43 }
 0x123   :  { %v1627_v52 = vmax.f32 %v1381_v50, 0.0  ;;  %1599 = vmatprep.mubr.bf16.mxu0 %v2829_v48 }
 0x124   :  { %v1096_v53 = vpop.f32.mrb[8].mxu1 }
 0x125   :  { %v2309_v54 = vpack.c.bf16 %v1627_v52, %v1626_v51  ;;  %v1097_v55 = vadd.f32 %v3328_v15, %v1096_v53  ;;  %v1385_v56 = vpop.f32.mrb[8].mxu0  ;;  %v1098_v57 = vpop.f32.mrb[9].mxu1 }
 0x126   :  { %v1387_v59 = vpop.f32.mrb[9].mxu0  ;;  %v1099_v60 = vpop.f32.mrb[10].mxu1 }
 0x127   :  { %2461 = vst [vmem:[%s3546_s3 + $0x8] sm:$0xff] %v2309_v54   ;;  %v1386_v63 = vadd.f32 %v1385_v56, %v1097_v55  ;;  %v1100_v0 = vadd.f32 %v3328_v15, %v1099_v60  ;;  %v1388_v1 = vpop.f32.mrb[10].mxu0  ;;  %v1101_v2 = vpop.f32.mrb[11].mxu1 }
 0x128   :  { %v1390_v4 = vpop.f32.mrb[11].mxu0 }
 0x129   :  { %v1389_v5 = vadd.f32 %v1388_v1, %v1100_v0  ;;  %1311 = vmatmul.mubr.bf16.gmra.mrb[116].mxu1 %v2831_v58  ;;  %v1628_v6 = vmax.f32 %v1386_v63, 0.0 }
 0x12a   :  { %1600 = vmatmul.mubr.bf16.gmra.mrb[116].mxu0 %v2832_v61  ;;  %1318 = vmatprep.mubr.bf16.mxu1 %v2833_v62 }
 0x12b   :  { %v1629_v7 = vmax.f32 %v1389_v5, 0.0  ;;  %1607 = vmatprep.mubr.bf16.mxu0 %v2835_v3 }
 0x12c   :  { %v1104_v8 = vpop.f32.mrb[12].mxu1 }
 0x12d   :  { %v2314_v9 = vpack.c.bf16 %v1629_v7, %v1628_v6  ;;  %v1105_v10 = vadd.f32 %v3328_v15, %v1104_v8  ;;  %v1393_v11 = vpop.f32.mrb[12].mxu0  ;;  %v1106_v12 = vpop.f32.mrb[13].mxu1 }
 0x12e   :  { %v1395_v14 = vpop.f32.mrb[13].mxu0  ;;  %v1107_v16 = vpop.f32.mrb[14].mxu1 }
 0x12f   :  { %2462 = vst [vmem:[%s3546_s3 + $0x10] sm:$0xff] %v2314_v9   ;;  %v1394_v19 = vadd.f32 %v1393_v11, %v1105_v10  ;;  %v1108_v20 = vadd.f32 %v3328_v15, %v1107_v16  ;;  %v1396_v21 = vpop.f32.mrb[14].mxu0  ;;  %v1109_v22 = vpop.f32.mrb[15].mxu1 }
 0x130   :  { %v1398_v24 = vpop.f32.mrb[15].mxu0 }
 0x131   :  { %v1397_v25 = vadd.f32 %v1396_v21, %v1108_v20  ;;  %1319 = vmatmul.mubr.bf16.gmra.mrb[120].mxu1 %v2837_v13  ;;  %v1630_v26 = vmax.f32 %v1394_v19, 0.0 }
 0x132   :  { %1608 = vmatmul.mubr.bf16.gmra.mrb[120].mxu0 %v2838_v17  ;;  %1326 = vmatprep.mubr.bf16.mxu1 %v2839_v18 }
 0x133   :  { %v1631_v27 = vmax.f32 %v1397_v25, 0.0  ;;  %1615 = vmatprep.mubr.bf16.mxu0 %v2841_v23 }
 0x134   :  { %v1112_v28 = vpop.f32.mrb[16].mxu1 }
 0x135   :  { %v2319_v29 = vpack.c.bf16 %v1631_v27, %v1630_v26  ;;  %v1113_v30 = vadd.f32 %v3328_v15, %v1112_v28  ;;  %v1401_v31 = vpop.f32.mrb[16].mxu0  ;;  %v1114_v32 = vpop.f32.mrb[17].mxu1 }
 0x136   :  { %v1403_v34 = vpop.f32.mrb[17].mxu0  ;;  %v1115_v35 = vpop.f32.mrb[18].mxu1 }
 0x137   :  { %2463 = vst [vmem:[%s3546_s3 + $0x18] sm:$0xff] %v2319_v29   ;;  %v1402_v37 = vadd.f32 %v1401_v31, %v1113_v30  ;;  %v1116_v38 = vadd.f32 %v3328_v15, %v1115_v35  ;;  %v1404_v39 = vpop.f32.mrb[18].mxu0  ;;  %v1117_v40 = vpop.f32.mrb[19].mxu1 }
 0x138   :  { %v1406_v41 = vpop.f32.mrb[19].mxu0 }
 0x139   :  { %v1405_v42 = vadd.f32 %v1404_v39, %v1116_v38  ;;  %1327 = vmatmul.mubr.bf16.gmra.mrb[124].mxu1 %v2843_v33  ;;  %v1632_v43 = vmax.f32 %v1402_v37, 0.0 }
 0x13a   :  { %1616 = vmatmul.mubr.bf16.gmra.mrb[124].mxu0 %v2844_v36 }
 0x13b   :  { %v1633_v44 = vmax.f32 %v1405_v42, 0.0 }
 0x13c   :  { %v1120_v45 = vpop.f32.mrb[20].mxu1 }
 0x13d   :  { %v2324_v46 = vpack.c.bf16 %v1633_v44, %v1632_v43  ;;  %v1121_v47 = vadd.f32 %v3328_v15, %v1120_v45  ;;  %v1409_v48 = vpop.f32.mrb[20].mxu0  ;;  %v1122_v49 = vpop.f32.mrb[21].mxu1 }
 0x13e   :  { %v1411_v50 = vpop.f32.mrb[21].mxu0  ;;  %v1123_v51 = vpop.f32.mrb[22].mxu1 }
 0x13f   :  { %2464 = vst [vmem:[%s3546_s3 + $0x20] sm:$0xff] %v2324_v46   ;;  %v1410_v52 = vadd.f32 %v1409_v48, %v1121_v47  ;;  %v1124_v53 = vadd.f32 %v3328_v15, %v1123_v51  ;;  %v1412_v54 = vpop.f32.mrb[22].mxu0  ;;  %v1125_v55 = vpop.f32.mrb[23].mxu1 }
 0x140   :  { %v1414_v56 = vpop.f32.mrb[23].mxu0 }
 0x141   :  { %v1413_v57 = vadd.f32 %v1412_v54, %v1124_v53  ;;  %v1634_v58 = vmax.f32 %v1410_v52, 0.0 }
 0x143   :  { %v1635_v59 = vmax.f32 %v1413_v57, 0.0 }
 0x144   :  { %v1128_v60 = vpop.f32.mrb[24].mxu1 }
 0x145   :  { %v2329_v61 = vpack.c.bf16 %v1635_v59, %v1634_v58  ;;  %v1129_v62 = vadd.f32 %v3328_v15, %v1128_v60  ;;  %v1417_v63 = vpop.f32.mrb[24].mxu0  ;;  %v1130_v0 = vpop.f32.mrb[25].mxu1 }
 0x146   :  { %v1419_v1 = vpop.f32.mrb[25].mxu0  ;;  %v1131_v2 = vpop.f32.mrb[26].mxu1 }
 0x147   :  { %2465 = vst [vmem:[%s3546_s3 + $0x28] sm:$0xff] %v2329_v61   ;;  %v1418_v3 = vadd.f32 %v1417_v63, %v1129_v62  ;;  %v1132_v4 = vadd.f32 %v3328_v15, %v1131_v2  ;;  %v1420_v5 = vpop.f32.mrb[26].mxu0  ;;  %v1133_v6 = vpop.f32.mrb[27].mxu1 }
 0x148   :  { %v1422_v7 = vpop.f32.mrb[27].mxu0 }
 0x149   :  { %v1421_v8 = vadd.f32 %v1420_v5, %v1132_v4  ;;  %v1636_v9 = vmax.f32 %v1418_v3, 0.0 }
 0x14b   :  { %v1637_v10 = vmax.f32 %v1421_v8, 0.0 }
 0x14c   :  { %v1136_v11 = vpop.f32.mrb[28].mxu1 }
 0x14d   :  { %v2334_v12 = vpack.c.bf16 %v1637_v10, %v1636_v9  ;;  %v1137_v13 = vadd.f32 %v3328_v15, %v1136_v11  ;;  %v1425_v14 = vpop.f32.mrb[28].mxu0  ;;  %v1138_v16 = vpop.f32.mrb[29].mxu1 }
 0x14e   :  { %v1427_v17 = vpop.f32.mrb[29].mxu0  ;;  %v1139_v18 = vpop.f32.mrb[30].mxu1 }
 0x14f   :  { %2466 = vst [vmem:[%s3546_s3 + $0x30] sm:$0xff] %v2334_v12   ;;  %v1426_v19 = vadd.f32 %v1425_v14, %v1137_v13  ;;  %v1140_v20 = vadd.f32 %v3328_v15, %v1139_v18  ;;  %v1428_v21 = vpop.f32.mrb[30].mxu0  ;;  %v1141_v22 = vpop.f32.mrb[31].mxu1 }
 0x150   :  { %v1430_v23 = vpop.f32.mrb[31].mxu0 }
 0x151   :  { %v1429_v24 = vadd.f32 %v1428_v21, %v1140_v20  ;;  %v1638_v25 = vmax.f32 %v1426_v19, 0.0 }
 0x153   :  { %v1639_v26 = vmax.f32 %v1429_v24, 0.0 }
 0x154   :  { %v1144_v27 = vpop.f32.mrb[32].mxu1 }
 0x155   :  { %v2339_v28 = vpack.c.bf16 %v1639_v26, %v1638_v25  ;;  %v1145_v29 = vadd.f32 %v3328_v15, %v1144_v27  ;;  %v1433_v30 = vpop.f32.mrb[32].mxu0  ;;  %v1146_v31 = vpop.f32.mrb[33].mxu1 }
 0x156   :  { %v1435_v32 = vpop.f32.mrb[33].mxu0  ;;  %v1147_v33 = vpop.f32.mrb[34].mxu1 }
 0x157   :  { %2467 = vst [vmem:[%s3546_s3 + $0x38] sm:$0xff] %v2339_v28   ;;  %v1434_v34 = vadd.f32 %v1433_v30, %v1145_v29  ;;  %v1148_v35 = vadd.f32 %v3328_v15, %v1147_v33  ;;  %v1436_v36 = vpop.f32.mrb[34].mxu0  ;;  %v1149_v37 = vpop.f32.mrb[35].mxu1 }
 0x158   :  { %v1438_v38 = vpop.f32.mrb[35].mxu0 }
 0x159   :  { %v1437_v39 = vadd.f32 %v1436_v36, %v1148_v35  ;;  %v1640_v40 = vmax.f32 %v1434_v34, 0.0 }
 0x15b   :  { %v1641_v41 = vmax.f32 %v1437_v39, 0.0 }
 0x15c   :  { %v1152_v42 = vpop.f32.mrb[36].mxu1 }
 0x15d   :  { %v2344_v43 = vpack.c.bf16 %v1641_v41, %v1640_v40  ;;  %v1153_v44 = vadd.f32 %v3328_v15, %v1152_v42  ;;  %v1441_v45 = vpop.f32.mrb[36].mxu0  ;;  %v1154_v46 = vpop.f32.mrb[37].mxu1 }
 0x15e   :  { %v1443_v47 = vpop.f32.mrb[37].mxu0  ;;  %v1155_v48 = vpop.f32.mrb[38].mxu1 }
 0x15f   :  { %2468 = vst [vmem:[%s3546_s3 + $0x40] sm:$0xff] %v2344_v43   ;;  %v1442_v49 = vadd.f32 %v1441_v45, %v1153_v44  ;;  %v1156_v50 = vadd.f32 %v3328_v15, %v1155_v48  ;;  %v1444_v51 = vpop.f32.mrb[38].mxu0  ;;  %v1157_v52 = vpop.f32.mrb[39].mxu1 }
 0x160   :  { %v1446_v53 = vpop.f32.mrb[39].mxu0 }
 0x161   :  { %v1445_v54 = vadd.f32 %v1444_v51, %v1156_v50  ;;  %v1642_v55 = vmax.f32 %v1442_v49, 0.0 }
 0x163   :  { %v1643_v56 = vmax.f32 %v1445_v54, 0.0 }
 0x164   :  { %v1160_v57 = vpop.f32.mrb[40].mxu1 }
 0x165   :  { %v2349_v58 = vpack.c.bf16 %v1643_v56, %v1642_v55  ;;  %v1161_v59 = vadd.f32 %v3328_v15, %v1160_v57  ;;  %v1449_v60 = vpop.f32.mrb[40].mxu0  ;;  %v1162_v61 = vpop.f32.mrb[41].mxu1 }
 0x166   :  { %v1451_v62 = vpop.f32.mrb[41].mxu0  ;;  %v1163_v63 = vpop.f32.mrb[42].mxu1 }
 0x167   :  { %2469 = vst [vmem:[%s3546_s3 + $0x48] sm:$0xff] %v2349_v58   ;;  %v1450_v0 = vadd.f32 %v1449_v60, %v1161_v59  ;;  %v1164_v1 = vadd.f32 %v3328_v15, %v1163_v63  ;;  %v1452_v2 = vpop.f32.mrb[42].mxu0  ;;  %v1165_v3 = vpop.f32.mrb[43].mxu1 }
 0x168   :  { %v1454_v4 = vpop.f32.mrb[43].mxu0 }
 0x169   :  { %v1453_v5 = vadd.f32 %v1452_v2, %v1164_v1  ;;  %v1644_v6 = vmax.f32 %v1450_v0, 0.0 }
 0x16b   :  { %v1645_v7 = vmax.f32 %v1453_v5, 0.0 }
 0x16c   :  { %v1168_v8 = vpop.f32.mrb[44].mxu1 }
 0x16d   :  { %v2354_v9 = vpack.c.bf16 %v1645_v7, %v1644_v6  ;;  %v1169_v10 = vadd.f32 %v3328_v15, %v1168_v8  ;;  %v1457_v11 = vpop.f32.mrb[44].mxu0  ;;  %v1170_v12 = vpop.f32.mrb[45].mxu1 }
 0x16e   :  { %v1459_v13 = vpop.f32.mrb[45].mxu0  ;;  %v1171_v14 = vpop.f32.mrb[46].mxu1 }
 0x16f   :  { %2470 = vst [vmem:[%s3546_s3 + $0x50] sm:$0xff] %v2354_v9   ;;  %v1458_v16 = vadd.f32 %v1457_v11, %v1169_v10  ;;  %v1172_v17 = vadd.f32 %v3328_v15, %v1171_v14  ;;  %v1460_v18 = vpop.f32.mrb[46].mxu0  ;;  %v1173_v19 = vpop.f32.mrb[47].mxu1 }
 0x170   :  { %v1462_v20 = vpop.f32.mrb[47].mxu0 }
 0x171   :  { %v1461_v21 = vadd.f32 %v1460_v18, %v1172_v17  ;;  %v1646_v22 = vmax.f32 %v1458_v16, 0.0 }
 0x173   :  { %v1647_v23 = vmax.f32 %v1461_v21, 0.0 }
 0x174   :  { %v1176_v24 = vpop.f32.mrb[48].mxu1 }
 0x175   :  { %v2359_v25 = vpack.c.bf16 %v1647_v23, %v1646_v22  ;;  %v1177_v26 = vadd.f32 %v3328_v15, %v1176_v24  ;;  %v1465_v27 = vpop.f32.mrb[48].mxu0  ;;  %v1178_v28 = vpop.f32.mrb[49].mxu1 }
 0x176   :  { %v1467_v29 = vpop.f32.mrb[49].mxu0  ;;  %v1179_v30 = vpop.f32.mrb[50].mxu1 }
 0x177   :  { %2471 = vst [vmem:[%s3546_s3 + $0x58] sm:$0xff] %v2359_v25   ;;  %v1466_v31 = vadd.f32 %v1465_v27, %v1177_v26  ;;  %v1180_v32 = vadd.f32 %v3328_v15, %v1179_v30  ;;  %v1468_v33 = vpop.f32.mrb[50].mxu0  ;;  %v1181_v34 = vpop.f32.mrb[51].mxu1 }
 0x178   :  { %v1470_v35 = vpop.f32.mrb[51].mxu0 }
 0x179   :  { %v1469_v36 = vadd.f32 %v1468_v33, %v1180_v32  ;;  %v1648_v37 = vmax.f32 %v1466_v31, 0.0 }
 0x17b   :  { %v1649_v38 = vmax.f32 %v1469_v36, 0.0 }
 0x17c   :  { %v1184_v39 = vpop.f32.mrb[52].mxu1 }
 0x17d   :  { %v2364_v40 = vpack.c.bf16 %v1649_v38, %v1648_v37  ;;  %v1185_v41 = vadd.f32 %v3328_v15, %v1184_v39  ;;  %v1473_v42 = vpop.f32.mrb[52].mxu0  ;;  %v1186_v43 = vpop.f32.mrb[53].mxu1 }
 0x17e   :  { %v1475_v44 = vpop.f32.mrb[53].mxu0  ;;  %v1187_v45 = vpop.f32.mrb[54].mxu1 }
 0x17f   :  { %2472 = vst [vmem:[%s3546_s3 + $0x60] sm:$0xff] %v2364_v40   ;;  %v1474_v46 = vadd.f32 %v1473_v42, %v1185_v41  ;;  %v1188_v47 = vadd.f32 %v3328_v15, %v1187_v45  ;;  %v1476_v48 = vpop.f32.mrb[54].mxu0  ;;  %v1189_v49 = vpop.f32.mrb[55].mxu1 }
 0x180   :  { %v1478_v50 = vpop.f32.mrb[55].mxu0 }
 0x181   :  { %v1477_v51 = vadd.f32 %v1476_v48, %v1188_v47  ;;  %v1650_v52 = vmax.f32 %v1474_v46, 0.0 }
 0x183   :  { %v1651_v53 = vmax.f32 %v1477_v51, 0.0 }
 0x184   :  { %v1192_v54 = vpop.f32.mrb[56].mxu1 }
 0x185   :  { %v2369_v55 = vpack.c.bf16 %v1651_v53, %v1650_v52  ;;  %v1193_v56 = vadd.f32 %v3328_v15, %v1192_v54  ;;  %v1481_v57 = vpop.f32.mrb[56].mxu0  ;;  %v1194_v58 = vpop.f32.mrb[57].mxu1 }
 0x186   :  { %v1483_v59 = vpop.f32.mrb[57].mxu0  ;;  %v1195_v60 = vpop.f32.mrb[58].mxu1 }
 0x187   :  { %2473 = vst [vmem:[%s3546_s3 + $0x68] sm:$0xff] %v2369_v55   ;;  %v1482_v61 = vadd.f32 %v1481_v57, %v1193_v56  ;;  %v1196_v62 = vadd.f32 %v3328_v15, %v1195_v60  ;;  %v1484_v63 = vpop.f32.mrb[58].mxu0  ;;  %v1197_v0 = vpop.f32.mrb[59].mxu1 }
 0x188   :  { %v1486_v1 = vpop.f32.mrb[59].mxu0 }
 0x189   :  { %v1485_v2 = vadd.f32 %v1484_v63, %v1196_v62  ;;  %v1652_v3 = vmax.f32 %v1482_v61, 0.0 }
 0x18b   :  { %v1653_v4 = vmax.f32 %v1485_v2, 0.0 }
 0x18c   :  { %v1200_v5 = vpop.f32.mrb[60].mxu1 }
 0x18d   :  { %v2374_v6 = vpack.c.bf16 %v1653_v4, %v1652_v3  ;;  %v1201_v7 = vadd.f32 %v3328_v15, %v1200_v5  ;;  %v1489_v8 = vpop.f32.mrb[60].mxu0  ;;  %v1202_v9 = vpop.f32.mrb[61].mxu1 }
 0x18e   :  { %v1491_v10 = vpop.f32.mrb[61].mxu0  ;;  %v1203_v11 = vpop.f32.mrb[62].mxu1 }
 0x18f   :  { %2474 = vst [vmem:[%s3546_s3 + $0x70] sm:$0xff] %v2374_v6   ;;  %v1490_v12 = vadd.f32 %v1489_v8, %v1201_v7  ;;  %v1204_v13 = vadd.f32 %v3328_v15, %v1203_v11  ;;  %v1492_v14 = vpop.f32.mrb[62].mxu0  ;;  %v1205_v16 = vpop.f32.mrb[63].mxu1 }
 0x190   :  { %v1494_v17 = vpop.f32.mrb[63].mxu0 }
 0x191   :  { %v1493_v18 = vadd.f32 %v1492_v14, %v1204_v13  ;;  %v1654_v19 = vmax.f32 %v1490_v12, 0.0 }
 0x193   :  { %v1655_v20 = vmax.f32 %v1493_v18, 0.0 }
 0x194   :  { %v1208_v21 = vpop.f32.mrb[64].mxu1 }
 0x195   :  { %v2379_v22 = vpack.c.bf16 %v1655_v20, %v1654_v19  ;;  %v1209_v23 = vadd.f32 %v3328_v15, %v1208_v21  ;;  %v1497_v24 = vpop.f32.mrb[64].mxu0  ;;  %v1210_v25 = vpop.f32.mrb[65].mxu1 }
 0x196   :  { %v1499_v26 = vpop.f32.mrb[65].mxu0  ;;  %v1211_v27 = vpop.f32.mrb[66].mxu1 }
 0x197   :  { %2475 = vst [vmem:[%s3546_s3 + $0x78] sm:$0xff] %v2379_v22   ;;  %v1498_v28 = vadd.f32 %v1497_v24, %v1209_v23  ;;  %v1212_v29 = vadd.f32 %v3328_v15, %v1211_v27  ;;  %v1500_v30 = vpop.f32.mrb[66].mxu0  ;;  %v1213_v31 = vpop.f32.mrb[67].mxu1 }
 0x198   :  { %v1502_v32 = vpop.f32.mrb[67].mxu0 }
 0x199   :  { %v1501_v33 = vadd.f32 %v1500_v30, %v1212_v29  ;;  %v1656_v34 = vmax.f32 %v1498_v28, 0.0 }
 0x19b   :  { %v1657_v35 = vmax.f32 %v1501_v33, 0.0 }
 0x19c   :  { %v1216_v36 = vpop.f32.mrb[68].mxu1 }
 0x19d   :  { %v2384_v37 = vpack.c.bf16 %v1657_v35, %v1656_v34  ;;  %v1217_v38 = vadd.f32 %v3328_v15, %v1216_v36  ;;  %v1505_v39 = vpop.f32.mrb[68].mxu0  ;;  %v1218_v40 = vpop.f32.mrb[69].mxu1 }
 0x19e   :  { %v1507_v41 = vpop.f32.mrb[69].mxu0  ;;  %v1219_v42 = vpop.f32.mrb[70].mxu1 }
 0x19f   :  { %2476 = vst [vmem:[%s3546_s3 + $0x80] sm:$0xff] %v2384_v37   ;;  %v1506_v43 = vadd.f32 %v1505_v39, %v1217_v38  ;;  %v1220_v44 = vadd.f32 %v3328_v15, %v1219_v42  ;;  %v1508_v45 = vpop.f32.mrb[70].mxu0  ;;  %v1221_v46 = vpop.f32.mrb[71].mxu1 }
 0x1a0   :  { %v1510_v47 = vpop.f32.mrb[71].mxu0 }
 0x1a1   :  { %v1509_v48 = vadd.f32 %v1508_v45, %v1220_v44  ;;  %v1658_v49 = vmax.f32 %v1506_v43, 0.0 }
 0x1a3   :  { %v1659_v50 = vmax.f32 %v1509_v48, 0.0 }
 0x1a4   :  { %v1224_v51 = vpop.f32.mrb[72].mxu1 }
 0x1a5   :  { %v2389_v52 = vpack.c.bf16 %v1659_v50, %v1658_v49  ;;  %v1225_v53 = vadd.f32 %v3328_v15, %v1224_v51  ;;  %v1513_v54 = vpop.f32.mrb[72].mxu0  ;;  %v1226_v55 = vpop.f32.mrb[73].mxu1 }
 0x1a6   :  { %v1515_v56 = vpop.f32.mrb[73].mxu0  ;;  %v1227_v57 = vpop.f32.mrb[74].mxu1 }
 0x1a7   :  { %2477 = vst [vmem:[%s3546_s3 + $0x88] sm:$0xff] %v2389_v52   ;;  %v1514_v58 = vadd.f32 %v1513_v54, %v1225_v53  ;;  %v1228_v59 = vadd.f32 %v3328_v15, %v1227_v57  ;;  %v1516_v60 = vpop.f32.mrb[74].mxu0  ;;  %v1229_v61 = vpop.f32.mrb[75].mxu1 }
 0x1a8   :  { %v1518_v62 = vpop.f32.mrb[75].mxu0 }
 0x1a9   :  { %v1517_v63 = vadd.f32 %v1516_v60, %v1228_v59  ;;  %v1660_v0 = vmax.f32 %v1514_v58, 0.0 }
 0x1ab   :  { %v1661_v1 = vmax.f32 %v1517_v63, 0.0 }
 0x1ac   :  { %v1232_v2 = vpop.f32.mrb[76].mxu1 }
 0x1ad   :  { %v2394_v3 = vpack.c.bf16 %v1661_v1, %v1660_v0  ;;  %v1233_v4 = vadd.f32 %v3328_v15, %v1232_v2  ;;  %v1521_v5 = vpop.f32.mrb[76].mxu0  ;;  %v1234_v6 = vpop.f32.mrb[77].mxu1 }
 0x1ae   :  { %v1523_v7 = vpop.f32.mrb[77].mxu0  ;;  %v1235_v8 = vpop.f32.mrb[78].mxu1 }
 0x1af   :  { %2478 = vst [vmem:[%s3546_s3 + $0x90] sm:$0xff] %v2394_v3   ;;  %v1522_v9 = vadd.f32 %v1521_v5, %v1233_v4  ;;  %v1236_v10 = vadd.f32 %v3328_v15, %v1235_v8  ;;  %v1524_v11 = vpop.f32.mrb[78].mxu0  ;;  %v1237_v12 = vpop.f32.mrb[79].mxu1 }
 0x1b0   :  { %v1526_v13 = vpop.f32.mrb[79].mxu0 }
 0x1b1   :  { %v1525_v14 = vadd.f32 %v1524_v11, %v1236_v10  ;;  %v1662_v16 = vmax.f32 %v1522_v9, 0.0 }
 0x1b3   :  { %v1663_v17 = vmax.f32 %v1525_v14, 0.0 }
 0x1b4   :  { %v1240_v18 = vpop.f32.mrb[80].mxu1 }
 0x1b5   :  { %v2399_v19 = vpack.c.bf16 %v1663_v17, %v1662_v16  ;;  %v1241_v20 = vadd.f32 %v3328_v15, %v1240_v18  ;;  %v1529_v21 = vpop.f32.mrb[80].mxu0  ;;  %v1242_v22 = vpop.f32.mrb[81].mxu1 }
 0x1b6   :  { %v1531_v23 = vpop.f32.mrb[81].mxu0  ;;  %v1243_v24 = vpop.f32.mrb[82].mxu1 }
 0x1b7   :  { %2479 = vst [vmem:[%s3546_s3 + $0x98] sm:$0xff] %v2399_v19   ;;  %v1530_v25 = vadd.f32 %v1529_v21, %v1241_v20  ;;  %v1244_v26 = vadd.f32 %v3328_v15, %v1243_v24  ;;  %v1532_v27 = vpop.f32.mrb[82].mxu0  ;;  %v1245_v28 = vpop.f32.mrb[83].mxu1 }
 0x1b8   :  { %v1534_v29 = vpop.f32.mrb[83].mxu0 }
 0x1b9   :  { %v1533_v30 = vadd.f32 %v1532_v27, %v1244_v26  ;;  %v1664_v31 = vmax.f32 %v1530_v25, 0.0 }
 0x1bb   :  { %v1665_v32 = vmax.f32 %v1533_v30, 0.0 }
 0x1bc   :  { %v1248_v33 = vpop.f32.mrb[84].mxu1 }
 0x1bd   :  { %v2404_v34 = vpack.c.bf16 %v1665_v32, %v1664_v31  ;;  %v1249_v35 = vadd.f32 %v3328_v15, %v1248_v33  ;;  %v1537_v36 = vpop.f32.mrb[84].mxu0  ;;  %v1250_v37 = vpop.f32.mrb[85].mxu1 }
 0x1be   :  { %v1539_v38 = vpop.f32.mrb[85].mxu0  ;;  %v1251_v39 = vpop.f32.mrb[86].mxu1 }
 0x1bf   :  { %2480 = vst [vmem:[%s3546_s3 + $0xa0] sm:$0xff] %v2404_v34   ;;  %v1538_v40 = vadd.f32 %v1537_v36, %v1249_v35  ;;  %v1252_v41 = vadd.f32 %v3328_v15, %v1251_v39  ;;  %v1540_v42 = vpop.f32.mrb[86].mxu0  ;;  %v1253_v43 = vpop.f32.mrb[87].mxu1 }
 0x1c0   :  { %v1542_v44 = vpop.f32.mrb[87].mxu0 }
 0x1c1   :  { %v1541_v45 = vadd.f32 %v1540_v42, %v1252_v41  ;;  %v1666_v46 = vmax.f32 %v1538_v40, 0.0 }
 0x1c3   :  { %v1667_v47 = vmax.f32 %v1541_v45, 0.0 }
 0x1c4   :  { %v1256_v48 = vpop.f32.mrb[88].mxu1 }
 0x1c5   :  { %v2409_v49 = vpack.c.bf16 %v1667_v47, %v1666_v46  ;;  %v1257_v50 = vadd.f32 %v3328_v15, %v1256_v48  ;;  %v1545_v51 = vpop.f32.mrb[88].mxu0  ;;  %v1258_v52 = vpop.f32.mrb[89].mxu1 }
 0x1c6   :  { %v1547_v53 = vpop.f32.mrb[89].mxu0  ;;  %v1259_v54 = vpop.f32.mrb[90].mxu1 }
 0x1c7   :  { %2481 = vst [vmem:[%s3546_s3 + $0xa8] sm:$0xff] %v2409_v49   ;;  %v1546_v55 = vadd.f32 %v1545_v51, %v1257_v50  ;;  %v1260_v56 = vadd.f32 %v3328_v15, %v1259_v54  ;;  %v1548_v57 = vpop.f32.mrb[90].mxu0  ;;  %v1261_v58 = vpop.f32.mrb[91].mxu1 }
 0x1c8   :  { %v1550_v59 = vpop.f32.mrb[91].mxu0 }
 0x1c9   :  { %v1549_v60 = vadd.f32 %v1548_v57, %v1260_v56  ;;  %v1668_v61 = vmax.f32 %v1546_v55, 0.0 }
 0x1cb   :  { %v1669_v62 = vmax.f32 %v1549_v60, 0.0 }
 0x1cc   :  { %v1264_v63 = vpop.f32.mrb[92].mxu1 }
 0x1cd   :  { %v2414_v0 = vpack.c.bf16 %v1669_v62, %v1668_v61  ;;  %v1265_v1 = vadd.f32 %v3328_v15, %v1264_v63  ;;  %v1553_v2 = vpop.f32.mrb[92].mxu0  ;;  %v1266_v3 = vpop.f32.mrb[93].mxu1 }
 0x1ce   :  { %v1555_v4 = vpop.f32.mrb[93].mxu0  ;;  %v1267_v5 = vpop.f32.mrb[94].mxu1 }
 0x1cf   :  { %2482 = vst [vmem:[%s3546_s3 + $0xb0] sm:$0xff] %v2414_v0   ;;  %v1554_v6 = vadd.f32 %v1553_v2, %v1265_v1  ;;  %v1268_v7 = vadd.f32 %v3328_v15, %v1267_v5  ;;  %v1556_v8 = vpop.f32.mrb[94].mxu0  ;;  %v1269_v9 = vpop.f32.mrb[95].mxu1 }
 0x1d0   :  { %v1558_v10 = vpop.f32.mrb[95].mxu0 }
 0x1d1   :  { %v1557_v11 = vadd.f32 %v1556_v8, %v1268_v7  ;;  %v1670_v12 = vmax.f32 %v1554_v6, 0.0 }
 0x1d3   :  { %v1671_v13 = vmax.f32 %v1557_v11, 0.0 }
 0x1d4   :  { %v1272_v14 = vpop.f32.mrb[96].mxu1 }
 0x1d5   :  { %v2419_v16 = vpack.c.bf16 %v1671_v13, %v1670_v12  ;;  %v1273_v17 = vadd.f32 %v3328_v15, %v1272_v14  ;;  %v1561_v18 = vpop.f32.mrb[96].mxu0  ;;  %v1274_v19 = vpop.f32.mrb[97].mxu1 }
 0x1d6   :  { %v1563_v20 = vpop.f32.mrb[97].mxu0  ;;  %v1275_v21 = vpop.f32.mrb[98].mxu1 }
 0x1d7   :  { %2483 = vst [vmem:[%s3546_s3 + $0xb8] sm:$0xff] %v2419_v16   ;;  %v1562_v22 = vadd.f32 %v1561_v18, %v1273_v17  ;;  %v1276_v23 = vadd.f32 %v3328_v15, %v1275_v21  ;;  %v1564_v24 = vpop.f32.mrb[98].mxu0  ;;  %v1277_v25 = vpop.f32.mrb[99].mxu1 }
 0x1d8   :  { %v1566_v26 = vpop.f32.mrb[99].mxu0 }
 0x1d9   :  { %v1565_v27 = vadd.f32 %v1564_v24, %v1276_v23  ;;  %v1672_v28 = vmax.f32 %v1562_v22, 0.0 }
 0x1db   :  { %v1673_v29 = vmax.f32 %v1565_v27, 0.0 }
 0x1dc   :  { %v1280_v30 = vpop.f32.mrb[100].mxu1 }
 0x1dd   :  { %v2424_v31 = vpack.c.bf16 %v1673_v29, %v1672_v28  ;;  %v1281_v32 = vadd.f32 %v3328_v15, %v1280_v30  ;;  %v1569_v33 = vpop.f32.mrb[100].mxu0  ;;  %v1282_v34 = vpop.f32.mrb[101].mxu1 }
 0x1de   :  { %v1571_v35 = vpop.f32.mrb[101].mxu0  ;;  %v1283_v36 = vpop.f32.mrb[102].mxu1 }
 0x1df   :  { %2484 = vst [vmem:[%s3546_s3 + $0xc0] sm:$0xff] %v2424_v31   ;;  %v1570_v37 = vadd.f32 %v1569_v33, %v1281_v32  ;;  %v1284_v38 = vadd.f32 %v3328_v15, %v1283_v36  ;;  %v1572_v39 = vpop.f32.mrb[102].mxu0  ;;  %v1285_v40 = vpop.f32.mrb[103].mxu1 }
 0x1e0   :  { %v1574_v41 = vpop.f32.mrb[103].mxu0 }
 0x1e1   :  { %v1573_v42 = vadd.f32 %v1572_v39, %v1284_v38  ;;  %v1674_v43 = vmax.f32 %v1570_v37, 0.0 }
 0x1e3   :  { %v1675_v44 = vmax.f32 %v1573_v42, 0.0 }
 0x1e4   :  { %v1288_v45 = vpop.f32.mrb[104].mxu1 }
 0x1e5   :  { %v2429_v46 = vpack.c.bf16 %v1675_v44, %v1674_v43  ;;  %v1289_v47 = vadd.f32 %v3328_v15, %v1288_v45  ;;  %v1577_v48 = vpop.f32.mrb[104].mxu0  ;;  %v1290_v49 = vpop.f32.mrb[105].mxu1  ;;  %v2845_v44 = vld [vmem:[%s3545_s2] ss:$0 sm:$0xff] }
 0x1e6   :  { %v1579_v50 = vpop.f32.mrb[105].mxu0  ;;  %v1291_v51 = vpop.f32.mrb[106].mxu1 }
 0x1e7   :  { %2485 = vst [vmem:[%s3546_s3 + $0xc8] sm:$0xff] %v2429_v46   ;;  %v1578_v52 = vadd.f32 %v1577_v48, %v1289_v47  ;;  %v1292_v53 = vadd.f32 %v3328_v15, %v1291_v51  ;;  %v1580_v54 = vpop.f32.mrb[106].mxu0  ;;  %v1293_v55 = vpop.f32.mrb[107].mxu1 }
 0x1e8   :  { %v1582_v56 = vpop.f32.mrb[107].mxu0 }
 0x1e9   :  { %v1581_v57 = vadd.f32 %v1580_v54, %v1292_v53  ;;  %v1676_v58 = vmax.f32 %v1578_v52, 0.0 }
 0x1eb   :  { %v1677_v59 = vmax.f32 %v1581_v57, 0.0 }
 0x1ec   :  { %v1296_v60 = vpop.f32.mrb[108].mxu1 }
 0x1ed   :  { %v2434_v61 = vpack.c.bf16 %v1677_v59, %v1676_v58  ;;  %v1297_v62 = vadd.f32 %v3328_v15, %v1296_v60  ;;  %v1585_v63 = vpop.f32.mrb[108].mxu0  ;;  %v1298_v0 = vpop.f32.mrb[109].mxu1 }
 0x1ee   :  { %v1587_v1 = vpop.f32.mrb[109].mxu0  ;;  %v1299_v2 = vpop.f32.mrb[110].mxu1 }
 0x1ef   :  { %2486 = vst [vmem:[%s3546_s3 + $0xd0] sm:$0xff] %v2434_v61   ;;  %v1586_v3 = vadd.f32 %v1585_v63, %v1297_v62  ;;  %v1300_v4 = vadd.f32 %v3328_v15, %v1299_v2  ;;  %v1588_v5 = vpop.f32.mrb[110].mxu0  ;;  %v1301_v6 = vpop.f32.mrb[111].mxu1 }
 0x1f0   :  { %v1590_v7 = vpop.f32.mrb[111].mxu0 }
 0x1f1   :  { %v1589_v8 = vadd.f32 %v1588_v5, %v1300_v4  ;;  %v1678_v9 = vmax.f32 %v1586_v3, 0.0 }
 0x1f3   :  { %v1679_v10 = vmax.f32 %v1589_v8, 0.0 }
 0x1f4   :  { %v1304_v11 = vpop.f32.mrb[112].mxu1 }
 0x1f5   :  { %v2439_v12 = vpack.c.bf16 %v1679_v10, %v1678_v9  ;;  %v1305_v13 = vadd.f32 %v3328_v15, %v1304_v11  ;;  %v1593_v14 = vpop.f32.mrb[112].mxu0  ;;  %v1306_v16 = vpop.f32.mrb[113].mxu1 }
 0x1f6   :  { %v1595_v17 = vpop.f32.mrb[113].mxu0  ;;  %v1307_v18 = vpop.f32.mrb[114].mxu1 }
 0x1f7   :  { %2487 = vst [vmem:[%s3546_s3 + $0xd8] sm:$0xff] %v2439_v12   ;;  %v1594_v19 = vadd.f32 %v1593_v14, %v1305_v13  ;;  %v1308_v20 = vadd.f32 %v3328_v15, %v1307_v18  ;;  %v1596_v21 = vpop.f32.mrb[114].mxu0  ;;  %v1309_v22 = vpop.f32.mrb[115].mxu1 }
 0x1f8   :  { %v1598_v23 = vpop.f32.mrb[115].mxu0 }
 0x1f9   :  { %v1597_v24 = vadd.f32 %v1596_v21, %v1308_v20  ;;  %v1680_v25 = vmax.f32 %v1594_v19, 0.0 }
 0x1fb   :  { %v1681_v26 = vmax.f32 %v1597_v24, 0.0 }
 0x1fc   :  { %v1312_v27 = vpop.f32.mrb[116].mxu1 }
 0x1fd   :  { %v2444_v28 = vpack.c.bf16 %v1681_v26, %v1680_v25  ;;  %v1313_v29 = vadd.f32 %v3328_v15, %v1312_v27  ;;  %v1601_v30 = vpop.f32.mrb[116].mxu0  ;;  %v1314_v31 = vpop.f32.mrb[117].mxu1 }
 0x1fe   :  { %v1603_v32 = vpop.f32.mrb[117].mxu0  ;;  %v1315_v33 = vpop.f32.mrb[118].mxu1 }
 0x1ff   :  { %2488 = vst [vmem:[%s3546_s3 + $0xe0] sm:$0xff] %v2444_v28   ;;  %v1602_v34 = vadd.f32 %v1601_v30, %v1313_v29  ;;  %v1316_v35 = vadd.f32 %v3328_v15, %v1315_v33  ;;  %v1604_v36 = vpop.f32.mrb[118].mxu0  ;;  %v1317_v37 = vpop.f32.mrb[119].mxu1 }
 0x200   :  { %v1606_v38 = vpop.f32.mrb[119].mxu0 }
 0x201   :  { %v1605_v39 = vadd.f32 %v1604_v36, %v1316_v35  ;;  %v1682_v40 = vmax.f32 %v1602_v34, 0.0 }
 0x203   :  { %v1683_v41 = vmax.f32 %v1605_v39, 0.0 }
 0x204   :  { %v1320_v42 = vpop.f32.mrb[120].mxu1 }
 0x205   :  { %v2449_v43 = vpack.c.bf16 %v1683_v41, %v1682_v40  ;;  %v1321_v45 = vadd.f32 %v2845_v44, %v1320_v42  ;;  %v1609_v46 = vpop.f32.mrb[120].mxu0  ;;  %v1322_v47 = vpop.f32.mrb[121].mxu1 }
 0x206   :  { %v1611_v48 = vpop.f32.mrb[121].mxu0  ;;  %v1323_v49 = vpop.f32.mrb[122].mxu1 }
 0x207   :  { %2489 = vst [vmem:[%s3546_s3 + $0xe8] sm:$0xff] %v2449_v43   ;;  %v1610_v15 = vadd.f32 %v1609_v46, %v1321_v45  ;;  %v1324_v50 = vadd.f32 %v2845_v44, %v1323_v49  ;;  %v1612_v51 = vpop.f32.mrb[122].mxu0  ;;  %v1325_v52 = vpop.f32.mrb[123].mxu1 }
 0x208   :  { %v1614_v53 = vpop.f32.mrb[123].mxu0 }
 0x209   :  { %v1613_v54 = vadd.f32 %v1612_v51, %v1324_v50  ;;  %v1684_v55 = vmax.f32 %v1610_v15, 0.0 }
 0x20b   :  { %v1685_v56 = vmax.f32 %v1613_v54, 0.0 }
 0x20c   :  { %v1328_v57 = vpop.f32.mrb[124].mxu1 }
 0x20d   :  { %v2454_v58 = vpack.c.bf16 %v1685_v56, %v1684_v55  ;;  %v1329_v59 = vadd.f32 %v2845_v44, %v1328_v57  ;;  %v1617_v60 = vpop.f32.mrb[124].mxu0  ;;  %v1330_v61 = vpop.f32.mrb[125].mxu1 }
 0x20e   :  { %v1619_v62 = vpop.f32.mrb[125].mxu0  ;;  %v1331_v63 = vpop.f32.mrb[126].mxu1 }
 0x20f   :  { %2490 = vst [vmem:[%s3546_s3 + $0xf0] sm:$0xff] %v2454_v58   ;;  %v1618_v0 = vadd.f32 %v1617_v60, %v1329_v59  ;;  %v1332_v1 = vadd.f32 %v2845_v44, %v1331_v63  ;;  %v1620_v2 = vpop.f32.mrb[126].mxu0  ;;  %v1333_v3 = vpop.f32.mrb[127].mxu1 }
 0x210   :  { %v1622_v4 = vpop.f32.mrb[127].mxu0 }
 0x211   :  { %v1621_v5 = vadd.f32 %v1620_v2, %v1332_v1  ;;  %v1686_v6 = vmax.f32 %v1618_v0, 0.0 }
 0x213   :  { %v1687_v7 = vmax.f32 %v1621_v5, 0.0 }
 0x215   :  { %v2459_v8 = vpack.c.bf16 %v1687_v7, %v1686_v6 }
 0x217   :  { %2491 = vst [vmem:[%s3546_s3 + $0xf8] sm:$0xff] %v2459_v8  }

// kernel: autoencoder_forward.10
= control target key start
LH: loop header
LB: loop body
LE: loop exit
PB: predicated region body
PF: predicated region fallthrough
CT: control target
= control target key end

     0   :  { %s2431_s1 = inlined_call_operand.vmem [shape: bf16[1,1024,128], index: 1, kind: input, shape index: {}]   ;;  %s2432_s0 = inlined_call_operand.vmem [shape: bf16[1,128,1024], index: 0, kind: input, shape index: {}]   ;;  %s2433_s2 = inlined_call_operand.vmem [shape: f32[1,128], index: 2, kind: input, shape index: {}]   ;;  %s2434_s3 = inlined_call_operand.vmem [shape: bf16[1,128,128], index: 3, kind: output, shape index: {}]  }
   0x1   :  { %v1870_v0 = vld [vmem:[%s2431_s1 + $0x40] sm:$0xff]   ;;  %v1874_v4 = vld [vmem:[%s2431_s1 + $0x48] sm:$0xff]   ;;  %v1878_v8 = vld [vmem:[%s2431_s1 + $0x50] sm:$0xff]  }
   0x2   :  { %v1871_v1 = vld [vmem:[%s2431_s1 + $0xc0] sm:$0xff]   ;;  %1614 = vmatprep.subr.bf16.mxu0 %v1870_v0  ;;  %v1875_v5 = vld [vmem:[%s2431_s1 + $0xc8] sm:$0xff]   ;;  %v1879_v9 = vld [vmem:[%s2431_s1 + $0xd0] sm:$0xff]  }
   0x3   :  { %v1872_v2 = vld [vmem:[%s2431_s1] sm:$0xff]   ;;  %1678 = vmatprep.subr.bf16.mxu1 %v1871_v1  ;;  %v1876_v6 = vld [vmem:[%s2431_s1 + $0x8] sm:$0xff]   ;;  %v1880_v10 = vld [vmem:[%s2431_s1 + $0x10] sm:$0xff]  }
   0x4   :  { %v1873_v3 = vld [vmem:[%s2431_s1 + $0x80] sm:$0xff]   ;;  %1615 = vmatpush3.bf16.msra.mxu0 %v1872_v2  ;;  %v1877_v7 = vld [vmem:[%s2431_s1 + $0x88] sm:$0xff]   ;;  %v1881_v11 = vld [vmem:[%s2431_s1 + $0x90] sm:$0xff]  }
   0x5   :  { %1679 = vmatpush3.bf16.msra.mxu1 %v1873_v3  ;;  %1616 = vmatprep.subr.bf16.mxu0 %v1874_v4  ;;  %v1882_v12 = vld [vmem:[%s2431_s1 + $0x58] sm:$0xff]   ;;  %v1886_v16 = vld [vmem:[%s2431_s1 + $0x60] sm:$0xff]   ;;  %v1890_v20 = vld [vmem:[%s2431_s1 + $0x68] sm:$0xff]  }
   0x6   :  { %1680 = vmatprep.subr.bf16.mxu1 %v1875_v5  ;;  %v1883_v13 = vld [vmem:[%s2431_s1 + $0xd8] sm:$0xff]   ;;  %v1887_v17 = vld [vmem:[%s2431_s1 + $0xe0] sm:$0xff]   ;;  %v1891_v21 = vld [vmem:[%s2431_s1 + $0xe8] sm:$0xff]  }
   0x7   :  { %v1884_v14 = vld [vmem:[%s2431_s1 + $0x18] sm:$0xff]   ;;  %v1888_v18 = vld [vmem:[%s2431_s1 + $0x20] sm:$0xff]   ;;  %v1892_v22 = vld [vmem:[%s2431_s1 + $0x28] sm:$0xff]  }
   0x8   :  { %1617 = vmatpush3.bf16.msra.mxu0 %v1876_v6  ;;  %v1885_v15 = vld [vmem:[%s2431_s1 + $0x98] sm:$0xff]   ;;  %v1889_v19 = vld [vmem:[%s2431_s1 + $0xa0] sm:$0xff]   ;;  %v1893_v23 = vld [vmem:[%s2431_s1 + $0xa8] sm:$0xff]  }
   0x9   :  { %1681 = vmatpush3.bf16.msra.mxu1 %v1877_v7  ;;  %1618 = vmatprep.subr.bf16.mxu0 %v1878_v8  ;;  %v1894_v24 = vld [vmem:[%s2431_s1 + $0x70] sm:$0xff]   ;;  %v1898_v28 = vld [vmem:[%s2431_s1 + $0x78] sm:$0xff]   ;;  %v15_v32 = vld [vmem:[%s2432_s0] sm:$0xff] }
   0xa   :  { %1682 = vmatprep.subr.bf16.mxu1 %v1879_v9  ;;  %v1895_v25 = vld [vmem:[%s2431_s1 + $0xf0] sm:$0xff]   ;;  %v1899_v29 = vld [vmem:[%s2431_s1 + $0xf8] sm:$0xff]   ;;  %v19_v33 = vld [vmem:[%s2432_s0 + $0x20] sm:$0xff] }
   0xb   :  { %v1896_v26 = vld [vmem:[%s2431_s1 + $0x30] sm:$0xff]   ;;  %v1900_v30 = vld [vmem:[%s2431_s1 + $0x38] sm:$0xff]   ;;  %v16_v34 = vld [vmem:[%s2432_s0 + $0x8] sm:$0xff]  ;;  %v1407_v35 = vcombine.low %v15_v32, %v19_v33  ;;  %v1408_v36 = vcombine.high %v15_v32, %v19_v33 }
   0xc   :  { %1619 = vmatpush3.bf16.msra.mxu0 %v1880_v10  ;;  %v1897_v27 = vld [vmem:[%s2431_s1 + $0xb0] sm:$0xff]   ;;  %v1901_v31 = vld [vmem:[%s2431_s1 + $0xb8] sm:$0xff]   ;;  %v20_v37 = vld [vmem:[%s2432_s0 + $0x28] sm:$0xff] }
   0xd   :  { %1683 = vmatpush3.bf16.msra.mxu1 %v1881_v11  ;;  %1620 = vmatprep.subr.bf16.mxu0 %v1882_v12  ;;  %v1409_v38 = vcombine.low %v16_v34, %v20_v37  ;;  %v1410_v39 = vcombine.high %v16_v34, %v20_v37  ;;  %v1902_v40 = vld [vmem:[%s2431_s1 + $0x140] sm:$0xff]   ;;  %v24_v47 = vld [vmem:[%s2432_s0 + $0x48] sm:$0xff]  ;;  %v1910_v62 = vld [vmem:[%s2431_s1 + $0x150] sm:$0xff]  }
   0xe   :  { %1684 = vmatprep.subr.bf16.mxu1 %v1883_v13  ;;  %950 = vmatprep.mubr.bf16.mxu0 %v1408_v36  ;;  %v1903_v41 = vld [vmem:[%s2431_s1 + $0x100] sm:$0xff]   ;;  %v28_v48 = vld [vmem:[%s2432_s0 + $0x68] sm:$0xff]  ;;  %v1911_v63 = vld [vmem:[%s2431_s1 + $0x110] sm:$0xff]  }
   0xf   :  { %1047 = vmatprep.mubr.bf16.mxu1 %v1410_v39  ;;  %v1904_v42 = vld [vmem:[%s2431_s1 + $0x1c0] sm:$0xff]   ;;  %v1418_v49 = vcombine.high %v24_v47, %v28_v48  ;;  %v1906_v50 = vld [vmem:[%s2431_s1 + $0x148] sm:$0xff]   ;;  %v1417_v53 = vcombine.low %v24_v47, %v28_v48  ;;  %v1912_v0 = vld [vmem:[%s2431_s1 + $0x1d0] sm:$0xff]  }
  0x10   :  { %1621 = vmatpush3.bf16.msra.mxu0 %v1884_v14  ;;  %v1905_v43 = vld [vmem:[%s2431_s1 + $0x180] sm:$0xff]   ;;  %v1907_v52 = vld [vmem:[%s2431_s1 + $0x108] sm:$0xff]   ;;  %v1913_v1 = vld [vmem:[%s2431_s1 + $0x190] sm:$0xff]  }
  0x11   :  { %1685 = vmatpush3.bf16.msra.mxu1 %v1885_v15  ;;  %1622 = vmatprep.subr.bf16.mxu0 %v1886_v16  ;;  %v23_v44 = vld [vmem:[%s2432_s0 + $0x40] sm:$0xff]  ;;  %v1908_v54 = vld [vmem:[%s2431_s1 + $0x1c8] sm:$0xff]   ;;  %v1914_v10 = vld [vmem:[%s2431_s1 + $0x158] sm:$0xff]  }
  0x12   :  { %1686 = vmatprep.subr.bf16.mxu1 %v1887_v17  ;;  %v27_v45 = vld [vmem:[%s2432_s0 + $0x60] sm:$0xff]  ;;  %v1909_v55 = vld [vmem:[%s2431_s1 + $0x188] sm:$0xff]   ;;  %v1915_v11 = vld [vmem:[%s2431_s1 + $0x118] sm:$0xff]  }
  0x13   :  { %v1416_v46 = vcombine.high %v23_v44, %v27_v45  ;;  %v1415_v51 = vcombine.low %v23_v44, %v27_v45  ;;  %v31_v56 = vld [vmem:[%s2432_s0 + $0x80] sm:$0xff]  ;;  %v32_v58 = vld [vmem:[%s2432_s0 + $0x88] sm:$0xff]  ;;  %v1916_v12 = vld [vmem:[%s2431_s1 + $0x1d8] sm:$0xff]  }
  0x14   :  { %1623 = vmatpush3.bf16.msra.mxu0 %v1888_v18  ;;  %v35_v57 = vld [vmem:[%s2432_s0 + $0xa0] sm:$0xff]  ;;  %v36_v59 = vld [vmem:[%s2432_s0 + $0xa8] sm:$0xff]  ;;  %v1917_v13 = vld [vmem:[%s2431_s1 + $0x198] sm:$0xff]  }
  0x15   :  { %1687 = vmatpush3.bf16.msra.mxu1 %v1889_v19  ;;  %1624 = vmatprep.subr.bf16.mxu0 %v1890_v20  ;;  %v1424_v60 = vcombine.high %v31_v56, %v35_v57  ;;  %v1426_v61 = vcombine.high %v32_v58, %v36_v59  ;;  %v1423_v2 = vcombine.low %v31_v56, %v35_v57  ;;  %v39_v3 = vld [vmem:[%s2432_s0 + $0xc0] sm:$0xff]  ;;  %v40_v5 = vld [vmem:[%s2432_s0 + $0xc8] sm:$0xff]  ;;  %v1927_v39 = vld [vmem:[%s2431_s1 + $0x130] sm:$0xff]  }
  0x16   :  { %1688 = vmatprep.subr.bf16.mxu1 %v1891_v21  ;;  %v43_v4 = vld [vmem:[%s2432_s0 + $0xe0] sm:$0xff]  ;;  %v1425_v6 = vcombine.low %v32_v58, %v36_v59  ;;  %v44_v8 = vld [vmem:[%s2432_s0 + $0xe8] sm:$0xff]  ;;  %v1931_v48 = vld [vmem:[%s2431_s1 + $0x138] sm:$0xff]  }
  0x17   :  { %v1432_v7 = vcombine.high %v39_v3, %v43_v4  ;;  %v1434_v9 = vcombine.high %v40_v5, %v44_v8  ;;  %v47_v14 = vld [vmem:[%s2432_s0 + $0x100] sm:$0xff]  ;;  %v48_v16 = vld [vmem:[%s2432_s0 + $0x108] sm:$0xff]  ;;  %v1431_v19 = vcombine.low %v39_v3, %v43_v4  ;;  %v1433_v21 = vcombine.low %v40_v5, %v44_v8  ;;  %v26_v8 = vld [vmem:[%s2432_s0 + $0x58] sm:$0xff] }
  0x18   :  { %1625 = vmatpush3.bf16.msra.mxu0 %v1892_v22  ;;  %v51_v15 = vld [vmem:[%s2432_s0 + $0x120] sm:$0xff]  ;;  %v52_v17 = vld [vmem:[%s2432_s0 + $0x128] sm:$0xff] }
  0x19   :  { %1689 = vmatpush3.bf16.msra.mxu1 %v1893_v23  ;;  %1626 = vmatprep.subr.bf16.mxu0 %v1894_v24  ;;  %v1918_v18 = vld [vmem:[%s2431_s1 + $0x160] sm:$0xff]   ;;  %v1440_v22 = vcombine.high %v47_v14, %v51_v15  ;;  %v1442_v24 = vcombine.high %v48_v16, %v52_v17  ;;  %v1924_v32 = vld [vmem:[%s2431_s1 + $0x1e8] sm:$0xff]   ;;  %v1439_v34 = vcombine.low %v47_v14, %v51_v15  ;;  %v33_v14 = vld [vmem:[%s2432_s0 + $0x90] sm:$0xff] }
  0x1a   :  { %1690 = vmatprep.subr.bf16.mxu1 %v1895_v25  ;;  %v1919_v20 = vld [vmem:[%s2431_s1 + $0x120] sm:$0xff]   ;;  %v1925_v33 = vld [vmem:[%s2431_s1 + $0x1a8] sm:$0xff]   ;;  %v37_v15 = vld [vmem:[%s2432_s0 + $0xb0] sm:$0xff] }
  0x1b   :  { %v1920_v23 = vld [vmem:[%s2431_s1 + $0x1e0] sm:$0xff]   ;;  %v64_v44 = vld [vmem:[%s2432_s0 + $0x188] sm:$0xff] }
  0x1c   :  { %1627 = vmatpush3.bf16.msra.mxu0 %v1896_v26  ;;  %v1921_v25 = vld [vmem:[%s2431_s1 + $0x1a0] sm:$0xff]   ;;  %v68_v45 = vld [vmem:[%s2432_s0 + $0x1a8] sm:$0xff] }
  0x1d   :  { %1691 = vmatpush3.bf16.msra.mxu1 %v1897_v27  ;;  %1628 = vmatprep.subr.bf16.mxu0 %v1898_v28  ;;  %v55_v26 = vld [vmem:[%s2432_s0 + $0x140] sm:$0xff]  ;;  %v1922_v28 = vld [vmem:[%s2431_s1 + $0x168] sm:$0xff]   ;;  %v1457_v59 = vcombine.low %v64_v44, %v68_v45 }
  0x1e   :  { %1692 = vmatprep.subr.bf16.mxu1 %v1899_v29  ;;  %v59_v27 = vld [vmem:[%s2432_s0 + $0x160] sm:$0xff]  ;;  %v56_v29 = vld [vmem:[%s2432_s0 + $0x148] sm:$0xff] }
  0x1f   :  { %v1448_v36 = vcombine.high %v55_v26, %v59_v27  ;;  %v1447_v47 = vcombine.low %v55_v26, %v59_v27  ;;  %v72_v56 = vld [vmem:[%s2432_s0 + $0x1c8] sm:$0xff]  ;;  %v1427_v26 = vcombine.low %v33_v14, %v37_v15 }
  0x20   :  { %1629 = vmatpush3.bf16.msra.mxu0 %v1900_v30  ;;  %v60_v30 = vld [vmem:[%s2432_s0 + $0x168] sm:$0xff] }
  0x21   :  { %1693 = vmatpush3.bf16.msra.mxu1 %v1901_v31  ;;  %1742 = vmatprep.subr.bf16.mxu0 %v1902_v40  ;;  %v1923_v31 = vld [vmem:[%s2431_s1 + $0x128] sm:$0xff]   ;;  %v1450_v37 = vcombine.high %v56_v29, %v60_v30  ;;  %v1928_v40 = vld [vmem:[%s2431_s1 + $0x1f0] sm:$0xff]  }
  0x22   :  { %1806 = vmatprep.subr.bf16.mxu1 %v1904_v42  ;;  %v67_v42 = vld [vmem:[%s2432_s0 + $0x1a0] sm:$0xff]  ;;  %v76_v57 = vld [vmem:[%s2432_s0 + $0x1e8] sm:$0xff] }
  0x23   :  { %951 = vmatmul.mubr.bf16.vlgmr.msra.gmra.mrb[0].mxu0 %v1407_v35  ;;  %v1441_v35 = vcombine.low %v48_v16, %v52_v17  ;;  %v1465_v3 = vcombine.low %v72_v56, %v76_v57  ;;  %v34_v16 = vld [vmem:[%s2432_s0 + $0x98] sm:$0xff] }
  0x24   :  { %1048 = vmatmul.mubr.bf16.vlgmr.msra.gmra.mrb[0].mxu1 %v1409_v38  ;;  %1743 = vmatpush3.bf16.msra.mxu0 %v1903_v41  ;;  %v1926_v38 = vld [vmem:[%s2431_s1 + $0x170] sm:$0xff]   ;;  %v63_v41 = vld [vmem:[%s2432_s0 + $0x180] sm:$0xff]  ;;  %v38_v17 = vld [vmem:[%s2432_s0 + $0xb8] sm:$0xff] }
  0x25   :  { %1807 = vmatpush3.bf16.msra.mxu1 %v1905_v43  ;;  %958 = vmatprep.mubr.bf16.mxu0 %v1416_v46  ;;  %v1929_v43 = vld [vmem:[%s2431_s1 + $0x1b0] sm:$0xff]   ;;  %v1930_v46 = vld [vmem:[%s2431_s1 + $0x178] sm:$0xff]   ;;  %v1455_v58 = vcombine.low %v63_v41, %v67_v42  ;;  %v1429_v27 = vcombine.low %v34_v16, %v38_v17 }
  0x26   :  { %1055 = vmatprep.mubr.bf16.mxu1 %v1418_v49  ;;  %1744 = vmatprep.subr.bf16.mxu0 %v1906_v50  ;;  %v1449_v49 = vcombine.low %v56_v29, %v60_v30  ;;  %v1456_v50 = vcombine.high %v63_v41, %v67_v42  ;;  %v49_v30 = vld [vmem:[%s2432_s0 + $0x110] sm:$0xff]  ;;  %v62_v41 = vld [vmem:[%s2432_s0 + $0x178] sm:$0xff] }
  0x27   :  { %1808 = vmatprep.subr.bf16.mxu1 %v1908_v54  ;;  %v71_v54 = vld [vmem:[%s2432_s0 + $0x1c0] sm:$0xff] }
  0x28   :  { %1745 = vmatpush3.bf16.msra.mxu0 %v1907_v52  ;;  %v1458_v52 = vcombine.high %v64_v44, %v68_v45 }
  0x29   :  { %1809 = vmatpush3.bf16.msra.mxu1 %v1909_v55  ;;  %1746 = vmatprep.subr.bf16.mxu0 %v1910_v62  ;;  %v75_v55 = vld [vmem:[%s2432_s0 + $0x1e0] sm:$0xff]  ;;  %v17_v62 = vld [vmem:[%s2432_s0 + $0x10] sm:$0xff] }
  0x2a   :  { %1810 = vmatprep.subr.bf16.mxu1 %v1912_v0  ;;  %v18_v0 = vld [vmem:[%s2432_s0 + $0x18] sm:$0xff] }
  0x2b   :  { %959 = vmatmul.mubr.bf16.gmra.mrb[4].mxu0 %v1415_v51  ;;  %v1932_v51 = vld [vmem:[%s2431_s1 + $0x1f8] sm:$0xff]  }
  0x2c   :  { %1056 = vmatmul.mubr.bf16.gmra.mrb[4].mxu1 %v1417_v53  ;;  %966 = vmatprep.mubr.bf16.mxu0 %v1424_v60  ;;  %v1933_v53 = vld [vmem:[%s2431_s1 + $0x1b8] sm:$0xff]   ;;  %v1464_v60 = vcombine.high %v71_v54, %v75_v55 }
  0x2d   :  { %1063 = vmatprep.mubr.bf16.mxu1 %v1426_v61  ;;  %1747 = vmatpush3.bf16.msra.mxu0 %v1911_v63  ;;  %v1466_v61 = vcombine.high %v72_v56, %v76_v57  ;;  %v21_v63 = vld [vmem:[%s2432_s0 + $0x30] sm:$0xff]  ;;  %v74_v56 = vld [vmem:[%s2432_s0 + $0x1d8] sm:$0xff] }
  0x2e   :  { %1811 = vmatpush3.bf16.msra.mxu1 %v1913_v1  ;;  %1748 = vmatprep.subr.bf16.mxu0 %v1914_v10  ;;  %v22_v1 = vld [vmem:[%s2432_s0 + $0x38] sm:$0xff]  ;;  %v1412_v4 = vcombine.high %v17_v62, %v21_v63  ;;  %v1411_v10 = vcombine.low %v17_v62, %v21_v63 }
  0x2f   :  { %1812 = vmatprep.subr.bf16.mxu1 %v1916_v12  ;;  %v1414_v5 = vcombine.high %v18_v0, %v22_v1  ;;  %v78_v57 = vld [vmem:[%s2432_s0 + $0x1f8] sm:$0xff] }
  0x30   :  { %v1469_v63 = vcombine.low %v74_v56, %v78_v57 }
  0x31   :  { %1749 = vmatpush3.bf16.msra.mxu0 %v1915_v11  ;;  %v1413_v11 = vcombine.low %v18_v0, %v22_v1 }
  0x32   :  { %1813 = vmatpush3.bf16.msra.mxu1 %v1917_v13  ;;  %1750 = vmatprep.subr.bf16.mxu0 %v1918_v18 }
  0x33   :  { %967 = vmatmul.mubr.bf16.gmra.mrb[8].mxu0 %v1423_v2  ;;  %1814 = vmatprep.subr.bf16.mxu1 %v1920_v23  ;;  %v1463_v2 = vcombine.low %v71_v54, %v75_v55  ;;  %v45_v23 = vld [vmem:[%s2432_s0 + $0xf0] sm:$0xff] }
  0x34   :  { %1064 = vmatmul.mubr.bf16.gmra.mrb[8].mxu1 %v1425_v6  ;;  %974 = vmatprep.mubr.bf16.mxu0 %v1432_v7  ;;  %v25_v6 = vld [vmem:[%s2432_s0 + $0x50] sm:$0xff] }
  0x35   :  { %1071 = vmatprep.mubr.bf16.mxu1 %v1434_v9  ;;  %1751 = vmatpush3.bf16.msra.mxu0 %v1919_v20  ;;  %v29_v7 = vld [vmem:[%s2432_s0 + $0x70] sm:$0xff]  ;;  %v30_v9 = vld [vmem:[%s2432_s0 + $0x78] sm:$0xff]  ;;  %v1428_v20 = vcombine.high %v33_v14, %v37_v15 }
  0x36   :  { %1815 = vmatpush3.bf16.msra.mxu1 %v1921_v25  ;;  %1752 = vmatprep.subr.bf16.mxu0 %v1922_v28  ;;  %v1420_v12 = vcombine.high %v25_v6, %v29_v7  ;;  %v1422_v13 = vcombine.high %v26_v8, %v30_v9  ;;  %v1419_v18 = vcombine.low %v25_v6, %v29_v7  ;;  %v46_v25 = vld [vmem:[%s2432_s0 + $0xf8] sm:$0xff]  ;;  %v73_v54 = vld [vmem:[%s2432_s0 + $0x1d0] sm:$0xff] }
  0x37   :  { %1816 = vmatprep.subr.bf16.mxu1 %v1924_v32  ;;  %v50_v32 = vld [vmem:[%s2432_s0 + $0x118] sm:$0xff]  ;;  %v77_v55 = vld [vmem:[%s2432_s0 + $0x1f0] sm:$0xff] }
  0x38   :  { %v1467_v62 = vcombine.low %v73_v54, %v77_v55 }
  0x39   :  { %1753 = vmatpush3.bf16.msra.mxu0 %v1923_v31  ;;  %v53_v31 = vld [vmem:[%s2432_s0 + $0x130] sm:$0xff] }
  0x3a   :  { %1817 = vmatpush3.bf16.msra.mxu1 %v1925_v33  ;;  %1754 = vmatprep.subr.bf16.mxu0 %v1926_v38  ;;  %v54_v33 = vld [vmem:[%s2432_s0 + $0x138] sm:$0xff]  ;;  %v57_v38 = vld [vmem:[%s2432_s0 + $0x150] sm:$0xff]  ;;  %v1443_v42 = vcombine.low %v49_v30, %v53_v31 }
  0x3b   :  { %975 = vmatmul.mubr.bf16.gmra.mrb[12].mxu0 %v1431_v19  ;;  %1818 = vmatprep.subr.bf16.mxu1 %v1928_v40  ;;  %v1421_v19 = vcombine.low %v26_v8, %v30_v9  ;;  %v58_v40 = vld [vmem:[%s2432_s0 + $0x158] sm:$0xff] }
  0x3c   :  { %1072 = vmatmul.mubr.bf16.gmra.mrb[12].mxu1 %v1433_v21  ;;  %982 = vmatprep.mubr.bf16.mxu0 %v1440_v22  ;;  %v1430_v21 = vcombine.high %v34_v16, %v38_v17  ;;  %v41_v22 = vld [vmem:[%s2432_s0 + $0xd0] sm:$0xff]  ;;  %v1454_v45 = vcombine.high %v58_v40, %v62_v41 }
  0x3d   :  { %1079 = vmatprep.mubr.bf16.mxu1 %v1442_v24  ;;  %1755 = vmatpush3.bf16.msra.mxu0 %v1927_v39  ;;  %v42_v24 = vld [vmem:[%s2432_s0 + $0xd8] sm:$0xff]  ;;  %v1436_v28 = vcombine.high %v41_v22, %v45_v23  ;;  %v61_v39 = vld [vmem:[%s2432_s0 + $0x170] sm:$0xff] }
  0x3e   :  { %1819 = vmatpush3.bf16.msra.mxu1 %v1929_v43  ;;  %1756 = vmatprep.subr.bf16.mxu0 %v1930_v46  ;;  %v1438_v29 = vcombine.high %v42_v24, %v46_v25  ;;  %v1445_v43 = vcombine.low %v50_v32, %v54_v33  ;;  %v1452_v44 = vcombine.high %v57_v38, %v61_v39  ;;  %v65_v46 = vld [vmem:[%s2432_s0 + $0x190] sm:$0xff] }
  0x3f   :  { %1820 = vmatprep.subr.bf16.mxu1 %v1932_v51  ;;  %v1453_v51 = vcombine.low %v58_v40, %v62_v41 }
  0x41   :  { %1757 = vmatpush3.bf16.msra.mxu0 %v1931_v48  ;;  %v66_v48 = vld [vmem:[%s2432_s0 + $0x198] sm:$0xff] }
  0x42   :  { %1821 = vmatpush3.bf16.msra.mxu1 %v1933_v53 }
  0x43   :  { %983 = vmatmul.mubr.bf16.gmra.mrb[16].mxu0 %v1439_v34  ;;  %v1435_v34 = vcombine.low %v41_v22, %v45_v23 }
  0x44   :  { %1080 = vmatmul.mubr.bf16.gmra.mrb[16].mxu1 %v1441_v35  ;;  %990 = vmatprep.mubr.bf16.mxu0 %v1448_v36  ;;  %v1437_v35 = vcombine.low %v42_v24, %v46_v25  ;;  %v1444_v36 = vcombine.high %v49_v30, %v53_v31 }
  0x45   :  { %1087 = vmatprep.mubr.bf16.mxu1 %v1450_v37  ;;  %v1446_v37 = vcombine.high %v50_v32, %v54_v33 }
  0x4b   :  { %991 = vmatmul.mubr.bf16.gmra.mrb[20].mxu0 %v1447_v47  ;;  %v69_v47 = vld [vmem:[%s2432_s0 + $0x1b0] sm:$0xff] }
  0x4c   :  { %1088 = vmatmul.mubr.bf16.gmra.mrb[20].mxu1 %v1449_v49  ;;  %998 = vmatprep.mubr.bf16.mxu0 %v1456_v50  ;;  %v70_v49 = vld [vmem:[%s2432_s0 + $0x1b8] sm:$0xff]  ;;  %v1451_v50 = vcombine.low %v57_v38, %v61_v39 }
  0x4d   :  { %1095 = vmatprep.mubr.bf16.mxu1 %v1458_v52  ;;  %v1460_v52 = vcombine.high %v65_v46, %v69_v47  ;;  %v1462_v53 = vcombine.high %v66_v48, %v70_v49 }
  0x53   :  { %999 = vmatmul.mubr.bf16.gmra.mrb[24].mxu0 %v1455_v58  ;;  %v1459_v58 = vcombine.low %v65_v46, %v69_v47 }
  0x54   :  { %1096 = vmatmul.mubr.bf16.gmra.mrb[24].mxu1 %v1457_v59  ;;  %1006 = vmatprep.mubr.bf16.mxu0 %v1464_v60  ;;  %v1461_v59 = vcombine.low %v66_v48, %v70_v49  ;;  %v1468_v60 = vcombine.high %v73_v54, %v77_v55 }
  0x55   :  { %1103 = vmatprep.mubr.bf16.mxu1 %v1466_v61  ;;  %v1470_v61 = vcombine.high %v74_v56, %v78_v57 }
  0x5b   :  { %1007 = vmatmul.mubr.bf16.gmra.mrb[28].mxu0 %v1463_v2  ;;  %v2341_v2 = vld [vmem:[%s2433_s2] ss:$0 sm:$0xff] }
  0x5c   :  { %1104 = vmatmul.mubr.bf16.gmra.mrb[28].mxu1 %v1465_v3  ;;  %1144 = vmatprep.mubr.bf16.mxu0 %v1412_v4 }
  0x5d   :  { %1241 = vmatprep.mubr.bf16.mxu1 %v1414_v5 }
  0x63   :  { %1145 = vmatmul.mubr.bf16.vlgmr.msra.gmra.mrb[32].mxu0 %v1411_v10 }
  0x64   :  { %1242 = vmatmul.mubr.bf16.vlgmr.msra.gmra.mrb[32].mxu1 %v1413_v11  ;;  %1152 = vmatprep.mubr.bf16.mxu0 %v1420_v12 }
  0x65   :  { %1249 = vmatprep.mubr.bf16.mxu1 %v1422_v13 }
  0x6b   :  { %1153 = vmatmul.mubr.bf16.gmra.mrb[36].mxu0 %v1419_v18 }
  0x6c   :  { %1250 = vmatmul.mubr.bf16.gmra.mrb[36].mxu1 %v1421_v19  ;;  %1160 = vmatprep.mubr.bf16.mxu0 %v1428_v20 }
  0x6d   :  { %1257 = vmatprep.mubr.bf16.mxu1 %v1430_v21 }
  0x73   :  { %1161 = vmatmul.mubr.bf16.gmra.mrb[40].mxu0 %v1427_v26 }
  0x74   :  { %1258 = vmatmul.mubr.bf16.gmra.mrb[40].mxu1 %v1429_v27  ;;  %1168 = vmatprep.mubr.bf16.mxu0 %v1436_v28 }
  0x75   :  { %1265 = vmatprep.mubr.bf16.mxu1 %v1438_v29 }
  0x7b   :  { %1169 = vmatmul.mubr.bf16.gmra.mrb[44].mxu0 %v1435_v34 }
  0x7c   :  { %1266 = vmatmul.mubr.bf16.gmra.mrb[44].mxu1 %v1437_v35  ;;  %1176 = vmatprep.mubr.bf16.mxu0 %v1444_v36 }
  0x7d   :  { %1273 = vmatprep.mubr.bf16.mxu1 %v1446_v37 }
  0x83   :  { %1177 = vmatmul.mubr.bf16.gmra.mrb[48].mxu0 %v1443_v42 }
  0x84   :  { %1274 = vmatmul.mubr.bf16.gmra.mrb[48].mxu1 %v1445_v43  ;;  %1184 = vmatprep.mubr.bf16.mxu0 %v1452_v44 }
  0x85   :  { %1281 = vmatprep.mubr.bf16.mxu1 %v1454_v45 }
  0x8b   :  { %1185 = vmatmul.mubr.bf16.gmra.mrb[52].mxu0 %v1451_v50 }
  0x8c   :  { %1282 = vmatmul.mubr.bf16.gmra.mrb[52].mxu1 %v1453_v51  ;;  %1192 = vmatprep.mubr.bf16.mxu0 %v1460_v52 }
  0x8d   :  { %1289 = vmatprep.mubr.bf16.mxu1 %v1462_v53 }
  0x93   :  { %1193 = vmatmul.mubr.bf16.gmra.mrb[56].mxu0 %v1459_v58 }
  0x94   :  { %1290 = vmatmul.mubr.bf16.gmra.mrb[56].mxu1 %v1461_v59  ;;  %1200 = vmatprep.mubr.bf16.mxu0 %v1468_v60 }
  0x95   :  { %1297 = vmatprep.mubr.bf16.mxu1 %v1470_v61 }
  0x9b   :  { %1201 = vmatmul.mubr.bf16.gmra.mrb[60].mxu0 %v1467_v62 }
  0x9c   :  { %1298 = vmatmul.mubr.bf16.gmra.mrb[60].mxu1 %v1469_v63 }
  0xf6   :  { %v1630_v0 = vpop.f32.mrb[0].mxu0 }
  0xf7   :  { %v1694_v1 = vpop.f32.mrb[0].mxu1  ;;  %v1631_v3 = vpop.f32.mrb[1].mxu0 }
  0xf8   :  { %v1632_v4 = vadd.f32 %v1631_v3, %v1630_v0  ;;  %v1695_v5 = vpop.f32.mrb[1].mxu1  ;;  %v1633_v6 = vpop.f32.mrb[2].mxu0 }
  0xf9   :  { %v1696_v7 = vadd.f32 %v1695_v5, %v1694_v1  ;;  %v1697_v8 = vpop.f32.mrb[2].mxu1  ;;  %v1634_v9 = vpop.f32.mrb[3].mxu0 }
  0xfa   :  { %v953_v10 = vadd.f32 %v1632_v4, %v2341_v2  ;;  %v1635_v11 = vadd.f32 %v1634_v9, %v1633_v6  ;;  %v1698_v12 = vpop.f32.mrb[3].mxu1 }
  0xfb   :  { %v1699_v13 = vadd.f32 %v1698_v12, %v1697_v8 }
  0xfc   :  { %v2344_v14 = vadd.f32 %v1696_v7, %v953_v10  ;;  %v956_v15 = vadd.f32 %v1635_v11, %v2341_v2 }
  0xfe   :  { %v2347_v16 = vadd.f32 %v1699_v13, %v956_v15  ;;  %v1636_v17 = vpop.f32.mrb[4].mxu0 }
  0xff   :  { %v1700_v18 = vpop.f32.mrb[4].mxu1  ;;  %v1637_v19 = vpop.f32.mrb[5].mxu0 }
 0x100   :  { %v1638_v20 = vadd.f32 %v1637_v19, %v1636_v17  ;;  %v1701_v21 = vpop.f32.mrb[5].mxu1  ;;  %v1639_v22 = vpop.f32.mrb[6].mxu0 }
 0x101   :  { %v1702_v23 = vadd.f32 %v1701_v21, %v1700_v18  ;;  %v1703_v24 = vpop.f32.mrb[6].mxu1  ;;  %v1640_v25 = vpop.f32.mrb[7].mxu0 }
 0x102   :  { %v961_v26 = vadd.f32 %v1638_v20, %v2341_v2  ;;  %v1641_v27 = vadd.f32 %v1640_v25, %v1639_v22  ;;  %v1704_v28 = vpop.f32.mrb[7].mxu1 }
 0x103   :  { %v1705_v29 = vadd.f32 %v1704_v28, %v1703_v24 }
 0x104   :  { %v2350_v30 = vadd.f32 %v1702_v23, %v961_v26  ;;  %v964_v31 = vadd.f32 %v1641_v27, %v2341_v2 }
 0x106   :  { %v2353_v32 = vadd.f32 %v1705_v29, %v964_v31  ;;  %v1642_v33 = vpop.f32.mrb[8].mxu0 }
 0x107   :  { %v1706_v34 = vpop.f32.mrb[8].mxu1  ;;  %v1643_v35 = vpop.f32.mrb[9].mxu0 }
 0x108   :  { %v1644_v36 = vadd.f32 %v1643_v35, %v1642_v33  ;;  %v1707_v37 = vpop.f32.mrb[9].mxu1  ;;  %v1645_v38 = vpop.f32.mrb[10].mxu0 }
 0x109   :  { %v1708_v39 = vadd.f32 %v1707_v37, %v1706_v34  ;;  %v1709_v40 = vpop.f32.mrb[10].mxu1  ;;  %v1646_v41 = vpop.f32.mrb[11].mxu0 }
 0x10a   :  { %v969_v42 = vadd.f32 %v1644_v36, %v2341_v2  ;;  %v1647_v43 = vadd.f32 %v1646_v41, %v1645_v38  ;;  %v1710_v44 = vpop.f32.mrb[11].mxu1 }
 0x10b   :  { %v1711_v45 = vadd.f32 %v1710_v44, %v1709_v40 }
 0x10c   :  { %v2356_v46 = vadd.f32 %v1708_v39, %v969_v42  ;;  %v972_v47 = vadd.f32 %v1647_v43, %v2341_v2 }
 0x10e   :  { %v2359_v48 = vadd.f32 %v1711_v45, %v972_v47  ;;  %v1648_v49 = vpop.f32.mrb[12].mxu0 }
 0x10f   :  { %v1712_v50 = vpop.f32.mrb[12].mxu1  ;;  %v1649_v51 = vpop.f32.mrb[13].mxu0 }
 0x110   :  { %v1650_v52 = vadd.f32 %v1649_v51, %v1648_v49  ;;  %v1713_v53 = vpop.f32.mrb[13].mxu1  ;;  %v1651_v54 = vpop.f32.mrb[14].mxu0 }
 0x111   :  { %v1714_v55 = vadd.f32 %v1713_v53, %v1712_v50  ;;  %v1715_v56 = vpop.f32.mrb[14].mxu1  ;;  %v1652_v57 = vpop.f32.mrb[15].mxu0 }
 0x112   :  { %v977_v58 = vadd.f32 %v1650_v52, %v2341_v2  ;;  %v1653_v59 = vadd.f32 %v1652_v57, %v1651_v54  ;;  %v1716_v60 = vpop.f32.mrb[15].mxu1 }
 0x113   :  { %v1717_v61 = vadd.f32 %v1716_v60, %v1715_v56 }
 0x114   :  { %v2362_v62 = vadd.f32 %v1714_v55, %v977_v58  ;;  %v980_v63 = vadd.f32 %v1653_v59, %v2341_v2 }
 0x116   :  { %v2365_v0 = vadd.f32 %v1717_v61, %v980_v63  ;;  %v1654_v1 = vpop.f32.mrb[16].mxu0 }
 0x117   :  { %v1718_v3 = vpop.f32.mrb[16].mxu1  ;;  %v1655_v4 = vpop.f32.mrb[17].mxu0 }
 0x118   :  { %v1656_v5 = vadd.f32 %v1655_v4, %v1654_v1  ;;  %v1719_v6 = vpop.f32.mrb[17].mxu1  ;;  %v1657_v7 = vpop.f32.mrb[18].mxu0 }
 0x119   :  { %v1720_v8 = vadd.f32 %v1719_v6, %v1718_v3  ;;  %v1721_v9 = vpop.f32.mrb[18].mxu1  ;;  %v1658_v10 = vpop.f32.mrb[19].mxu0 }
 0x11a   :  { %v985_v11 = vadd.f32 %v1656_v5, %v2341_v2  ;;  %v1659_v12 = vadd.f32 %v1658_v10, %v1657_v7  ;;  %v1722_v13 = vpop.f32.mrb[19].mxu1 }
 0x11b   :  { %v1723_v15 = vadd.f32 %v1722_v13, %v1721_v9 }
 0x11c   :  { %v2368_v17 = vadd.f32 %v1720_v8, %v985_v11  ;;  %v988_v18 = vadd.f32 %v1659_v12, %v2341_v2 }
 0x11e   :  { %v2371_v19 = vadd.f32 %v1723_v15, %v988_v18  ;;  %v1660_v20 = vpop.f32.mrb[20].mxu0 }
 0x11f   :  { %v1724_v21 = vpop.f32.mrb[20].mxu1  ;;  %v1661_v22 = vpop.f32.mrb[21].mxu0 }
 0x120   :  { %v1662_v23 = vadd.f32 %v1661_v22, %v1660_v20  ;;  %v1725_v24 = vpop.f32.mrb[21].mxu1  ;;  %v1663_v25 = vpop.f32.mrb[22].mxu0 }
 0x121   :  { %v1726_v26 = vadd.f32 %v1725_v24, %v1724_v21  ;;  %v1727_v27 = vpop.f32.mrb[22].mxu1  ;;  %v1664_v28 = vpop.f32.mrb[23].mxu0 }
 0x122   :  { %v993_v29 = vadd.f32 %v1662_v23, %v2341_v2  ;;  %v1665_v31 = vadd.f32 %v1664_v28, %v1663_v25  ;;  %v1728_v33 = vpop.f32.mrb[23].mxu1 }
 0x123   :  { %v1729_v34 = vadd.f32 %v1728_v33, %v1727_v27 }
 0x124   :  { %v2374_v35 = vadd.f32 %v1726_v26, %v993_v29  ;;  %v996_v36 = vadd.f32 %v1665_v31, %v2341_v2 }
 0x126   :  { %v2377_v37 = vadd.f32 %v1729_v34, %v996_v36  ;;  %v1666_v38 = vpop.f32.mrb[24].mxu0 }
 0x127   :  { %v1730_v39 = vpop.f32.mrb[24].mxu1  ;;  %v1667_v40 = vpop.f32.mrb[25].mxu0 }
 0x128   :  { %v1668_v41 = vadd.f32 %v1667_v40, %v1666_v38  ;;  %v1731_v42 = vpop.f32.mrb[25].mxu1  ;;  %v1669_v43 = vpop.f32.mrb[26].mxu0 }
 0x129   :  { %v1732_v44 = vadd.f32 %v1731_v42, %v1730_v39  ;;  %v1733_v45 = vpop.f32.mrb[26].mxu1  ;;  %v1670_v47 = vpop.f32.mrb[27].mxu0 }
 0x12a   :  { %v1001_v49 = vadd.f32 %v1668_v41, %v2341_v2  ;;  %v1671_v50 = vadd.f32 %v1670_v47, %v1669_v43  ;;  %v1734_v51 = vpop.f32.mrb[27].mxu1 }
 0x12b   :  { %v1735_v52 = vadd.f32 %v1734_v51, %v1733_v45 }
 0x12c   :  { %v2380_v53 = vadd.f32 %v1732_v44, %v1001_v49  ;;  %v1004_v54 = vadd.f32 %v1671_v50, %v2341_v2 }
 0x12e   :  { %v2383_v55 = vadd.f32 %v1735_v52, %v1004_v54  ;;  %v1672_v56 = vpop.f32.mrb[28].mxu0 }
 0x12f   :  { %v1736_v57 = vpop.f32.mrb[28].mxu1  ;;  %v1673_v58 = vpop.f32.mrb[29].mxu0 }
 0x130   :  { %v1674_v59 = vadd.f32 %v1673_v58, %v1672_v56  ;;  %v1737_v60 = vpop.f32.mrb[29].mxu1  ;;  %v1675_v61 = vpop.f32.mrb[30].mxu0 }
 0x131   :  { %v1738_v63 = vadd.f32 %v1737_v60, %v1736_v57  ;;  %v1739_v1 = vpop.f32.mrb[30].mxu1  ;;  %v1676_v3 = vpop.f32.mrb[31].mxu0 }
 0x132   :  { %v1009_v4 = vadd.f32 %v1674_v59, %v2341_v2  ;;  %v1677_v5 = vadd.f32 %v1676_v3, %v1675_v61  ;;  %v1740_v6 = vpop.f32.mrb[31].mxu1 }
 0x133   :  { %v1741_v7 = vadd.f32 %v1740_v6, %v1739_v1 }
 0x134   :  { %v2386_v8 = vadd.f32 %v1738_v63, %v1009_v4  ;;  %v1012_v9 = vadd.f32 %v1677_v5, %v2341_v2 }
 0x136   :  { %v2389_v10 = vadd.f32 %v1741_v7, %v1012_v9  ;;  %v1758_v11 = vpop.f32.mrb[32].mxu0 }
 0x137   :  { %v1822_v12 = vpop.f32.mrb[32].mxu1  ;;  %v1759_v13 = vpop.f32.mrb[33].mxu0 }
 0x138   :  { %v1760_v15 = vadd.f32 %v1759_v13, %v1758_v11  ;;  %v1823_v18 = vpop.f32.mrb[33].mxu1  ;;  %v1761_v20 = vpop.f32.mrb[34].mxu0 }
 0x139   :  { %v1824_v21 = vadd.f32 %v1823_v18, %v1822_v12  ;;  %v1825_v22 = vpop.f32.mrb[34].mxu1  ;;  %v1762_v23 = vpop.f32.mrb[35].mxu0 }
 0x13a   :  { %v1147_v24 = vadd.f32 %v1760_v15, %v2344_v14  ;;  %v1763_v25 = vadd.f32 %v1762_v23, %v1761_v20  ;;  %v1826_v26 = vpop.f32.mrb[35].mxu1 }
 0x13b   :  { %v1827_v27 = vadd.f32 %v1826_v26, %v1825_v22 }
 0x13c   :  { %v1244_v28 = vadd.f32 %v1824_v21, %v1147_v24  ;;  %v1150_v29 = vadd.f32 %v1763_v25, %v2347_v16 }
 0x13e   :  { %v1247_v2 = vadd.f32 %v1827_v27, %v1150_v29  ;;  %v1764_v31 = vpop.f32.mrb[36].mxu0  ;;  %v1306_v36 = vmax.f32 %v1244_v28, 0.0 }
 0x13f   :  { %v1828_v33 = vpop.f32.mrb[36].mxu1  ;;  %v1765_v34 = vpop.f32.mrb[37].mxu0 }
 0x140   :  { %v1307_v38 = vmax.f32 %v1247_v2, 0.0  ;;  %v1766_v39 = vadd.f32 %v1765_v34, %v1764_v31  ;;  %v1829_v40 = vpop.f32.mrb[37].mxu1  ;;  %v1767_v41 = vpop.f32.mrb[38].mxu0 }
 0x141   :  { %v1830_v42 = vadd.f32 %v1829_v40, %v1828_v33  ;;  %v1831_v43 = vpop.f32.mrb[38].mxu1  ;;  %v1768_v44 = vpop.f32.mrb[39].mxu0 }
 0x142   :  { %v1570_v45 = vpack.c.bf16 %v1307_v38, %v1306_v36  ;;  %v1155_v14 = vadd.f32 %v1766_v39, %v2350_v30  ;;  %v1769_v47 = vadd.f32 %v1768_v44, %v1767_v41  ;;  %v1832_v49 = vpop.f32.mrb[39].mxu1 }
 0x143   :  { %v1833_v50 = vadd.f32 %v1832_v49, %v1831_v43 }
 0x144   :  { %1571 = vst [vmem:[%s2434_s3] sm:$0xff] %v1570_v45   ;;  %v1252_v16 = vadd.f32 %v1830_v42, %v1155_v14  ;;  %v1158_v51 = vadd.f32 %v1769_v47, %v2353_v32 }
 0x146   :  { %v1255_v52 = vadd.f32 %v1833_v50, %v1158_v51  ;;  %v1770_v54 = vpop.f32.mrb[40].mxu0  ;;  %v1308_v58 = vmax.f32 %v1252_v16, 0.0 }
 0x147   :  { %v1834_v56 = vpop.f32.mrb[40].mxu1  ;;  %v1771_v57 = vpop.f32.mrb[41].mxu0 }
 0x148   :  { %v1309_v59 = vmax.f32 %v1255_v52, 0.0  ;;  %v1772_v60 = vadd.f32 %v1771_v57, %v1770_v54  ;;  %v1835_v61 = vpop.f32.mrb[41].mxu1  ;;  %v1773_v63 = vpop.f32.mrb[42].mxu0 }
 0x149   :  { %v1836_v30 = vadd.f32 %v1835_v61, %v1834_v56  ;;  %v1837_v1 = vpop.f32.mrb[42].mxu1  ;;  %v1774_v3 = vpop.f32.mrb[43].mxu0 }
 0x14a   :  { %v1575_v4 = vpack.c.bf16 %v1309_v59, %v1308_v58  ;;  %v1163_v5 = vadd.f32 %v1772_v60, %v2356_v46  ;;  %v1775_v6 = vadd.f32 %v1774_v3, %v1773_v63  ;;  %v1838_v7 = vpop.f32.mrb[43].mxu1 }
 0x14b   :  { %v1839_v9 = vadd.f32 %v1838_v7, %v1837_v1 }
 0x14c   :  { %1607 = vst [vmem:[%s2434_s3 + $0x8] sm:$0xff] %v1575_v4   ;;  %v1260_v32 = vadd.f32 %v1836_v30, %v1163_v5  ;;  %v1166_v11 = vadd.f32 %v1775_v6, %v2359_v48 }
 0x14e   :  { %v1263_v12 = vadd.f32 %v1839_v9, %v1166_v11  ;;  %v1776_v13 = vpop.f32.mrb[44].mxu0  ;;  %v1310_v20 = vmax.f32 %v1260_v32, 0.0 }
 0x14f   :  { %v1840_v15 = vpop.f32.mrb[44].mxu1  ;;  %v1777_v18 = vpop.f32.mrb[45].mxu0 }
 0x150   :  { %v1311_v21 = vmax.f32 %v1263_v12, 0.0  ;;  %v1778_v22 = vadd.f32 %v1777_v18, %v1776_v13  ;;  %v1841_v23 = vpop.f32.mrb[45].mxu1  ;;  %v1779_v24 = vpop.f32.mrb[46].mxu0 }
 0x151   :  { %v1842_v46 = vadd.f32 %v1841_v23, %v1840_v15  ;;  %v1843_v25 = vpop.f32.mrb[46].mxu1  ;;  %v1780_v26 = vpop.f32.mrb[47].mxu0 }
 0x152   :  { %v1580_v27 = vpack.c.bf16 %v1311_v21, %v1310_v20  ;;  %v1171_v28 = vadd.f32 %v1778_v22, %v2362_v62  ;;  %v1781_v29 = vadd.f32 %v1780_v26, %v1779_v24  ;;  %v1844_v2 = vpop.f32.mrb[47].mxu1 }
 0x153   :  { %v1845_v31 = vadd.f32 %v1844_v2, %v1843_v25 }
 0x154   :  { %1608 = vst [vmem:[%s2434_s3 + $0x10] sm:$0xff] %v1580_v27   ;;  %v1268_v48 = vadd.f32 %v1842_v46, %v1171_v28  ;;  %v1174_v33 = vadd.f32 %v1781_v29, %v2365_v0 }
 0x156   :  { %v1271_v34 = vadd.f32 %v1845_v31, %v1174_v33  ;;  %v1782_v36 = vpop.f32.mrb[48].mxu0  ;;  %v1312_v40 = vmax.f32 %v1268_v48, 0.0 }
 0x157   :  { %v1846_v38 = vpop.f32.mrb[48].mxu1  ;;  %v1783_v39 = vpop.f32.mrb[49].mxu0 }
 0x158   :  { %v1313_v41 = vmax.f32 %v1271_v34, 0.0  ;;  %v1784_v42 = vadd.f32 %v1783_v39, %v1782_v36  ;;  %v1847_v43 = vpop.f32.mrb[49].mxu1  ;;  %v1785_v44 = vpop.f32.mrb[50].mxu0 }
 0x159   :  { %v1848_v62 = vadd.f32 %v1847_v43, %v1846_v38  ;;  %v1849_v45 = vpop.f32.mrb[50].mxu1  ;;  %v1786_v14 = vpop.f32.mrb[51].mxu0 }
 0x15a   :  { %v1585_v47 = vpack.c.bf16 %v1313_v41, %v1312_v40  ;;  %v1179_v49 = vadd.f32 %v1784_v42, %v2368_v17  ;;  %v1787_v50 = vadd.f32 %v1786_v14, %v1785_v44  ;;  %v1850_v16 = vpop.f32.mrb[51].mxu1 }
 0x15b   :  { %v1851_v51 = vadd.f32 %v1850_v16, %v1849_v45 }
 0x15c   :  { %1609 = vst [vmem:[%s2434_s3 + $0x18] sm:$0xff] %v1585_v47   ;;  %v1276_v0 = vadd.f32 %v1848_v62, %v1179_v49  ;;  %v1182_v52 = vadd.f32 %v1787_v50, %v2371_v19 }
 0x15e   :  { %v1279_v54 = vadd.f32 %v1851_v51, %v1182_v52  ;;  %v1788_v56 = vpop.f32.mrb[52].mxu0  ;;  %v1314_v59 = vmax.f32 %v1276_v0, 0.0 }
 0x15f   :  { %v1852_v57 = vpop.f32.mrb[52].mxu1  ;;  %v1789_v58 = vpop.f32.mrb[53].mxu0 }
 0x160   :  { %v1315_v60 = vmax.f32 %v1279_v54, 0.0  ;;  %v1790_v61 = vadd.f32 %v1789_v58, %v1788_v56  ;;  %v1853_v63 = vpop.f32.mrb[53].mxu1  ;;  %v1791_v30 = vpop.f32.mrb[54].mxu0 }
 0x161   :  { %v1854_v17 = vadd.f32 %v1853_v63, %v1852_v57  ;;  %v1855_v1 = vpop.f32.mrb[54].mxu1  ;;  %v1792_v3 = vpop.f32.mrb[55].mxu0 }
 0x162   :  { %v1590_v4 = vpack.c.bf16 %v1315_v60, %v1314_v59  ;;  %v1187_v5 = vadd.f32 %v1790_v61, %v2374_v35  ;;  %v1793_v6 = vadd.f32 %v1792_v3, %v1791_v30  ;;  %v1856_v7 = vpop.f32.mrb[55].mxu1 }
 0x163   :  { %v1857_v9 = vadd.f32 %v1856_v7, %v1855_v1 }
 0x164   :  { %1610 = vst [vmem:[%s2434_s3 + $0x20] sm:$0xff] %v1590_v4   ;;  %v1284_v19 = vadd.f32 %v1854_v17, %v1187_v5  ;;  %v1190_v32 = vadd.f32 %v1793_v6, %v2377_v37 }
 0x166   :  { %v1287_v11 = vadd.f32 %v1857_v9, %v1190_v32  ;;  %v1794_v12 = vpop.f32.mrb[56].mxu0  ;;  %v1316_v18 = vmax.f32 %v1284_v19, 0.0 }
 0x167   :  { %v1858_v13 = vpop.f32.mrb[56].mxu1  ;;  %v1795_v15 = vpop.f32.mrb[57].mxu0 }
 0x168   :  { %v1317_v20 = vmax.f32 %v1287_v11, 0.0  ;;  %v1796_v21 = vadd.f32 %v1795_v15, %v1794_v12  ;;  %v1859_v22 = vpop.f32.mrb[57].mxu1  ;;  %v1797_v23 = vpop.f32.mrb[58].mxu0 }
 0x169   :  { %v1860_v35 = vadd.f32 %v1859_v22, %v1858_v13  ;;  %v1861_v24 = vpop.f32.mrb[58].mxu1  ;;  %v1798_v46 = vpop.f32.mrb[59].mxu0 }
 0x16a   :  { %v1595_v25 = vpack.c.bf16 %v1317_v20, %v1316_v18  ;;  %v1195_v26 = vadd.f32 %v1796_v21, %v2380_v53  ;;  %v1799_v27 = vadd.f32 %v1798_v46, %v1797_v23  ;;  %v1862_v28 = vpop.f32.mrb[59].mxu1 }
 0x16b   :  { %v1863_v29 = vadd.f32 %v1862_v28, %v1861_v24 }
 0x16c   :  { %1611 = vst [vmem:[%s2434_s3 + $0x28] sm:$0xff] %v1595_v25   ;;  %v1292_v37 = vadd.f32 %v1860_v35, %v1195_v26  ;;  %v1198_v2 = vadd.f32 %v1799_v27, %v2383_v55 }
 0x16e   :  { %v1295_v31 = vadd.f32 %v1863_v29, %v1198_v2  ;;  %v1800_v48 = vpop.f32.mrb[60].mxu0  ;;  %v1318_v36 = vmax.f32 %v1292_v37, 0.0 }
 0x16f   :  { %v1864_v33 = vpop.f32.mrb[60].mxu1  ;;  %v1801_v34 = vpop.f32.mrb[61].mxu0 }
 0x170   :  { %v1319_v38 = vmax.f32 %v1295_v31, 0.0  ;;  %v1802_v39 = vadd.f32 %v1801_v34, %v1800_v48  ;;  %v1865_v40 = vpop.f32.mrb[61].mxu1  ;;  %v1803_v41 = vpop.f32.mrb[62].mxu0 }
 0x171   :  { %v1866_v53 = vadd.f32 %v1865_v40, %v1864_v33  ;;  %v1867_v42 = vpop.f32.mrb[62].mxu1  ;;  %v1804_v43 = vpop.f32.mrb[63].mxu0 }
 0x172   :  { %v1600_v44 = vpack.c.bf16 %v1319_v38, %v1318_v36  ;;  %v1203_v62 = vadd.f32 %v1802_v39, %v2386_v8  ;;  %v1805_v45 = vadd.f32 %v1804_v43, %v1803_v41  ;;  %v1868_v14 = vpop.f32.mrb[63].mxu1 }
 0x173   :  { %v1869_v47 = vadd.f32 %v1868_v14, %v1867_v42 }
 0x174   :  { %1612 = vst [vmem:[%s2434_s3 + $0x30] sm:$0xff] %v1600_v44   ;;  %v1300_v55 = vadd.f32 %v1866_v53, %v1203_v62  ;;  %v1206_v49 = vadd.f32 %v1805_v45, %v2389_v10 }
 0x176   :  { %v1303_v50 = vadd.f32 %v1869_v47, %v1206_v49  ;;  %v1320_v16 = vmax.f32 %v1300_v55, 0.0 }
 0x178   :  { %v1321_v51 = vmax.f32 %v1303_v50, 0.0 }
 0x17a   :  { %v1605_v0 = vpack.c.bf16 %v1321_v51, %v1320_v16 }
 0x17c   :  { %1613 = vst [vmem:[%s2434_s3 + $0x38] sm:$0xff] %v1605_v0  }

// kernel: squeeze.7
= control target key start
LH: loop header
LB: loop body
LE: loop exit
PB: predicated region body
PF: predicated region fallthrough
CT: control target
= control target key end

     0   :  { %v349_v18 = vmov 0.0   ;;  %s420_s0 = inlined_call_operand.vmem [shape: bf16[1,32,256], index: 0, kind: input, shape index: {}]   ;;  %s421_s1 = inlined_call_operand.vmem [shape: bf16[2,4,4,256], index: 1, kind: output, shape index: {}]  }
   0x1   :  { %v345_v0 = vld [vmem:[%s420_s0 + $0x18] sm:$0xff]   ;;  %v346_v1 = vld [vmem:[%s420_s0 + $0x10] sm:$0xff]   ;;  %v347_v2 = vld [vmem:[%s420_s0 + $0x8] sm:$0xff]  }
   0x2   :  { %v331_v3 = vunpack.c.l.bf16 %v345_v0  ;;  %v332_v4 = vunpack.c.h.bf16 %v345_v0  ;;  %v335_v5 = vunpack.c.l.bf16 %v346_v1  ;;  %v336_v6 = vunpack.c.h.bf16 %v346_v1  ;;  %v342_v7 = vld [vmem:[%s420_s0] sm:$0xff]  }
   0x3   :  { %v339_v8 = vunpack.c.l.bf16 %v347_v2  ;;  %v340_v9 = vunpack.c.h.bf16 %v347_v2  ;;  %v343_v10 = vunpack.c.l.bf16 %v342_v7  ;;  %v344_v11 = vunpack.c.h.bf16 %v342_v7 }
   0x4   :  { %154 = vst [vmem:[#allocation0 + $0x40] ss:$16 sps:$4 sm:$0xff] %v335_v5   ;;  %160 = vst [vmem:[#allocation0 + $0x48] ss:$16 sps:$4 sm:$0xff] %v336_v6  }
   0x5   :  { %166 = vst [vmem:[#allocation0 + $0x60] ss:$16 sps:$4 sm:$0xff] %v331_v3   ;;  %172 = vst [vmem:[#allocation0 + $0x68] ss:$16 sps:$4 sm:$0xff] %v332_v4  }
   0x6   :  { %130 = vst [vmem:[#allocation0] ss:$16 sps:$4 sm:$0xff] %v343_v10   ;;  %136 = vst [vmem:[#allocation0 + $0x8] ss:$16 sps:$4 sm:$0xff] %v344_v11  }
   0x7   :  { %142 = vst [vmem:[#allocation0 + $0x20] ss:$16 sps:$4 sm:$0xff] %v339_v8   ;;  %148 = vst [vmem:[#allocation0 + $0x28] ss:$16 sps:$4 sm:$0xff] %v340_v9  }
   0xb   :  { %v232_v12 = vld [vmem:[#allocation0 + $0x40] sm:$0xf]  ;;  %v239_v13 = vld [vmem:[#allocation0 + $0x48] sm:$0xf]  ;;  %v246_v14 = vld [vmem:[#allocation0 + $0x50] sm:$0xf] }
   0xc   :  { %v233_v19 = vpack.c.bf16 %v349_v18, %v232_v12  ;;  %v240_v20 = vpack.c.bf16 %v349_v18, %v239_v13  ;;  %v247_v21 = vpack.c.bf16 %v349_v18, %v246_v14  ;;  %v253_v33 = vld [vmem:[#allocation0 + $0x58] sm:$0xf]  ;;  %v260_v37 = vld [vmem:[#allocation0 + $0x60] sm:$0xf]  ;;  %v267_v38 = vld [vmem:[#allocation0 + $0x68] sm:$0xf] }
   0xd   :  { %v179_v15 = vld [vmem:[#allocation0] sm:$0xf]  ;;  %v184_v16 = vld [vmem:[#allocation0 + $0x8] sm:$0xf]  ;;  %v190_v17 = vld [vmem:[#allocation0 + $0x10] sm:$0xf]  ;;  %v254_v36 = vpack.c.bf16 %v349_v18, %v253_v33  ;;  %v261_v40 = vpack.c.bf16 %v349_v18, %v260_v37  ;;  %v268_v41 = vpack.c.bf16 %v349_v18, %v267_v38 }
   0xe   :  { %v180_v22 = vpack.c.bf16 %v349_v18, %v179_v15  ;;  %v185_v23 = vpack.c.bf16 %v349_v18, %v184_v16  ;;  %v191_v24 = vpack.c.bf16 %v349_v18, %v190_v17  ;;  %v197_v25 = vld [vmem:[#allocation0 + $0x18] sm:$0xf]  ;;  %v204_v26 = vld [vmem:[#allocation0 + $0x20] sm:$0xf]  ;;  %v211_v27 = vld [vmem:[#allocation0 + $0x28] sm:$0xf] }
   0xf   :  { %v198_v28 = vpack.c.bf16 %v349_v18, %v197_v25  ;;  %v205_v29 = vpack.c.bf16 %v349_v18, %v204_v26  ;;  %v212_v30 = vpack.c.bf16 %v349_v18, %v211_v27  ;;  %v218_v31 = vld [vmem:[#allocation0 + $0x30] sm:$0xf]  ;;  %v225_v32 = vld [vmem:[#allocation0 + $0x38] sm:$0xf]  ;;  %321 = vst [vmem:[%s421_s1 + $0x10] sm:$0x3] %v233_v19 }
  0x10   :  { %322 = vst [vmem:[%s421_s1 + $0x12] sm:$0x3] %v240_v20  ;;  %323 = vst [vmem:[%s421_s1 + $0x14] sm:$0x3] %v247_v21  ;;  %v219_v34 = vpack.c.bf16 %v349_v18, %v218_v31  ;;  %v226_v35 = vpack.c.bf16 %v349_v18, %v225_v32  ;;  %v274_v39 = vld [vmem:[#allocation0 + $0x70] sm:$0xf] }
  0x11   :  { %182 = vst [vmem:[%s421_s1] sm:$0x3] %v180_v22  ;;  %314 = vst [vmem:[%s421_s1 + $0x2] sm:$0x3] %v185_v23  ;;  %v275_v42 = vpack.c.bf16 %v349_v18, %v274_v39  ;;  %v281_v43 = vld [vmem:[#allocation0 + $0x78] sm:$0xf] }
  0x12   :  { %315 = vst [vmem:[%s421_s1 + $0x4] sm:$0x3] %v191_v24  ;;  %316 = vst [vmem:[%s421_s1 + $0x6] sm:$0x3] %v198_v28  ;;  %v282_v44 = vpack.c.bf16 %v349_v18, %v281_v43 }
  0x13   :  { %317 = vst [vmem:[%s421_s1 + $0x8] sm:$0x3] %v205_v29  ;;  %318 = vst [vmem:[%s421_s1 + $0xa] sm:$0x3] %v212_v30 }
  0x14   :  { %319 = vst [vmem:[%s421_s1 + $0xc] sm:$0x3] %v219_v34  ;;  %320 = vst [vmem:[%s421_s1 + $0xe] sm:$0x3] %v226_v35 }
  0x15   :  { %324 = vst [vmem:[%s421_s1 + $0x16] sm:$0x3] %v254_v36  ;;  %325 = vst [vmem:[%s421_s1 + $0x18] sm:$0x3] %v261_v40 }
  0x16   :  { %326 = vst [vmem:[%s421_s1 + $0x1a] sm:$0x3] %v268_v41  ;;  %327 = vst [vmem:[%s421_s1 + $0x1c] sm:$0x3] %v275_v42 }
  0x17   :  { %328 = vst [vmem:[%s421_s1 + $0x1e] sm:$0x3] %v282_v44 }

// kernel: autoencoder_forward.12
= control target key start
LH: loop header
LB: loop body
LE: loop exit
PB: predicated region body
PF: predicated region fallthrough
CT: control target
= control target key end

     0   :  { %s1603_s12 = smov 0   ;;  %s1605_s13 = smov 0   ;;  %s1731_s0 = inlined_call_operand.vmem [shape: bf16[4,32,1024], index: 0, kind: input, shape index: {}]   ;;  %s1732_s1 = inlined_call_operand.vmem [shape: bf16[4,1024,128], index: 1, kind: input, shape index: {}]   ;;  %s1733_s2 = inlined_call_operand.vmem [shape: f32[1,128], index: 2, kind: input, shape index: {}]   ;;  %s1734_s3 = inlined_call_operand.vmem [shape: bf16[4,32,128], index: 3, kind: output, shape index: {}]  }
   0x1   :  { %s1607_s14 = smov 0  }
   0x2 LB: > { %s32_s15 = sadd.s32 1, %s1577_s13  ;;  %p1247_p0 = scmp.ge.s32.totalorder %s1581_s14, 1  ;;  %s1581_s14 = sphi %s1607_s14, %s13_s14   ;;  %s1577_s13 = sphi %s1605_s13, %s1736_s13   ;;  %s1573_s12 = sphi %s1603_s12, %s1735_s12  }
   0x3   : > { %p34_p1 = scmp.ge.s32.totalorder %s32_s15, 4  ;;  %p191_p2 = scmp.lt.s32.totalorder %s1581_s14, 5 }
   0x5   : > { %s1738_s15 = smov (%p34_p1, %s32_s15), 0  ;;  %p192_p3 = pnand %p1247_p0, %p191_p2 }
   0x6   : > { %p239_p4 = scmp.lt.s32.totalorder (!%p192_p3), %s1573_s12, 3 }
   0x7   : > { %195 = sbr.rel (%p192_p3) target bundleno = 317 (0x13d), region = 32 }
   0xe   : > { %s1740_s12 = smov (!%p239_p4, %s1573_s12), 3 }
   0xf   : > { %s1342_s16 = sshll.u32 %s1740_s12, 9  ;;  %s1341_s20 = sshll.u32 %s1740_s12, 7 }
  0x10   : > { %s1627_s19 = scalar_lea.vmem %s1732_s1, %s1342_s16  ;;  %s1663_s23 = scalar_lea.vmem %s1731_s0, %s1341_s20 }
  0x11   : > { %v1495_v0 = vld [vmem:[%s1627_s19 + $0x40] sm:$0xff]   ;;  %v1499_v4 = vld [vmem:[%s1627_s19 + $0x48] sm:$0xff]   ;;  %v1503_v8 = vld [vmem:[%s1627_s19 + $0x50] sm:$0xff]   ;;  %s1343_s26 = sshll.u32 %s1740_s12, 4 }
  0x12   : > { %v1496_v1 = vld [vmem:[%s1627_s19 + $0xc0] sm:$0xff]   ;;  %1359 = vmatprep.subr.bf16.mxu0 %v1495_v0  ;;  %v1500_v5 = vld [vmem:[%s1627_s19 + $0xc8] sm:$0xff]   ;;  %v1504_v9 = vld [vmem:[%s1627_s19 + $0xd0] sm:$0xff]   ;;  %s271_s29 = scalar_lea.vmem %s1734_s3, %s1343_s26 }
  0x13   : > { %v1497_v2 = vld [vmem:[%s1627_s19] sm:$0xff]   ;;  %1387 = vmatprep.subr.bf16.mxu1 %v1496_v1  ;;  %v1501_v6 = vld [vmem:[%s1627_s19 + $0x8] sm:$0xff]   ;;  %v1505_v10 = vld [vmem:[%s1627_s19 + $0x10] sm:$0xff]  }
  0x14   : > { %v1498_v3 = vld [vmem:[%s1627_s19 + $0x80] sm:$0xff]   ;;  %1360 = vmatpush3.bf16.msra.mxu0 %v1497_v2  ;;  %v1502_v7 = vld [vmem:[%s1627_s19 + $0x88] sm:$0xff]   ;;  %v1506_v11 = vld [vmem:[%s1627_s19 + $0x90] sm:$0xff]  }
  0x15   : > { %1388 = vmatpush3.bf16.msra.mxu1 %v1498_v3  ;;  %1361 = vmatprep.subr.bf16.mxu0 %v1499_v4  ;;  %v1507_v12 = vld [vmem:[%s1627_s19 + $0x58] sm:$0xff]   ;;  %v1511_v16 = vld [vmem:[%s1627_s19 + $0x60] sm:$0xff]   ;;  %v1515_v20 = vld [vmem:[%s1627_s19 + $0x68] sm:$0xff]  }
  0x16   : > { %1389 = vmatprep.subr.bf16.mxu1 %v1500_v5  ;;  %v1508_v13 = vld [vmem:[%s1627_s19 + $0xd8] sm:$0xff]   ;;  %v1512_v17 = vld [vmem:[%s1627_s19 + $0xe0] sm:$0xff]   ;;  %v1516_v21 = vld [vmem:[%s1627_s19 + $0xe8] sm:$0xff]  }
  0x17   : > { %v1509_v14 = vld [vmem:[%s1627_s19 + $0x18] sm:$0xff]   ;;  %v1513_v18 = vld [vmem:[%s1627_s19 + $0x20] sm:$0xff]   ;;  %v1517_v22 = vld [vmem:[%s1627_s19 + $0x28] sm:$0xff]  }
  0x18   : > { %1362 = vmatpush3.bf16.msra.mxu0 %v1501_v6  ;;  %v1510_v15 = vld [vmem:[%s1627_s19 + $0x98] sm:$0xff]   ;;  %v1514_v19 = vld [vmem:[%s1627_s19 + $0xa0] sm:$0xff]   ;;  %v1518_v23 = vld [vmem:[%s1627_s19 + $0xa8] sm:$0xff]  }
  0x19   : > { %1390 = vmatpush3.bf16.msra.mxu1 %v1502_v7  ;;  %1363 = vmatprep.subr.bf16.mxu0 %v1503_v8  ;;  %v1519_v24 = vld [vmem:[%s1627_s19 + $0x70] sm:$0xff]   ;;  %v1523_v28 = vld [vmem:[%s1627_s19 + $0x78] sm:$0xff]   ;;  %v274_v32 = vld [vmem:[%s1663_s23] sm:$0xff] }
  0x1a   : > { %1391 = vmatprep.subr.bf16.mxu1 %v1504_v9  ;;  %v1520_v25 = vld [vmem:[%s1627_s19 + $0xf0] sm:$0xff]   ;;  %v1524_v29 = vld [vmem:[%s1627_s19 + $0xf8] sm:$0xff]   ;;  %v278_v33 = vld [vmem:[%s1663_s23 + $0x20] sm:$0xff] }
  0x1b   : > { %v1521_v26 = vld [vmem:[%s1627_s19 + $0x30] sm:$0xff]   ;;  %v1525_v30 = vld [vmem:[%s1627_s19 + $0x38] sm:$0xff]   ;;  %v275_v34 = vld [vmem:[%s1663_s23 + $0x8] sm:$0xff]  ;;  %v1255_v35 = vcombine.low %v274_v32, %v278_v33  ;;  %v1256_v36 = vcombine.high %v274_v32, %v278_v33 }
  0x1c   : > { %1364 = vmatpush3.bf16.msra.mxu0 %v1505_v10  ;;  %v1522_v27 = vld [vmem:[%s1627_s19 + $0xb0] sm:$0xff]   ;;  %v1526_v31 = vld [vmem:[%s1627_s19 + $0xb8] sm:$0xff]   ;;  %v279_v37 = vld [vmem:[%s1663_s23 + $0x28] sm:$0xff] }
  0x1d   : > { %1392 = vmatpush3.bf16.msra.mxu1 %v1506_v11  ;;  %1365 = vmatprep.subr.bf16.mxu0 %v1507_v12  ;;  %v1257_v38 = vcombine.low %v275_v34, %v279_v37  ;;  %v1258_v39 = vcombine.high %v275_v34, %v279_v37  ;;  %v1527_v40 = vld [vmem:[%s1627_s19 + $0x140] sm:$0xff]   ;;  %v1531_v44 = vld [vmem:[%s1627_s19 + $0x148] sm:$0xff]   ;;  %v1535_v48 = vld [vmem:[%s1627_s19 + $0x150] sm:$0xff]  }
  0x1e   : > { %1393 = vmatprep.subr.bf16.mxu1 %v1508_v13  ;;  %921 = vmatprep.mubr.bf16.mxu0 %v1256_v36  ;;  %v1528_v41 = vld [vmem:[%s1627_s19 + $0x1c0] sm:$0xff]   ;;  %v1532_v45 = vld [vmem:[%s1627_s19 + $0x1c8] sm:$0xff]   ;;  %v1536_v49 = vld [vmem:[%s1627_s19 + $0x1d0] sm:$0xff]  }
  0x1f   : > { %970 = vmatprep.mubr.bf16.mxu1 %v1258_v39  ;;  %v1529_v42 = vld [vmem:[%s1627_s19 + $0x100] sm:$0xff]   ;;  %v1533_v46 = vld [vmem:[%s1627_s19 + $0x108] sm:$0xff]   ;;  %v1537_v50 = vld [vmem:[%s1627_s19 + $0x110] sm:$0xff]  }
  0x20   : > { %1366 = vmatpush3.bf16.msra.mxu0 %v1509_v14  ;;  %v1530_v43 = vld [vmem:[%s1627_s19 + $0x180] sm:$0xff]   ;;  %v1534_v47 = vld [vmem:[%s1627_s19 + $0x188] sm:$0xff]   ;;  %v1538_v51 = vld [vmem:[%s1627_s19 + $0x190] sm:$0xff]  }
  0x21   : > { %1394 = vmatpush3.bf16.msra.mxu1 %v1510_v15  ;;  %1367 = vmatprep.subr.bf16.mxu0 %v1511_v16  ;;  %v1539_v52 = vld [vmem:[%s1627_s19 + $0x158] sm:$0xff]   ;;  %v1543_v56 = vld [vmem:[%s1627_s19 + $0x160] sm:$0xff]   ;;  %v1547_v63 = vld [vmem:[%s1627_s19 + $0x168] sm:$0xff]  }
  0x22   : > { %1395 = vmatprep.subr.bf16.mxu1 %v1512_v17  ;;  %v1540_v53 = vld [vmem:[%s1627_s19 + $0x1d8] sm:$0xff]   ;;  %v1544_v57 = vld [vmem:[%s1627_s19 + $0x1e0] sm:$0xff]   ;;  %v1548_v1 = vld [vmem:[%s1627_s19 + $0x1e8] sm:$0xff]  }
  0x23   : > { %v1541_v54 = vld [vmem:[%s1627_s19 + $0x118] sm:$0xff]   ;;  %v1545_v58 = vld [vmem:[%s1627_s19 + $0x120] sm:$0xff]   ;;  %v1549_v2 = vld [vmem:[%s1627_s19 + $0x128] sm:$0xff]  }
  0x24   : > { %1368 = vmatpush3.bf16.msra.mxu0 %v1513_v18  ;;  %v1542_v55 = vld [vmem:[%s1627_s19 + $0x198] sm:$0xff]   ;;  %v1546_v59 = vld [vmem:[%s1627_s19 + $0x1a0] sm:$0xff]   ;;  %v1550_v3 = vld [vmem:[%s1627_s19 + $0x1a8] sm:$0xff]  }
  0x25   : > { %1396 = vmatpush3.bf16.msra.mxu1 %v1514_v19  ;;  %1369 = vmatprep.subr.bf16.mxu0 %v1515_v20  ;;  %v282_v60 = vld [vmem:[%s1663_s23 + $0x40] sm:$0xff]  ;;  %v283_v4 = vld [vmem:[%s1663_s23 + $0x48] sm:$0xff]  ;;  %v1551_v8 = vld [vmem:[%s1627_s19 + $0x170] sm:$0xff]  }
  0x26   : > { %1397 = vmatprep.subr.bf16.mxu1 %v1516_v21  ;;  %v286_v61 = vld [vmem:[%s1663_s23 + $0x60] sm:$0xff]  ;;  %v287_v5 = vld [vmem:[%s1663_s23 + $0x68] sm:$0xff]  ;;  %v1552_v9 = vld [vmem:[%s1627_s19 + $0x1f0] sm:$0xff]  }
  0x27   : > { %v1264_v62 = vcombine.high %v282_v60, %v286_v61  ;;  %v1263_v0 = vcombine.low %v282_v60, %v286_v61  ;;  %v1266_v6 = vcombine.high %v283_v4, %v287_v5  ;;  %v1265_v7 = vcombine.low %v283_v4, %v287_v5  ;;  %v1553_v10 = vld [vmem:[%s1627_s19 + $0x130] sm:$0xff]   ;;  %v1555_v12 = vld [vmem:[%s1627_s19 + $0x178] sm:$0xff]   ;;  %v1254_v34 = vld [vmem:[%s1733_s2] ss:$0 sm:$0xff] }
  0x28   : > { %1370 = vmatpush3.bf16.msra.mxu0 %v1517_v22  ;;  %v1554_v11 = vld [vmem:[%s1627_s19 + $0x1b0] sm:$0xff]   ;;  %v1556_v13 = vld [vmem:[%s1627_s19 + $0x1f8] sm:$0xff]  }
  0x29   : > { %1398 = vmatpush3.bf16.msra.mxu1 %v1518_v23  ;;  %1371 = vmatprep.subr.bf16.mxu0 %v1519_v24  ;;  %v1557_v14 = vld [vmem:[%s1627_s19 + $0x138] sm:$0xff]   ;;  %v276_v16 = vld [vmem:[%s1663_s23 + $0x10] sm:$0xff] }
  0x2a   : > { %1399 = vmatprep.subr.bf16.mxu1 %v1520_v25  ;;  %v1558_v15 = vld [vmem:[%s1627_s19 + $0x1b8] sm:$0xff]   ;;  %v280_v17 = vld [vmem:[%s1663_s23 + $0x30] sm:$0xff] }
  0x2b   : > { %v277_v18 = vld [vmem:[%s1663_s23 + $0x18] sm:$0xff]  ;;  %v1259_v20 = vcombine.low %v276_v16, %v280_v17  ;;  %v1260_v21 = vcombine.high %v276_v16, %v280_v17  ;;  %v284_v24 = vld [vmem:[%s1663_s23 + $0x50] sm:$0xff] }
  0x2c   : > { %1372 = vmatpush3.bf16.msra.mxu0 %v1521_v26  ;;  %v281_v19 = vld [vmem:[%s1663_s23 + $0x38] sm:$0xff]  ;;  %v288_v25 = vld [vmem:[%s1663_s23 + $0x70] sm:$0xff] }
  0x2d   : > { %1400 = vmatpush3.bf16.msra.mxu1 %v1522_v27  ;;  %1373 = vmatprep.subr.bf16.mxu0 %v1523_v28  ;;  %v1261_v22 = vcombine.low %v277_v18, %v281_v19  ;;  %v1262_v23 = vcombine.high %v277_v18, %v281_v19  ;;  %v285_v26 = vld [vmem:[%s1663_s23 + $0x58] sm:$0xff]  ;;  %v1268_v27 = vcombine.high %v284_v24, %v288_v25 }
  0x2e   : > { %1401 = vmatprep.subr.bf16.mxu1 %v1524_v29  ;;  %v289_v28 = vld [vmem:[%s1663_s23 + $0x78] sm:$0xff] }
  0x2f   : > { %v1270_v29 = vcombine.high %v285_v26, %v289_v28 }
  0x30   : > { %1374 = vmatpush3.bf16.msra.mxu0 %v1525_v30  ;;  %v1267_v30 = vcombine.low %v284_v24, %v288_v25 }
  0x31   : > { %1402 = vmatpush3.bf16.msra.mxu1 %v1526_v31  ;;  %1415 = vmatprep.subr.bf16.mxu0 %v1527_v40  ;;  %v1269_v31 = vcombine.low %v285_v26, %v289_v28 }
  0x32   : > { %1443 = vmatprep.subr.bf16.mxu1 %v1528_v41 }
  0x33   : > { %922 = vmatmul.mubr.bf16.vlgmr.msra.gmra.mrb[0].mxu0 %v1255_v35 }
  0x34   : > { %971 = vmatmul.mubr.bf16.vlgmr.msra.gmra.mrb[0].mxu1 %v1257_v38  ;;  %1416 = vmatpush3.bf16.msra.mxu0 %v1529_v42 }
  0x35   : > { %1444 = vmatpush3.bf16.msra.mxu1 %v1530_v43  ;;  %1417 = vmatprep.subr.bf16.mxu0 %v1531_v44 }
  0x36   : > { %1445 = vmatprep.subr.bf16.mxu1 %v1532_v45  ;;  %929 = vmatprep.mubr.bf16.mxu0 %v1264_v62 }
  0x37   : > { %978 = vmatprep.mubr.bf16.mxu1 %v1266_v6 }
  0x38   : > { %1418 = vmatpush3.bf16.msra.mxu0 %v1533_v46 }
  0x39   : > { %1446 = vmatpush3.bf16.msra.mxu1 %v1534_v47  ;;  %1419 = vmatprep.subr.bf16.mxu0 %v1535_v48 }
  0x3a   : > { %1447 = vmatprep.subr.bf16.mxu1 %v1536_v49 }
  0x3b   : > { %930 = vmatmul.mubr.bf16.gmra.mrb[4].mxu0 %v1263_v0 }
  0x3c   : > { %1420 = vmatpush3.bf16.msra.mxu0 %v1537_v50  ;;  %979 = vmatmul.mubr.bf16.gmra.mrb[4].mxu1 %v1265_v7 }
  0x3d   : > { %1448 = vmatpush3.bf16.msra.mxu1 %v1538_v51  ;;  %1421 = vmatprep.subr.bf16.mxu0 %v1539_v52 }
  0x3e   : > { %1449 = vmatprep.subr.bf16.mxu1 %v1540_v53  ;;  %1019 = vmatprep.mubr.bf16.mxu0 %v1260_v21 }
  0x3f   : > { %1068 = vmatprep.mubr.bf16.mxu1 %v1262_v23 }
  0x40   : > { %1422 = vmatpush3.bf16.msra.mxu0 %v1541_v54 }
  0x41   : > { %1450 = vmatpush3.bf16.msra.mxu1 %v1542_v55  ;;  %1423 = vmatprep.subr.bf16.mxu0 %v1543_v56 }
  0x42   : > { %1451 = vmatprep.subr.bf16.mxu1 %v1544_v57 }
  0x44   : > { %1424 = vmatpush3.bf16.msra.mxu0 %v1545_v58 }
  0x45   : > { %1452 = vmatpush3.bf16.msra.mxu1 %v1546_v59  ;;  %1425 = vmatprep.subr.bf16.mxu0 %v1547_v63 }
  0x46   : > { %1453 = vmatprep.subr.bf16.mxu1 %v1548_v1 }
  0x48   : > { %1426 = vmatpush3.bf16.msra.mxu0 %v1549_v2 }
  0x49   : > { %1454 = vmatpush3.bf16.msra.mxu1 %v1550_v3  ;;  %1427 = vmatprep.subr.bf16.mxu0 %v1551_v8 }
  0x4a   : > { %1455 = vmatprep.subr.bf16.mxu1 %v1552_v9 }
  0x4c   : > { %1428 = vmatpush3.bf16.msra.mxu0 %v1553_v10 }
  0x4d   : > { %1456 = vmatpush3.bf16.msra.mxu1 %v1554_v11  ;;  %1429 = vmatprep.subr.bf16.mxu0 %v1555_v12 }
  0x4e   : > { %1457 = vmatprep.subr.bf16.mxu1 %v1556_v13 }
  0x50   : > { %1430 = vmatpush3.bf16.msra.mxu0 %v1557_v14 }
  0x51   : > { %1458 = vmatpush3.bf16.msra.mxu1 %v1558_v15 }
  0x53   : > { %1020 = vmatmul.mubr.bf16.vlgmr.msra.gmra.mrb[8].mxu0 %v1259_v20 }
  0x54   : > { %1069 = vmatmul.mubr.bf16.vlgmr.msra.gmra.mrb[8].mxu1 %v1261_v22  ;;  %1027 = vmatprep.mubr.bf16.mxu0 %v1268_v27 }
  0x55   : > { %1076 = vmatprep.mubr.bf16.mxu1 %v1270_v29 }
  0x5b   : > { %1028 = vmatmul.mubr.bf16.gmra.mrb[12].mxu0 %v1267_v30 }
  0x5c   : > { %1077 = vmatmul.mubr.bf16.gmra.mrb[12].mxu1 %v1269_v31 }
 0x106   : > { %v1375_v32 = vpop.f32.mrb[0].mxu0 }
 0x107   : > { %v1403_v33 = vpop.f32.mrb[0].mxu1  ;;  %v1376_v35 = vpop.f32.mrb[1].mxu0 }
 0x108   : > { %v1377_v36 = vadd.f32 %v1376_v35, %v1375_v32  ;;  %v1404_v37 = vpop.f32.mrb[1].mxu1  ;;  %v1378_v38 = vpop.f32.mrb[2].mxu0 }
 0x109   : > { %v1405_v39 = vadd.f32 %v1404_v37, %v1403_v33  ;;  %v1406_v40 = vpop.f32.mrb[2].mxu1  ;;  %v1379_v41 = vpop.f32.mrb[3].mxu0 }
 0x10a   : > { %v924_v42 = vadd.f32 %v1377_v36, %v1254_v34  ;;  %v1380_v43 = vadd.f32 %v1379_v41, %v1378_v38  ;;  %v1407_v44 = vpop.f32.mrb[3].mxu1 }
 0x10b   : > { %v1408_v45 = vadd.f32 %v1407_v44, %v1406_v40 }
 0x10c   : > { %v973_v46 = vadd.f32 %v1405_v39, %v924_v42  ;;  %v927_v47 = vadd.f32 %v1380_v43, %v1254_v34 }
 0x10e   : > { %v976_v48 = vadd.f32 %v1408_v45, %v927_v47  ;;  %v1381_v49 = vpop.f32.mrb[4].mxu0 }
 0x10f   : > { %v1382_v50 = vpop.f32.mrb[5].mxu0  ;;  %v1409_v56 = vpop.f32.mrb[4].mxu1 }
 0x110   : > { %v1383_v51 = vadd.f32 %v1382_v50, %v1381_v49  ;;  %v1384_v52 = vpop.f32.mrb[6].mxu0  ;;  %v1410_v57 = vpop.f32.mrb[5].mxu1 }
 0x111   : > { %v1385_v53 = vpop.f32.mrb[7].mxu0  ;;  %v1411_v59 = vadd.f32 %v1410_v57, %v1409_v56  ;;  %v1412_v60 = vpop.f32.mrb[6].mxu1 }
 0x112   : > { %v1386_v54 = vadd.f32 %v1385_v53, %v1384_v52  ;;  %v932_v55 = vadd.f32 %v1383_v51, %v1254_v34  ;;  %v1413_v61 = vpop.f32.mrb[7].mxu1 }
 0x113   : > { %v1414_v63 = vadd.f32 %v1413_v61, %v1412_v60 }
 0x114   : > { %v935_v58 = vadd.f32 %v1386_v54, %v1254_v34  ;;  %v981_v62 = vadd.f32 %v1411_v59, %v932_v55 }
 0x116   : > { %v984_v0 = vadd.f32 %v1414_v63, %v935_v58 }
 0x126   : > { %v1431_v1 = vpop.f32.mrb[8].mxu0 }
 0x127   : > { %v1459_v2 = vpop.f32.mrb[8].mxu1  ;;  %v1432_v3 = vpop.f32.mrb[9].mxu0 }
 0x128   : > { %v1460_v4 = vpop.f32.mrb[9].mxu1  ;;  %v1433_v5 = vadd.f32 %v1432_v3, %v1431_v1  ;;  %v1434_v7 = vpop.f32.mrb[10].mxu0 }
 0x129   : > { %v1461_v6 = vadd.f32 %v1460_v4, %v1459_v2  ;;  %v1462_v8 = vpop.f32.mrb[10].mxu1  ;;  %v1435_v9 = vpop.f32.mrb[11].mxu0 }
 0x12a   : > { %v1463_v10 = vpop.f32.mrb[11].mxu1  ;;  %v1022_v11 = vadd.f32 %v1433_v5, %v973_v46  ;;  %v1436_v12 = vadd.f32 %v1435_v9, %v1434_v7 }
 0x12b   : > { %v1464_v13 = vadd.f32 %v1463_v10, %v1462_v8 }
 0x12c   : > { %v1071_v14 = vadd.f32 %v1461_v6, %v1022_v11  ;;  %v1025_v15 = vadd.f32 %v1436_v12, %v976_v48 }
 0x12e   : > { %v1074_v16 = vadd.f32 %v1464_v13, %v1025_v15  ;;  %v1437_v17 = vpop.f32.mrb[12].mxu0  ;;  %v1085_v21 = vmax.f32 %v1071_v14, 0.0 }
 0x12f   : > { %v1465_v18 = vpop.f32.mrb[12].mxu1  ;;  %v1438_v19 = vpop.f32.mrb[13].mxu0 }
 0x130   : > { %v1466_v20 = vpop.f32.mrb[13].mxu1  ;;  %v1086_v22 = vmax.f32 %v1074_v16, 0.0  ;;  %v1439_v23 = vadd.f32 %v1438_v19, %v1437_v17  ;;  %v1440_v25 = vpop.f32.mrb[14].mxu0 }
 0x131   : > { %v1467_v24 = vadd.f32 %v1466_v20, %v1465_v18  ;;  %v1468_v26 = vpop.f32.mrb[14].mxu1  ;;  %v1441_v27 = vpop.f32.mrb[15].mxu0 }
 0x132   : > { %v1469_v28 = vpop.f32.mrb[15].mxu1  ;;  %v1351_v29 = vpack.c.bf16 %v1086_v22, %v1085_v21  ;;  %v1030_v30 = vadd.f32 %v1439_v23, %v981_v62  ;;  %v1442_v31 = vadd.f32 %v1441_v27, %v1440_v25 }
 0x133   : > { %v1470_v32 = vadd.f32 %v1469_v28, %v1468_v26 }
 0x134   : > { %1352 = vst [vmem:[%s271_s29] sm:$0xff] %v1351_v29   ;;  %v1079_v33 = vadd.f32 %v1467_v24, %v1030_v30  ;;  %v1033_v34 = vadd.f32 %v1442_v31, %v984_v0 }
 0x136   : > { %v1082_v35 = vadd.f32 %v1470_v32, %v1033_v34  ;;  %v1087_v36 = vmax.f32 %v1079_v33, 0.0 }
 0x138   : > { %v1088_v37 = vmax.f32 %v1082_v35, 0.0 }
 0x13a   : > { %v1356_v38 = vpack.c.bf16 %v1088_v37, %v1087_v36 }
 0x13c   : > { %1358 = vst [vmem:[%s271_s29 + $0x8] sm:$0xff] %v1356_v38  }
 0x13d PF: > { %s13_s14 = sadd.s32 1, %s1581_s14   ;;  %s1735_s12 = smov %s1577_s13 }
 0x13e   : > { %p10_p5 = scmp.ge.s32.totalorder %s13_s14, 6   ;;  %s1736_s13 = smov %s1738_s15 }
 0x140   :  { %12 = sbr.rel (!%p10_p5) target bundleno = 2 (0x2), region = 68 }

// kernel: autoencoder_forward.11
= control target key start
LH: loop header
LB: loop body
LE: loop exit
PB: predicated region body
PF: predicated region fallthrough
CT: control target
= control target key end

     0   :  { %s3909_s1 = inlined_call_operand.vmem [shape: bf16[1,2048,256], index: 1, kind: input, shape index: {}]   ;;  %s3910_s0 = inlined_call_operand.vmem [shape: bf16[1,32,2048], index: 0, kind: input, shape index: {}]   ;;  %s3911_s2 = inlined_call_operand.vmem [shape: f32[1,256], index: 2, kind: input, shape index: {}]   ;;  %s3912_s3 = inlined_call_operand.vmem [shape: bf16[1,32,256], index: 3, kind: output, shape index: {}]  }
   0x1   :  { %v2578_v0 = vld [vmem:[%s3909_s1 + $0x4] ss:$8 sps:$4 sm:$0xff]   ;;  %v2582_v2 = vld [vmem:[%s3909_s1] ss:$8 sps:$4 sm:$0xff]   ;;  %v2584_v4 = vld [vmem:[%s3909_s1 + $0x14] ss:$8 sps:$4 sm:$0xff]  }
   0x2   :  { %v2580_v1 = vld [vmem:[%s3909_s1 + $0x404] ss:$8 sps:$4 sm:$0xff]   ;;  %1754 = vmatprep.subr.bf16.mxu1 %v2578_v0  ;;  %v2583_v3 = vld [vmem:[%s3909_s1 + $0x400] ss:$8 sps:$4 sm:$0xff]   ;;  %v2586_v5 = vld [vmem:[%s3909_s1 + $0x414] ss:$8 sps:$4 sm:$0xff]  }
   0x3   :  { %1966 = vmatprep.subr.bf16.mxu0 %v2580_v1  ;;  %1755 = vmatpush1.bf16.msra.mxu1 %v2582_v2  ;;  %v2588_v6 = vld [vmem:[%s3909_s1 + $0x10] ss:$8 sps:$4 sm:$0xff]   ;;  %v2590_v8 = vld [vmem:[%s3909_s1 + $0x24] ss:$8 sps:$4 sm:$0xff]   ;;  %v2594_v10 = vld [vmem:[%s3909_s1 + $0x20] ss:$8 sps:$4 sm:$0xff]  }
   0x4   :  { %1967 = vmatpush1.bf16.msra.mxu0 %v2583_v3  ;;  %1756 = vmatprep.subr.bf16.mxu1 %v2584_v4  ;;  %v2589_v7 = vld [vmem:[%s3909_s1 + $0x410] ss:$8 sps:$4 sm:$0xff]   ;;  %v2592_v9 = vld [vmem:[%s3909_s1 + $0x424] ss:$8 sps:$4 sm:$0xff]   ;;  %v2595_v11 = vld [vmem:[%s3909_s1 + $0x420] ss:$8 sps:$4 sm:$0xff]  }
   0x5   :  { %1968 = vmatprep.subr.bf16.mxu0 %v2586_v5  ;;  %v2596_v12 = vld [vmem:[%s3909_s1 + $0x34] ss:$8 sps:$4 sm:$0xff]   ;;  %v2600_v14 = vld [vmem:[%s3909_s1 + $0x30] ss:$8 sps:$4 sm:$0xff]   ;;  %v2602_v16 = vld [vmem:[%s3909_s1 + $0x44] ss:$8 sps:$4 sm:$0xff]  }
   0x6   :  { %v2598_v13 = vld [vmem:[%s3909_s1 + $0x434] ss:$8 sps:$4 sm:$0xff]   ;;  %v2601_v15 = vld [vmem:[%s3909_s1 + $0x430] ss:$8 sps:$4 sm:$0xff]   ;;  %v2604_v17 = vld [vmem:[%s3909_s1 + $0x444] ss:$8 sps:$4 sm:$0xff]  }
   0x7   :  { %1757 = vmatpush1.bf16.msra.mxu1 %v2588_v6  ;;  %v2606_v18 = vld [vmem:[%s3909_s1 + $0x40] ss:$8 sps:$4 sm:$0xff]   ;;  %v2608_v20 = vld [vmem:[%s3909_s1 + $0x54] ss:$8 sps:$4 sm:$0xff]   ;;  %v2612_v22 = vld [vmem:[%s3909_s1 + $0x50] ss:$8 sps:$4 sm:$0xff]  }
   0x8   :  { %1969 = vmatpush1.bf16.msra.mxu0 %v2589_v7  ;;  %1758 = vmatprep.subr.bf16.mxu1 %v2590_v8  ;;  %v2607_v19 = vld [vmem:[%s3909_s1 + $0x440] ss:$8 sps:$4 sm:$0xff]   ;;  %v2610_v21 = vld [vmem:[%s3909_s1 + $0x454] ss:$8 sps:$4 sm:$0xff]   ;;  %v2613_v23 = vld [vmem:[%s3909_s1 + $0x450] ss:$8 sps:$4 sm:$0xff]  }
   0x9   :  { %1970 = vmatprep.subr.bf16.mxu0 %v2592_v9  ;;  %v2614_v24 = vld [vmem:[%s3909_s1 + $0x64] ss:$8 sps:$4 sm:$0xff]   ;;  %v2618_v26 = vld [vmem:[%s3909_s1 + $0x60] ss:$8 sps:$4 sm:$0xff]   ;;  %v2620_v28 = vld [vmem:[%s3909_s1 + $0x74] ss:$8 sps:$4 sm:$0xff]  }
   0xa   :  { %v2616_v25 = vld [vmem:[%s3909_s1 + $0x464] ss:$8 sps:$4 sm:$0xff]   ;;  %v2619_v27 = vld [vmem:[%s3909_s1 + $0x460] ss:$8 sps:$4 sm:$0xff]   ;;  %v2622_v29 = vld [vmem:[%s3909_s1 + $0x474] ss:$8 sps:$4 sm:$0xff]  }
   0xb   :  { %1759 = vmatpush1.bf16.msra.mxu1 %v2594_v10  ;;  %v2624_v30 = vld [vmem:[%s3909_s1 + $0x70] ss:$8 sps:$4 sm:$0xff]   ;;  %v2626_v32 = vld [vmem:[%s3909_s1 + $0x84] ss:$8 sps:$4 sm:$0xff]   ;;  %v2630_v34 = vld [vmem:[%s3909_s1 + $0x80] ss:$8 sps:$4 sm:$0xff]  }
   0xc   :  { %1971 = vmatpush1.bf16.msra.mxu0 %v2595_v11  ;;  %1760 = vmatprep.subr.bf16.mxu1 %v2596_v12  ;;  %v2625_v31 = vld [vmem:[%s3909_s1 + $0x470] ss:$8 sps:$4 sm:$0xff]   ;;  %v2628_v33 = vld [vmem:[%s3909_s1 + $0x484] ss:$8 sps:$4 sm:$0xff]   ;;  %v2631_v35 = vld [vmem:[%s3909_s1 + $0x480] ss:$8 sps:$4 sm:$0xff]  }
   0xd   :  { %1972 = vmatprep.subr.bf16.mxu0 %v2598_v13  ;;  %v2632_v36 = vld [vmem:[%s3909_s1 + $0x94] ss:$8 sps:$4 sm:$0xff]   ;;  %v2636_v38 = vld [vmem:[%s3909_s1 + $0x90] ss:$8 sps:$4 sm:$0xff]   ;;  %v2638_v40 = vld [vmem:[%s3909_s1 + $0xa4] ss:$8 sps:$4 sm:$0xff]  }
   0xe   :  { %v2634_v37 = vld [vmem:[%s3909_s1 + $0x494] ss:$8 sps:$4 sm:$0xff]   ;;  %v2637_v39 = vld [vmem:[%s3909_s1 + $0x490] ss:$8 sps:$4 sm:$0xff]   ;;  %v2640_v41 = vld [vmem:[%s3909_s1 + $0x4a4] ss:$8 sps:$4 sm:$0xff]  }
   0xf   :  { %1761 = vmatpush1.bf16.msra.mxu1 %v2600_v14  ;;  %v2642_v42 = vld [vmem:[%s3909_s1 + $0xa0] ss:$8 sps:$4 sm:$0xff]   ;;  %v2644_v44 = vld [vmem:[%s3909_s1 + $0xb4] ss:$8 sps:$4 sm:$0xff]   ;;  %v2648_v46 = vld [vmem:[%s3909_s1 + $0xb0] ss:$8 sps:$4 sm:$0xff]  }
  0x10   :  { %1973 = vmatpush1.bf16.msra.mxu0 %v2601_v15  ;;  %1762 = vmatprep.subr.bf16.mxu1 %v2602_v16  ;;  %v2643_v43 = vld [vmem:[%s3909_s1 + $0x4a0] ss:$8 sps:$4 sm:$0xff]   ;;  %v2646_v45 = vld [vmem:[%s3909_s1 + $0x4b4] ss:$8 sps:$4 sm:$0xff]   ;;  %v2649_v47 = vld [vmem:[%s3909_s1 + $0x4b0] ss:$8 sps:$4 sm:$0xff]  }
  0x11   :  { %1974 = vmatprep.subr.bf16.mxu0 %v2604_v17  ;;  %v14_v48 = vld [vmem:[%s3910_s0] sm:$0xff]  ;;  %v2656_v58 = vld [vmem:[%s3909_s1 + $0xd4] ss:$8 sps:$4 sm:$0xff]   ;;  %v2660_v60 = vld [vmem:[%s3909_s1 + $0xd0] ss:$8 sps:$4 sm:$0xff]  }
  0x12   :  { %v22_v49 = vld [vmem:[%s3910_s0 + $0x40] sm:$0xff]  ;;  %v2658_v59 = vld [vmem:[%s3909_s1 + $0x4d4] ss:$8 sps:$4 sm:$0xff]   ;;  %v2661_v61 = vld [vmem:[%s3909_s1 + $0x4d0] ss:$8 sps:$4 sm:$0xff]  }
  0x13   :  { %1763 = vmatpush1.bf16.msra.mxu1 %v2606_v18  ;;  %v2650_v50 = vld [vmem:[%s3909_s1 + $0xc4] ss:$8 sps:$4 sm:$0xff]   ;;  %v2219_v52 = vcombine.high %v14_v48, %v22_v49  ;;  %v2654_v56 = vld [vmem:[%s3909_s1 + $0xc0] ss:$8 sps:$4 sm:$0xff]   ;;  %v2668_v2 = vld [vmem:[%s3909_s1 + $0xf4] ss:$8 sps:$4 sm:$0xff]   ;;  %v2218_v8 = vcombine.low %v14_v48, %v22_v49 }
  0x14   :  { %1975 = vmatpush1.bf16.msra.mxu0 %v2607_v19  ;;  %1764 = vmatprep.subr.bf16.mxu1 %v2608_v20  ;;  %v2652_v51 = vld [vmem:[%s3909_s1 + $0x4c4] ss:$8 sps:$4 sm:$0xff]   ;;  %v2655_v57 = vld [vmem:[%s3909_s1 + $0x4c0] ss:$8 sps:$4 sm:$0xff]   ;;  %v2670_v3 = vld [vmem:[%s3909_s1 + $0x4f4] ss:$8 sps:$4 sm:$0xff]  }
  0x15   :  { %1976 = vmatprep.subr.bf16.mxu0 %v2610_v21  ;;  %v18_v53 = vld [vmem:[%s3910_s0 + $0x20] sm:$0xff]  ;;  %1786 = vmatprep.mubr.bf16.mxu1 %v2219_v52  ;;  %v2672_v4 = vld [vmem:[%s3909_s1 + $0xf0] ss:$8 sps:$4 sm:$0xff]   ;;  %v2682_v12 = vld [vmem:[%s3909_s1 + $0x114] ss:$8 sps:$4 sm:$0xff]  }
  0x16   :  { %v26_v54 = vld [vmem:[%s3910_s0 + $0x60] sm:$0xff]  ;;  %v2673_v5 = vld [vmem:[%s3909_s1 + $0x4f0] ss:$8 sps:$4 sm:$0xff]   ;;  %v2685_v13 = vld [vmem:[%s3909_s1 + $0x514] ss:$8 sps:$4 sm:$0xff]  }
  0x17   :  { %1765 = vmatpush1.bf16.msra.mxu1 %v2612_v22  ;;  %v2227_v55 = vcombine.high %v18_v53, %v26_v54  ;;  %v2662_v62 = vld [vmem:[%s3909_s1 + $0xe4] ss:$8 sps:$4 sm:$0xff]   ;;  %v2666_v0 = vld [vmem:[%s3909_s1 + $0xe0] ss:$8 sps:$4 sm:$0xff]   ;;  %v2226_v10 = vcombine.low %v18_v53, %v26_v54  ;;  %v2680_v14 = vld [vmem:[%s3909_s1 + $0x110] ss:$8 sps:$4 sm:$0xff]  }
  0x18   :  { %1977 = vmatpush1.bf16.msra.mxu0 %v2613_v23  ;;  %1766 = vmatprep.subr.bf16.mxu1 %v2614_v24  ;;  %v2664_v63 = vld [vmem:[%s3909_s1 + $0x4e4] ss:$8 sps:$4 sm:$0xff]   ;;  %v2667_v1 = vld [vmem:[%s3909_s1 + $0x4e0] ss:$8 sps:$4 sm:$0xff]   ;;  %v2683_v15 = vld [vmem:[%s3909_s1 + $0x510] ss:$8 sps:$4 sm:$0xff]  }
  0x19   :  { %1978 = vmatprep.subr.bf16.mxu0 %v2616_v25  ;;  %1998 = vmatprep.mubr.bf16.mxu0 %v2227_v55  ;;  %v2676_v6 = vld [vmem:[%s3909_s1 + $0x104] ss:$8 sps:$4 sm:$0xff]   ;;  %v2674_v9 = vld [vmem:[%s3909_s1 + $0x100] ss:$8 sps:$4 sm:$0xff]   ;;  %v2694_v20 = vld [vmem:[%s3909_s1 + $0x134] ss:$8 sps:$4 sm:$0xff]  }
  0x1a   :  { %v2679_v7 = vld [vmem:[%s3909_s1 + $0x504] ss:$8 sps:$4 sm:$0xff]   ;;  %v2677_v11 = vld [vmem:[%s3909_s1 + $0x500] ss:$8 sps:$4 sm:$0xff]   ;;  %v2697_v21 = vld [vmem:[%s3909_s1 + $0x534] ss:$8 sps:$4 sm:$0xff]  }
  0x1b   :  { %1767 = vmatpush1.bf16.msra.mxu1 %v2618_v26  ;;  %v2688_v16 = vld [vmem:[%s3909_s1 + $0x124] ss:$8 sps:$4 sm:$0xff]   ;;  %v2686_v18 = vld [vmem:[%s3909_s1 + $0x120] ss:$8 sps:$4 sm:$0xff]   ;;  %v2692_v22 = vld [vmem:[%s3909_s1 + $0x130] ss:$8 sps:$4 sm:$0xff]  }
  0x1c   :  { %1979 = vmatpush1.bf16.msra.mxu0 %v2619_v27  ;;  %1768 = vmatprep.subr.bf16.mxu1 %v2620_v28  ;;  %v2691_v17 = vld [vmem:[%s3909_s1 + $0x524] ss:$8 sps:$4 sm:$0xff]   ;;  %v2689_v19 = vld [vmem:[%s3909_s1 + $0x520] ss:$8 sps:$4 sm:$0xff]   ;;  %v2695_v23 = vld [vmem:[%s3909_s1 + $0x530] ss:$8 sps:$4 sm:$0xff]  }
  0x1d   :  { %1980 = vmatprep.subr.bf16.mxu0 %v2622_v29  ;;  %v2700_v24 = vld [vmem:[%s3909_s1 + $0x144] ss:$8 sps:$4 sm:$0xff]   ;;  %v2698_v26 = vld [vmem:[%s3909_s1 + $0x140] ss:$8 sps:$4 sm:$0xff]   ;;  %v2706_v28 = vld [vmem:[%s3909_s1 + $0x154] ss:$8 sps:$4 sm:$0xff]  }
  0x1e   :  { %v2703_v25 = vld [vmem:[%s3909_s1 + $0x544] ss:$8 sps:$4 sm:$0xff]   ;;  %v2701_v27 = vld [vmem:[%s3909_s1 + $0x540] ss:$8 sps:$4 sm:$0xff]   ;;  %v2709_v29 = vld [vmem:[%s3909_s1 + $0x554] ss:$8 sps:$4 sm:$0xff]  }
  0x1f   :  { %1769 = vmatpush1.bf16.msra.mxu1 %v2624_v30  ;;  %v30_v30 = vld [vmem:[%s3910_s0 + $0x80] sm:$0xff]  ;;  %v3303_v49 = vld [vmem:[%s3910_s0 + $0x28] sm:$0xff]  ;;  %v2719_v52 = vld [vmem:[%s3909_s1 + $0x570] ss:$8 sps:$4 sm:$0xff]  }
  0x20   :  { %1981 = vmatpush1.bf16.msra.mxu0 %v2625_v31  ;;  %1770 = vmatprep.subr.bf16.mxu1 %v2626_v32  ;;  %v38_v31 = vld [vmem:[%s3910_s0 + $0xc0] sm:$0xff]  ;;  %v2704_v32 = vld [vmem:[%s3909_s1 + $0x150] ss:$8 sps:$4 sm:$0xff]  }
  0x21   :  { %1982 = vmatprep.subr.bf16.mxu0 %v2628_v33  ;;  %v2235_v33 = vcombine.high %v30_v30, %v38_v31  ;;  %v2724_v54 = vld [vmem:[%s3909_s1 + $0x184] ss:$8 sps:$4 sm:$0xff]  }
  0x22   :  { %v2727_v55 = vld [vmem:[%s3909_s1 + $0x584] ss:$8 sps:$4 sm:$0xff]  }
  0x23   :  { %1771 = vmatpush1.bf16.msra.mxu1 %v2630_v34  ;;  %v2707_v34 = vld [vmem:[%s3909_s1 + $0x550] ss:$8 sps:$4 sm:$0xff]  }
  0x24   :  { %1983 = vmatpush1.bf16.msra.mxu0 %v2631_v35  ;;  %1772 = vmatprep.subr.bf16.mxu1 %v2632_v36  ;;  %v34_v35 = vld [vmem:[%s3910_s0 + $0xa0] sm:$0xff] }
  0x25   :  { %1984 = vmatprep.subr.bf16.mxu0 %v2634_v37  ;;  %v42_v36 = vld [vmem:[%s3910_s0 + $0xe0] sm:$0xff]  ;;  %v2234_v37 = vcombine.low %v30_v30, %v38_v31  ;;  %v2778_v30 = vld [vmem:[%s3909_s1 + $0x214] ss:$8 sps:$4 sm:$0xff]  }
  0x26   :  { %v2781_v31 = vld [vmem:[%s3909_s1 + $0x614] ss:$8 sps:$4 sm:$0xff]  }
  0x27   :  { %1773 = vmatpush1.bf16.msra.mxu1 %v2636_v38  ;;  %v2712_v38 = vld [vmem:[%s3909_s1 + $0x164] ss:$8 sps:$4 sm:$0xff]  }
  0x28   :  { %1985 = vmatpush1.bf16.msra.mxu0 %v2637_v39  ;;  %1774 = vmatprep.subr.bf16.mxu1 %v2638_v40  ;;  %v2243_v39 = vcombine.high %v34_v35, %v42_v36  ;;  %v2242_v40 = vcombine.low %v34_v35, %v42_v36  ;;  %v2776_v36 = vld [vmem:[%s3909_s1 + $0x210] ss:$8 sps:$4 sm:$0xff]  }
  0x29   :  { %1986 = vmatprep.subr.bf16.mxu0 %v2640_v41  ;;  %v2715_v41 = vld [vmem:[%s3909_s1 + $0x564] ss:$8 sps:$4 sm:$0xff]  }
  0x2b   :  { %1775 = vmatpush1.bf16.msra.mxu1 %v2642_v42  ;;  %v2710_v42 = vld [vmem:[%s3909_s1 + $0x160] ss:$8 sps:$4 sm:$0xff]  }
  0x2c   :  { %1987 = vmatpush1.bf16.msra.mxu0 %v2643_v43  ;;  %1776 = vmatprep.subr.bf16.mxu1 %v2644_v44  ;;  %v2713_v43 = vld [vmem:[%s3909_s1 + $0x560] ss:$8 sps:$4 sm:$0xff]  }
  0x2d   :  { %1988 = vmatprep.subr.bf16.mxu0 %v2646_v45  ;;  %v3285_v44 = vld [vmem:[%s3910_s0 + $0x8] sm:$0xff] }
  0x2e   :  { %v3290_v45 = vld [vmem:[%s3910_s0 + $0x48] sm:$0xff] }
  0x2f   :  { %1777 = vmatpush1.bf16.msra.mxu1 %v2648_v46  ;;  %v2718_v46 = vld [vmem:[%s3909_s1 + $0x174] ss:$8 sps:$4 sm:$0xff]   ;;  %v2221_v48 = vcombine.high %v3285_v44, %v3290_v45 }
  0x30   :  { %1989 = vmatpush1.bf16.msra.mxu0 %v2649_v47  ;;  %1778 = vmatprep.subr.bf16.mxu1 %v2650_v50  ;;  %v2721_v47 = vld [vmem:[%s3909_s1 + $0x574] ss:$8 sps:$4 sm:$0xff]   ;;  %v3308_v50 = vld [vmem:[%s3910_s0 + $0x68] sm:$0xff] }
  0x31   :  { %1990 = vmatprep.subr.bf16.mxu0 %v2652_v51  ;;  %v2716_v51 = vld [vmem:[%s3909_s1 + $0x170] ss:$8 sps:$4 sm:$0xff]   ;;  %v2229_v53 = vcombine.high %v3303_v49, %v3308_v50 }
  0x33   :  { %1779 = vmatpush1.bf16.msra.mxu1 %v2654_v56  ;;  %v2722_v56 = vld [vmem:[%s3909_s1 + $0x180] ss:$8 sps:$4 sm:$0xff]  }
  0x34   :  { %1991 = vmatpush1.bf16.msra.mxu0 %v2655_v57  ;;  %1780 = vmatprep.subr.bf16.mxu1 %v2656_v58  ;;  %v2725_v57 = vld [vmem:[%s3909_s1 + $0x580] ss:$8 sps:$4 sm:$0xff]   ;;  %v2730_v58 = vld [vmem:[%s3909_s1 + $0x194] ss:$8 sps:$4 sm:$0xff]  }
  0x35   :  { %1992 = vmatprep.subr.bf16.mxu0 %v2658_v59  ;;  %v2733_v59 = vld [vmem:[%s3909_s1 + $0x594] ss:$8 sps:$4 sm:$0xff]  }
  0x37   :  { %1781 = vmatpush1.bf16.msra.mxu1 %v2660_v60  ;;  %v2728_v60 = vld [vmem:[%s3909_s1 + $0x190] ss:$8 sps:$4 sm:$0xff]  }
  0x38   :  { %1993 = vmatpush1.bf16.msra.mxu0 %v2661_v61  ;;  %1782 = vmatprep.subr.bf16.mxu1 %v2662_v62  ;;  %v2731_v61 = vld [vmem:[%s3909_s1 + $0x590] ss:$8 sps:$4 sm:$0xff]   ;;  %v2736_v62 = vld [vmem:[%s3909_s1 + $0x1a4] ss:$8 sps:$4 sm:$0xff]  }
  0x39   :  { %1994 = vmatprep.subr.bf16.mxu0 %v2664_v63  ;;  %v2739_v63 = vld [vmem:[%s3909_s1 + $0x5a4] ss:$8 sps:$4 sm:$0xff]  }
  0x3b   :  { %1783 = vmatpush1.bf16.msra.mxu1 %v2666_v0  ;;  %v2734_v0 = vld [vmem:[%s3909_s1 + $0x1a0] ss:$8 sps:$4 sm:$0xff]  }
  0x3c   :  { %1995 = vmatpush1.bf16.msra.mxu0 %v2667_v1  ;;  %1784 = vmatprep.subr.bf16.mxu1 %v2668_v2  ;;  %v2737_v1 = vld [vmem:[%s3909_s1 + $0x5a0] ss:$8 sps:$4 sm:$0xff]   ;;  %v2742_v2 = vld [vmem:[%s3909_s1 + $0x1b4] ss:$8 sps:$4 sm:$0xff]  }
  0x3d   :  { %1996 = vmatprep.subr.bf16.mxu0 %v2670_v3  ;;  %v2745_v3 = vld [vmem:[%s3909_s1 + $0x5b4] ss:$8 sps:$4 sm:$0xff]  }
  0x3f   :  { %1785 = vmatpush1.bf16.msra.mxu1 %v2672_v4  ;;  %v2740_v4 = vld [vmem:[%s3909_s1 + $0x1b0] ss:$8 sps:$4 sm:$0xff]  }
  0x40   :  { %1997 = vmatpush1.bf16.msra.mxu0 %v2673_v5  ;;  %1807 = vmatprep.subr.bf16.mxu1 %v2676_v6  ;;  %v2743_v5 = vld [vmem:[%s3909_s1 + $0x5b0] ss:$8 sps:$4 sm:$0xff]   ;;  %v2748_v6 = vld [vmem:[%s3909_s1 + $0x1c4] ss:$8 sps:$4 sm:$0xff]  }
  0x41   :  { %2019 = vmatprep.subr.bf16.mxu0 %v2679_v7  ;;  %v2751_v7 = vld [vmem:[%s3909_s1 + $0x5c4] ss:$8 sps:$4 sm:$0xff]  }
  0x42   :  { %1787 = vmatmul.mubr.bf16.vlgmr.msra.gmra.mrb[0].mxu1 %v2218_v8  ;;  %v2746_v8 = vld [vmem:[%s3909_s1 + $0x1c0] ss:$8 sps:$4 sm:$0xff]  }
  0x43   :  { %1999 = vmatmul.mubr.bf16.vlgmr.msra.gmra.mrb[0].mxu0 %v2226_v10  ;;  %1808 = vmatpush1.bf16.msra.mxu1 %v2674_v9  ;;  %v2749_v9 = vld [vmem:[%s3909_s1 + $0x5c0] ss:$8 sps:$4 sm:$0xff]   ;;  %v2754_v10 = vld [vmem:[%s3909_s1 + $0x1d4] ss:$8 sps:$4 sm:$0xff]  }
  0x44   :  { %2020 = vmatpush1.bf16.msra.mxu0 %v2677_v11  ;;  %1809 = vmatprep.subr.bf16.mxu1 %v2682_v12  ;;  %v2757_v11 = vld [vmem:[%s3909_s1 + $0x5d4] ss:$8 sps:$4 sm:$0xff]   ;;  %v2752_v12 = vld [vmem:[%s3909_s1 + $0x1d0] ss:$8 sps:$4 sm:$0xff]  }
  0x45   :  { %2021 = vmatprep.subr.bf16.mxu0 %v2685_v13  ;;  %1796 = vmatprep.mubr.bf16.mxu1 %v2235_v33  ;;  %v2755_v13 = vld [vmem:[%s3909_s1 + $0x5d0] ss:$8 sps:$4 sm:$0xff]   ;;  %v43_v33 = vld [vmem:[%s3910_s0 + $0xe8] sm:$0xff] }
  0x46   :  { %2008 = vmatprep.mubr.bf16.mxu0 %v2243_v39  ;;  %v2787_v39 = vld [vmem:[%s3909_s1 + $0x624] ss:$8 sps:$4 sm:$0xff]  }
  0x47   :  { %1810 = vmatpush1.bf16.msra.mxu1 %v2680_v14  ;;  %v2760_v14 = vld [vmem:[%s3909_s1 + $0x1e4] ss:$8 sps:$4 sm:$0xff]  }
  0x48   :  { %2022 = vmatpush1.bf16.msra.mxu0 %v2683_v15  ;;  %1811 = vmatprep.subr.bf16.mxu1 %v2688_v16  ;;  %v2763_v15 = vld [vmem:[%s3909_s1 + $0x5e4] ss:$8 sps:$4 sm:$0xff]   ;;  %v2758_v16 = vld [vmem:[%s3909_s1 + $0x1e0] ss:$8 sps:$4 sm:$0xff]  }
  0x49   :  { %2023 = vmatprep.subr.bf16.mxu0 %v2691_v17  ;;  %v2761_v17 = vld [vmem:[%s3909_s1 + $0x5e0] ss:$8 sps:$4 sm:$0xff]  }
  0x4a   :  { %1797 = vmatmul.mubr.bf16.gmra.mrb[4].mxu1 %v2234_v37  ;;  %v2779_v37 = vld [vmem:[%s3909_s1 + $0x610] ss:$8 sps:$4 sm:$0xff]  }
  0x4b   :  { %1812 = vmatpush1.bf16.msra.mxu1 %v2686_v18  ;;  %2009 = vmatmul.mubr.bf16.gmra.mrb[4].mxu0 %v2242_v40  ;;  %v2766_v18 = vld [vmem:[%s3909_s1 + $0x1f4] ss:$8 sps:$4 sm:$0xff]   ;;  %v2782_v40 = vld [vmem:[%s3909_s1 + $0x220] ss:$8 sps:$4 sm:$0xff]  }
  0x4c   :  { %2024 = vmatpush1.bf16.msra.mxu0 %v2689_v19  ;;  %1813 = vmatprep.subr.bf16.mxu1 %v2694_v20  ;;  %v2769_v19 = vld [vmem:[%s3909_s1 + $0x5f4] ss:$8 sps:$4 sm:$0xff]   ;;  %v2764_v20 = vld [vmem:[%s3909_s1 + $0x1f0] ss:$8 sps:$4 sm:$0xff]  }
  0x4d   :  { %2025 = vmatprep.subr.bf16.mxu0 %v2697_v21  ;;  %1839 = vmatprep.mubr.bf16.mxu1 %v2221_v48  ;;  %v2767_v21 = vld [vmem:[%s3909_s1 + $0x5f0] ss:$8 sps:$4 sm:$0xff]   ;;  %v2790_v48 = vld [vmem:[%s3909_s1 + $0x234] ss:$8 sps:$4 sm:$0xff]  }
  0x4e   :  { %2051 = vmatprep.mubr.bf16.mxu0 %v2229_v53  ;;  %v2791_v53 = vld [vmem:[%s3909_s1 + $0x630] ss:$8 sps:$4 sm:$0xff]  }
  0x4f   :  { %1814 = vmatpush1.bf16.msra.mxu1 %v2692_v22  ;;  %v2772_v22 = vld [vmem:[%s3909_s1 + $0x204] ss:$8 sps:$4 sm:$0xff]  }
  0x50   :  { %2026 = vmatpush1.bf16.msra.mxu0 %v2695_v23  ;;  %1815 = vmatprep.subr.bf16.mxu1 %v2700_v24  ;;  %v2775_v23 = vld [vmem:[%s3909_s1 + $0x604] ss:$8 sps:$4 sm:$0xff]   ;;  %v2770_v24 = vld [vmem:[%s3909_s1 + $0x200] ss:$8 sps:$4 sm:$0xff]  }
  0x51   :  { %2027 = vmatprep.subr.bf16.mxu0 %v2703_v25  ;;  %v2773_v25 = vld [vmem:[%s3909_s1 + $0x600] ss:$8 sps:$4 sm:$0xff]  }
  0x53   :  { %1816 = vmatpush1.bf16.msra.mxu1 %v2698_v26  ;;  %v31_v26 = vld [vmem:[%s3910_s0 + $0x88] sm:$0xff] }
  0x54   :  { %2028 = vmatpush1.bf16.msra.mxu0 %v2701_v27  ;;  %1817 = vmatprep.subr.bf16.mxu1 %v2706_v28  ;;  %v2220_v27 = vcombine.low %v3285_v44, %v3290_v45  ;;  %v2228_v28 = vcombine.low %v3303_v49, %v3308_v50  ;;  %v3474_v45 = vld [vmem:[%s3910_s0 + $0x50] sm:$0xff] }
  0x55   :  { %2029 = vmatprep.subr.bf16.mxu0 %v2709_v29  ;;  %v39_v29 = vld [vmem:[%s3910_s0 + $0xc8] sm:$0xff]  ;;  %v2793_v49 = vld [vmem:[%s3909_s1 + $0x634] ss:$8 sps:$4 sm:$0xff]  }
  0x57   :  { %1818 = vmatpush1.bf16.msra.mxu1 %v2704_v32  ;;  %v35_v32 = vld [vmem:[%s3910_s0 + $0xa8] sm:$0xff] }
  0x58   :  { %2030 = vmatpush1.bf16.msra.mxu0 %v2707_v34  ;;  %1819 = vmatprep.subr.bf16.mxu1 %v2712_v38  ;;  %v2237_v34 = vcombine.high %v31_v26, %v39_v29  ;;  %v2245_v35 = vcombine.high %v35_v32, %v43_v33  ;;  %v2784_v38 = vld [vmem:[%s3909_s1 + $0x224] ss:$8 sps:$4 sm:$0xff]   ;;  %v2244_v44 = vcombine.low %v35_v32, %v43_v33  ;;  %v2854_v32 = vld [vmem:[%s3909_s1 + $0x2e0] ss:$8 sps:$4 sm:$0xff]  }
  0x59   :  { %2031 = vmatprep.subr.bf16.mxu0 %v2715_v41  ;;  %v2785_v41 = vld [vmem:[%s3909_s1 + $0x620] ss:$8 sps:$4 sm:$0xff]  }
  0x5a   :  { %v2857_v33 = vld [vmem:[%s3909_s1 + $0x6e0] ss:$8 sps:$4 sm:$0xff]  }
  0x5b   :  { %1820 = vmatpush1.bf16.msra.mxu1 %v2710_v42  ;;  %v3469_v42 = vld [vmem:[%s3910_s0 + $0x10] sm:$0xff] }
  0x5c   :  { %2032 = vmatpush1.bf16.msra.mxu0 %v2713_v43  ;;  %1821 = vmatprep.subr.bf16.mxu1 %v2718_v46  ;;  %v2236_v43 = vcombine.low %v31_v26, %v39_v29  ;;  %v3479_v46 = vld [vmem:[%s3910_s0 + $0x30] sm:$0xff]  ;;  %v2223_v50 = vcombine.high %v3469_v42, %v3474_v45 }
  0x5d   :  { %2033 = vmatprep.subr.bf16.mxu0 %v2721_v47  ;;  %v3484_v47 = vld [vmem:[%s3910_s0 + $0x70] sm:$0xff] }
  0x5e   :  { %v2850_v26 = vld [vmem:[%s3909_s1 + $0x2d4] ss:$8 sps:$4 sm:$0xff]   ;;  %v2851_v29 = vld [vmem:[%s3909_s1 + $0x6d0] ss:$8 sps:$4 sm:$0xff]  }
  0x5f   :  { %1822 = vmatpush1.bf16.msra.mxu1 %v2716_v51  ;;  %v2231_v51 = vcombine.high %v3479_v46, %v3484_v47 }
  0x60   :  { %2034 = vmatpush1.bf16.msra.mxu0 %v2719_v52  ;;  %1823 = vmatprep.subr.bf16.mxu1 %v2724_v54  ;;  %v2788_v52 = vld [vmem:[%s3909_s1 + $0x230] ss:$8 sps:$4 sm:$0xff]   ;;  %v2796_v54 = vld [vmem:[%s3909_s1 + $0x244] ss:$8 sps:$4 sm:$0xff]  }
  0x61   :  { %2035 = vmatprep.subr.bf16.mxu0 %v2727_v55  ;;  %v2799_v55 = vld [vmem:[%s3909_s1 + $0x644] ss:$8 sps:$4 sm:$0xff]  }
  0x63   :  { %1824 = vmatpush1.bf16.msra.mxu1 %v2722_v56  ;;  %v2794_v56 = vld [vmem:[%s3909_s1 + $0x240] ss:$8 sps:$4 sm:$0xff]  }
  0x64   :  { %2036 = vmatpush1.bf16.msra.mxu0 %v2725_v57  ;;  %1825 = vmatprep.subr.bf16.mxu1 %v2730_v58  ;;  %v2797_v57 = vld [vmem:[%s3909_s1 + $0x640] ss:$8 sps:$4 sm:$0xff]   ;;  %v2802_v58 = vld [vmem:[%s3909_s1 + $0x254] ss:$8 sps:$4 sm:$0xff]  }
  0x65   :  { %2037 = vmatprep.subr.bf16.mxu0 %v2733_v59  ;;  %v2805_v59 = vld [vmem:[%s3909_s1 + $0x654] ss:$8 sps:$4 sm:$0xff]  }
  0x67   :  { %1826 = vmatpush1.bf16.msra.mxu1 %v2728_v60  ;;  %v2800_v60 = vld [vmem:[%s3909_s1 + $0x250] ss:$8 sps:$4 sm:$0xff]  }
  0x68   :  { %2038 = vmatpush1.bf16.msra.mxu0 %v2731_v61  ;;  %1827 = vmatprep.subr.bf16.mxu1 %v2736_v62  ;;  %v2803_v61 = vld [vmem:[%s3909_s1 + $0x650] ss:$8 sps:$4 sm:$0xff]   ;;  %v2808_v62 = vld [vmem:[%s3909_s1 + $0x264] ss:$8 sps:$4 sm:$0xff]  }
  0x69   :  { %2039 = vmatprep.subr.bf16.mxu0 %v2739_v63  ;;  %v2811_v63 = vld [vmem:[%s3909_s1 + $0x664] ss:$8 sps:$4 sm:$0xff]  }
  0x6b   :  { %1828 = vmatpush1.bf16.msra.mxu1 %v2734_v0  ;;  %v2806_v0 = vld [vmem:[%s3909_s1 + $0x260] ss:$8 sps:$4 sm:$0xff]  }
  0x6c   :  { %2040 = vmatpush1.bf16.msra.mxu0 %v2737_v1  ;;  %1829 = vmatprep.subr.bf16.mxu1 %v2742_v2  ;;  %v2809_v1 = vld [vmem:[%s3909_s1 + $0x660] ss:$8 sps:$4 sm:$0xff]   ;;  %v2814_v2 = vld [vmem:[%s3909_s1 + $0x274] ss:$8 sps:$4 sm:$0xff]  }
  0x6d   :  { %2041 = vmatprep.subr.bf16.mxu0 %v2745_v3  ;;  %v2817_v3 = vld [vmem:[%s3909_s1 + $0x674] ss:$8 sps:$4 sm:$0xff]  }
  0x6f   :  { %1830 = vmatpush1.bf16.msra.mxu1 %v2740_v4  ;;  %v2812_v4 = vld [vmem:[%s3909_s1 + $0x270] ss:$8 sps:$4 sm:$0xff]  }
  0x70   :  { %2042 = vmatpush1.bf16.msra.mxu0 %v2743_v5  ;;  %1831 = vmatprep.subr.bf16.mxu1 %v2748_v6  ;;  %v2815_v5 = vld [vmem:[%s3909_s1 + $0x670] ss:$8 sps:$4 sm:$0xff]   ;;  %v2820_v6 = vld [vmem:[%s3909_s1 + $0x284] ss:$8 sps:$4 sm:$0xff]  }
  0x71   :  { %2043 = vmatprep.subr.bf16.mxu0 %v2751_v7  ;;  %v2823_v7 = vld [vmem:[%s3909_s1 + $0x684] ss:$8 sps:$4 sm:$0xff]  }
  0x73   :  { %1832 = vmatpush1.bf16.msra.mxu1 %v2746_v8  ;;  %v2818_v8 = vld [vmem:[%s3909_s1 + $0x280] ss:$8 sps:$4 sm:$0xff]  }
  0x74   :  { %2044 = vmatpush1.bf16.msra.mxu0 %v2749_v9  ;;  %1833 = vmatprep.subr.bf16.mxu1 %v2754_v10  ;;  %v2821_v9 = vld [vmem:[%s3909_s1 + $0x680] ss:$8 sps:$4 sm:$0xff]   ;;  %v2826_v10 = vld [vmem:[%s3909_s1 + $0x294] ss:$8 sps:$4 sm:$0xff]  }
  0x75   :  { %2045 = vmatprep.subr.bf16.mxu0 %v2757_v11  ;;  %v2829_v11 = vld [vmem:[%s3909_s1 + $0x694] ss:$8 sps:$4 sm:$0xff]  }
  0x77   :  { %1834 = vmatpush1.bf16.msra.mxu1 %v2752_v12  ;;  %v2824_v12 = vld [vmem:[%s3909_s1 + $0x290] ss:$8 sps:$4 sm:$0xff]  }
  0x78   :  { %2046 = vmatpush1.bf16.msra.mxu0 %v2755_v13  ;;  %1835 = vmatprep.subr.bf16.mxu1 %v2760_v14  ;;  %v2827_v13 = vld [vmem:[%s3909_s1 + $0x690] ss:$8 sps:$4 sm:$0xff]   ;;  %v2832_v14 = vld [vmem:[%s3909_s1 + $0x2a4] ss:$8 sps:$4 sm:$0xff]  }
  0x79   :  { %2047 = vmatprep.subr.bf16.mxu0 %v2763_v15  ;;  %v2835_v15 = vld [vmem:[%s3909_s1 + $0x6a4] ss:$8 sps:$4 sm:$0xff]  }
  0x7b   :  { %1836 = vmatpush1.bf16.msra.mxu1 %v2758_v16  ;;  %v2830_v16 = vld [vmem:[%s3909_s1 + $0x2a0] ss:$8 sps:$4 sm:$0xff]  }
  0x7c   :  { %2048 = vmatpush1.bf16.msra.mxu0 %v2761_v17  ;;  %1837 = vmatprep.subr.bf16.mxu1 %v2766_v18  ;;  %v2833_v17 = vld [vmem:[%s3909_s1 + $0x6a0] ss:$8 sps:$4 sm:$0xff]   ;;  %v2838_v18 = vld [vmem:[%s3909_s1 + $0x2b4] ss:$8 sps:$4 sm:$0xff]  }
  0x7d   :  { %2049 = vmatprep.subr.bf16.mxu0 %v2769_v19  ;;  %v2841_v19 = vld [vmem:[%s3909_s1 + $0x6b4] ss:$8 sps:$4 sm:$0xff]  }
  0x7f   :  { %1838 = vmatpush1.bf16.msra.mxu1 %v2764_v20  ;;  %v2836_v20 = vld [vmem:[%s3909_s1 + $0x2b0] ss:$8 sps:$4 sm:$0xff]  }
  0x80   :  { %2050 = vmatpush1.bf16.msra.mxu0 %v2767_v21  ;;  %1860 = vmatprep.subr.bf16.mxu1 %v2772_v22  ;;  %v2839_v21 = vld [vmem:[%s3909_s1 + $0x6b0] ss:$8 sps:$4 sm:$0xff]   ;;  %v2844_v22 = vld [vmem:[%s3909_s1 + $0x2c4] ss:$8 sps:$4 sm:$0xff]  }
  0x81   :  { %2072 = vmatprep.subr.bf16.mxu0 %v2775_v23  ;;  %v2847_v23 = vld [vmem:[%s3909_s1 + $0x6c4] ss:$8 sps:$4 sm:$0xff]  }
  0x82   :  { %1840 = vmatmul.mubr.bf16.vlgmr.msra.gmra.mrb[0].mxu1 %v2220_v27  ;;  %v2853_v27 = vld [vmem:[%s3909_s1 + $0x6d4] ss:$8 sps:$4 sm:$0xff]  }
  0x83   :  { %2052 = vmatmul.mubr.bf16.vlgmr.msra.gmra.mrb[0].mxu0 %v2228_v28  ;;  %1861 = vmatpush1.bf16.msra.mxu1 %v2770_v24  ;;  %v2842_v24 = vld [vmem:[%s3909_s1 + $0x2c0] ss:$8 sps:$4 sm:$0xff]   ;;  %v2848_v28 = vld [vmem:[%s3909_s1 + $0x2d0] ss:$8 sps:$4 sm:$0xff]  }
  0x84   :  { %2073 = vmatpush1.bf16.msra.mxu0 %v2773_v25  ;;  %1862 = vmatprep.subr.bf16.mxu1 %v2778_v30  ;;  %v2845_v25 = vld [vmem:[%s3909_s1 + $0x6c0] ss:$8 sps:$4 sm:$0xff]   ;;  %v2856_v30 = vld [vmem:[%s3909_s1 + $0x2e4] ss:$8 sps:$4 sm:$0xff]  }
  0x85   :  { %2074 = vmatprep.subr.bf16.mxu0 %v2781_v31  ;;  %1849 = vmatprep.mubr.bf16.mxu1 %v2237_v34  ;;  %v2859_v31 = vld [vmem:[%s3909_s1 + $0x6e4] ss:$8 sps:$4 sm:$0xff]   ;;  %v2862_v34 = vld [vmem:[%s3909_s1 + $0x2f4] ss:$8 sps:$4 sm:$0xff]  }
  0x86   :  { %2061 = vmatprep.mubr.bf16.mxu0 %v2245_v35  ;;  %v2865_v35 = vld [vmem:[%s3909_s1 + $0x6f4] ss:$8 sps:$4 sm:$0xff]  }
  0x87   :  { %1863 = vmatpush1.bf16.msra.mxu1 %v2776_v36  ;;  %v2860_v36 = vld [vmem:[%s3909_s1 + $0x2f0] ss:$8 sps:$4 sm:$0xff]  }
  0x88   :  { %2075 = vmatpush1.bf16.msra.mxu0 %v2779_v37  ;;  %1864 = vmatprep.subr.bf16.mxu1 %v2784_v38  ;;  %v2863_v37 = vld [vmem:[%s3909_s1 + $0x6f0] ss:$8 sps:$4 sm:$0xff]   ;;  %v2868_v38 = vld [vmem:[%s3909_s1 + $0x304] ss:$8 sps:$4 sm:$0xff]  }
  0x89   :  { %2076 = vmatprep.subr.bf16.mxu0 %v2787_v39  ;;  %v2871_v39 = vld [vmem:[%s3909_s1 + $0x704] ss:$8 sps:$4 sm:$0xff]  }
  0x8a   :  { %1850 = vmatmul.mubr.bf16.gmra.mrb[4].mxu1 %v2236_v43  ;;  %v2230_v43 = vcombine.low %v3479_v46, %v3484_v47  ;;  %v2874_v46 = vld [vmem:[%s3909_s1 + $0x314] ss:$8 sps:$4 sm:$0xff]  }
  0x8b   :  { %2062 = vmatmul.mubr.bf16.gmra.mrb[4].mxu0 %v2244_v44  ;;  %1865 = vmatpush1.bf16.msra.mxu1 %v2782_v40  ;;  %v32_v40 = vld [vmem:[%s3910_s0 + $0x90] sm:$0xff] }
  0x8c   :  { %2077 = vmatpush1.bf16.msra.mxu0 %v2785_v41  ;;  %1866 = vmatprep.subr.bf16.mxu1 %v2790_v48  ;;  %v2222_v41 = vcombine.low %v3469_v42, %v3474_v45  ;;  %v40_v44 = vld [vmem:[%s3910_s0 + $0xd0] sm:$0xff]  ;;  %v2866_v42 = vld [vmem:[%s3909_s1 + $0x300] ss:$8 sps:$4 sm:$0xff]  }
  0x8d   :  { %2078 = vmatprep.subr.bf16.mxu0 %v2793_v49  ;;  %1892 = vmatprep.mubr.bf16.mxu1 %v2223_v50  ;;  %v36_v48 = vld [vmem:[%s3910_s0 + $0xb0] sm:$0xff]  ;;  %v2869_v45 = vld [vmem:[%s3909_s1 + $0x700] ss:$8 sps:$4 sm:$0xff]   ;;  %v2239_v50 = vcombine.high %v32_v40, %v40_v44 }
  0x8e   :  { %2104 = vmatprep.mubr.bf16.mxu0 %v2231_v51  ;;  %v44_v49 = vld [vmem:[%s3910_s0 + $0xf0] sm:$0xff] }
  0x8f   :  { %1867 = vmatpush1.bf16.msra.mxu1 %v2788_v52  ;;  %v2877_v47 = vld [vmem:[%s3909_s1 + $0x714] ss:$8 sps:$4 sm:$0xff]   ;;  %v2247_v51 = vcombine.high %v36_v48, %v44_v49  ;;  %v2872_v52 = vld [vmem:[%s3909_s1 + $0x310] ss:$8 sps:$4 sm:$0xff]  }
  0x90   :  { %2079 = vmatpush1.bf16.msra.mxu0 %v2791_v53  ;;  %1868 = vmatprep.subr.bf16.mxu1 %v2796_v54  ;;  %v2875_v53 = vld [vmem:[%s3909_s1 + $0x710] ss:$8 sps:$4 sm:$0xff]   ;;  %v2880_v54 = vld [vmem:[%s3909_s1 + $0x324] ss:$8 sps:$4 sm:$0xff]  }
  0x91   :  { %2080 = vmatprep.subr.bf16.mxu0 %v2799_v55  ;;  %v2883_v55 = vld [vmem:[%s3909_s1 + $0x724] ss:$8 sps:$4 sm:$0xff]  }
  0x93   :  { %1869 = vmatpush1.bf16.msra.mxu1 %v2794_v56  ;;  %v3695_v56 = vld [vmem:[%s3910_s0 + $0x18] sm:$0xff] }
  0x94   :  { %2081 = vmatpush1.bf16.msra.mxu0 %v2797_v57  ;;  %1870 = vmatprep.subr.bf16.mxu1 %v2802_v58  ;;  %v2238_v57 = vcombine.low %v32_v40, %v40_v44  ;;  %v2246_v58 = vcombine.low %v36_v48, %v44_v49  ;;  %v2938_v40 = vld [vmem:[%s3909_s1 + $0x3c0] ss:$8 sps:$4 sm:$0xff]   ;;  %v2949_v44 = vld [vmem:[%s3909_s1 + $0x7d4] ss:$8 sps:$4 sm:$0xff]   ;;  %v2944_v48 = vld [vmem:[%s3909_s1 + $0x3d0] ss:$8 sps:$4 sm:$0xff]  }
  0x95   :  { %2082 = vmatprep.subr.bf16.mxu0 %v2805_v59  ;;  %v3700_v59 = vld [vmem:[%s3910_s0 + $0x58] sm:$0xff] }
  0x96   :  { %v2947_v49 = vld [vmem:[%s3909_s1 + $0x7d0] ss:$8 sps:$4 sm:$0xff]  }
  0x97   :  { %1871 = vmatpush1.bf16.msra.mxu1 %v2800_v60  ;;  %v3705_v60 = vld [vmem:[%s3910_s0 + $0x38] sm:$0xff] }
  0x98   :  { %2083 = vmatpush1.bf16.msra.mxu0 %v2803_v61  ;;  %1872 = vmatprep.subr.bf16.mxu1 %v2808_v62  ;;  %v3710_v61 = vld [vmem:[%s3910_s0 + $0x78] sm:$0xff]  ;;  %v2878_v62 = vld [vmem:[%s3909_s1 + $0x320] ss:$8 sps:$4 sm:$0xff]  }
  0x99   :  { %2084 = vmatprep.subr.bf16.mxu0 %v2811_v63  ;;  %v2881_v63 = vld [vmem:[%s3909_s1 + $0x720] ss:$8 sps:$4 sm:$0xff]  }
  0x9b   :  { %1873 = vmatpush1.bf16.msra.mxu1 %v2806_v0  ;;  %v2886_v0 = vld [vmem:[%s3909_s1 + $0x334] ss:$8 sps:$4 sm:$0xff]  }
  0x9c   :  { %2085 = vmatpush1.bf16.msra.mxu0 %v2809_v1  ;;  %1874 = vmatprep.subr.bf16.mxu1 %v2814_v2  ;;  %v2889_v1 = vld [vmem:[%s3909_s1 + $0x734] ss:$8 sps:$4 sm:$0xff]   ;;  %v2225_v2 = vcombine.high %v3695_v56, %v3700_v59 }
  0x9d   :  { %2086 = vmatprep.subr.bf16.mxu0 %v2817_v3  ;;  %v2233_v3 = vcombine.high %v3705_v60, %v3710_v61 }
  0x9f   :  { %1875 = vmatpush1.bf16.msra.mxu1 %v2812_v4  ;;  %v2884_v4 = vld [vmem:[%s3909_s1 + $0x330] ss:$8 sps:$4 sm:$0xff]  }
  0xa0   :  { %2087 = vmatpush1.bf16.msra.mxu0 %v2815_v5  ;;  %1876 = vmatprep.subr.bf16.mxu1 %v2820_v6  ;;  %v2887_v5 = vld [vmem:[%s3909_s1 + $0x730] ss:$8 sps:$4 sm:$0xff]   ;;  %v2892_v6 = vld [vmem:[%s3909_s1 + $0x344] ss:$8 sps:$4 sm:$0xff]  }
  0xa1   :  { %2088 = vmatprep.subr.bf16.mxu0 %v2823_v7  ;;  %v2895_v7 = vld [vmem:[%s3909_s1 + $0x744] ss:$8 sps:$4 sm:$0xff]  }
  0xa3   :  { %1877 = vmatpush1.bf16.msra.mxu1 %v2818_v8  ;;  %v2890_v8 = vld [vmem:[%s3909_s1 + $0x340] ss:$8 sps:$4 sm:$0xff]  }
  0xa4   :  { %2089 = vmatpush1.bf16.msra.mxu0 %v2821_v9  ;;  %1878 = vmatprep.subr.bf16.mxu1 %v2826_v10  ;;  %v2893_v9 = vld [vmem:[%s3909_s1 + $0x740] ss:$8 sps:$4 sm:$0xff]   ;;  %v2898_v10 = vld [vmem:[%s3909_s1 + $0x354] ss:$8 sps:$4 sm:$0xff]  }
  0xa5   :  { %2090 = vmatprep.subr.bf16.mxu0 %v2829_v11  ;;  %v2901_v11 = vld [vmem:[%s3909_s1 + $0x754] ss:$8 sps:$4 sm:$0xff]  }
  0xa7   :  { %1879 = vmatpush1.bf16.msra.mxu1 %v2824_v12  ;;  %v2896_v12 = vld [vmem:[%s3909_s1 + $0x350] ss:$8 sps:$4 sm:$0xff]  }
  0xa8   :  { %2091 = vmatpush1.bf16.msra.mxu0 %v2827_v13  ;;  %1880 = vmatprep.subr.bf16.mxu1 %v2832_v14  ;;  %v2899_v13 = vld [vmem:[%s3909_s1 + $0x750] ss:$8 sps:$4 sm:$0xff]   ;;  %v2904_v14 = vld [vmem:[%s3909_s1 + $0x364] ss:$8 sps:$4 sm:$0xff]  }
  0xa9   :  { %2092 = vmatprep.subr.bf16.mxu0 %v2835_v15  ;;  %v2907_v15 = vld [vmem:[%s3909_s1 + $0x764] ss:$8 sps:$4 sm:$0xff]  }
  0xab   :  { %1881 = vmatpush1.bf16.msra.mxu1 %v2830_v16  ;;  %v2902_v16 = vld [vmem:[%s3909_s1 + $0x360] ss:$8 sps:$4 sm:$0xff]  }
  0xac   :  { %2093 = vmatpush1.bf16.msra.mxu0 %v2833_v17  ;;  %1882 = vmatprep.subr.bf16.mxu1 %v2838_v18  ;;  %v2905_v17 = vld [vmem:[%s3909_s1 + $0x760] ss:$8 sps:$4 sm:$0xff]   ;;  %v2910_v18 = vld [vmem:[%s3909_s1 + $0x374] ss:$8 sps:$4 sm:$0xff]  }
  0xad   :  { %2094 = vmatprep.subr.bf16.mxu0 %v2841_v19  ;;  %v2913_v19 = vld [vmem:[%s3909_s1 + $0x774] ss:$8 sps:$4 sm:$0xff]  }
  0xaf   :  { %1883 = vmatpush1.bf16.msra.mxu1 %v2836_v20  ;;  %v2908_v20 = vld [vmem:[%s3909_s1 + $0x370] ss:$8 sps:$4 sm:$0xff]  }
  0xb0   :  { %2095 = vmatpush1.bf16.msra.mxu0 %v2839_v21  ;;  %1884 = vmatprep.subr.bf16.mxu1 %v2844_v22  ;;  %v2911_v21 = vld [vmem:[%s3909_s1 + $0x770] ss:$8 sps:$4 sm:$0xff]   ;;  %v2916_v22 = vld [vmem:[%s3909_s1 + $0x384] ss:$8 sps:$4 sm:$0xff]  }
  0xb1   :  { %2096 = vmatprep.subr.bf16.mxu0 %v2847_v23  ;;  %v2919_v23 = vld [vmem:[%s3909_s1 + $0x784] ss:$8 sps:$4 sm:$0xff]  }
  0xb3   :  { %1885 = vmatpush1.bf16.msra.mxu1 %v2842_v24  ;;  %v2914_v24 = vld [vmem:[%s3909_s1 + $0x380] ss:$8 sps:$4 sm:$0xff]  }
  0xb4   :  { %2097 = vmatpush1.bf16.msra.mxu0 %v2845_v25  ;;  %1886 = vmatprep.subr.bf16.mxu1 %v2850_v26  ;;  %v2917_v25 = vld [vmem:[%s3909_s1 + $0x780] ss:$8 sps:$4 sm:$0xff]   ;;  %v2922_v26 = vld [vmem:[%s3909_s1 + $0x394] ss:$8 sps:$4 sm:$0xff]  }
  0xb5   :  { %2098 = vmatprep.subr.bf16.mxu0 %v2853_v27  ;;  %v2925_v27 = vld [vmem:[%s3909_s1 + $0x794] ss:$8 sps:$4 sm:$0xff]  }
  0xb7   :  { %1887 = vmatpush1.bf16.msra.mxu1 %v2848_v28  ;;  %v2920_v28 = vld [vmem:[%s3909_s1 + $0x390] ss:$8 sps:$4 sm:$0xff]  }
  0xb8   :  { %2099 = vmatpush1.bf16.msra.mxu0 %v2851_v29  ;;  %1888 = vmatprep.subr.bf16.mxu1 %v2856_v30  ;;  %v2923_v29 = vld [vmem:[%s3909_s1 + $0x790] ss:$8 sps:$4 sm:$0xff]   ;;  %v2928_v30 = vld [vmem:[%s3909_s1 + $0x3a4] ss:$8 sps:$4 sm:$0xff]  }
  0xb9   :  { %2100 = vmatprep.subr.bf16.mxu0 %v2859_v31  ;;  %v2931_v31 = vld [vmem:[%s3909_s1 + $0x7a4] ss:$8 sps:$4 sm:$0xff]  }
  0xbb   :  { %1889 = vmatpush1.bf16.msra.mxu1 %v2854_v32  ;;  %v2926_v32 = vld [vmem:[%s3909_s1 + $0x3a0] ss:$8 sps:$4 sm:$0xff]  }
  0xbc   :  { %2101 = vmatpush1.bf16.msra.mxu0 %v2857_v33  ;;  %1890 = vmatprep.subr.bf16.mxu1 %v2862_v34  ;;  %v2929_v33 = vld [vmem:[%s3909_s1 + $0x7a0] ss:$8 sps:$4 sm:$0xff]   ;;  %v2934_v34 = vld [vmem:[%s3909_s1 + $0x3b4] ss:$8 sps:$4 sm:$0xff]  }
  0xbd   :  { %2102 = vmatprep.subr.bf16.mxu0 %v2865_v35  ;;  %v2937_v35 = vld [vmem:[%s3909_s1 + $0x7b4] ss:$8 sps:$4 sm:$0xff]  }
  0xbf   :  { %1891 = vmatpush1.bf16.msra.mxu1 %v2860_v36  ;;  %v2932_v36 = vld [vmem:[%s3909_s1 + $0x3b0] ss:$8 sps:$4 sm:$0xff]  }
  0xc0   :  { %2103 = vmatpush1.bf16.msra.mxu0 %v2863_v37  ;;  %1913 = vmatprep.subr.bf16.mxu1 %v2868_v38  ;;  %v2935_v37 = vld [vmem:[%s3909_s1 + $0x7b0] ss:$8 sps:$4 sm:$0xff]   ;;  %v2940_v38 = vld [vmem:[%s3909_s1 + $0x3c4] ss:$8 sps:$4 sm:$0xff]  }
  0xc1   :  { %2125 = vmatprep.subr.bf16.mxu0 %v2871_v39  ;;  %v2943_v39 = vld [vmem:[%s3909_s1 + $0x7c4] ss:$8 sps:$4 sm:$0xff]  }
  0xc2   :  { %1893 = vmatmul.mubr.bf16.vlgmr.msra.gmra.mrb[0].mxu1 %v2222_v41  ;;  %v2941_v41 = vld [vmem:[%s3909_s1 + $0x7c0] ss:$8 sps:$4 sm:$0xff]  }
  0xc3   :  { %2105 = vmatmul.mubr.bf16.vlgmr.msra.gmra.mrb[0].mxu0 %v2230_v43  ;;  %1914 = vmatpush1.bf16.msra.mxu1 %v2866_v42  ;;  %v2946_v43 = vld [vmem:[%s3909_s1 + $0x3d4] ss:$8 sps:$4 sm:$0xff]   ;;  %v2952_v42 = vld [vmem:[%s3909_s1 + $0x3e4] ss:$8 sps:$4 sm:$0xff]  }
  0xc4   :  { %2126 = vmatpush1.bf16.msra.mxu0 %v2869_v45  ;;  %1915 = vmatprep.subr.bf16.mxu1 %v2874_v46  ;;  %v2955_v45 = vld [vmem:[%s3909_s1 + $0x7e4] ss:$8 sps:$4 sm:$0xff]   ;;  %v2950_v46 = vld [vmem:[%s3909_s1 + $0x3e0] ss:$8 sps:$4 sm:$0xff]  }
  0xc5   :  { %2127 = vmatprep.subr.bf16.mxu0 %v2877_v47  ;;  %1902 = vmatprep.mubr.bf16.mxu1 %v2239_v50  ;;  %v2953_v47 = vld [vmem:[%s3909_s1 + $0x7e0] ss:$8 sps:$4 sm:$0xff]   ;;  %v2958_v50 = vld [vmem:[%s3909_s1 + $0x3f4] ss:$8 sps:$4 sm:$0xff]  }
  0xc6   :  { %2114 = vmatprep.mubr.bf16.mxu0 %v2247_v51  ;;  %v2961_v51 = vld [vmem:[%s3909_s1 + $0x7f4] ss:$8 sps:$4 sm:$0xff]  }
  0xc7   :  { %1916 = vmatpush1.bf16.msra.mxu1 %v2872_v52  ;;  %v2956_v52 = vld [vmem:[%s3909_s1 + $0x3f0] ss:$8 sps:$4 sm:$0xff]  }
  0xc8   :  { %2128 = vmatpush1.bf16.msra.mxu0 %v2875_v53  ;;  %1917 = vmatprep.subr.bf16.mxu1 %v2880_v54  ;;  %v2959_v53 = vld [vmem:[%s3909_s1 + $0x7f0] ss:$8 sps:$4 sm:$0xff]  }
  0xc9   :  { %2129 = vmatprep.subr.bf16.mxu0 %v2883_v55  ;;  %v33_v54 = vld [vmem:[%s3910_s0 + $0x98] sm:$0xff] }
  0xca   :  { %1903 = vmatmul.mubr.bf16.gmra.mrb[4].mxu1 %v2238_v57  ;;  %v41_v55 = vld [vmem:[%s3910_s0 + $0xd8] sm:$0xff] }
  0xcb   :  { %2115 = vmatmul.mubr.bf16.gmra.mrb[4].mxu0 %v2246_v58  ;;  %1918 = vmatpush1.bf16.msra.mxu1 %v2878_v62  ;;  %v37_v57 = vld [vmem:[%s3910_s0 + $0xb8] sm:$0xff]  ;;  %v2224_v62 = vcombine.low %v3695_v56, %v3700_v59  ;;  %v302_v56 = vld [vmem:[%s3911_s2] sm:$0x3] }
  0xcc   :  { %2130 = vmatpush1.bf16.msra.mxu0 %v2881_v63  ;;  %1919 = vmatprep.subr.bf16.mxu1 %v2886_v0  ;;  %v45_v58 = vld [vmem:[%s3910_s0 + $0xf8] sm:$0xff]  ;;  %v2232_v63 = vcombine.low %v3705_v60, %v3710_v61  ;;  %v2241_v0 = vcombine.high %v33_v54, %v41_v55 }
  0xcd   :  { %2131 = vmatprep.subr.bf16.mxu0 %v2889_v1  ;;  %1945 = vmatprep.mubr.bf16.mxu1 %v2225_v2  ;;  %v2249_v1 = vcombine.high %v37_v57, %v45_v58  ;;  %v2240_v2 = vcombine.low %v33_v54, %v41_v55 }
  0xce   :  { %2157 = vmatprep.mubr.bf16.mxu0 %v2233_v3  ;;  %v2248_v3 = vcombine.low %v37_v57, %v45_v58 }
  0xcf   :  { %1920 = vmatpush1.bf16.msra.mxu1 %v2884_v4  ;;  %v304_v4 = vlaneseq }
  0xd0   :  { %2132 = vmatpush1.bf16.msra.mxu0 %v2887_v5  ;;  %1921 = vmatprep.subr.bf16.mxu1 %v2892_v6 }
  0xd1   :  { %2133 = vmatprep.subr.bf16.mxu0 %v2895_v7  ;;  %v305_v5 = vshrl.u32 %v304_v4, 7 }
  0xd3   :  { %1922 = vmatpush1.bf16.msra.mxu1 %v2890_v8  ;;  %v306_v6 = vsub.s32 0, %v305_v5  ;;  %v310_v59 = vsub.s32 1, %v305_v5 }
  0xd4   :  { %2134 = vmatpush1.bf16.msra.mxu0 %v2893_v9  ;;  %1923 = vmatprep.subr.bf16.mxu1 %v2898_v10 }
  0xd5   :  { %2135 = vmatprep.subr.bf16.mxu0 %v2901_v11  ;;  %v307_v60 = vrot.slane %v302_v56, %v306_v6  ;;  %v311_v61 = vrot.slane %v302_v56, %v310_v59 }
  0xd7   :  { %1924 = vmatpush1.bf16.msra.mxu1 %v2896_v12 }
  0xd8   :  { %2136 = vmatpush1.bf16.msra.mxu0 %v2899_v13  ;;  %1925 = vmatprep.subr.bf16.mxu1 %v2904_v14 }
  0xd9   :  { %2137 = vmatprep.subr.bf16.mxu0 %v2907_v15 }
  0xdb   :  { %1926 = vmatpush1.bf16.msra.mxu1 %v2902_v16 }
  0xdc   :  { %2138 = vmatpush1.bf16.msra.mxu0 %v2905_v17  ;;  %1927 = vmatprep.subr.bf16.mxu1 %v2910_v18 }
  0xdd   :  { %2139 = vmatprep.subr.bf16.mxu0 %v2913_v19 }
  0xdf   :  { %1928 = vmatpush1.bf16.msra.mxu1 %v2908_v20 }
  0xe0   :  { %2140 = vmatpush1.bf16.msra.mxu0 %v2911_v21  ;;  %1929 = vmatprep.subr.bf16.mxu1 %v2916_v22 }
  0xe1   :  { %2141 = vmatprep.subr.bf16.mxu0 %v2919_v23 }
  0xe3   :  { %1930 = vmatpush1.bf16.msra.mxu1 %v2914_v24 }
  0xe4   :  { %2142 = vmatpush1.bf16.msra.mxu0 %v2917_v25  ;;  %1931 = vmatprep.subr.bf16.mxu1 %v2922_v26 }
  0xe5   :  { %2143 = vmatprep.subr.bf16.mxu0 %v2925_v27 }
  0xe7   :  { %1932 = vmatpush1.bf16.msra.mxu1 %v2920_v28 }
  0xe8   :  { %2144 = vmatpush1.bf16.msra.mxu0 %v2923_v29  ;;  %1933 = vmatprep.subr.bf16.mxu1 %v2928_v30 }
  0xe9   :  { %2145 = vmatprep.subr.bf16.mxu0 %v2931_v31 }
  0xeb   :  { %1934 = vmatpush1.bf16.msra.mxu1 %v2926_v32 }
  0xec   :  { %2146 = vmatpush1.bf16.msra.mxu0 %v2929_v33  ;;  %1935 = vmatprep.subr.bf16.mxu1 %v2934_v34 }
  0xed   :  { %2147 = vmatprep.subr.bf16.mxu0 %v2937_v35 }
  0xef   :  { %1936 = vmatpush1.bf16.msra.mxu1 %v2932_v36 }
  0xf0   :  { %2148 = vmatpush1.bf16.msra.mxu0 %v2935_v37  ;;  %1937 = vmatprep.subr.bf16.mxu1 %v2940_v38 }
  0xf1   :  { %2149 = vmatprep.subr.bf16.mxu0 %v2943_v39 }
  0xf3   :  { %1938 = vmatpush1.bf16.msra.mxu1 %v2938_v40 }
  0xf4   :  { %2150 = vmatpush1.bf16.msra.mxu0 %v2941_v41  ;;  %1939 = vmatprep.subr.bf16.mxu1 %v2946_v43 }
  0xf5   :  { %2151 = vmatprep.subr.bf16.mxu0 %v2949_v44 }
  0xf7   :  { %1940 = vmatpush1.bf16.msra.mxu1 %v2944_v48 }
  0xf8   :  { %2152 = vmatpush1.bf16.msra.mxu0 %v2947_v49  ;;  %1941 = vmatprep.subr.bf16.mxu1 %v2952_v42 }
  0xf9   :  { %2153 = vmatprep.subr.bf16.mxu0 %v2955_v45 }
  0xfb   :  { %1942 = vmatpush1.bf16.msra.mxu1 %v2950_v46 }
  0xfc   :  { %2154 = vmatpush1.bf16.msra.mxu0 %v2953_v47  ;;  %1943 = vmatprep.subr.bf16.mxu1 %v2958_v50 }
  0xfd   :  { %2155 = vmatprep.subr.bf16.mxu0 %v2961_v51 }
  0xff   :  { %1944 = vmatpush1.bf16.msra.mxu1 %v2956_v52 }
 0x100   :  { %2156 = vmatpush1.bf16.msra.mxu0 %v2959_v53 }
 0x102   :  { %1946 = vmatmul.mubr.bf16.vlgmr.msra.gmra.mrb[0].mxu1 %v2224_v62 }
 0x103   :  { %2158 = vmatmul.mubr.bf16.vlgmr.msra.gmra.mrb[0].mxu0 %v2232_v63  ;;  %1955 = vmatprep.mubr.bf16.mxu1 %v2241_v0 }
 0x104   :  { %2167 = vmatprep.mubr.bf16.mxu0 %v2249_v1 }
 0x10a   :  { %1956 = vmatmul.mubr.bf16.gmra.mrb[4].mxu1 %v2240_v2 }
 0x10b   :  { %2168 = vmatmul.mubr.bf16.gmra.mrb[4].mxu0 %v2248_v3 }
 0x1d5   :  { %v1947_v7 = vpop.f32.mrb[0].mxu1 }
 0x1d6   :  { %v2159_v8 = vpop.f32.mrb[0].mxu0  ;;  %v2514_v9 = vadd.f32 %v1947_v7, %v307_v60  ;;  %v1949_v10 = vpop.f32.mrb[1].mxu1 }
 0x1d7   :  { %v2161_v11 = vpop.f32.mrb[1].mxu0  ;;  %v2516_v12 = vadd.f32 %v1949_v10, %v311_v61  ;;  %v1951_v13 = vpop.f32.mrb[2].mxu1 }
 0x1d8   :  { %v2163_v14 = vpop.f32.mrb[2].mxu0  ;;  %v2515_v15 = vadd.f32 %v2514_v9, %v2159_v8  ;;  %v2518_v16 = vadd.f32 %v1951_v13, %v307_v60  ;;  %v1953_v17 = vpop.f32.mrb[3].mxu1 }
 0x1d9   :  { %v2165_v18 = vpop.f32.mrb[3].mxu0  ;;  %v2517_v19 = vadd.f32 %v2516_v12, %v2161_v11  ;;  %v2520_v20 = vadd.f32 %v1953_v17, %v311_v61 }
 0x1da   :  { %v2178_v21 = vmax.f32 %v2515_v15, 0.0  ;;  %v2519_v22 = vadd.f32 %v2518_v16, %v2163_v14 }
 0x1db   :  { %v2179_v23 = vmax.f32 %v2517_v19, 0.0  ;;  %v2521_v24 = vadd.f32 %v2520_v20, %v2165_v18 }
 0x1dc   :  { %v2180_v25 = vmax.f32 %v2519_v22, 0.0 }
 0x1dd   :  { %v2510_v26 = vpack.c.bf16 %v2179_v23, %v2178_v21  ;;  %v2181_v27 = vmax.f32 %v2521_v24, 0.0  ;;  %v1957_v28 = vpop.f32.mrb[4].mxu1 }
 0x1de   :  { %v2169_v29 = vpop.f32.mrb[4].mxu0  ;;  %v2522_v30 = vadd.f32 %v1957_v28, %v307_v60  ;;  %v1959_v31 = vpop.f32.mrb[5].mxu1 }
 0x1df   :  { %v2171_v32 = vpop.f32.mrb[5].mxu0  ;;  %2210 = vst [vmem:[%s3912_s3] sm:$0xff] %v2510_v26  ;;  %v2511_v33 = vpack.c.bf16 %v2181_v27, %v2180_v25  ;;  %v2524_v34 = vadd.f32 %v1959_v31, %v311_v61  ;;  %v1961_v35 = vpop.f32.mrb[6].mxu1 }
 0x1e0   :  { %v2173_v36 = vpop.f32.mrb[6].mxu0  ;;  %v2523_v37 = vadd.f32 %v2522_v30, %v2169_v29  ;;  %v2526_v38 = vadd.f32 %v1961_v35, %v307_v60  ;;  %v1963_v39 = vpop.f32.mrb[7].mxu1 }
 0x1e1   :  { %v2175_v40 = vpop.f32.mrb[7].mxu0  ;;  %2211 = vst [vmem:[%s3912_s3 + $0x8] sm:$0xff] %v2511_v33  ;;  %v2525_v41 = vadd.f32 %v2524_v34, %v2171_v32  ;;  %v2528_v43 = vadd.f32 %v1963_v39, %v311_v61 }
 0x1e2   :  { %v2182_v44 = vmax.f32 %v2523_v37, 0.0  ;;  %v2527_v48 = vadd.f32 %v2526_v38, %v2173_v36 }
 0x1e3   :  { %v2183_v49 = vmax.f32 %v2525_v41, 0.0  ;;  %v2529_v42 = vadd.f32 %v2528_v43, %v2175_v40 }
 0x1e4   :  { %v2184_v45 = vmax.f32 %v2527_v48, 0.0 }
 0x1e5   :  { %v2512_v46 = vpack.c.bf16 %v2183_v49, %v2182_v44  ;;  %v2185_v47 = vmax.f32 %v2529_v42, 0.0 }
 0x1e7   :  { %2212 = vst [vmem:[%s3912_s3 + $0x10] sm:$0xff] %v2512_v46  ;;  %v2513_v50 = vpack.c.bf16 %v2185_v47, %v2184_v45 }
 0x1e9   :  { %2213 = vst [vmem:[%s3912_s3 + $0x18] sm:$0xff] %v2513_v50 }

// kernel: autoencoder_forward.13
= control target key start
LH: loop header
LB: loop body
LE: loop exit
PB: predicated region body
PF: predicated region fallthrough
CT: control target
= control target key end

     0   :  { %s1589_s12 = smov 0   ;;  %s1591_s13 = smov 0   ;;  %s1732_s0 = inlined_call_operand.vmem [shape: bf16[4,128,512], index: 0, kind: input, shape index: {}]   ;;  %s1733_s1 = inlined_call_operand.vmem [shape: bf16[4,512,128], index: 1, kind: input, shape index: {}]   ;;  %s1734_s2 = inlined_call_operand.vmem [shape: f32[1,128], index: 2, kind: input, shape index: {}]   ;;  %s1735_s3 = inlined_call_operand.vmem [shape: bf16[4,128,128], index: 3, kind: output, shape index: {}]  }
   0x1   :  { %s1593_s14 = smov 0  }
   0x2 LB: > { %s32_s15 = sadd.s32 1, %s1563_s13  ;;  %p1157_p0 = scmp.ge.s32.totalorder %s1567_s14, 1  ;;  %s1567_s14 = sphi %s1593_s14, %s13_s14   ;;  %s1563_s13 = sphi %s1591_s13, %s1737_s13   ;;  %s1559_s12 = sphi %s1589_s12, %s1736_s12  }
   0x3   : > { %p34_p1 = scmp.ge.s32.totalorder %s32_s15, 4  ;;  %p191_p2 = scmp.lt.s32.totalorder %s1567_s14, 5 }
   0x5   : > { %s1739_s15 = smov (%p34_p1, %s32_s15), 0  ;;  %p192_p3 = pnand %p1157_p0, %p191_p2 }
   0x6   : > { %p239_p4 = scmp.lt.s32.totalorder (!%p192_p3), %s1559_s12, 3 }
   0x7   : > { %195 = sbr.rel (%p192_p3) target bundleno = 333 (0x14d), region = 32 }
   0xe   : > { %s1741_s12 = smov (!%p239_p4, %s1559_s12), 3 }
   0xf   : > { %s1247_s16 = sshll.u32 %s1741_s12, 8  ;;  %s1249_s25 = sshll.u32 %s1741_s12, 6 }
  0x10   : > { %s1615_s19 = scalar_lea.vmem %s1733_s1, %s1247_s16  ;;  %s1652_s22 = scalar_lea.vmem %s1732_s0, %s1247_s16 }
  0x11   : > { %v1465_v0 = vld [vmem:[%s1615_s19 + $0x40] sm:$0xff]   ;;  %v1469_v4 = vld [vmem:[%s1615_s19 + $0x48] sm:$0xff]   ;;  %v1473_v8 = vld [vmem:[%s1615_s19 + $0x50] sm:$0xff]   ;;  %s1699_s28 = scalar_lea.vmem %s1735_s3, %s1249_s25 }
  0x12   : > { %v1466_v1 = vld [vmem:[%s1615_s19 + $0xc0] sm:$0xff]   ;;  %1313 = vmatprep.subr.bf16.mxu0 %v1465_v0  ;;  %v1470_v5 = vld [vmem:[%s1615_s19 + $0xc8] sm:$0xff]   ;;  %v1474_v9 = vld [vmem:[%s1615_s19 + $0xd0] sm:$0xff]  }
  0x13   : > { %v1467_v2 = vld [vmem:[%s1615_s19] sm:$0xff]   ;;  %1377 = vmatprep.subr.bf16.mxu1 %v1466_v1  ;;  %v1471_v6 = vld [vmem:[%s1615_s19 + $0x8] sm:$0xff]   ;;  %v1475_v10 = vld [vmem:[%s1615_s19 + $0x10] sm:$0xff]  }
  0x14   : > { %v1468_v3 = vld [vmem:[%s1615_s19 + $0x80] sm:$0xff]   ;;  %1314 = vmatpush3.bf16.msra.mxu0 %v1467_v2  ;;  %v1472_v7 = vld [vmem:[%s1615_s19 + $0x88] sm:$0xff]   ;;  %v1476_v11 = vld [vmem:[%s1615_s19 + $0x90] sm:$0xff]  }
  0x15   : > { %1378 = vmatpush3.bf16.msra.mxu1 %v1468_v3  ;;  %1315 = vmatprep.subr.bf16.mxu0 %v1469_v4  ;;  %v1477_v12 = vld [vmem:[%s1615_s19 + $0x58] sm:$0xff]   ;;  %v1481_v16 = vld [vmem:[%s1615_s19 + $0x60] sm:$0xff]   ;;  %v1485_v20 = vld [vmem:[%s1615_s19 + $0x68] sm:$0xff]  }
  0x16   : > { %1379 = vmatprep.subr.bf16.mxu1 %v1470_v5  ;;  %v1478_v13 = vld [vmem:[%s1615_s19 + $0xd8] sm:$0xff]   ;;  %v1482_v17 = vld [vmem:[%s1615_s19 + $0xe0] sm:$0xff]   ;;  %v1486_v21 = vld [vmem:[%s1615_s19 + $0xe8] sm:$0xff]  }
  0x17   : > { %v1479_v14 = vld [vmem:[%s1615_s19 + $0x18] sm:$0xff]   ;;  %v1483_v18 = vld [vmem:[%s1615_s19 + $0x20] sm:$0xff]   ;;  %v1487_v22 = vld [vmem:[%s1615_s19 + $0x28] sm:$0xff]  }
  0x18   : > { %1316 = vmatpush3.bf16.msra.mxu0 %v1471_v6  ;;  %v1480_v15 = vld [vmem:[%s1615_s19 + $0x98] sm:$0xff]   ;;  %v1484_v19 = vld [vmem:[%s1615_s19 + $0xa0] sm:$0xff]   ;;  %v1488_v23 = vld [vmem:[%s1615_s19 + $0xa8] sm:$0xff]  }
  0x19   : > { %1380 = vmatpush3.bf16.msra.mxu1 %v1472_v7  ;;  %1317 = vmatprep.subr.bf16.mxu0 %v1473_v8  ;;  %v1489_v24 = vld [vmem:[%s1615_s19 + $0x70] sm:$0xff]   ;;  %v1493_v28 = vld [vmem:[%s1615_s19 + $0x78] sm:$0xff]   ;;  %v1691_v2 = vld [vmem:[%s1734_s2] ss:$0 sm:$0xff] }
  0x1a   : > { %1381 = vmatprep.subr.bf16.mxu1 %v1474_v9  ;;  %v1490_v25 = vld [vmem:[%s1615_s19 + $0xf0] sm:$0xff]   ;;  %v1494_v29 = vld [vmem:[%s1615_s19 + $0xf8] sm:$0xff]  }
  0x1b   : > { %v1491_v26 = vld [vmem:[%s1615_s19 + $0x30] sm:$0xff]   ;;  %v1495_v30 = vld [vmem:[%s1615_s19 + $0x38] sm:$0xff]  }
  0x1c   : > { %1318 = vmatpush3.bf16.msra.mxu0 %v1475_v10  ;;  %v1492_v27 = vld [vmem:[%s1615_s19 + $0xb0] sm:$0xff]   ;;  %v1496_v31 = vld [vmem:[%s1615_s19 + $0xb8] sm:$0xff]  }
  0x1d   : > { %1382 = vmatpush3.bf16.msra.mxu1 %v1476_v11  ;;  %1319 = vmatprep.subr.bf16.mxu0 %v1477_v12  ;;  %v1497_v32 = vld [vmem:[%s1652_s22] ss:$16 sps:$4 sm:$0xff]   ;;  %v1499_v33 = vld [vmem:[%s1652_s22 + $0x4] ss:$16 sps:$4 sm:$0xff]   ;;  %v1500_v34 = vld [vmem:[%s1652_s22 + $0x8] ss:$16 sps:$4 sm:$0xff]  }
  0x1e   : > { %1383 = vmatprep.subr.bf16.mxu1 %v1478_v13  ;;  %v1502_v35 = vld [vmem:[%s1652_s22 + $0xc] ss:$16 sps:$4 sm:$0xff]   ;;  %761 = vmatprep.mubr.bf16.mxu0 %v1499_v33  ;;  %v1503_v36 = vld [vmem:[%s1652_s22 + $0x24] ss:$16 sps:$4 sm:$0xff]   ;;  %v1507_v38 = vld [vmem:[%s1652_s22 + $0x20] ss:$16 sps:$4 sm:$0xff]  }
  0x1f   : > { %858 = vmatprep.mubr.bf16.mxu1 %v1502_v35  ;;  %v1505_v37 = vld [vmem:[%s1652_s22 + $0x2c] ss:$16 sps:$4 sm:$0xff]   ;;  %v1508_v39 = vld [vmem:[%s1652_s22 + $0x28] ss:$16 sps:$4 sm:$0xff]   ;;  %v1509_v40 = vld [vmem:[%s1652_s22 + $0x44] ss:$16 sps:$4 sm:$0xff]  }
  0x20   : > { %1320 = vmatpush3.bf16.msra.mxu0 %v1479_v14  ;;  %v1511_v41 = vld [vmem:[%s1652_s22 + $0x4c] ss:$16 sps:$4 sm:$0xff]   ;;  %v1513_v42 = vld [vmem:[%s1652_s22 + $0x40] ss:$16 sps:$4 sm:$0xff]   ;;  %v1514_v43 = vld [vmem:[%s1652_s22 + $0x48] ss:$16 sps:$4 sm:$0xff]  }
  0x21   : > { %1384 = vmatpush3.bf16.msra.mxu1 %v1480_v15  ;;  %1321 = vmatprep.subr.bf16.mxu0 %v1481_v16  ;;  %v1515_v44 = vld [vmem:[%s1652_s22 + $0x64] ss:$16 sps:$4 sm:$0xff]   ;;  %v1517_v45 = vld [vmem:[%s1652_s22 + $0x6c] ss:$16 sps:$4 sm:$0xff]   ;;  %v1519_v46 = vld [vmem:[%s1652_s22 + $0x60] ss:$16 sps:$4 sm:$0xff]  }
  0x22   : > { %1385 = vmatprep.subr.bf16.mxu1 %v1482_v17  ;;  %v1520_v47 = vld [vmem:[%s1652_s22 + $0x68] ss:$16 sps:$4 sm:$0xff]   ;;  %v1521_v48 = vld [vmem:[%s1652_s22 + $0x84] ss:$16 sps:$4 sm:$0xff]   ;;  %v1523_v49 = vld [vmem:[%s1652_s22 + $0x8c] ss:$16 sps:$4 sm:$0xff]  }
  0x23   : > { %v1525_v50 = vld [vmem:[%s1652_s22 + $0x80] ss:$16 sps:$4 sm:$0xff]   ;;  %v1526_v51 = vld [vmem:[%s1652_s22 + $0x88] ss:$16 sps:$4 sm:$0xff]   ;;  %v1527_v52 = vld [vmem:[%s1652_s22 + $0xa4] ss:$16 sps:$4 sm:$0xff]  }
  0x24   : > { %1322 = vmatpush3.bf16.msra.mxu0 %v1483_v18  ;;  %v1529_v53 = vld [vmem:[%s1652_s22 + $0xac] ss:$16 sps:$4 sm:$0xff]   ;;  %v1531_v54 = vld [vmem:[%s1652_s22 + $0xa0] ss:$16 sps:$4 sm:$0xff]   ;;  %v1532_v55 = vld [vmem:[%s1652_s22 + $0xa8] ss:$16 sps:$4 sm:$0xff]  }
  0x25   : > { %1386 = vmatpush3.bf16.msra.mxu1 %v1484_v19  ;;  %1323 = vmatprep.subr.bf16.mxu0 %v1485_v20  ;;  %v1533_v56 = vld [vmem:[%s1652_s22 + $0xc4] ss:$16 sps:$4 sm:$0xff]   ;;  %v1535_v57 = vld [vmem:[%s1652_s22 + $0xcc] ss:$16 sps:$4 sm:$0xff]   ;;  %v1537_v58 = vld [vmem:[%s1652_s22 + $0xc0] ss:$16 sps:$4 sm:$0xff]  }
  0x26   : > { %1387 = vmatprep.subr.bf16.mxu1 %v1486_v21  ;;  %v1538_v59 = vld [vmem:[%s1652_s22 + $0xc8] ss:$16 sps:$4 sm:$0xff]   ;;  %v1539_v60 = vld [vmem:[%s1652_s22 + $0xe4] ss:$16 sps:$4 sm:$0xff]   ;;  %v1541_v61 = vld [vmem:[%s1652_s22 + $0xec] ss:$16 sps:$4 sm:$0xff]  }
  0x27   : > { %v1543_v62 = vld [vmem:[%s1652_s22 + $0xe0] ss:$16 sps:$4 sm:$0xff]   ;;  %v1544_v63 = vld [vmem:[%s1652_s22 + $0xe8] ss:$16 sps:$4 sm:$0xff]  }
  0x28   : > { %1324 = vmatpush3.bf16.msra.mxu0 %v1487_v22 }
  0x29   : > { %1388 = vmatpush3.bf16.msra.mxu1 %v1488_v23  ;;  %1325 = vmatprep.subr.bf16.mxu0 %v1489_v24 }
  0x2a   : > { %1389 = vmatprep.subr.bf16.mxu1 %v1490_v25 }
  0x2c   : > { %1326 = vmatpush3.bf16.msra.mxu0 %v1491_v26 }
  0x2d   : > { %1390 = vmatpush3.bf16.msra.mxu1 %v1492_v27  ;;  %1327 = vmatprep.subr.bf16.mxu0 %v1493_v28 }
  0x2e   : > { %1391 = vmatprep.subr.bf16.mxu1 %v1494_v29 }
  0x30   : > { %1328 = vmatpush3.bf16.msra.mxu0 %v1495_v30 }
  0x31   : > { %1392 = vmatpush3.bf16.msra.mxu1 %v1496_v31 }
  0x33   : > { %762 = vmatmul.mubr.bf16.vlgmr.msra.gmra.mrb[0].mxu0 %v1497_v32 }
  0x34   : > { %859 = vmatmul.mubr.bf16.vlgmr.msra.gmra.mrb[0].mxu1 %v1500_v34  ;;  %769 = vmatprep.mubr.bf16.mxu0 %v1503_v36 }
  0x35   : > { %866 = vmatprep.mubr.bf16.mxu1 %v1505_v37 }
  0x3b   : > { %770 = vmatmul.mubr.bf16.gmra.mrb[4].mxu0 %v1507_v38 }
  0x3c   : > { %867 = vmatmul.mubr.bf16.gmra.mrb[4].mxu1 %v1508_v39  ;;  %777 = vmatprep.mubr.bf16.mxu0 %v1509_v40 }
  0x3d   : > { %874 = vmatprep.mubr.bf16.mxu1 %v1511_v41 }
  0x43   : > { %778 = vmatmul.mubr.bf16.gmra.mrb[8].mxu0 %v1513_v42 }
  0x44   : > { %875 = vmatmul.mubr.bf16.gmra.mrb[8].mxu1 %v1514_v43  ;;  %785 = vmatprep.mubr.bf16.mxu0 %v1515_v44 }
  0x45   : > { %882 = vmatprep.mubr.bf16.mxu1 %v1517_v45 }
  0x4b   : > { %786 = vmatmul.mubr.bf16.gmra.mrb[12].mxu0 %v1519_v46 }
  0x4c   : > { %883 = vmatmul.mubr.bf16.gmra.mrb[12].mxu1 %v1520_v47  ;;  %793 = vmatprep.mubr.bf16.mxu0 %v1521_v48 }
  0x4d   : > { %890 = vmatprep.mubr.bf16.mxu1 %v1523_v49 }
  0x53   : > { %794 = vmatmul.mubr.bf16.gmra.mrb[16].mxu0 %v1525_v50 }
  0x54   : > { %891 = vmatmul.mubr.bf16.gmra.mrb[16].mxu1 %v1526_v51  ;;  %801 = vmatprep.mubr.bf16.mxu0 %v1527_v52 }
  0x55   : > { %898 = vmatprep.mubr.bf16.mxu1 %v1529_v53 }
  0x5b   : > { %802 = vmatmul.mubr.bf16.gmra.mrb[20].mxu0 %v1531_v54 }
  0x5c   : > { %899 = vmatmul.mubr.bf16.gmra.mrb[20].mxu1 %v1532_v55  ;;  %809 = vmatprep.mubr.bf16.mxu0 %v1533_v56 }
  0x5d   : > { %906 = vmatprep.mubr.bf16.mxu1 %v1535_v57 }
  0x63   : > { %810 = vmatmul.mubr.bf16.gmra.mrb[24].mxu0 %v1537_v58 }
  0x64   : > { %907 = vmatmul.mubr.bf16.gmra.mrb[24].mxu1 %v1538_v59  ;;  %817 = vmatprep.mubr.bf16.mxu0 %v1539_v60 }
  0x65   : > { %914 = vmatprep.mubr.bf16.mxu1 %v1541_v61 }
  0x6b   : > { %818 = vmatmul.mubr.bf16.gmra.mrb[28].mxu0 %v1543_v62 }
  0x6c   : > { %915 = vmatmul.mubr.bf16.gmra.mrb[28].mxu1 %v1544_v63 }
 0x106   : > { %v1329_v0 = vpop.f32.mrb[0].mxu0 }
 0x107   : > { %v1393_v1 = vpop.f32.mrb[0].mxu1  ;;  %v1330_v3 = vpop.f32.mrb[1].mxu0 }
 0x108   : > { %v1331_v4 = vadd.f32 %v1330_v3, %v1329_v0  ;;  %v1394_v5 = vpop.f32.mrb[1].mxu1  ;;  %v1332_v6 = vpop.f32.mrb[2].mxu0 }
 0x109   : > { %v1395_v7 = vadd.f32 %v1394_v5, %v1393_v1  ;;  %v1396_v8 = vpop.f32.mrb[2].mxu1  ;;  %v1333_v9 = vpop.f32.mrb[3].mxu0 }
 0x10a   : > { %v764_v10 = vadd.f32 %v1331_v4, %v1691_v2  ;;  %v1334_v11 = vadd.f32 %v1333_v9, %v1332_v6  ;;  %v1397_v12 = vpop.f32.mrb[3].mxu1 }
 0x10b   : > { %v1398_v13 = vadd.f32 %v1397_v12, %v1396_v8 }
 0x10c   : > { %v861_v14 = vadd.f32 %v1395_v7, %v764_v10  ;;  %v767_v15 = vadd.f32 %v1334_v11, %v1691_v2 }
 0x10e   : > { %v864_v16 = vadd.f32 %v1398_v13, %v767_v15  ;;  %v1335_v17 = vpop.f32.mrb[4].mxu0  ;;  %v923_v20 = vmax.f32 %v861_v14, 0.0 }
 0x10f   : > { %v1399_v18 = vpop.f32.mrb[4].mxu1  ;;  %v1336_v19 = vpop.f32.mrb[5].mxu0 }
 0x110   : > { %v924_v21 = vmax.f32 %v864_v16, 0.0  ;;  %v1337_v22 = vadd.f32 %v1336_v19, %v1335_v17  ;;  %v1400_v23 = vpop.f32.mrb[5].mxu1  ;;  %v1338_v24 = vpop.f32.mrb[6].mxu0 }
 0x111   : > { %v1401_v25 = vadd.f32 %v1400_v23, %v1399_v18  ;;  %v1402_v26 = vpop.f32.mrb[6].mxu1  ;;  %v1339_v27 = vpop.f32.mrb[7].mxu0 }
 0x112   : > { %v1269_v28 = vpack.c.bf16 %v924_v21, %v923_v20  ;;  %v772_v29 = vadd.f32 %v1337_v22, %v1691_v2  ;;  %v1340_v30 = vadd.f32 %v1339_v27, %v1338_v24  ;;  %v1403_v31 = vpop.f32.mrb[7].mxu1 }
 0x113   : > { %v1404_v32 = vadd.f32 %v1403_v31, %v1402_v26 }
 0x114   : > { %1270 = vst [vmem:[%s1699_s28] sm:$0xff] %v1269_v28   ;;  %v869_v33 = vadd.f32 %v1401_v25, %v772_v29  ;;  %v775_v34 = vadd.f32 %v1340_v30, %v1691_v2 }
 0x116   : > { %v872_v35 = vadd.f32 %v1404_v32, %v775_v34  ;;  %v1341_v36 = vpop.f32.mrb[8].mxu0  ;;  %v925_v39 = vmax.f32 %v869_v33, 0.0 }
 0x117   : > { %v1405_v37 = vpop.f32.mrb[8].mxu1  ;;  %v1342_v38 = vpop.f32.mrb[9].mxu0 }
 0x118   : > { %v926_v40 = vmax.f32 %v872_v35, 0.0  ;;  %v1343_v41 = vadd.f32 %v1342_v38, %v1341_v36  ;;  %v1406_v42 = vpop.f32.mrb[9].mxu1  ;;  %v1344_v43 = vpop.f32.mrb[10].mxu0 }
 0x119   : > { %v1407_v44 = vadd.f32 %v1406_v42, %v1405_v37  ;;  %v1408_v45 = vpop.f32.mrb[10].mxu1  ;;  %v1345_v46 = vpop.f32.mrb[11].mxu0 }
 0x11a   : > { %v1274_v47 = vpack.c.bf16 %v926_v40, %v925_v39  ;;  %v780_v48 = vadd.f32 %v1343_v41, %v1691_v2  ;;  %v1346_v49 = vadd.f32 %v1345_v46, %v1344_v43  ;;  %v1409_v50 = vpop.f32.mrb[11].mxu1 }
 0x11b   : > { %v1410_v51 = vadd.f32 %v1409_v50, %v1408_v45 }
 0x11c   : > { %1306 = vst [vmem:[%s1699_s28 + $0x8] sm:$0xff] %v1274_v47   ;;  %v877_v52 = vadd.f32 %v1407_v44, %v780_v48  ;;  %v783_v53 = vadd.f32 %v1346_v49, %v1691_v2 }
 0x11e   : > { %v880_v54 = vadd.f32 %v1410_v51, %v783_v53  ;;  %v1347_v55 = vpop.f32.mrb[12].mxu0  ;;  %v927_v58 = vmax.f32 %v877_v52, 0.0 }
 0x11f   : > { %v1411_v56 = vpop.f32.mrb[12].mxu1  ;;  %v1348_v57 = vpop.f32.mrb[13].mxu0 }
 0x120   : > { %v928_v59 = vmax.f32 %v880_v54, 0.0  ;;  %v1349_v60 = vadd.f32 %v1348_v57, %v1347_v55  ;;  %v1412_v61 = vpop.f32.mrb[13].mxu1  ;;  %v1350_v62 = vpop.f32.mrb[14].mxu0 }
 0x121   : > { %v1413_v63 = vadd.f32 %v1412_v61, %v1411_v56  ;;  %v1414_v0 = vpop.f32.mrb[14].mxu1  ;;  %v1351_v1 = vpop.f32.mrb[15].mxu0 }
 0x122   : > { %v1279_v3 = vpack.c.bf16 %v928_v59, %v927_v58  ;;  %v788_v4 = vadd.f32 %v1349_v60, %v1691_v2  ;;  %v1352_v5 = vadd.f32 %v1351_v1, %v1350_v62  ;;  %v1415_v6 = vpop.f32.mrb[15].mxu1 }
 0x123   : > { %v1416_v7 = vadd.f32 %v1415_v6, %v1414_v0 }
 0x124   : > { %1307 = vst [vmem:[%s1699_s28 + $0x10] sm:$0xff] %v1279_v3   ;;  %v885_v8 = vadd.f32 %v1413_v63, %v788_v4  ;;  %v791_v9 = vadd.f32 %v1352_v5, %v1691_v2 }
 0x126   : > { %v888_v10 = vadd.f32 %v1416_v7, %v791_v9  ;;  %v1353_v11 = vpop.f32.mrb[16].mxu0  ;;  %v929_v14 = vmax.f32 %v885_v8, 0.0 }
 0x127   : > { %v1417_v12 = vpop.f32.mrb[16].mxu1  ;;  %v1354_v13 = vpop.f32.mrb[17].mxu0 }
 0x128   : > { %v930_v15 = vmax.f32 %v888_v10, 0.0  ;;  %v1355_v16 = vadd.f32 %v1354_v13, %v1353_v11  ;;  %v1418_v17 = vpop.f32.mrb[17].mxu1  ;;  %v1356_v18 = vpop.f32.mrb[18].mxu0 }
 0x129   : > { %v1419_v19 = vadd.f32 %v1418_v17, %v1417_v12  ;;  %v1420_v20 = vpop.f32.mrb[18].mxu1  ;;  %v1357_v21 = vpop.f32.mrb[19].mxu0 }
 0x12a   : > { %v1284_v22 = vpack.c.bf16 %v930_v15, %v929_v14  ;;  %v796_v23 = vadd.f32 %v1355_v16, %v1691_v2  ;;  %v1358_v24 = vadd.f32 %v1357_v21, %v1356_v18  ;;  %v1421_v25 = vpop.f32.mrb[19].mxu1 }
 0x12b   : > { %v1422_v26 = vadd.f32 %v1421_v25, %v1420_v20 }
 0x12c   : > { %1308 = vst [vmem:[%s1699_s28 + $0x18] sm:$0xff] %v1284_v22   ;;  %v893_v27 = vadd.f32 %v1419_v19, %v796_v23  ;;  %v799_v28 = vadd.f32 %v1358_v24, %v1691_v2 }
 0x12e   : > { %v896_v29 = vadd.f32 %v1422_v26, %v799_v28  ;;  %v1359_v30 = vpop.f32.mrb[20].mxu0  ;;  %v931_v33 = vmax.f32 %v893_v27, 0.0 }
 0x12f   : > { %v1423_v31 = vpop.f32.mrb[20].mxu1  ;;  %v1360_v32 = vpop.f32.mrb[21].mxu0 }
 0x130   : > { %v932_v34 = vmax.f32 %v896_v29, 0.0  ;;  %v1361_v35 = vadd.f32 %v1360_v32, %v1359_v30  ;;  %v1424_v36 = vpop.f32.mrb[21].mxu1  ;;  %v1362_v37 = vpop.f32.mrb[22].mxu0 }
 0x131   : > { %v1425_v38 = vadd.f32 %v1424_v36, %v1423_v31  ;;  %v1426_v39 = vpop.f32.mrb[22].mxu1  ;;  %v1363_v40 = vpop.f32.mrb[23].mxu0 }
 0x132   : > { %v1289_v41 = vpack.c.bf16 %v932_v34, %v931_v33  ;;  %v804_v42 = vadd.f32 %v1361_v35, %v1691_v2  ;;  %v1364_v43 = vadd.f32 %v1363_v40, %v1362_v37  ;;  %v1427_v44 = vpop.f32.mrb[23].mxu1 }
 0x133   : > { %v1428_v45 = vadd.f32 %v1427_v44, %v1426_v39 }
 0x134   : > { %1309 = vst [vmem:[%s1699_s28 + $0x20] sm:$0xff] %v1289_v41   ;;  %v901_v46 = vadd.f32 %v1425_v38, %v804_v42  ;;  %v807_v47 = vadd.f32 %v1364_v43, %v1691_v2 }
 0x136   : > { %v904_v48 = vadd.f32 %v1428_v45, %v807_v47  ;;  %v1365_v49 = vpop.f32.mrb[24].mxu0  ;;  %v933_v52 = vmax.f32 %v901_v46, 0.0 }
 0x137   : > { %v1429_v50 = vpop.f32.mrb[24].mxu1  ;;  %v1366_v51 = vpop.f32.mrb[25].mxu0 }
 0x138   : > { %v934_v53 = vmax.f32 %v904_v48, 0.0  ;;  %v1367_v54 = vadd.f32 %v1366_v51, %v1365_v49  ;;  %v1430_v55 = vpop.f32.mrb[25].mxu1  ;;  %v1368_v56 = vpop.f32.mrb[26].mxu0 }
 0x139   : > { %v1431_v57 = vadd.f32 %v1430_v55, %v1429_v50  ;;  %v1432_v58 = vpop.f32.mrb[26].mxu1  ;;  %v1369_v59 = vpop.f32.mrb[27].mxu0 }
 0x13a   : > { %v1294_v60 = vpack.c.bf16 %v934_v53, %v933_v52  ;;  %v812_v61 = vadd.f32 %v1367_v54, %v1691_v2  ;;  %v1370_v62 = vadd.f32 %v1369_v59, %v1368_v56  ;;  %v1433_v63 = vpop.f32.mrb[27].mxu1 }
 0x13b   : > { %v1434_v0 = vadd.f32 %v1433_v63, %v1432_v58 }
 0x13c   : > { %1310 = vst [vmem:[%s1699_s28 + $0x28] sm:$0xff] %v1294_v60   ;;  %v909_v1 = vadd.f32 %v1431_v57, %v812_v61  ;;  %v815_v3 = vadd.f32 %v1370_v62, %v1691_v2 }
 0x13e   : > { %v912_v4 = vadd.f32 %v1434_v0, %v815_v3  ;;  %v1371_v5 = vpop.f32.mrb[28].mxu0  ;;  %v935_v8 = vmax.f32 %v909_v1, 0.0 }
 0x13f   : > { %v1435_v6 = vpop.f32.mrb[28].mxu1  ;;  %v1372_v7 = vpop.f32.mrb[29].mxu0 }
 0x140   : > { %v936_v9 = vmax.f32 %v912_v4, 0.0  ;;  %v1373_v10 = vadd.f32 %v1372_v7, %v1371_v5  ;;  %v1436_v11 = vpop.f32.mrb[29].mxu1  ;;  %v1374_v12 = vpop.f32.mrb[30].mxu0 }
 0x141   : > { %v1437_v13 = vadd.f32 %v1436_v11, %v1435_v6  ;;  %v1438_v14 = vpop.f32.mrb[30].mxu1  ;;  %v1375_v15 = vpop.f32.mrb[31].mxu0 }
 0x142   : > { %v1299_v16 = vpack.c.bf16 %v936_v9, %v935_v8  ;;  %v820_v17 = vadd.f32 %v1373_v10, %v1691_v2  ;;  %v1376_v18 = vadd.f32 %v1375_v15, %v1374_v12  ;;  %v1439_v19 = vpop.f32.mrb[31].mxu1 }
 0x143   : > { %v1440_v20 = vadd.f32 %v1439_v19, %v1438_v14 }
 0x144   : > { %1311 = vst [vmem:[%s1699_s28 + $0x30] sm:$0xff] %v1299_v16   ;;  %v917_v21 = vadd.f32 %v1437_v13, %v820_v17  ;;  %v823_v22 = vadd.f32 %v1376_v18, %v1691_v2 }
 0x146   : > { %v920_v23 = vadd.f32 %v1440_v20, %v823_v22  ;;  %v937_v24 = vmax.f32 %v917_v21, 0.0 }
 0x148   : > { %v938_v25 = vmax.f32 %v920_v23, 0.0 }
 0x14a   : > { %v1304_v26 = vpack.c.bf16 %v938_v25, %v937_v24 }
 0x14c   : > { %1312 = vst [vmem:[%s1699_s28 + $0x38] sm:$0xff] %v1304_v26  }
 0x14d PF: > { %s13_s14 = sadd.s32 1, %s1567_s14   ;;  %s1736_s12 = smov %s1563_s13 }
 0x14e   : > { %p10_p5 = scmp.ge.s32.totalorder %s13_s14, 6   ;;  %s1737_s13 = smov %s1739_s15 }
 0x150   :  { %12 = sbr.rel (!%p10_p5) target bundleno = 2 (0x2), region = 68 }

// kernel: autoencoder_forward.14
= control target key start
LH: loop header
LB: loop body
LE: loop exit
PB: predicated region body
PF: predicated region fallthrough
CT: control target
= control target key end

     0   :  { %s2230_s12 = smov 0   ;;  %s2232_s13 = smov 0   ;;  %s2490_s0 = inlined_call_operand.vmem [shape: bf16[4,512,256], index: 0, kind: input, shape index: {}]   ;;  %s2491_s1 = inlined_call_operand.vmem [shape: bf16[4,256,128], index: 1, kind: input, shape index: {}]   ;;  %s2492_s2 = inlined_call_operand.vmem [shape: f32[1,128], index: 2, kind: input, shape index: {}]   ;;  %s2493_s3 = inlined_call_operand.vmem [shape: bf16[4,512,128], index: 3, kind: output, shape index: {}]  }
   0x1   :  { %s2234_s14 = smov 0  }
   0x2 LB: > { %s32_s15 = sadd.s32 1, %s2203_s13  ;;  %p1604_p0 = scmp.ge.s32.totalorder %s2207_s14, 1  ;;  %s2207_s14 = sphi %s2234_s14, %s13_s14   ;;  %s2203_s13 = sphi %s2232_s13, %s2495_s13   ;;  %s2199_s12 = sphi %s2230_s12, %s2494_s12  }
   0x3   : > { %p34_p1 = scmp.ge.s32.totalorder %s32_s15, 4  ;;  %p191_p2 = scmp.lt.s32.totalorder %s2207_s14, 5 }
   0x5   : > { %s2497_s15 = smov (%p34_p1, %s32_s15), 0  ;;  %p192_p3 = pnand %p1604_p0, %p191_p2 }
   0x6   : > { %p239_p4 = scmp.lt.s32.totalorder (!%p192_p3), %s2199_s12, 3  ;;  %v2209_v0 = vmov (!%p192_p3), 0  }
   0x7   : > { %195 = sbr.rel (%p192_p3) target bundleno = 422 (0x1a6), region = 32  ;;  %793 = vmatprep.subr.bf16.mxu0 (!%p192_p3), %v2209_v0  ;;  %2016 = vmatprep.subr.bf16.mxu1 (!%p192_p3), %v2209_v0 }
   0xe   : > { %s2499_s12 = smov (!%p239_p4, %s2199_s12), 3 }
   0xf   : > { %s1759_s16 = sshll.u32 %s2499_s12, 7  ;;  %s1758_s20 = sshll.u32 %s2499_s12, 9 }
  0x10   : > { %s2256_s19 = scalar_lea.vmem %s2491_s1, %s1759_s16  ;;  %s2272_s23 = scalar_lea.vmem %s2490_s0, %s1758_s20 }
  0x11   : > { %v2073_v1 = vld [vmem:[%s2256_s19] sm:$0xff]   ;;  %v2074_v2 = vld [vmem:[%s2256_s19 + $0x8] sm:$0xff]   ;;  %v2075_v3 = vld [vmem:[%s2256_s19 + $0x10] sm:$0xff]   ;;  %s1760_s26 = sshll.u32 %s2499_s12, 8 }
  0x12   : > { %794 = vmatpush1.bf16.msra.mxu0 %v2073_v1  ;;  %2032 = vmatpush1.bf16.msra.mxu1 %v2073_v1  ;;  %v2076_v4 = vld [vmem:[%s2256_s19 + $0x18] sm:$0xff]   ;;  %v2077_v5 = vld [vmem:[%s2256_s19 + $0x20] sm:$0xff]   ;;  %v2078_v7 = vld [vmem:[%s2256_s19 + $0x28] sm:$0xff]   ;;  %s2387_s29 = scalar_lea.vmem %s2493_s3, %s1760_s26 }
  0x13   : > { %795 = vmatprep.subr.bf16.mxu0 %v2209_v0  ;;  %2017 = vmatprep.subr.bf16.mxu1 %v2209_v0  ;;  %v2091_v6 = vld [vmem:[%s2272_s23 + $0x4] ss:$8 sps:$4 sm:$0xff]   ;;  %v2079_v9 = vld [vmem:[%s2256_s19 + $0x30] sm:$0xff]   ;;  %v2080_v10 = vld [vmem:[%s2256_s19 + $0x38] sm:$0xff]  }
  0x14   : > { %v2094_v8 = vld [vmem:[%s2272_s23 + $0x104] ss:$8 sps:$4 sm:$0xff]   ;;  %825 = vmatprep.mubr.bf16.mxu0 %v2091_v6  ;;  %v2083_v13 = vld [vmem:[%s2256_s19 + $0x50] sm:$0xff]   ;;  %v2084_v14 = vld [vmem:[%s2256_s19 + $0x58] sm:$0xff]  }
  0x15   : > { %953 = vmatprep.mubr.bf16.mxu1 %v2094_v8  ;;  %v2081_v11 = vld [vmem:[%s2256_s19 + $0x40] sm:$0xff]   ;;  %v2082_v12 = vld [vmem:[%s2256_s19 + $0x48] sm:$0xff]   ;;  %v2087_v17 = vld [vmem:[%s2256_s19 + $0x70] sm:$0xff]  }
  0x16   : > { %796 = vmatpush1.bf16.msra.mxu0 %v2074_v2  ;;  %2033 = vmatpush1.bf16.msra.mxu1 %v2074_v2  ;;  %v2085_v15 = vld [vmem:[%s2256_s19 + $0x60] sm:$0xff]   ;;  %v2086_v16 = vld [vmem:[%s2256_s19 + $0x68] sm:$0xff]   ;;  %v2088_v18 = vld [vmem:[%s2256_s19 + $0x78] sm:$0xff]  }
  0x17   : > { %797 = vmatprep.subr.bf16.mxu0 %v2209_v0  ;;  %2018 = vmatprep.subr.bf16.mxu1 %v2209_v0  ;;  %v2089_v19 = vld [vmem:[%s2272_s23] ss:$8 sps:$4 sm:$0xff]   ;;  %v2095_v21 = vld [vmem:[%s2272_s23 + $0x14] ss:$8 sps:$4 sm:$0xff]   ;;  %v2099_v23 = vld [vmem:[%s2272_s23 + $0x10] ss:$8 sps:$4 sm:$0xff]  }
  0x18   : > { %v2092_v20 = vld [vmem:[%s2272_s23 + $0x100] ss:$8 sps:$4 sm:$0xff]   ;;  %v2097_v22 = vld [vmem:[%s2272_s23 + $0x114] ss:$8 sps:$4 sm:$0xff]   ;;  %v2100_v24 = vld [vmem:[%s2272_s23 + $0x110] ss:$8 sps:$4 sm:$0xff]  }
  0x19   : > { %v2101_v25 = vld [vmem:[%s2272_s23 + $0x24] ss:$8 sps:$4 sm:$0xff]   ;;  %v2105_v27 = vld [vmem:[%s2272_s23 + $0x20] ss:$8 sps:$4 sm:$0xff]   ;;  %v2107_v29 = vld [vmem:[%s2272_s23 + $0x34] ss:$8 sps:$4 sm:$0xff]  }
  0x1a   : > { %798 = vmatpush1.bf16.msra.mxu0 %v2075_v3  ;;  %2034 = vmatpush1.bf16.msra.mxu1 %v2075_v3  ;;  %v2103_v26 = vld [vmem:[%s2272_s23 + $0x124] ss:$8 sps:$4 sm:$0xff]   ;;  %v2106_v28 = vld [vmem:[%s2272_s23 + $0x120] ss:$8 sps:$4 sm:$0xff]   ;;  %v2109_v30 = vld [vmem:[%s2272_s23 + $0x134] ss:$8 sps:$4 sm:$0xff]  }
  0x1b   : > { %799 = vmatprep.subr.bf16.mxu0 %v2209_v0  ;;  %2019 = vmatprep.subr.bf16.mxu1 %v2209_v0  ;;  %v2111_v31 = vld [vmem:[%s2272_s23 + $0x30] ss:$8 sps:$4 sm:$0xff]   ;;  %v2113_v33 = vld [vmem:[%s2272_s23 + $0x44] ss:$8 sps:$4 sm:$0xff]   ;;  %v2117_v35 = vld [vmem:[%s2272_s23 + $0x40] ss:$8 sps:$4 sm:$0xff]  }
  0x1c   : > { %v2112_v32 = vld [vmem:[%s2272_s23 + $0x130] ss:$8 sps:$4 sm:$0xff]   ;;  %v2115_v34 = vld [vmem:[%s2272_s23 + $0x144] ss:$8 sps:$4 sm:$0xff]   ;;  %v2118_v36 = vld [vmem:[%s2272_s23 + $0x140] ss:$8 sps:$4 sm:$0xff]  }
  0x1d   : > { %v2119_v37 = vld [vmem:[%s2272_s23 + $0x54] ss:$8 sps:$4 sm:$0xff]   ;;  %v2123_v39 = vld [vmem:[%s2272_s23 + $0x50] ss:$8 sps:$4 sm:$0xff]   ;;  %v2125_v41 = vld [vmem:[%s2272_s23 + $0x64] ss:$8 sps:$4 sm:$0xff]  }
  0x1e   : > { %800 = vmatpush1.bf16.msra.mxu0 %v2076_v4  ;;  %2035 = vmatpush1.bf16.msra.mxu1 %v2076_v4  ;;  %v2121_v38 = vld [vmem:[%s2272_s23 + $0x154] ss:$8 sps:$4 sm:$0xff]   ;;  %v2124_v40 = vld [vmem:[%s2272_s23 + $0x150] ss:$8 sps:$4 sm:$0xff]   ;;  %v2127_v42 = vld [vmem:[%s2272_s23 + $0x164] ss:$8 sps:$4 sm:$0xff]  }
  0x1f   : > { %801 = vmatprep.subr.bf16.mxu0 %v2209_v0  ;;  %2020 = vmatprep.subr.bf16.mxu1 %v2209_v0  ;;  %v2129_v43 = vld [vmem:[%s2272_s23 + $0x60] ss:$8 sps:$4 sm:$0xff]   ;;  %v2131_v45 = vld [vmem:[%s2272_s23 + $0x74] ss:$8 sps:$4 sm:$0xff]   ;;  %v2135_v47 = vld [vmem:[%s2272_s23 + $0x70] ss:$8 sps:$4 sm:$0xff]  }
  0x20   : > { %v2130_v44 = vld [vmem:[%s2272_s23 + $0x160] ss:$8 sps:$4 sm:$0xff]   ;;  %v2133_v46 = vld [vmem:[%s2272_s23 + $0x174] ss:$8 sps:$4 sm:$0xff]   ;;  %v2136_v48 = vld [vmem:[%s2272_s23 + $0x170] ss:$8 sps:$4 sm:$0xff]  }
  0x21   : > { %v2137_v49 = vld [vmem:[%s2272_s23 + $0x84] ss:$8 sps:$4 sm:$0xff]   ;;  %v2141_v51 = vld [vmem:[%s2272_s23 + $0x80] ss:$8 sps:$4 sm:$0xff]   ;;  %v2143_v53 = vld [vmem:[%s2272_s23 + $0x94] ss:$8 sps:$4 sm:$0xff]  }
  0x22   : > { %802 = vmatpush1.bf16.msra.mxu0 %v2077_v5  ;;  %2036 = vmatpush1.bf16.msra.mxu1 %v2077_v5  ;;  %v2139_v50 = vld [vmem:[%s2272_s23 + $0x184] ss:$8 sps:$4 sm:$0xff]   ;;  %v2142_v52 = vld [vmem:[%s2272_s23 + $0x180] ss:$8 sps:$4 sm:$0xff]   ;;  %v2145_v54 = vld [vmem:[%s2272_s23 + $0x194] ss:$8 sps:$4 sm:$0xff]  }
  0x23   : > { %803 = vmatprep.subr.bf16.mxu0 %v2209_v0  ;;  %2021 = vmatprep.subr.bf16.mxu1 %v2209_v0  ;;  %v2147_v55 = vld [vmem:[%s2272_s23 + $0x90] ss:$8 sps:$4 sm:$0xff]   ;;  %v2149_v57 = vld [vmem:[%s2272_s23 + $0xa4] ss:$8 sps:$4 sm:$0xff]   ;;  %v2153_v59 = vld [vmem:[%s2272_s23 + $0xa0] ss:$8 sps:$4 sm:$0xff]  }
  0x24   : > { %v2148_v56 = vld [vmem:[%s2272_s23 + $0x190] ss:$8 sps:$4 sm:$0xff]   ;;  %v2151_v58 = vld [vmem:[%s2272_s23 + $0x1a4] ss:$8 sps:$4 sm:$0xff]   ;;  %v2154_v60 = vld [vmem:[%s2272_s23 + $0x1a0] ss:$8 sps:$4 sm:$0xff]  }
  0x25   : > { %v2155_v61 = vld [vmem:[%s2272_s23 + $0xb4] ss:$8 sps:$4 sm:$0xff]   ;;  %v2159_v63 = vld [vmem:[%s2272_s23 + $0xb0] ss:$8 sps:$4 sm:$0xff]   ;;  %v2161_v1 = vld [vmem:[%s2272_s23 + $0xc4] ss:$8 sps:$4 sm:$0xff]  }
  0x26   : > { %804 = vmatpush1.bf16.msra.mxu0 %v2078_v7  ;;  %2037 = vmatpush1.bf16.msra.mxu1 %v2078_v7  ;;  %v2157_v62 = vld [vmem:[%s2272_s23 + $0x1b4] ss:$8 sps:$4 sm:$0xff]   ;;  %v2163_v2 = vld [vmem:[%s2272_s23 + $0x1c4] ss:$8 sps:$4 sm:$0xff]   ;;  %v2165_v3 = vld [vmem:[%s2272_s23 + $0xc0] ss:$8 sps:$4 sm:$0xff]  }
  0x27   : > { %805 = vmatprep.subr.bf16.mxu0 %v2209_v0  ;;  %2022 = vmatprep.subr.bf16.mxu1 %v2209_v0  ;;  %v2166_v4 = vld [vmem:[%s2272_s23 + $0x1c0] ss:$8 sps:$4 sm:$0xff]   ;;  %v2167_v5 = vld [vmem:[%s2272_s23 + $0xd4] ss:$8 sps:$4 sm:$0xff]   ;;  %v2171_v7 = vld [vmem:[%s2272_s23 + $0xd0] ss:$8 sps:$4 sm:$0xff]  }
  0x28   : > { %v2169_v6 = vld [vmem:[%s2272_s23 + $0x1d4] ss:$8 sps:$4 sm:$0xff]   ;;  %v2172_v8 = vld [vmem:[%s2272_s23 + $0x1d0] ss:$8 sps:$4 sm:$0xff]  }
  0x2a   : > { %806 = vmatpush1.bf16.msra.mxu0 %v2079_v9  ;;  %2038 = vmatpush1.bf16.msra.mxu1 %v2079_v9  ;;  %v2173_v9 = vld [vmem:[%s2272_s23 + $0xe4] ss:$8 sps:$4 sm:$0xff]  }
  0x2b   : > { %807 = vmatprep.subr.bf16.mxu0 %v2209_v0  ;;  %2023 = vmatprep.subr.bf16.mxu1 %v2209_v0 }
  0x2e   : > { %808 = vmatpush1.bf16.msra.mxu0 %v2080_v10  ;;  %2039 = vmatpush1.bf16.msra.mxu1 %v2080_v10  ;;  %v2175_v10 = vld [vmem:[%s2272_s23 + $0x1e4] ss:$8 sps:$4 sm:$0xff]  }
  0x2f   : > { %809 = vmatprep.subr.bf16.mxu0 %v2209_v0  ;;  %2024 = vmatprep.subr.bf16.mxu1 %v2209_v0 }
  0x32   : > { %810 = vmatpush1.bf16.msra.mxu0 %v2081_v11  ;;  %2040 = vmatpush1.bf16.msra.mxu1 %v2081_v11  ;;  %v2177_v11 = vld [vmem:[%s2272_s23 + $0xe0] ss:$8 sps:$4 sm:$0xff]  }
  0x33   : > { %811 = vmatprep.subr.bf16.mxu0 %v2209_v0  ;;  %2025 = vmatprep.subr.bf16.mxu1 %v2209_v0 }
  0x36   : > { %812 = vmatpush1.bf16.msra.mxu0 %v2082_v12  ;;  %2041 = vmatpush1.bf16.msra.mxu1 %v2082_v12  ;;  %v2178_v12 = vld [vmem:[%s2272_s23 + $0x1e0] ss:$8 sps:$4 sm:$0xff]  }
  0x37   : > { %813 = vmatprep.subr.bf16.mxu0 %v2209_v0  ;;  %2026 = vmatprep.subr.bf16.mxu1 %v2209_v0 }
  0x3a   : > { %814 = vmatpush1.bf16.msra.mxu0 %v2083_v13  ;;  %2042 = vmatpush1.bf16.msra.mxu1 %v2083_v13  ;;  %v2179_v13 = vld [vmem:[%s2272_s23 + $0xf4] ss:$8 sps:$4 sm:$0xff]  }
  0x3b   : > { %815 = vmatprep.subr.bf16.mxu0 %v2209_v0  ;;  %2027 = vmatprep.subr.bf16.mxu1 %v2209_v0 }
  0x3e   : > { %816 = vmatpush1.bf16.msra.mxu0 %v2084_v14  ;;  %2043 = vmatpush1.bf16.msra.mxu1 %v2084_v14  ;;  %v2181_v14 = vld [vmem:[%s2272_s23 + $0x1f4] ss:$8 sps:$4 sm:$0xff]  }
  0x3f   : > { %817 = vmatprep.subr.bf16.mxu0 %v2209_v0  ;;  %2028 = vmatprep.subr.bf16.mxu1 %v2209_v0 }
  0x42   : > { %818 = vmatpush1.bf16.msra.mxu0 %v2085_v15  ;;  %2044 = vmatpush1.bf16.msra.mxu1 %v2085_v15  ;;  %v2183_v15 = vld [vmem:[%s2272_s23 + $0xf0] ss:$8 sps:$4 sm:$0xff]  }
  0x43   : > { %819 = vmatprep.subr.bf16.mxu0 %v2209_v0  ;;  %2029 = vmatprep.subr.bf16.mxu1 %v2209_v0 }
  0x46   : > { %820 = vmatpush1.bf16.msra.mxu0 %v2086_v16  ;;  %2045 = vmatpush1.bf16.msra.mxu1 %v2086_v16  ;;  %v2184_v16 = vld [vmem:[%s2272_s23 + $0x1f0] ss:$8 sps:$4 sm:$0xff]  }
  0x47   : > { %821 = vmatprep.subr.bf16.mxu0 %v2209_v0  ;;  %2030 = vmatprep.subr.bf16.mxu1 %v2209_v0 }
  0x4a   : > { %822 = vmatpush1.bf16.msra.mxu0 %v2087_v17  ;;  %2046 = vmatpush1.bf16.msra.mxu1 %v2087_v17  ;;  %v2377_v17 = vld [vmem:[%s2492_s2] ss:$0 sm:$0xff] }
  0x4b   : > { %823 = vmatprep.subr.bf16.mxu0 %v2209_v0  ;;  %2031 = vmatprep.subr.bf16.mxu1 %v2209_v0  ;;  %v2160_v0 = vld [vmem:[%s2272_s23 + $0x1b0] ss:$8 sps:$4 sm:$0xff]  }
  0x4e   : > { %824 = vmatpush1.bf16.msra.mxu0 %v2088_v18  ;;  %2047 = vmatpush1.bf16.msra.mxu1 %v2088_v18 }
  0x51   : > { %826 = vmatmul.mubr.bf16.vlgmr.msra.gmra.mrb[0].mxu0 %v2089_v19  ;;  %954 = vmatmul.mubr.bf16.vlgmr.msra.gmra.mrb[0].mxu1 %v2092_v20 }
  0x52   : > { %833 = vmatprep.mubr.bf16.mxu0 %v2095_v21  ;;  %961 = vmatprep.mubr.bf16.mxu1 %v2097_v22 }
  0x59   : > { %834 = vmatmul.mubr.bf16.gmra.mrb[4].mxu0 %v2099_v23  ;;  %962 = vmatmul.mubr.bf16.gmra.mrb[4].mxu1 %v2100_v24 }
  0x5a   : > { %841 = vmatprep.mubr.bf16.mxu0 %v2101_v25  ;;  %969 = vmatprep.mubr.bf16.mxu1 %v2103_v26 }
  0x61   : > { %842 = vmatmul.mubr.bf16.gmra.mrb[8].mxu0 %v2105_v27  ;;  %970 = vmatmul.mubr.bf16.gmra.mrb[8].mxu1 %v2106_v28 }
  0x62   : > { %849 = vmatprep.mubr.bf16.mxu0 %v2107_v29  ;;  %977 = vmatprep.mubr.bf16.mxu1 %v2109_v30 }
  0x69   : > { %850 = vmatmul.mubr.bf16.gmra.mrb[12].mxu0 %v2111_v31  ;;  %978 = vmatmul.mubr.bf16.gmra.mrb[12].mxu1 %v2112_v32 }
  0x6a   : > { %857 = vmatprep.mubr.bf16.mxu0 %v2113_v33  ;;  %985 = vmatprep.mubr.bf16.mxu1 %v2115_v34 }
  0x71   : > { %858 = vmatmul.mubr.bf16.gmra.mrb[16].mxu0 %v2117_v35  ;;  %986 = vmatmul.mubr.bf16.gmra.mrb[16].mxu1 %v2118_v36 }
  0x72   : > { %865 = vmatprep.mubr.bf16.mxu0 %v2119_v37  ;;  %993 = vmatprep.mubr.bf16.mxu1 %v2121_v38 }
  0x79   : > { %866 = vmatmul.mubr.bf16.gmra.mrb[20].mxu0 %v2123_v39  ;;  %994 = vmatmul.mubr.bf16.gmra.mrb[20].mxu1 %v2124_v40 }
  0x7a   : > { %873 = vmatprep.mubr.bf16.mxu0 %v2125_v41  ;;  %1001 = vmatprep.mubr.bf16.mxu1 %v2127_v42 }
  0x81   : > { %874 = vmatmul.mubr.bf16.gmra.mrb[24].mxu0 %v2129_v43  ;;  %1002 = vmatmul.mubr.bf16.gmra.mrb[24].mxu1 %v2130_v44 }
  0x82   : > { %881 = vmatprep.mubr.bf16.mxu0 %v2131_v45  ;;  %1009 = vmatprep.mubr.bf16.mxu1 %v2133_v46 }
  0x89   : > { %882 = vmatmul.mubr.bf16.gmra.mrb[28].mxu0 %v2135_v47  ;;  %1010 = vmatmul.mubr.bf16.gmra.mrb[28].mxu1 %v2136_v48 }
  0x8a   : > { %889 = vmatprep.mubr.bf16.mxu0 %v2137_v49  ;;  %1017 = vmatprep.mubr.bf16.mxu1 %v2139_v50 }
  0x91   : > { %890 = vmatmul.mubr.bf16.gmra.mrb[32].mxu0 %v2141_v51  ;;  %1018 = vmatmul.mubr.bf16.gmra.mrb[32].mxu1 %v2142_v52 }
  0x92   : > { %897 = vmatprep.mubr.bf16.mxu0 %v2143_v53  ;;  %1025 = vmatprep.mubr.bf16.mxu1 %v2145_v54 }
  0x99   : > { %898 = vmatmul.mubr.bf16.gmra.mrb[36].mxu0 %v2147_v55  ;;  %1026 = vmatmul.mubr.bf16.gmra.mrb[36].mxu1 %v2148_v56 }
  0x9a   : > { %905 = vmatprep.mubr.bf16.mxu0 %v2149_v57  ;;  %1033 = vmatprep.mubr.bf16.mxu1 %v2151_v58 }
  0xa1   : > { %906 = vmatmul.mubr.bf16.gmra.mrb[40].mxu0 %v2153_v59  ;;  %1034 = vmatmul.mubr.bf16.gmra.mrb[40].mxu1 %v2154_v60 }
  0xa2   : > { %913 = vmatprep.mubr.bf16.mxu0 %v2155_v61  ;;  %1041 = vmatprep.mubr.bf16.mxu1 %v2157_v62 }
  0xa9   : > { %914 = vmatmul.mubr.bf16.gmra.mrb[44].mxu0 %v2159_v63  ;;  %1042 = vmatmul.mubr.bf16.gmra.mrb[44].mxu1 %v2160_v0 }
  0xaa   : > { %921 = vmatprep.mubr.bf16.mxu0 %v2161_v1  ;;  %1049 = vmatprep.mubr.bf16.mxu1 %v2163_v2 }
  0xb1   : > { %922 = vmatmul.mubr.bf16.gmra.mrb[48].mxu0 %v2165_v3  ;;  %1050 = vmatmul.mubr.bf16.gmra.mrb[48].mxu1 %v2166_v4 }
  0xb2   : > { %929 = vmatprep.mubr.bf16.mxu0 %v2167_v5  ;;  %1057 = vmatprep.mubr.bf16.mxu1 %v2169_v6 }
  0xb9   : > { %930 = vmatmul.mubr.bf16.gmra.mrb[52].mxu0 %v2171_v7  ;;  %1058 = vmatmul.mubr.bf16.gmra.mrb[52].mxu1 %v2172_v8 }
  0xba   : > { %937 = vmatprep.mubr.bf16.mxu0 %v2173_v9  ;;  %1065 = vmatprep.mubr.bf16.mxu1 %v2175_v10 }
  0xc1   : > { %938 = vmatmul.mubr.bf16.gmra.mrb[56].mxu0 %v2177_v11  ;;  %1066 = vmatmul.mubr.bf16.gmra.mrb[56].mxu1 %v2178_v12 }
  0xc2   : > { %945 = vmatprep.mubr.bf16.mxu0 %v2179_v13  ;;  %1073 = vmatprep.mubr.bf16.mxu1 %v2181_v14 }
  0xc9   : > { %946 = vmatmul.mubr.bf16.gmra.mrb[60].mxu0 %v2183_v15  ;;  %1074 = vmatmul.mubr.bf16.gmra.mrb[60].mxu1 %v2184_v16 }
 0x124   : > { %v827_v18 = vpop.f32.mrb[0].mxu0  ;;  %v955_v19 = vpop.f32.mrb[0].mxu1 }
 0x125   : > { %v828_v20 = vadd.f32 %v2377_v17, %v827_v18  ;;  %v956_v21 = vadd.f32 %v2377_v17, %v955_v19  ;;  %v829_v22 = vpop.f32.mrb[1].mxu0  ;;  %v957_v23 = vpop.f32.mrb[1].mxu1 }
 0x126   : > { %v830_v24 = vpop.f32.mrb[2].mxu0  ;;  %v958_v25 = vpop.f32.mrb[2].mxu1 }
 0x127   : > { %v831_v26 = vadd.f32 %v2377_v17, %v830_v24  ;;  %v959_v27 = vadd.f32 %v2377_v17, %v958_v25  ;;  %v832_v28 = vpop.f32.mrb[3].mxu0  ;;  %v960_v29 = vpop.f32.mrb[3].mxu1  ;;  %v1082_v30 = vmax.f32 %v828_v20, 0.0  ;;  %v1114_v31 = vmax.f32 %v956_v21, 0.0 }
 0x129   : > { %v1083_v32 = vmax.f32 %v831_v26, 0.0  ;;  %v1115_v33 = vmax.f32 %v959_v27, 0.0 }
 0x12b   : > { %v1828_v34 = vpack.c.bf16 %v1083_v32, %v1082_v30  ;;  %v1908_v35 = vpack.c.bf16 %v1115_v33, %v1114_v31 }
 0x12c   : > { %v835_v36 = vpop.f32.mrb[4].mxu0  ;;  %v963_v37 = vpop.f32.mrb[4].mxu1 }
 0x12d   : > { %1829 = vst [vmem:[%s2387_s29] sm:$0xff] %v1828_v34   ;;  %2000 = vst [vmem:[%s2387_s29 + $0x80] sm:$0xff] %v1908_v35   ;;  %v836_v38 = vadd.f32 %v2377_v17, %v835_v36  ;;  %v964_v39 = vadd.f32 %v2377_v17, %v963_v37  ;;  %v837_v40 = vpop.f32.mrb[5].mxu0  ;;  %v965_v41 = vpop.f32.mrb[5].mxu1 }
 0x12e   : > { %v838_v42 = vpop.f32.mrb[6].mxu0  ;;  %v966_v43 = vpop.f32.mrb[6].mxu1 }
 0x12f   : > { %v839_v44 = vadd.f32 %v2377_v17, %v838_v42  ;;  %v967_v45 = vadd.f32 %v2377_v17, %v966_v43  ;;  %v840_v46 = vpop.f32.mrb[7].mxu0  ;;  %v968_v47 = vpop.f32.mrb[7].mxu1  ;;  %v1084_v48 = vmax.f32 %v836_v38, 0.0  ;;  %v1116_v49 = vmax.f32 %v964_v39, 0.0 }
 0x131   : > { %v1085_v50 = vmax.f32 %v839_v44, 0.0  ;;  %v1117_v51 = vmax.f32 %v967_v45, 0.0 }
 0x133   : > { %v1833_v52 = vpack.c.bf16 %v1085_v50, %v1084_v48  ;;  %v1913_v53 = vpack.c.bf16 %v1117_v51, %v1116_v49 }
 0x134   : > { %v843_v54 = vpop.f32.mrb[8].mxu0  ;;  %v971_v55 = vpop.f32.mrb[8].mxu1 }
 0x135   : > { %1985 = vst [vmem:[%s2387_s29 + $0x8] sm:$0xff] %v1833_v52   ;;  %2001 = vst [vmem:[%s2387_s29 + $0x88] sm:$0xff] %v1913_v53   ;;  %v844_v56 = vadd.f32 %v2377_v17, %v843_v54  ;;  %v972_v57 = vadd.f32 %v2377_v17, %v971_v55  ;;  %v845_v58 = vpop.f32.mrb[9].mxu0  ;;  %v973_v59 = vpop.f32.mrb[9].mxu1 }
 0x136   : > { %v846_v60 = vpop.f32.mrb[10].mxu0  ;;  %v974_v61 = vpop.f32.mrb[10].mxu1 }
 0x137   : > { %v847_v62 = vadd.f32 %v2377_v17, %v846_v60  ;;  %v975_v63 = vadd.f32 %v2377_v17, %v974_v61  ;;  %v848_v0 = vpop.f32.mrb[11].mxu0  ;;  %v976_v1 = vpop.f32.mrb[11].mxu1  ;;  %v1086_v2 = vmax.f32 %v844_v56, 0.0  ;;  %v1118_v3 = vmax.f32 %v972_v57, 0.0 }
 0x139   : > { %v1087_v4 = vmax.f32 %v847_v62, 0.0  ;;  %v1119_v5 = vmax.f32 %v975_v63, 0.0 }
 0x13b   : > { %v1838_v6 = vpack.c.bf16 %v1087_v4, %v1086_v2  ;;  %v1918_v7 = vpack.c.bf16 %v1119_v5, %v1118_v3 }
 0x13c   : > { %v851_v8 = vpop.f32.mrb[12].mxu0  ;;  %v979_v9 = vpop.f32.mrb[12].mxu1 }
 0x13d   : > { %1986 = vst [vmem:[%s2387_s29 + $0x10] sm:$0xff] %v1838_v6   ;;  %2002 = vst [vmem:[%s2387_s29 + $0x90] sm:$0xff] %v1918_v7   ;;  %v852_v10 = vadd.f32 %v2377_v17, %v851_v8  ;;  %v980_v11 = vadd.f32 %v2377_v17, %v979_v9  ;;  %v853_v12 = vpop.f32.mrb[13].mxu0  ;;  %v981_v13 = vpop.f32.mrb[13].mxu1 }
 0x13e   : > { %v854_v14 = vpop.f32.mrb[14].mxu0  ;;  %v982_v15 = vpop.f32.mrb[14].mxu1 }
 0x13f   : > { %v855_v16 = vadd.f32 %v2377_v17, %v854_v14  ;;  %v983_v18 = vadd.f32 %v2377_v17, %v982_v15  ;;  %v856_v19 = vpop.f32.mrb[15].mxu0  ;;  %v984_v20 = vpop.f32.mrb[15].mxu1  ;;  %v1088_v21 = vmax.f32 %v852_v10, 0.0  ;;  %v1120_v22 = vmax.f32 %v980_v11, 0.0 }
 0x141   : > { %v1089_v23 = vmax.f32 %v855_v16, 0.0  ;;  %v1121_v24 = vmax.f32 %v983_v18, 0.0 }
 0x143   : > { %v1843_v25 = vpack.c.bf16 %v1089_v23, %v1088_v21  ;;  %v1923_v26 = vpack.c.bf16 %v1121_v24, %v1120_v22 }
 0x144   : > { %v859_v27 = vpop.f32.mrb[16].mxu0  ;;  %v987_v28 = vpop.f32.mrb[16].mxu1 }
 0x145   : > { %1987 = vst [vmem:[%s2387_s29 + $0x18] sm:$0xff] %v1843_v25   ;;  %2003 = vst [vmem:[%s2387_s29 + $0x98] sm:$0xff] %v1923_v26   ;;  %v860_v29 = vadd.f32 %v2377_v17, %v859_v27  ;;  %v988_v30 = vadd.f32 %v2377_v17, %v987_v28  ;;  %v861_v31 = vpop.f32.mrb[17].mxu0  ;;  %v989_v32 = vpop.f32.mrb[17].mxu1 }
 0x146   : > { %v862_v33 = vpop.f32.mrb[18].mxu0  ;;  %v990_v34 = vpop.f32.mrb[18].mxu1 }
 0x147   : > { %v863_v35 = vadd.f32 %v2377_v17, %v862_v33  ;;  %v991_v36 = vadd.f32 %v2377_v17, %v990_v34  ;;  %v864_v37 = vpop.f32.mrb[19].mxu0  ;;  %v992_v38 = vpop.f32.mrb[19].mxu1  ;;  %v1090_v39 = vmax.f32 %v860_v29, 0.0  ;;  %v1122_v40 = vmax.f32 %v988_v30, 0.0 }
 0x149   : > { %v1091_v41 = vmax.f32 %v863_v35, 0.0  ;;  %v1123_v42 = vmax.f32 %v991_v36, 0.0 }
 0x14b   : > { %v1848_v43 = vpack.c.bf16 %v1091_v41, %v1090_v39  ;;  %v1928_v44 = vpack.c.bf16 %v1123_v42, %v1122_v40 }
 0x14c   : > { %v867_v45 = vpop.f32.mrb[20].mxu0  ;;  %v995_v46 = vpop.f32.mrb[20].mxu1 }
 0x14d   : > { %1988 = vst [vmem:[%s2387_s29 + $0x20] sm:$0xff] %v1848_v43   ;;  %2004 = vst [vmem:[%s2387_s29 + $0xa0] sm:$0xff] %v1928_v44   ;;  %v868_v47 = vadd.f32 %v2377_v17, %v867_v45  ;;  %v996_v48 = vadd.f32 %v2377_v17, %v995_v46  ;;  %v869_v49 = vpop.f32.mrb[21].mxu0  ;;  %v997_v50 = vpop.f32.mrb[21].mxu1 }
 0x14e   : > { %v870_v51 = vpop.f32.mrb[22].mxu0  ;;  %v998_v52 = vpop.f32.mrb[22].mxu1 }
 0x14f   : > { %v871_v53 = vadd.f32 %v2377_v17, %v870_v51  ;;  %v999_v54 = vadd.f32 %v2377_v17, %v998_v52  ;;  %v872_v55 = vpop.f32.mrb[23].mxu0  ;;  %v1000_v56 = vpop.f32.mrb[23].mxu1  ;;  %v1092_v57 = vmax.f32 %v868_v47, 0.0  ;;  %v1124_v58 = vmax.f32 %v996_v48, 0.0 }
 0x151   : > { %v1093_v59 = vmax.f32 %v871_v53, 0.0  ;;  %v1125_v60 = vmax.f32 %v999_v54, 0.0 }
 0x153   : > { %v1853_v61 = vpack.c.bf16 %v1093_v59, %v1092_v57  ;;  %v1933_v62 = vpack.c.bf16 %v1125_v60, %v1124_v58 }
 0x154   : > { %v875_v63 = vpop.f32.mrb[24].mxu0  ;;  %v1003_v0 = vpop.f32.mrb[24].mxu1 }
 0x155   : > { %1989 = vst [vmem:[%s2387_s29 + $0x28] sm:$0xff] %v1853_v61   ;;  %2005 = vst [vmem:[%s2387_s29 + $0xa8] sm:$0xff] %v1933_v62   ;;  %v876_v1 = vadd.f32 %v2377_v17, %v875_v63  ;;  %v1004_v2 = vadd.f32 %v2377_v17, %v1003_v0  ;;  %v877_v3 = vpop.f32.mrb[25].mxu0  ;;  %v1005_v4 = vpop.f32.mrb[25].mxu1 }
 0x156   : > { %v878_v5 = vpop.f32.mrb[26].mxu0  ;;  %v1006_v6 = vpop.f32.mrb[26].mxu1 }
 0x157   : > { %v879_v7 = vadd.f32 %v2377_v17, %v878_v5  ;;  %v1007_v8 = vadd.f32 %v2377_v17, %v1006_v6  ;;  %v880_v9 = vpop.f32.mrb[27].mxu0  ;;  %v1008_v10 = vpop.f32.mrb[27].mxu1  ;;  %v1094_v11 = vmax.f32 %v876_v1, 0.0  ;;  %v1126_v12 = vmax.f32 %v1004_v2, 0.0 }
 0x159   : > { %v1095_v13 = vmax.f32 %v879_v7, 0.0  ;;  %v1127_v14 = vmax.f32 %v1007_v8, 0.0 }
 0x15b   : > { %v1858_v15 = vpack.c.bf16 %v1095_v13, %v1094_v11  ;;  %v1938_v16 = vpack.c.bf16 %v1127_v14, %v1126_v12 }
 0x15c   : > { %v883_v18 = vpop.f32.mrb[28].mxu0  ;;  %v1011_v19 = vpop.f32.mrb[28].mxu1 }
 0x15d   : > { %1990 = vst [vmem:[%s2387_s29 + $0x30] sm:$0xff] %v1858_v15   ;;  %2006 = vst [vmem:[%s2387_s29 + $0xb0] sm:$0xff] %v1938_v16   ;;  %v884_v20 = vadd.f32 %v2377_v17, %v883_v18  ;;  %v1012_v21 = vadd.f32 %v2377_v17, %v1011_v19  ;;  %v885_v22 = vpop.f32.mrb[29].mxu0  ;;  %v1013_v23 = vpop.f32.mrb[29].mxu1 }
 0x15e   : > { %v886_v24 = vpop.f32.mrb[30].mxu0  ;;  %v1014_v25 = vpop.f32.mrb[30].mxu1 }
 0x15f   : > { %v887_v26 = vadd.f32 %v2377_v17, %v886_v24  ;;  %v1015_v27 = vadd.f32 %v2377_v17, %v1014_v25  ;;  %v888_v28 = vpop.f32.mrb[31].mxu0  ;;  %v1016_v29 = vpop.f32.mrb[31].mxu1  ;;  %v1096_v30 = vmax.f32 %v884_v20, 0.0  ;;  %v1128_v31 = vmax.f32 %v1012_v21, 0.0 }
 0x161   : > { %v1097_v32 = vmax.f32 %v887_v26, 0.0  ;;  %v1129_v33 = vmax.f32 %v1015_v27, 0.0 }
 0x163   : > { %v1863_v34 = vpack.c.bf16 %v1097_v32, %v1096_v30  ;;  %v1943_v35 = vpack.c.bf16 %v1129_v33, %v1128_v31 }
 0x164   : > { %v891_v36 = vpop.f32.mrb[32].mxu0  ;;  %v1019_v37 = vpop.f32.mrb[32].mxu1 }
 0x165   : > { %1991 = vst [vmem:[%s2387_s29 + $0x38] sm:$0xff] %v1863_v34   ;;  %2007 = vst [vmem:[%s2387_s29 + $0xb8] sm:$0xff] %v1943_v35   ;;  %v892_v38 = vadd.f32 %v2377_v17, %v891_v36  ;;  %v1020_v39 = vadd.f32 %v2377_v17, %v1019_v37  ;;  %v893_v40 = vpop.f32.mrb[33].mxu0  ;;  %v1021_v41 = vpop.f32.mrb[33].mxu1 }
 0x166   : > { %v894_v42 = vpop.f32.mrb[34].mxu0  ;;  %v1022_v43 = vpop.f32.mrb[34].mxu1 }
 0x167   : > { %v895_v44 = vadd.f32 %v2377_v17, %v894_v42  ;;  %v1023_v45 = vadd.f32 %v2377_v17, %v1022_v43  ;;  %v896_v46 = vpop.f32.mrb[35].mxu0  ;;  %v1024_v47 = vpop.f32.mrb[35].mxu1  ;;  %v1098_v48 = vmax.f32 %v892_v38, 0.0  ;;  %v1130_v49 = vmax.f32 %v1020_v39, 0.0 }
 0x169   : > { %v1099_v50 = vmax.f32 %v895_v44, 0.0  ;;  %v1131_v51 = vmax.f32 %v1023_v45, 0.0 }
 0x16b   : > { %v1868_v52 = vpack.c.bf16 %v1099_v50, %v1098_v48  ;;  %v1948_v53 = vpack.c.bf16 %v1131_v51, %v1130_v49 }
 0x16c   : > { %v899_v54 = vpop.f32.mrb[36].mxu0  ;;  %v1027_v55 = vpop.f32.mrb[36].mxu1 }
 0x16d   : > { %1992 = vst [vmem:[%s2387_s29 + $0x40] sm:$0xff] %v1868_v52   ;;  %2008 = vst [vmem:[%s2387_s29 + $0xc0] sm:$0xff] %v1948_v53   ;;  %v900_v56 = vadd.f32 %v2377_v17, %v899_v54  ;;  %v1028_v57 = vadd.f32 %v2377_v17, %v1027_v55  ;;  %v901_v58 = vpop.f32.mrb[37].mxu0  ;;  %v1029_v59 = vpop.f32.mrb[37].mxu1 }
 0x16e   : > { %v902_v60 = vpop.f32.mrb[38].mxu0  ;;  %v1030_v61 = vpop.f32.mrb[38].mxu1 }
 0x16f   : > { %v903_v62 = vadd.f32 %v2377_v17, %v902_v60  ;;  %v1031_v63 = vadd.f32 %v2377_v17, %v1030_v61  ;;  %v904_v0 = vpop.f32.mrb[39].mxu0  ;;  %v1032_v1 = vpop.f32.mrb[39].mxu1  ;;  %v1100_v2 = vmax.f32 %v900_v56, 0.0  ;;  %v1132_v3 = vmax.f32 %v1028_v57, 0.0 }
 0x171   : > { %v1101_v4 = vmax.f32 %v903_v62, 0.0  ;;  %v1133_v5 = vmax.f32 %v1031_v63, 0.0 }
 0x173   : > { %v1873_v6 = vpack.c.bf16 %v1101_v4, %v1100_v2  ;;  %v1953_v7 = vpack.c.bf16 %v1133_v5, %v1132_v3 }
 0x174   : > { %v907_v8 = vpop.f32.mrb[40].mxu0  ;;  %v1035_v9 = vpop.f32.mrb[40].mxu1 }
 0x175   : > { %1993 = vst [vmem:[%s2387_s29 + $0x48] sm:$0xff] %v1873_v6   ;;  %2009 = vst [vmem:[%s2387_s29 + $0xc8] sm:$0xff] %v1953_v7   ;;  %v908_v10 = vadd.f32 %v2377_v17, %v907_v8  ;;  %v1036_v11 = vadd.f32 %v2377_v17, %v1035_v9  ;;  %v909_v12 = vpop.f32.mrb[41].mxu0  ;;  %v1037_v13 = vpop.f32.mrb[41].mxu1 }
 0x176   : > { %v910_v14 = vpop.f32.mrb[42].mxu0  ;;  %v1038_v15 = vpop.f32.mrb[42].mxu1 }
 0x177   : > { %v911_v16 = vadd.f32 %v2377_v17, %v910_v14  ;;  %v1039_v18 = vadd.f32 %v2377_v17, %v1038_v15  ;;  %v912_v19 = vpop.f32.mrb[43].mxu0  ;;  %v1040_v20 = vpop.f32.mrb[43].mxu1  ;;  %v1102_v21 = vmax.f32 %v908_v10, 0.0  ;;  %v1134_v22 = vmax.f32 %v1036_v11, 0.0 }
 0x179   : > { %v1103_v23 = vmax.f32 %v911_v16, 0.0  ;;  %v1135_v24 = vmax.f32 %v1039_v18, 0.0 }
 0x17b   : > { %v1878_v25 = vpack.c.bf16 %v1103_v23, %v1102_v21  ;;  %v1958_v26 = vpack.c.bf16 %v1135_v24, %v1134_v22 }
 0x17c   : > { %v915_v27 = vpop.f32.mrb[44].mxu0  ;;  %v1043_v28 = vpop.f32.mrb[44].mxu1 }
 0x17d   : > { %1994 = vst [vmem:[%s2387_s29 + $0x50] sm:$0xff] %v1878_v25   ;;  %2010 = vst [vmem:[%s2387_s29 + $0xd0] sm:$0xff] %v1958_v26   ;;  %v916_v29 = vadd.f32 %v2377_v17, %v915_v27  ;;  %v1044_v30 = vadd.f32 %v2377_v17, %v1043_v28  ;;  %v917_v31 = vpop.f32.mrb[45].mxu0  ;;  %v1045_v32 = vpop.f32.mrb[45].mxu1 }
 0x17e   : > { %v918_v33 = vpop.f32.mrb[46].mxu0  ;;  %v1046_v34 = vpop.f32.mrb[46].mxu1 }
 0x17f   : > { %v919_v35 = vadd.f32 %v2377_v17, %v918_v33  ;;  %v1047_v36 = vadd.f32 %v2377_v17, %v1046_v34  ;;  %v920_v37 = vpop.f32.mrb[47].mxu0  ;;  %v1048_v38 = vpop.f32.mrb[47].mxu1  ;;  %v1104_v39 = vmax.f32 %v916_v29, 0.0  ;;  %v1136_v40 = vmax.f32 %v1044_v30, 0.0 }
 0x181   : > { %v1105_v41 = vmax.f32 %v919_v35, 0.0  ;;  %v1137_v42 = vmax.f32 %v1047_v36, 0.0 }
 0x183   : > { %v1883_v43 = vpack.c.bf16 %v1105_v41, %v1104_v39  ;;  %v1963_v44 = vpack.c.bf16 %v1137_v42, %v1136_v40 }
 0x184   : > { %v923_v45 = vpop.f32.mrb[48].mxu0  ;;  %v1051_v46 = vpop.f32.mrb[48].mxu1 }
 0x185   : > { %1995 = vst [vmem:[%s2387_s29 + $0x58] sm:$0xff] %v1883_v43   ;;  %2011 = vst [vmem:[%s2387_s29 + $0xd8] sm:$0xff] %v1963_v44   ;;  %v924_v47 = vadd.f32 %v2377_v17, %v923_v45  ;;  %v1052_v48 = vadd.f32 %v2377_v17, %v1051_v46  ;;  %v925_v49 = vpop.f32.mrb[49].mxu0  ;;  %v1053_v50 = vpop.f32.mrb[49].mxu1 }
 0x186   : > { %v926_v51 = vpop.f32.mrb[50].mxu0  ;;  %v1054_v52 = vpop.f32.mrb[50].mxu1 }
 0x187   : > { %v927_v53 = vadd.f32 %v2377_v17, %v926_v51  ;;  %v1055_v54 = vadd.f32 %v2377_v17, %v1054_v52  ;;  %v928_v55 = vpop.f32.mrb[51].mxu0  ;;  %v1056_v56 = vpop.f32.mrb[51].mxu1  ;;  %v1106_v57 = vmax.f32 %v924_v47, 0.0  ;;  %v1138_v58 = vmax.f32 %v1052_v48, 0.0 }
 0x189   : > { %v1107_v59 = vmax.f32 %v927_v53, 0.0  ;;  %v1139_v60 = vmax.f32 %v1055_v54, 0.0 }
 0x18b   : > { %v1888_v61 = vpack.c.bf16 %v1107_v59, %v1106_v57  ;;  %v1968_v62 = vpack.c.bf16 %v1139_v60, %v1138_v58 }
 0x18c   : > { %v931_v63 = vpop.f32.mrb[52].mxu0  ;;  %v1059_v0 = vpop.f32.mrb[52].mxu1 }
 0x18d   : > { %1996 = vst [vmem:[%s2387_s29 + $0x60] sm:$0xff] %v1888_v61   ;;  %2012 = vst [vmem:[%s2387_s29 + $0xe0] sm:$0xff] %v1968_v62   ;;  %v932_v1 = vadd.f32 %v2377_v17, %v931_v63  ;;  %v1060_v2 = vadd.f32 %v2377_v17, %v1059_v0  ;;  %v933_v3 = vpop.f32.mrb[53].mxu0  ;;  %v1061_v4 = vpop.f32.mrb[53].mxu1 }
 0x18e   : > { %v934_v5 = vpop.f32.mrb[54].mxu0  ;;  %v1062_v6 = vpop.f32.mrb[54].mxu1 }
 0x18f   : > { %v935_v7 = vadd.f32 %v2377_v17, %v934_v5  ;;  %v1063_v8 = vadd.f32 %v2377_v17, %v1062_v6  ;;  %v936_v9 = vpop.f32.mrb[55].mxu0  ;;  %v1064_v10 = vpop.f32.mrb[55].mxu1  ;;  %v1108_v11 = vmax.f32 %v932_v1, 0.0  ;;  %v1140_v12 = vmax.f32 %v1060_v2, 0.0 }
 0x191   : > { %v1109_v13 = vmax.f32 %v935_v7, 0.0  ;;  %v1141_v14 = vmax.f32 %v1063_v8, 0.0 }
 0x193   : > { %v1893_v15 = vpack.c.bf16 %v1109_v13, %v1108_v11  ;;  %v1973_v16 = vpack.c.bf16 %v1141_v14, %v1140_v12 }
 0x194   : > { %v939_v18 = vpop.f32.mrb[56].mxu0  ;;  %v1067_v19 = vpop.f32.mrb[56].mxu1 }
 0x195   : > { %1997 = vst [vmem:[%s2387_s29 + $0x68] sm:$0xff] %v1893_v15   ;;  %2013 = vst [vmem:[%s2387_s29 + $0xe8] sm:$0xff] %v1973_v16   ;;  %v940_v20 = vadd.f32 %v2377_v17, %v939_v18  ;;  %v1068_v21 = vadd.f32 %v2377_v17, %v1067_v19  ;;  %v941_v22 = vpop.f32.mrb[57].mxu0  ;;  %v1069_v23 = vpop.f32.mrb[57].mxu1 }
 0x196   : > { %v942_v24 = vpop.f32.mrb[58].mxu0  ;;  %v1070_v25 = vpop.f32.mrb[58].mxu1 }
 0x197   : > { %v943_v26 = vadd.f32 %v2377_v17, %v942_v24  ;;  %v1071_v27 = vadd.f32 %v2377_v17, %v1070_v25  ;;  %v944_v28 = vpop.f32.mrb[59].mxu0  ;;  %v1072_v29 = vpop.f32.mrb[59].mxu1  ;;  %v1110_v30 = vmax.f32 %v940_v20, 0.0  ;;  %v1142_v31 = vmax.f32 %v1068_v21, 0.0 }
 0x199   : > { %v1111_v32 = vmax.f32 %v943_v26, 0.0  ;;  %v1143_v33 = vmax.f32 %v1071_v27, 0.0 }
 0x19b   : > { %v1898_v34 = vpack.c.bf16 %v1111_v32, %v1110_v30  ;;  %v1978_v35 = vpack.c.bf16 %v1143_v33, %v1142_v31 }
 0x19c   : > { %v947_v36 = vpop.f32.mrb[60].mxu0  ;;  %v1075_v37 = vpop.f32.mrb[60].mxu1 }
 0x19d   : > { %1998 = vst [vmem:[%s2387_s29 + $0x70] sm:$0xff] %v1898_v34   ;;  %2014 = vst [vmem:[%s2387_s29 + $0xf0] sm:$0xff] %v1978_v35   ;;  %v948_v38 = vadd.f32 %v2377_v17, %v947_v36  ;;  %v1076_v39 = vadd.f32 %v2377_v17, %v1075_v37  ;;  %v949_v40 = vpop.f32.mrb[61].mxu0  ;;  %v1077_v41 = vpop.f32.mrb[61].mxu1 }
 0x19e   : > { %v950_v42 = vpop.f32.mrb[62].mxu0  ;;  %v1078_v43 = vpop.f32.mrb[62].mxu1 }
 0x19f   : > { %v951_v44 = vadd.f32 %v2377_v17, %v950_v42  ;;  %v1079_v45 = vadd.f32 %v2377_v17, %v1078_v43  ;;  %v952_v46 = vpop.f32.mrb[63].mxu0  ;;  %v1080_v47 = vpop.f32.mrb[63].mxu1  ;;  %v1112_v48 = vmax.f32 %v948_v38, 0.0  ;;  %v1144_v49 = vmax.f32 %v1076_v39, 0.0 }
 0x1a1   : > { %v1113_v50 = vmax.f32 %v951_v44, 0.0  ;;  %v1145_v51 = vmax.f32 %v1079_v45, 0.0 }
 0x1a3   : > { %v1903_v52 = vpack.c.bf16 %v1113_v50, %v1112_v48  ;;  %v1983_v53 = vpack.c.bf16 %v1145_v51, %v1144_v49 }
 0x1a5   : > { %1999 = vst [vmem:[%s2387_s29 + $0x78] sm:$0xff] %v1903_v52   ;;  %2015 = vst [vmem:[%s2387_s29 + $0xf8] sm:$0xff] %v1983_v53  }
 0x1a6 PF: > { %s13_s14 = sadd.s32 1, %s2207_s14   ;;  %s2494_s12 = smov %s2203_s13 }
 0x1a7   : > { %p10_p5 = scmp.ge.s32.totalorder %s13_s14, 6   ;;  %s2495_s13 = smov %s2497_s15 }
 0x1a9   :  { %12 = sbr.rel (!%p10_p5) target bundleno = 2 (0x2), region = 68 }

// kernel: autoencoder_forward.15
= control target key start
LH: loop header
LB: loop body
LE: loop exit
PB: predicated region body
PF: predicated region fallthrough
CT: control target
= control target key end

     0   :  { %s8714_s12 = smov 0   ;;  %s8716_s13 = smov 0   ;;  %s10131_s0 = inlined_call_operand.vmem [shape: bf16[4,2048,128], index: 0, kind: input, shape index: {}]   ;;  %s10132_s1 = inlined_call_operand.vmem [shape: bf16[4,128,128], index: 1, kind: input, shape index: {}]   ;;  %s10133_s2 = inlined_call_operand.vmem [shape: f32[1,128], index: 2, kind: input, shape index: {}]   ;;  %s10134_s3 = inlined_call_operand.vmem [shape: bf16[4,2048,128], index: 3, kind: output, shape index: {}]  }
   0x1   :  { %s8718_s14 = smov 0  }
   0x2 LB: > { %s32_s15 = sadd.s32 1, %s8688_s13  ;;  %p5374_p0 = scmp.ge.s32.totalorder %s8692_s14, 1  ;;  %s8692_s14 = sphi %s8718_s14, %s13_s14   ;;  %s8688_s13 = sphi %s8716_s13, %s10260_s13   ;;  %s8684_s12 = sphi %s8714_s12, %s10259_s12  }
   0x3   : > { %p34_p1 = scmp.ge.s32.totalorder %s32_s15, 4  ;;  %p190_p2 = scmp.lt.s32.totalorder %s8692_s14, 5 }
   0x5   : > { %s10262_s15 = smov (%p34_p1, %s32_s15), 0  ;;  %p191_p3 = pnand %p5374_p0, %p190_p2 }
   0x7   : > { %194 = sbr.rel (%p191_p3) target bundleno = 800 (0x320), region = 32 }
   0xe   : > { %p237_p4 = scmp.lt.s32.totalorder %s8684_s12, 3 }
  0x10   : > { %s10264_s12 = smov (!%p237_p4, %s8684_s12), 3 }
  0x11   : > { %s6033_s16 = sshll.u32 %s10264_s12, 6  ;;  %s6032_s20 = sshll.u32 %s10264_s12, 10 }
  0x12   : > { %s8738_s19 = scalar_lea.vmem %s10132_s1, %s6033_s16  ;;  %s8749_s23 = scalar_lea.vmem %s10131_s0, %s6032_s20 }
  0x13   : > { %v7506_v0 = vld [vmem:[%s8738_s19] sm:$0xff]   ;;  %v7507_v1 = vld [vmem:[%s8738_s19 + $0x8] sm:$0xff]   ;;  %v7508_v2 = vld [vmem:[%s8738_s19 + $0x10] sm:$0xff]   ;;  %s8946_s28 = scalar_lea.vmem %s10134_s3, %s6032_s20 }
  0x14   : > { %7194 = vmatprep.subr.bf16.mxu0 %v7506_v0  ;;  %7466 = vmatprep.subr.bf16.mxu1 %v7506_v0  ;;  %v7509_v3 = vld [vmem:[%s8738_s19 + $0x18] sm:$0xff]   ;;  %v7514_v4 = vld [vmem:[%s8749_s23] sm:$0xff]   ;;  %v7511_v7 = vld [vmem:[%s8738_s19 + $0x28] sm:$0xff]  }
  0x15   : > { %7195 = vmatpush3.bf16.msra.mxu0 %v7506_v0  ;;  %7474 = vmatpush3.bf16.msra.mxu1 %v7506_v0  ;;  %v7515_v5 = vld [vmem:[%s8749_s23 + $0x200] sm:$0xff]   ;;  %v7512_v8 = vld [vmem:[%s8738_s19 + $0x30] sm:$0xff]   ;;  %v7513_v9 = vld [vmem:[%s8738_s19 + $0x38] sm:$0xff]  }
  0x16   : > { %7196 = vmatprep.subr.bf16.mxu0 %v7507_v1  ;;  %7467 = vmatprep.subr.bf16.mxu1 %v7507_v1  ;;  %v7510_v6 = vld [vmem:[%s8738_s19 + $0x20] sm:$0xff]   ;;  %v7516_v10 = vld [vmem:[%s8749_s23 + $0x8] sm:$0xff]   ;;  %v7518_v12 = vld [vmem:[%s8749_s23 + $0x10] sm:$0xff]  }
  0x17   : > { %7210 = vmatprep.mubr.bf16.mxu0 %v7514_v4  ;;  %7338 = vmatprep.mubr.bf16.mxu1 %v7515_v5  ;;  %v7517_v11 = vld [vmem:[%s8749_s23 + $0x208] sm:$0xff]   ;;  %v7519_v13 = vld [vmem:[%s8749_s23 + $0x210] sm:$0xff]   ;;  %v7520_v14 = vld [vmem:[%s8749_s23 + $0x18] sm:$0xff]  }
  0x18   : > { %v7521_v15 = vld [vmem:[%s8749_s23 + $0x218] sm:$0xff]   ;;  %v7522_v16 = vld [vmem:[%s8749_s23 + $0x20] sm:$0xff]   ;;  %v7524_v18 = vld [vmem:[%s8749_s23 + $0x28] sm:$0xff]  }
  0x19   : > { %7197 = vmatpush3.bf16.msra.mxu0 %v7507_v1  ;;  %7475 = vmatpush3.bf16.msra.mxu1 %v7507_v1  ;;  %v7523_v17 = vld [vmem:[%s8749_s23 + $0x220] sm:$0xff]   ;;  %v7525_v19 = vld [vmem:[%s8749_s23 + $0x228] sm:$0xff]   ;;  %v7526_v20 = vld [vmem:[%s8749_s23 + $0x30] sm:$0xff]  }
  0x1a   : > { %7198 = vmatprep.subr.bf16.mxu0 %v7508_v2  ;;  %7468 = vmatprep.subr.bf16.mxu1 %v7508_v2  ;;  %v7527_v21 = vld [vmem:[%s8749_s23 + $0x230] sm:$0xff]   ;;  %v7528_v22 = vld [vmem:[%s8749_s23 + $0x38] sm:$0xff]   ;;  %v7530_v24 = vld [vmem:[%s8749_s23 + $0x40] sm:$0xff]  }
  0x1b   : > { %v7529_v23 = vld [vmem:[%s8749_s23 + $0x238] sm:$0xff]   ;;  %v7531_v25 = vld [vmem:[%s8749_s23 + $0x240] sm:$0xff]   ;;  %v7532_v26 = vld [vmem:[%s8749_s23 + $0x48] sm:$0xff]  }
  0x1c   : > { %v7533_v27 = vld [vmem:[%s8749_s23 + $0x248] sm:$0xff]   ;;  %v7534_v28 = vld [vmem:[%s8749_s23 + $0x50] sm:$0xff]   ;;  %v7536_v30 = vld [vmem:[%s8749_s23 + $0x58] sm:$0xff]  }
  0x1d   : > { %7199 = vmatpush3.bf16.msra.mxu0 %v7508_v2  ;;  %7476 = vmatpush3.bf16.msra.mxu1 %v7508_v2  ;;  %v7535_v29 = vld [vmem:[%s8749_s23 + $0x250] sm:$0xff]   ;;  %v7537_v31 = vld [vmem:[%s8749_s23 + $0x258] sm:$0xff]   ;;  %v7538_v32 = vld [vmem:[%s8749_s23 + $0x60] sm:$0xff]  }
  0x1e   : > { %7200 = vmatprep.subr.bf16.mxu0 %v7509_v3  ;;  %7469 = vmatprep.subr.bf16.mxu1 %v7509_v3  ;;  %v7539_v33 = vld [vmem:[%s8749_s23 + $0x260] sm:$0xff]   ;;  %v7540_v34 = vld [vmem:[%s8749_s23 + $0x68] sm:$0xff]   ;;  %v7542_v36 = vld [vmem:[%s8749_s23 + $0x70] sm:$0xff]  }
  0x1f   : > { %v7541_v35 = vld [vmem:[%s8749_s23 + $0x268] sm:$0xff]   ;;  %v7543_v37 = vld [vmem:[%s8749_s23 + $0x270] sm:$0xff]   ;;  %v7544_v38 = vld [vmem:[%s8749_s23 + $0x78] sm:$0xff]  }
  0x20   : > { %v7545_v39 = vld [vmem:[%s8749_s23 + $0x278] sm:$0xff]   ;;  %v7546_v40 = vld [vmem:[%s8749_s23 + $0x80] sm:$0xff]   ;;  %v7548_v42 = vld [vmem:[%s8749_s23 + $0x88] sm:$0xff]  }
  0x21   : > { %7201 = vmatpush3.bf16.msra.mxu0 %v7509_v3  ;;  %7477 = vmatpush3.bf16.msra.mxu1 %v7509_v3  ;;  %v7547_v41 = vld [vmem:[%s8749_s23 + $0x280] sm:$0xff]   ;;  %v7549_v43 = vld [vmem:[%s8749_s23 + $0x288] sm:$0xff]   ;;  %v7550_v44 = vld [vmem:[%s8749_s23 + $0x90] sm:$0xff]  }
  0x22   : > { %7202 = vmatprep.subr.bf16.mxu0 %v7510_v6  ;;  %7470 = vmatprep.subr.bf16.mxu1 %v7510_v6  ;;  %v7551_v45 = vld [vmem:[%s8749_s23 + $0x290] sm:$0xff]   ;;  %v7552_v46 = vld [vmem:[%s8749_s23 + $0x98] sm:$0xff]   ;;  %v7554_v48 = vld [vmem:[%s8749_s23 + $0xa0] sm:$0xff]  }
  0x23   : > { %v7553_v47 = vld [vmem:[%s8749_s23 + $0x298] sm:$0xff]   ;;  %v7555_v49 = vld [vmem:[%s8749_s23 + $0x2a0] sm:$0xff]   ;;  %v7556_v50 = vld [vmem:[%s8749_s23 + $0xa8] sm:$0xff]  }
  0x24   : > { %v7557_v51 = vld [vmem:[%s8749_s23 + $0x2a8] sm:$0xff]   ;;  %v7558_v52 = vld [vmem:[%s8749_s23 + $0xb0] sm:$0xff]   ;;  %v7560_v54 = vld [vmem:[%s8749_s23 + $0xb8] sm:$0xff]  }
  0x25   : > { %7203 = vmatpush3.bf16.msra.mxu0 %v7510_v6  ;;  %7478 = vmatpush3.bf16.msra.mxu1 %v7510_v6  ;;  %v7559_v53 = vld [vmem:[%s8749_s23 + $0x2b0] sm:$0xff]   ;;  %v7561_v55 = vld [vmem:[%s8749_s23 + $0x2b8] sm:$0xff]   ;;  %v7562_v56 = vld [vmem:[%s8749_s23 + $0xc0] sm:$0xff]  }
  0x26   : > { %7204 = vmatprep.subr.bf16.mxu0 %v7511_v7  ;;  %7471 = vmatprep.subr.bf16.mxu1 %v7511_v7  ;;  %v7563_v57 = vld [vmem:[%s8749_s23 + $0x2c0] sm:$0xff]   ;;  %v7564_v58 = vld [vmem:[%s8749_s23 + $0xc8] sm:$0xff]   ;;  %v7566_v60 = vld [vmem:[%s8749_s23 + $0xd0] sm:$0xff]  }
  0x27   : > { %v7565_v59 = vld [vmem:[%s8749_s23 + $0x2c8] sm:$0xff]   ;;  %v7567_v61 = vld [vmem:[%s8749_s23 + $0x2d0] sm:$0xff]   ;;  %v7568_v62 = vld [vmem:[%s8749_s23 + $0xd8] sm:$0xff]  }
  0x28   : > { %v7569_v63 = vld [vmem:[%s8749_s23 + $0x2d8] sm:$0xff]   ;;  %v7570_v0 = vld [vmem:[%s8749_s23 + $0xe0] sm:$0xff]   ;;  %v7572_v2 = vld [vmem:[%s8749_s23 + $0xe8] sm:$0xff]  }
  0x29   : > { %7205 = vmatpush3.bf16.msra.mxu0 %v7511_v7  ;;  %7479 = vmatpush3.bf16.msra.mxu1 %v7511_v7  ;;  %v7571_v1 = vld [vmem:[%s8749_s23 + $0x2e0] sm:$0xff]   ;;  %v7573_v3 = vld [vmem:[%s8749_s23 + $0x2e8] sm:$0xff]   ;;  %v7574_v4 = vld [vmem:[%s8749_s23 + $0xf0] sm:$0xff]  }
  0x2a   : > { %7206 = vmatprep.subr.bf16.mxu0 %v7512_v8  ;;  %7472 = vmatprep.subr.bf16.mxu1 %v7512_v8  ;;  %v7575_v5 = vld [vmem:[%s8749_s23 + $0x2f0] sm:$0xff]   ;;  %v7576_v6 = vld [vmem:[%s8749_s23 + $0xf8] sm:$0xff]  }
  0x2b   : > { %v7577_v7 = vld [vmem:[%s8749_s23 + $0x2f8] sm:$0xff]  }
  0x2d   : > { %7207 = vmatpush3.bf16.msra.mxu0 %v7512_v8  ;;  %7480 = vmatpush3.bf16.msra.mxu1 %v7512_v8  ;;  %v7578_v8 = vld [vmem:[%s8749_s23 + $0x100] sm:$0xff]  }
  0x2e   : > { %7208 = vmatprep.subr.bf16.mxu0 %v7513_v9  ;;  %7473 = vmatprep.subr.bf16.mxu1 %v7513_v9 }
  0x31   : > { %7209 = vmatpush3.bf16.msra.mxu0 %v7513_v9  ;;  %7481 = vmatpush3.bf16.msra.mxu1 %v7513_v9  ;;  %v7579_v9 = vld [vmem:[%s8749_s23 + $0x300] sm:$0xff]  }
  0x34   : > { %7211 = vmatmul.mubr.bf16.vlgmr.msra.gmra.mrb[0].mxu0 %v7516_v10  ;;  %7339 = vmatmul.mubr.bf16.vlgmr.msra.gmra.mrb[0].mxu1 %v7517_v11  ;;  %v7580_v10 = vld [vmem:[%s8749_s23 + $0x108] sm:$0xff]  }
  0x35   : > { %7214 = vmatprep.mubr.bf16.mxu0 %v7518_v12  ;;  %7342 = vmatprep.mubr.bf16.mxu1 %v7519_v13  ;;  %v7581_v11 = vld [vmem:[%s8749_s23 + $0x308] sm:$0xff]   ;;  %v7582_v12 = vld [vmem:[%s8749_s23 + $0x110] sm:$0xff]  }
  0x36   : > { %v7583_v13 = vld [vmem:[%s8749_s23 + $0x310] sm:$0xff]  }
  0x3c   : > { %7215 = vmatmul.mubr.bf16.gmra.mrb[4].mxu0 %v7520_v14  ;;  %7343 = vmatmul.mubr.bf16.gmra.mrb[4].mxu1 %v7521_v15  ;;  %v7584_v14 = vld [vmem:[%s8749_s23 + $0x118] sm:$0xff]  }
  0x3d   : > { %7218 = vmatprep.mubr.bf16.mxu0 %v7522_v16  ;;  %7346 = vmatprep.mubr.bf16.mxu1 %v7523_v17  ;;  %v7585_v15 = vld [vmem:[%s8749_s23 + $0x318] sm:$0xff]   ;;  %v7586_v16 = vld [vmem:[%s8749_s23 + $0x120] sm:$0xff]  }
  0x3e   : > { %v7587_v17 = vld [vmem:[%s8749_s23 + $0x320] sm:$0xff]  }
  0x44   : > { %7219 = vmatmul.mubr.bf16.gmra.mrb[8].mxu0 %v7524_v18  ;;  %7347 = vmatmul.mubr.bf16.gmra.mrb[8].mxu1 %v7525_v19  ;;  %v7588_v18 = vld [vmem:[%s8749_s23 + $0x128] sm:$0xff]  }
  0x45   : > { %7222 = vmatprep.mubr.bf16.mxu0 %v7526_v20  ;;  %7350 = vmatprep.mubr.bf16.mxu1 %v7527_v21  ;;  %v7589_v19 = vld [vmem:[%s8749_s23 + $0x328] sm:$0xff]   ;;  %v7590_v20 = vld [vmem:[%s8749_s23 + $0x130] sm:$0xff]  }
  0x46   : > { %v7591_v21 = vld [vmem:[%s8749_s23 + $0x330] sm:$0xff]  }
  0x4c   : > { %7223 = vmatmul.mubr.bf16.gmra.mrb[12].mxu0 %v7528_v22  ;;  %7351 = vmatmul.mubr.bf16.gmra.mrb[12].mxu1 %v7529_v23  ;;  %v7592_v22 = vld [vmem:[%s8749_s23 + $0x138] sm:$0xff]  }
  0x4d   : > { %7226 = vmatprep.mubr.bf16.mxu0 %v7530_v24  ;;  %7354 = vmatprep.mubr.bf16.mxu1 %v7531_v25  ;;  %v7593_v23 = vld [vmem:[%s8749_s23 + $0x338] sm:$0xff]   ;;  %v7594_v24 = vld [vmem:[%s8749_s23 + $0x140] sm:$0xff]  }
  0x4e   : > { %v7595_v25 = vld [vmem:[%s8749_s23 + $0x340] sm:$0xff]  }
  0x54   : > { %7227 = vmatmul.mubr.bf16.gmra.mrb[16].mxu0 %v7532_v26  ;;  %7355 = vmatmul.mubr.bf16.gmra.mrb[16].mxu1 %v7533_v27  ;;  %v7596_v26 = vld [vmem:[%s8749_s23 + $0x148] sm:$0xff]  }
  0x55   : > { %7230 = vmatprep.mubr.bf16.mxu0 %v7534_v28  ;;  %7358 = vmatprep.mubr.bf16.mxu1 %v7535_v29  ;;  %v7597_v27 = vld [vmem:[%s8749_s23 + $0x348] sm:$0xff]   ;;  %v7598_v28 = vld [vmem:[%s8749_s23 + $0x150] sm:$0xff]  }
  0x56   : > { %v7599_v29 = vld [vmem:[%s8749_s23 + $0x350] sm:$0xff]  }
  0x5c   : > { %7231 = vmatmul.mubr.bf16.gmra.mrb[20].mxu0 %v7536_v30  ;;  %7359 = vmatmul.mubr.bf16.gmra.mrb[20].mxu1 %v7537_v31  ;;  %v7600_v30 = vld [vmem:[%s8749_s23 + $0x158] sm:$0xff]  }
  0x5d   : > { %7234 = vmatprep.mubr.bf16.mxu0 %v7538_v32  ;;  %7362 = vmatprep.mubr.bf16.mxu1 %v7539_v33  ;;  %v7601_v31 = vld [vmem:[%s8749_s23 + $0x358] sm:$0xff]   ;;  %v7602_v32 = vld [vmem:[%s8749_s23 + $0x160] sm:$0xff]  }
  0x5e   : > { %v7603_v33 = vld [vmem:[%s8749_s23 + $0x360] sm:$0xff]  }
  0x64   : > { %7235 = vmatmul.mubr.bf16.gmra.mrb[24].mxu0 %v7540_v34  ;;  %7363 = vmatmul.mubr.bf16.gmra.mrb[24].mxu1 %v7541_v35  ;;  %v7604_v34 = vld [vmem:[%s8749_s23 + $0x168] sm:$0xff]  }
  0x65   : > { %7238 = vmatprep.mubr.bf16.mxu0 %v7542_v36  ;;  %7366 = vmatprep.mubr.bf16.mxu1 %v7543_v37  ;;  %v7605_v35 = vld [vmem:[%s8749_s23 + $0x368] sm:$0xff]   ;;  %v7606_v36 = vld [vmem:[%s8749_s23 + $0x170] sm:$0xff]  }
  0x66   : > { %v7607_v37 = vld [vmem:[%s8749_s23 + $0x370] sm:$0xff]  }
  0x6c   : > { %7239 = vmatmul.mubr.bf16.gmra.mrb[28].mxu0 %v7544_v38  ;;  %7367 = vmatmul.mubr.bf16.gmra.mrb[28].mxu1 %v7545_v39  ;;  %v7608_v38 = vld [vmem:[%s8749_s23 + $0x178] sm:$0xff]  }
  0x6d   : > { %7242 = vmatprep.mubr.bf16.mxu0 %v7546_v40  ;;  %7370 = vmatprep.mubr.bf16.mxu1 %v7547_v41  ;;  %v7609_v39 = vld [vmem:[%s8749_s23 + $0x378] sm:$0xff]   ;;  %v7610_v40 = vld [vmem:[%s8749_s23 + $0x180] sm:$0xff]  }
  0x6e   : > { %v7611_v41 = vld [vmem:[%s8749_s23 + $0x380] sm:$0xff]  }
  0x74   : > { %7243 = vmatmul.mubr.bf16.gmra.mrb[32].mxu0 %v7548_v42  ;;  %7371 = vmatmul.mubr.bf16.gmra.mrb[32].mxu1 %v7549_v43  ;;  %v7612_v42 = vld [vmem:[%s8749_s23 + $0x188] sm:$0xff]  }
  0x75   : > { %7246 = vmatprep.mubr.bf16.mxu0 %v7550_v44  ;;  %7374 = vmatprep.mubr.bf16.mxu1 %v7551_v45  ;;  %v7613_v43 = vld [vmem:[%s8749_s23 + $0x388] sm:$0xff]   ;;  %v7614_v44 = vld [vmem:[%s8749_s23 + $0x190] sm:$0xff]  }
  0x76   : > { %v7615_v45 = vld [vmem:[%s8749_s23 + $0x390] sm:$0xff]  }
  0x7c   : > { %7247 = vmatmul.mubr.bf16.gmra.mrb[36].mxu0 %v7552_v46  ;;  %7375 = vmatmul.mubr.bf16.gmra.mrb[36].mxu1 %v7553_v47  ;;  %v7616_v46 = vld [vmem:[%s8749_s23 + $0x198] sm:$0xff]  }
  0x7d   : > { %7250 = vmatprep.mubr.bf16.mxu0 %v7554_v48  ;;  %7378 = vmatprep.mubr.bf16.mxu1 %v7555_v49  ;;  %v7617_v47 = vld [vmem:[%s8749_s23 + $0x398] sm:$0xff]   ;;  %v7618_v48 = vld [vmem:[%s8749_s23 + $0x1a0] sm:$0xff]  }
  0x7e   : > { %v7619_v49 = vld [vmem:[%s8749_s23 + $0x3a0] sm:$0xff]  }
  0x84   : > { %7251 = vmatmul.mubr.bf16.gmra.mrb[40].mxu0 %v7556_v50  ;;  %7379 = vmatmul.mubr.bf16.gmra.mrb[40].mxu1 %v7557_v51  ;;  %v7620_v50 = vld [vmem:[%s8749_s23 + $0x1a8] sm:$0xff]  }
  0x85   : > { %7254 = vmatprep.mubr.bf16.mxu0 %v7558_v52  ;;  %7382 = vmatprep.mubr.bf16.mxu1 %v7559_v53  ;;  %v7621_v51 = vld [vmem:[%s8749_s23 + $0x3a8] sm:$0xff]   ;;  %v7622_v52 = vld [vmem:[%s8749_s23 + $0x1b0] sm:$0xff]  }
  0x86   : > { %v7623_v53 = vld [vmem:[%s8749_s23 + $0x3b0] sm:$0xff]  }
  0x8c   : > { %7255 = vmatmul.mubr.bf16.gmra.mrb[44].mxu0 %v7560_v54  ;;  %7383 = vmatmul.mubr.bf16.gmra.mrb[44].mxu1 %v7561_v55  ;;  %v8869_v54 = vld [vmem:[%s10133_s2] ss:$0 sm:$0xff] }
  0x8d   : > { %7258 = vmatprep.mubr.bf16.mxu0 %v7562_v56  ;;  %7386 = vmatprep.mubr.bf16.mxu1 %v7563_v57 }
  0x94   : > { %7259 = vmatmul.mubr.bf16.gmra.mrb[48].mxu0 %v7564_v58  ;;  %7387 = vmatmul.mubr.bf16.gmra.mrb[48].mxu1 %v7565_v59 }
  0x95   : > { %7262 = vmatprep.mubr.bf16.mxu0 %v7566_v60  ;;  %7390 = vmatprep.mubr.bf16.mxu1 %v7567_v61  ;;  %v7624_v61 = vld [vmem:[%s8749_s23 + $0x1b8] sm:$0xff]  }
  0x9c   : > { %7263 = vmatmul.mubr.bf16.gmra.mrb[52].mxu0 %v7568_v62  ;;  %7391 = vmatmul.mubr.bf16.gmra.mrb[52].mxu1 %v7569_v63  ;;  %v7625_v62 = vld [vmem:[%s8749_s23 + $0x3b8] sm:$0xff]  }
  0x9d   : > { %7266 = vmatprep.mubr.bf16.mxu0 %v7570_v0  ;;  %7394 = vmatprep.mubr.bf16.mxu1 %v7571_v1 }
  0xa4   : > { %7267 = vmatmul.mubr.bf16.gmra.mrb[56].mxu0 %v7572_v2  ;;  %7395 = vmatmul.mubr.bf16.gmra.mrb[56].mxu1 %v7573_v3  ;;  %v7626_v3 = vld [vmem:[%s8749_s23 + $0x1c0] sm:$0xff]  }
  0xa5   : > { %7270 = vmatprep.mubr.bf16.mxu0 %v7574_v4  ;;  %7398 = vmatprep.mubr.bf16.mxu1 %v7575_v5  ;;  %v7627_v4 = vld [vmem:[%s8749_s23 + $0x3c0] sm:$0xff]  }
  0xac   : > { %7271 = vmatmul.mubr.bf16.gmra.mrb[60].mxu0 %v7576_v6  ;;  %7399 = vmatmul.mubr.bf16.gmra.mrb[60].mxu1 %v7577_v7 }
  0xad   : > { %7274 = vmatprep.mubr.bf16.mxu0 %v7578_v8  ;;  %7402 = vmatprep.mubr.bf16.mxu1 %v7579_v9 }
  0xb4   : > { %7275 = vmatmul.mubr.bf16.gmra.mrb[64].mxu0 %v7580_v10  ;;  %7403 = vmatmul.mubr.bf16.gmra.mrb[64].mxu1 %v7581_v11 }
  0xb5   : > { %7278 = vmatprep.mubr.bf16.mxu0 %v7582_v12  ;;  %7406 = vmatprep.mubr.bf16.mxu1 %v7583_v13 }
  0xbc   : > { %7279 = vmatmul.mubr.bf16.gmra.mrb[68].mxu0 %v7584_v14  ;;  %7407 = vmatmul.mubr.bf16.gmra.mrb[68].mxu1 %v7585_v15 }
  0xbd   : > { %7282 = vmatprep.mubr.bf16.mxu0 %v7586_v16  ;;  %7410 = vmatprep.mubr.bf16.mxu1 %v7587_v17 }
  0xc4   : > { %7283 = vmatmul.mubr.bf16.gmra.mrb[72].mxu0 %v7588_v18  ;;  %7411 = vmatmul.mubr.bf16.gmra.mrb[72].mxu1 %v7589_v19 }
  0xc5   : > { %7286 = vmatprep.mubr.bf16.mxu0 %v7590_v20  ;;  %7414 = vmatprep.mubr.bf16.mxu1 %v7591_v21 }
  0xcc   : > { %7287 = vmatmul.mubr.bf16.gmra.mrb[76].mxu0 %v7592_v22  ;;  %7415 = vmatmul.mubr.bf16.gmra.mrb[76].mxu1 %v7593_v23 }
  0xcd   : > { %7290 = vmatprep.mubr.bf16.mxu0 %v7594_v24  ;;  %7418 = vmatprep.mubr.bf16.mxu1 %v7595_v25  ;;  %v7628_v25 = vld [vmem:[%s8749_s23 + $0x1c8] sm:$0xff]  }
  0xd4   : > { %7291 = vmatmul.mubr.bf16.gmra.mrb[80].mxu0 %v7596_v26  ;;  %7419 = vmatmul.mubr.bf16.gmra.mrb[80].mxu1 %v7597_v27  ;;  %v7629_v26 = vld [vmem:[%s8749_s23 + $0x3c8] sm:$0xff]  }
  0xd5   : > { %7294 = vmatprep.mubr.bf16.mxu0 %v7598_v28  ;;  %7422 = vmatprep.mubr.bf16.mxu1 %v7599_v29 }
  0xdc   : > { %7295 = vmatmul.mubr.bf16.gmra.mrb[84].mxu0 %v7600_v30  ;;  %7423 = vmatmul.mubr.bf16.gmra.mrb[84].mxu1 %v7601_v31  ;;  %v7630_v31 = vld [vmem:[%s8749_s23 + $0x1d0] sm:$0xff]  }
  0xdd   : > { %7298 = vmatprep.mubr.bf16.mxu0 %v7602_v32  ;;  %7426 = vmatprep.mubr.bf16.mxu1 %v7603_v33  ;;  %v7631_v32 = vld [vmem:[%s8749_s23 + $0x3d0] sm:$0xff]  }
  0xe4   : > { %7299 = vmatmul.mubr.bf16.gmra.mrb[88].mxu0 %v7604_v34  ;;  %7427 = vmatmul.mubr.bf16.gmra.mrb[88].mxu1 %v7605_v35 }
  0xe5   : > { %7302 = vmatprep.mubr.bf16.mxu0 %v7606_v36  ;;  %7430 = vmatprep.mubr.bf16.mxu1 %v7607_v37 }
  0xec   : > { %7303 = vmatmul.mubr.bf16.gmra.mrb[92].mxu0 %v7608_v38  ;;  %7431 = vmatmul.mubr.bf16.gmra.mrb[92].mxu1 %v7609_v39 }
  0xed   : > { %7306 = vmatprep.mubr.bf16.mxu0 %v7610_v40  ;;  %7434 = vmatprep.mubr.bf16.mxu1 %v7611_v41 }
  0xf4   : > { %7307 = vmatmul.mubr.bf16.gmra.mrb[96].mxu0 %v7612_v42  ;;  %7435 = vmatmul.mubr.bf16.gmra.mrb[96].mxu1 %v7613_v43 }
  0xf5   : > { %7310 = vmatprep.mubr.bf16.mxu0 %v7614_v44  ;;  %7438 = vmatprep.mubr.bf16.mxu1 %v7615_v45 }
  0xfc   : > { %7311 = vmatmul.mubr.bf16.gmra.mrb[100].mxu0 %v7616_v46  ;;  %7439 = vmatmul.mubr.bf16.gmra.mrb[100].mxu1 %v7617_v47 }
  0xfd   : > { %7314 = vmatprep.mubr.bf16.mxu0 %v7618_v48  ;;  %7442 = vmatprep.mubr.bf16.mxu1 %v7619_v49 }
 0x104   : > { %7315 = vmatmul.mubr.bf16.gmra.mrb[104].mxu0 %v7620_v50  ;;  %7443 = vmatmul.mubr.bf16.gmra.mrb[104].mxu1 %v7621_v51  ;;  %v7632_v50 = vld [vmem:[%s8749_s23 + $0x1d8] sm:$0xff]  }
 0x105   : > { %7318 = vmatprep.mubr.bf16.mxu0 %v7622_v52  ;;  %7446 = vmatprep.mubr.bf16.mxu1 %v7623_v53  ;;  %v7633_v51 = vld [vmem:[%s8749_s23 + $0x3d8] sm:$0xff]  }
 0x107   : > { %v7212_v55 = vpop.f32.mrb[0].mxu0  ;;  %v7340_v56 = vpop.f32.mrb[0].mxu1 }
 0x108   : > { %v1409_v57 = vadd.f32 %v7212_v55, %v8869_v54  ;;  %v1921_v58 = vadd.f32 %v7340_v56, %v8869_v54  ;;  %v1400_v59 = vpop.f32.mrb[1].mxu0  ;;  %v1912_v60 = vpop.f32.mrb[1].mxu1 }
 0x109   : > { %v1401_v63 = vadd.f32 %v8869_v54, %v1400_v59  ;;  %v1913_v0 = vadd.f32 %v8869_v54, %v1912_v60  ;;  %v7213_v1 = vpop.f32.mrb[2].mxu0  ;;  %v7341_v2 = vpop.f32.mrb[2].mxu1 }
 0x10a   : > { %v5520_v5 = vmul.f32 -1.442695, %v1409_v57  ;;  %v5648_v6 = vmul.f32 -1.442695, %v1921_v58  ;;  %v1412_v7 = vadd.f32 %v7213_v1, %v8869_v54  ;;  %v1924_v8 = vadd.f32 %v7341_v2, %v8869_v54  ;;  %v1403_v9 = vpop.f32.mrb[3].mxu0  ;;  %v1915_v10 = vpop.f32.mrb[3].mxu1 }
 0x10b   : > { %v5518_v11 = vmul.f32 -1.442695, %v1401_v63  ;;  %v5646_v12 = vmul.f32 -1.442695, %v1913_v0  ;;  %v1404_v13 = vadd.f32 %v8869_v54, %v1403_v9  ;;  %v1916_v14 = vadd.f32 %v8869_v54, %v1915_v10  ;;  %v7634_v57 = vld [vmem:[%s8749_s23 + $0x1e0] sm:$0xff]  }
 0x10c   : > { %7642 = vpow2.f32 %v5520_v5  ;;  %v5521_v15 = vmul.f32 -1.442695, %v1412_v7  ;;  %7319 = vmatmul.mubr.bf16.gmra.mrb[108].mxu0 %v7624_v61  ;;  %7447 = vmatmul.mubr.bf16.gmra.mrb[108].mxu1 %v7625_v62  ;;  %v5649_v16 = vmul.f32 -1.442695, %v1924_v8  ;;  %v7635_v58 = vld [vmem:[%s8749_s23 + $0x3e0] sm:$0xff]  }
 0x10d   : > { %7644 = vpow2.f32 %v5648_v6  ;;  %7322 = vmatprep.mubr.bf16.mxu0 %v7626_v3  ;;  %7450 = vmatprep.mubr.bf16.mxu1 %v7627_v4  ;;  %v5519_v17 = vmul.f32 -1.442695, %v1404_v13  ;;  %v5647_v18 = vmul.f32 -1.442695, %v1916_v14 }
 0x10e   : > { %7646 = vpow2.f32 %v5518_v11 }
 0x10f   : > { %7648 = vpow2.f32 %v5646_v12  ;;  %v7216_v19 = vpop.f32.mrb[4].mxu0  ;;  %v7344_v20 = vpop.f32.mrb[4].mxu1 }
 0x110   : > { %7650 = vpow2.f32 %v5521_v15  ;;  %v1425_v21 = vadd.f32 %v7216_v19, %v8869_v54  ;;  %v1937_v22 = vadd.f32 %v7344_v20, %v8869_v54  ;;  %v1416_v23 = vpop.f32.mrb[5].mxu0  ;;  %v1928_v24 = vpop.f32.mrb[5].mxu1 }
 0x111   : > { %7652 = vpow2.f32 %v5649_v16  ;;  %v1417_v27 = vadd.f32 %v8869_v54, %v1416_v23  ;;  %v1929_v28 = vadd.f32 %v8869_v54, %v1928_v24  ;;  %v7217_v29 = vpop.f32.mrb[6].mxu0  ;;  %v7345_v30 = vpop.f32.mrb[6].mxu1  ;;  %v7638_v24 = vld [vmem:[%s8749_s23 + $0x1f0] sm:$0xff]  }
 0x112   : > { %7654 = vpow2.f32 %v5519_v17  ;;  %v5524_v33 = vmul.f32 -1.442695, %v1425_v21  ;;  %v5652_v34 = vmul.f32 -1.442695, %v1937_v22  ;;  %v1428_v35 = vadd.f32 %v7217_v29, %v8869_v54  ;;  %v1419_v36 = vpop.f32.mrb[7].mxu0  ;;  %v1931_v37 = vpop.f32.mrb[7].mxu1 }
 0x113   : > { %7656 = vpow2.f32 %v5647_v18  ;;  %v5522_v38 = vmul.f32 -1.442695, %v1417_v27  ;;  %v5650_v39 = vmul.f32 -1.442695, %v1929_v28  ;;  %v1940_v7 = vadd.f32 %v7345_v30, %v8869_v54  ;;  %v7636_v17 = vld [vmem:[%s8749_s23 + $0x1e8] sm:$0xff]  }
 0x114   : > { %7658 = vpow2.f32 %v5524_v33  ;;  %v5525_v40 = vmul.f32 -1.442695, %v1428_v35  ;;  %7323 = vmatmul.mubr.bf16.gmra.mrb[112].mxu0 %v7628_v25  ;;  %7451 = vmatmul.mubr.bf16.gmra.mrb[112].mxu1 %v7629_v26  ;;  %v1420_v10 = vadd.f32 %v8869_v54, %v1419_v36  ;;  %v1932_v14 = vadd.f32 %v8869_v54, %v1931_v37  ;;  %v7637_v18 = vld [vmem:[%s8749_s23 + $0x3e8] sm:$0xff]   ;;  %v7639_v25 = vld [vmem:[%s8749_s23 + $0x3f0] sm:$0xff]  }
 0x115   : > { %7660 = vpow2.f32 %v5652_v34  ;;  %7326 = vmatprep.mubr.bf16.mxu0 %v7630_v31  ;;  %7454 = vmatprep.mubr.bf16.mxu1 %v7631_v32  ;;  %v5653_v28 = vmul.f32 -1.442695, %v1940_v7 }
 0x116   : > { %v7643_v41 = vpop.eup %7642  ;;  %7662 = vpow2.f32 %v5522_v38  ;;  %v5523_v34 = vmul.f32 -1.442695, %v1420_v10  ;;  %v5651_v38 = vmul.f32 -1.442695, %v1932_v14 }
 0x117   : > { %v7645_v42 = vpop.eup %7644  ;;  %v3193_v43 = vadd.f32 1.0, %v7643_v41  ;;  %7664 = vpow2.f32 %v5650_v39  ;;  %v7220_v44 = vpop.f32.mrb[8].mxu0 }
 0x118   : > { %v7348_v45 = vpop.f32.mrb[8].mxu1  ;;  %v7647_v46 = vpop.eup %7646  ;;  %v3321_v47 = vadd.f32 1.0, %v7645_v42  ;;  %7666 = vpow2.f32 %v5525_v40  ;;  %v1441_v21 = vadd.f32 %v7220_v44, %v8869_v54 }
 0x119   : > { %v8892_v48 = vpop.f32.mrb[9].mxu0  ;;  %v8894_v49 = vpop.f32.mrb[9].mxu1  ;;  %7668 = vrcp.f32 %v3193_v43  ;;  %v3191_v53 = vadd.f32 1.0, %v7647_v46  ;;  %v1953_v29 = vadd.f32 %v7348_v45, %v8869_v54 }
 0x11a   : > { %v7649_v52 = vpop.eup %7648  ;;  %v8898_v55 = vpop.f32.mrb[10].mxu0  ;;  %7670 = vrcp.f32 %v3321_v47  ;;  %v1433_v35 = vadd.f32 %v8869_v54, %v8892_v48  ;;  %v1945_v39 = vadd.f32 %v8869_v54, %v8894_v49  ;;  %v5528_v41 = vmul.f32 -1.442695, %v1441_v21 }
 0x11b   : > { %v8900_v56 = vpop.f32.mrb[10].mxu1  ;;  %v7651_v59 = vpop.eup %7650  ;;  %v3319_v60 = vadd.f32 1.0, %v7649_v52  ;;  %7672 = vrcp.f32 %v3191_v53  ;;  %v1444_v42 = vadd.f32 %v8898_v55, %v8869_v54  ;;  %v5656_v44 = vmul.f32 -1.442695, %v1953_v29 }
 0x11c   : > { %v8904_v61 = vpop.f32.mrb[11].mxu0  ;;  %v7653_v62 = vpop.eup %7652  ;;  %v3194_v63 = vadd.f32 1.0, %v7651_v59  ;;  %7327 = vmatmul.mubr.bf16.gmra.mrb[116].mxu0 %v7632_v50  ;;  %7455 = vmatmul.mubr.bf16.gmra.mrb[116].mxu1 %v7633_v51  ;;  %v1956_v45 = vadd.f32 %v8900_v56, %v8869_v54  ;;  %v5526_v47 = vmul.f32 -1.442695, %v1433_v35  ;;  %v5654_v53 = vmul.f32 -1.442695, %v1945_v39 }
 0x11d   : > { %v8906_v0 = vpop.f32.mrb[11].mxu1  ;;  %v7655_v1 = vpop.eup %7654  ;;  %7674 = vrcp.f32 %v3319_v60  ;;  %v3322_v2 = vadd.f32 1.0, %v7653_v62  ;;  %7330 = vmatprep.mubr.bf16.mxu0 %v7634_v57  ;;  %7458 = vmatprep.mubr.bf16.mxu1 %v7635_v58  ;;  %v1436_v48 = vadd.f32 %v8869_v54, %v8904_v61  ;;  %v7640_v58 = vld [vmem:[%s8749_s23 + $0x1f8] sm:$0xff]   ;;  %v5529_v62 = vmul.f32 -1.442695, %v1444_v42 }
 0x11e   : > { %v7657_v3 = vpop.eup %7656  ;;  %7676 = vrcp.f32 %v3194_v63  ;;  %v3192_v4 = vadd.f32 1.0, %v7655_v1  ;;  %v1948_v55 = vadd.f32 %v8869_v54, %v8906_v0  ;;  %v7641_v59 = vld [vmem:[%s8749_s23 + $0x3f8] sm:$0xff]  }
 0x11f   : > { %v7659_v5 = vpop.eup %7658  ;;  %7678 = vrcp.f32 %v3322_v2  ;;  %v3320_v6 = vadd.f32 1.0, %v7657_v3  ;;  %v8910_v11 = vpop.f32.mrb[12].mxu0  ;;  %v5527_v10 = vmul.f32 -1.442695, %v1436_v48 }
 0x120   : > { %v7661_v8 = vpop.eup %7660  ;;  %7680 = vrcp.f32 %v3192_v4  ;;  %v3197_v9 = vadd.f32 1.0, %v7659_v5  ;;  %v8913_v15 = vpop.f32.mrb[12].mxu1  ;;  %v1457_v63 = vadd.f32 %v8910_v11, %v8869_v54  ;;  %v5657_v4 = vmul.f32 -1.442695, %v1956_v45 }
 0x121   : > { %v7663_v12 = vpop.eup %7662  ;;  %7682 = vrcp.f32 %v3320_v6  ;;  %v3325_v13 = vadd.f32 1.0, %v7661_v8  ;;  %v8915_v16 = vpop.f32.mrb[13].mxu0  ;;  %v1969_v5 = vadd.f32 %v8913_v15, %v8869_v54 }
 0x122   : > { %v7665_v19 = vpop.eup %7664  ;;  %7684 = vrcp.f32 %v3197_v9  ;;  %v3195_v20 = vadd.f32 1.0, %v7663_v12  ;;  %v8920_v22 = vpop.f32.mrb[13].mxu1  ;;  %v5655_v12 = vmul.f32 -1.442695, %v1948_v55  ;;  %v5532_v14 = vmul.f32 -1.442695, %v1457_v63 }
 0x123   : > { %v8922_v23 = vpop.f32.mrb[14].mxu0  ;;  %v7667_v26 = vpop.eup %7666  ;;  %7686 = vrcp.f32 %v3325_v13  ;;  %v3323_v27 = vadd.f32 1.0, %v7665_v19 }
 0x124   : > { %v8927_v30 = vpop.f32.mrb[14].mxu1  ;;  %v8929_v31 = vpop.f32.mrb[15].mxu0  ;;  %7688 = vrcp.f32 %v3195_v20  ;;  %v3198_v33 = vadd.f32 1.0, %v7667_v26  ;;  %7331 = vmatmul.mubr.bf16.gmra.mrb[120].mxu0 %v7636_v17  ;;  %7459 = vmatmul.mubr.bf16.gmra.mrb[120].mxu1 %v7637_v18  ;;  %v5660_v17 = vmul.f32 -1.442695, %v1969_v5 }
 0x125   : > { %v7669_v32 = vpop.eup %7668  ;;  %v8933_v36 = vpop.f32.mrb[15].mxu1  ;;  %7690 = vrcp.f32 %v3323_v27  ;;  %7334 = vmatprep.mubr.bf16.mxu0 %v7638_v24  ;;  %7462 = vmatprep.mubr.bf16.mxu1 %v7639_v25 }
 0x126   : > { %v7671_v37 = vpop.eup %7670  ;;  %7692 = vrcp.f32 %v3198_v33 }
 0x127   : > { %v7673_v40 = vpop.eup %7672  ;;  %7694 = vpow2.f32 %v5653_v28  ;;  %v8950_v49 = vpop.f32.mrb[16].mxu0 }
 0x128   : > { %v7675_v43 = vpop.eup %7674  ;;  %7696 = vpow2.f32 %v5523_v34  ;;  %v8952_v50 = vpop.f32.mrb[16].mxu1 }
 0x129   : > { %v7677_v46 = vpop.eup %7676  ;;  %7698 = vpow2.f32 %v5651_v38  ;;  %v8956_v56 = vpop.f32.mrb[17].mxu0 }
 0x12a   : > { %v7679_v51 = vpop.eup %7678  ;;  %v6299_v52 = vpack.c.bf16 %v7677_v46, %v7669_v32  ;;  %v8958_v57 = vpop.f32.mrb[17].mxu1  ;;  %7700 = vpow2.f32 %v5528_v41 }
 0x12b   : > { %v7681_v60 = vpop.eup %7680  ;;  %v6619_v61 = vpack.c.bf16 %v7679_v51, %v7671_v37  ;;  %v8964_v1 = vpop.f32.mrb[18].mxu0  ;;  %7702 = vpow2.f32 %v5656_v44 }
 0x12c   : > { %v8966_v2 = vpop.f32.mrb[18].mxu1  ;;  %v7683_v0 = vpop.eup %7682  ;;  %6931 = vst [vmem:[%s8946_s28 + $0x8] sm:$0xff] %v6299_v52   ;;  %v6294_v3 = vpack.c.bf16 %v7681_v60, %v7673_v40  ;;  %7704 = vpow2.f32 %v5526_v47  ;;  %7335 = vmatmul.mubr.bf16.gmra.mrb[124].mxu0 %v7640_v58  ;;  %7463 = vmatmul.mubr.bf16.gmra.mrb[124].mxu1 %v7641_v59 }
 0x12d   : > { %v8971_v6 = vpop.f32.mrb[19].mxu0  ;;  %v8973_v7 = vpop.f32.mrb[19].mxu1  ;;  %6995 = vst [vmem:[%s8946_s28 + $0x208] sm:$0xff] %v6619_v61   ;;  %v6614_v9 = vpack.c.bf16 %v7683_v0, %v7675_v43  ;;  %7706 = vpow2.f32 %v5654_v53  ;;  %v1449_v53 = vadd.f32 %v8869_v54, %v8915_v16  ;;  %v1961_v61 = vadd.f32 %v8869_v54, %v8920_v22 }
 0x12e   : > { %v7685_v8 = vpop.eup %7684  ;;  %6295 = vst [vmem:[%s8946_s28] sm:$0xff] %v6294_v3   ;;  %7708 = vpow2.f32 %v5529_v62  ;;  %v1460_v16 = vadd.f32 %v8922_v23, %v8869_v54  ;;  %v1972_v22 = vadd.f32 %v8927_v30, %v8869_v54 }
 0x12f   : > { %v8976_v11 = vpop.eup %7686  ;;  %6994 = vst [vmem:[%s8946_s28 + $0x200] sm:$0xff] %v6614_v9   ;;  %7710 = vpow2.f32 %v5657_v4  ;;  %v8984_v19 = vpop.f32.mrb[20].mxu0 }
 0x130   : > { %v8979_v13 = vpop.eup %7688  ;;  %7712 = vpow2.f32 %v5527_v10  ;;  %v8986_v20 = vpop.f32.mrb[20].mxu1 }
 0x131   : > { %v8982_v15 = vpop.eup %7690  ;;  %7714 = vpow2.f32 %v5655_v12  ;;  %v8988_v25 = vpop.f32.mrb[21].mxu0 }
 0x132   : > { %v7693_v18 = vpop.eup %7692  ;;  %v8990_v26 = vpop.f32.mrb[21].mxu1  ;;  %7716 = vpow2.f32 %v5532_v14 }
 0x133   : > { %v7695_v21 = vpop.eup %7694  ;;  %v6309_v24 = vpack.c.bf16 %v7693_v18, %v7685_v8  ;;  %v8992_v29 = vpop.f32.mrb[22].mxu0  ;;  %7718 = vpow2.f32 %v5660_v17  ;;  %v5530_v17 = vmul.f32 -1.442695, %v1449_v53  ;;  %v1452_v18 = vadd.f32 %v8869_v54, %v8929_v31 }
 0x134   : > { %v7697_v27 = vpop.eup %7696  ;;  %v3326_v28 = vadd.f32 1.0, %v7695_v21  ;;  %v8994_v32 = vpop.f32.mrb[22].mxu1 }
 0x135   : > { %v7699_v33 = vpop.eup %7698  ;;  %6933 = vst [vmem:[%s8946_s28 + $0x18] sm:$0xff] %v6309_v24   ;;  %v3196_v34 = vadd.f32 1.0, %v7697_v27  ;;  %v8997_v35 = vpop.f32.mrb[23].mxu0  ;;  %v5658_v24 = vmul.f32 -1.442695, %v1961_v61  ;;  %v1964_v27 = vadd.f32 %v8869_v54, %v8933_v36 }
 0x136   : > { %v7701_v37 = vpop.eup %7700  ;;  %7720 = vrcp.f32 %v3326_v28  ;;  %v3324_v38 = vadd.f32 1.0, %v7699_v33  ;;  %v8999_v39 = vpop.f32.mrb[23].mxu1  ;;  %v5533_v33 = vmul.f32 -1.442695, %v1460_v16  ;;  %v1468_v16 = vadd.f32 %v8869_v54, %v8971_v6 }
 0x137   : > { %v7703_v40 = vpop.eup %7702  ;;  %7722 = vrcp.f32 %v3196_v34  ;;  %v3201_v41 = vadd.f32 1.0, %v7701_v37  ;;  %v9001_v48 = vpop.f32.mrb[24].mxu0  ;;  %v1473_v34 = vadd.f32 %v8950_v49, %v8869_v54  ;;  %v5531_v49 = vmul.f32 -1.442695, %v1452_v18 }
 0x138   : > { %v7705_v42 = vpop.eup %7704  ;;  %7724 = vrcp.f32 %v3324_v38  ;;  %v3329_v43 = vadd.f32 1.0, %v7703_v40  ;;  %v9005_v55 = vpop.f32.mrb[24].mxu1  ;;  %v5661_v38 = vmul.f32 -1.442695, %v1972_v22  ;;  %v1985_v40 = vadd.f32 %v8952_v50, %v8869_v54 }
 0x139   : > { %v7707_v44 = vpop.eup %7706  ;;  %7726 = vrcp.f32 %v3201_v41  ;;  %v3199_v45 = vadd.f32 1.0, %v7705_v42  ;;  %v9007_v58 = vpop.f32.mrb[25].mxu0  ;;  %v5659_v50 = vmul.f32 -1.442695, %v1964_v27  ;;  %v5535_v27 = vmul.f32 -1.442695, %v1468_v16 }
 0x13a   : > { %v7709_v46 = vpop.eup %7708  ;;  %7728 = vrcp.f32 %v3329_v43  ;;  %v3327_v47 = vadd.f32 1.0, %v7707_v44  ;;  %v9011_v62 = vpop.f32.mrb[25].mxu1  ;;  %v1465_v43 = vadd.f32 %v8869_v54, %v8956_v56  ;;  %v1476_v56 = vadd.f32 %v8964_v1, %v8869_v54 }
 0x13b   : > { %v7711_v51 = vpop.eup %7710  ;;  %7730 = vrcp.f32 %v3199_v45  ;;  %v3202_v52 = vadd.f32 1.0, %v7709_v46  ;;  %v9013_v63 = vpop.f32.mrb[26].mxu0  ;;  %v1977_v46 = vadd.f32 %v8869_v54, %v8958_v57  ;;  %v5664_v61 = vmul.f32 -1.442695, %v1985_v40 }
 0x13c   : > { %v7713_v59 = vpop.eup %7712  ;;  %7732 = vrcp.f32 %v3327_v47  ;;  %v3330_v60 = vadd.f32 1.0, %v7711_v51  ;;  %v9017_v4 = vpop.f32.mrb[26].mxu1  ;;  %v1988_v57 = vadd.f32 %v8966_v2, %v8869_v54 }
 0x13d   : > { %v7715_v0 = vpop.eup %7714  ;;  %7734 = vrcp.f32 %v3202_v52  ;;  %v3200_v3 = vadd.f32 1.0, %v7713_v59  ;;  %v9019_v5 = vpop.f32.mrb[27].mxu0  ;;  %v5536_v52 = vmul.f32 -1.442695, %v1473_v34 }
 0x13e   : > { %v7717_v8 = vpop.eup %7716  ;;  %7736 = vrcp.f32 %v3330_v60  ;;  %v3328_v9 = vadd.f32 1.0, %v7715_v0  ;;  %v9023_v10 = vpop.f32.mrb[27].mxu1  ;;  %v5665_v2 = vmul.f32 -1.442695, %v1988_v57 }
 0x13f   : > { %v7719_v12 = vpop.eup %7718  ;;  %7738 = vrcp.f32 %v3200_v3  ;;  %v3205_v14 = vadd.f32 1.0, %v7717_v8  ;;  %v9035_v41 = vpop.f32.mrb[28].mxu0  ;;  %v5534_v3 = vmul.f32 -1.442695, %v1465_v43 }
 0x140   : > { %v7721_v23 = vpop.eup %7720  ;;  %7740 = vrcp.f32 %v3328_v9  ;;  %v3333_v21 = vadd.f32 1.0, %v7719_v12  ;;  %v9037_v36 = vpop.f32.mrb[28].mxu1  ;;  %v5662_v9 = vmul.f32 -1.442695, %v1977_v46 }
 0x141   : > { %v7723_v28 = vpop.eup %7722  ;;  %v6629_v30 = vpack.c.bf16 %v7721_v23, %v8976_v11  ;;  %7742 = vrcp.f32 %v3205_v14  ;;  %v9045_v44 = vpop.f32.mrb[29].mxu1  ;;  %v5537_v14 = vmul.f32 -1.442695, %v1476_v56 }
 0x142   : > { %v7725_v37 = vpop.eup %7724  ;;  %v6304_v31 = vpack.c.bf16 %v7723_v28, %v8979_v13  ;;  %7744 = vrcp.f32 %v3333_v21  ;;  %v9043_v13 = vpop.f32.mrb[29].mxu0 }
 0x143   : > { %v7727_v42 = vpop.eup %7726  ;;  %6997 = vst [vmem:[%s8946_s28 + $0x218] sm:$0xff] %v6629_v30   ;;  %v6624_v11 = vpack.c.bf16 %v7725_v37, %v8982_v15  ;;  %7746 = vpow2.f32 %v5530_v17  ;;  %v9050_v47 = vpop.f32.mrb[30].mxu0 }
 0x144   : > { %v7729_v45 = vpop.eup %7728  ;;  %6932 = vst [vmem:[%s8946_s28 + $0x10] sm:$0xff] %v6304_v31   ;;  %7748 = vpow2.f32 %v5658_v24  ;;  %v9052_v51 = vpop.f32.mrb[30].mxu1 }
 0x145   : > { %v7731_v15 = vpop.eup %7730  ;;  %6996 = vst [vmem:[%s8946_s28 + $0x210] sm:$0xff] %v6624_v11   ;;  %7750 = vpow2.f32 %v5533_v33  ;;  %v9057_v53 = vpop.f32.mrb[31].mxu0 }
 0x146   : > { %v9059_v59 = vpop.f32.mrb[31].mxu1  ;;  %v7733_v60 = vpop.eup %7732  ;;  %7752 = vpow2.f32 %v5661_v38 }
 0x147   : > { %v7735_v0 = vpop.eup %7734  ;;  %7754 = vpow2.f32 %v5531_v49  ;;  %v9066_v23 = vpop.f32.mrb[32].mxu0 }
 0x148   : > { %v7737_v8 = vpop.eup %7736  ;;  %v6319_v1 = vpack.c.bf16 %v7735_v0, %v7727_v42  ;;  %7756 = vpow2.f32 %v5659_v50  ;;  %v9068_v21 = vpop.f32.mrb[32].mxu1 }
 0x149   : > { %v7739_v22 = vpop.eup %7738  ;;  %v6639_v12 = vpack.c.bf16 %v7737_v8, %v7729_v45  ;;  %7758 = vpow2.f32 %v5536_v52  ;;  %v9073_v28 = vpop.f32.mrb[33].mxu0 }
 0x14a   : > { %v7741_v17 = vpop.eup %7740  ;;  %6935 = vst [vmem:[%s8946_s28 + $0x28] sm:$0xff] %v6319_v1   ;;  %v6314_v18 = vpack.c.bf16 %v7739_v22, %v7731_v15  ;;  %7760 = vpow2.f32 %v5664_v61  ;;  %v9075_v30 = vpop.f32.mrb[33].mxu1 }
 0x14b   : > { %v9070_v6 = vpop.eup %7742  ;;  %6999 = vst [vmem:[%s8946_s28 + $0x228] sm:$0xff] %v6639_v12   ;;  %v6634_v24 = vpack.c.bf16 %v7741_v17, %v7733_v60  ;;  %7762 = vpow2.f32 %v5534_v3  ;;  %v9080_v34 = vpop.f32.mrb[34].mxu0 }
 0x14c   : > { %v9077_v33 = vpop.eup %7744  ;;  %6934 = vst [vmem:[%s8946_s28 + $0x20] sm:$0xff] %v6314_v18   ;;  %7764 = vpow2.f32 %v5662_v9  ;;  %v9082_v37 = vpop.f32.mrb[34].mxu1 }
 0x14d   : > { %v7747_v31 = vpop.eup %7746  ;;  %6998 = vst [vmem:[%s8946_s28 + $0x220] sm:$0xff] %v6634_v24   ;;  %7766 = vpow2.f32 %v5537_v14  ;;  %v9085_v38 = vpop.f32.mrb[35].mxu0  ;;  %v1980_v14 = vadd.f32 %v8869_v54, %v8973_v7 }
 0x14e   : > { %v9087_v40 = vpop.f32.mrb[35].mxu1  ;;  %v7749_v42 = vpop.eup %7748  ;;  %v3203_v11 = vadd.f32 1.0, %v7747_v31  ;;  %7768 = vpow2.f32 %v5665_v2 }
 0x14f   : > { %v7751_v49 = vpop.eup %7750  ;;  %v3331_v43 = vadd.f32 1.0, %v7749_v42  ;;  %7770 = vpow2.f32 %v5535_v27  ;;  %v9089_v60 = vpop.f32.mrb[36].mxu0  ;;  %v1489_v27 = vadd.f32 %v8984_v19, %v8869_v54  ;;  %v1993_v19 = vadd.f32 %v8869_v54, %v8990_v26 }
 0x150   : > { %v7753_v45 = vpop.eup %7752  ;;  %7772 = vrcp.f32 %v3203_v11  ;;  %v3206_v50 = vadd.f32 1.0, %v7751_v49  ;;  %v9091_v0 = vpop.f32.mrb[36].mxu1  ;;  %v2001_v49 = vadd.f32 %v8986_v20, %v8869_v54  ;;  %v1492_v20 = vadd.f32 %v8992_v29, %v8869_v54 }
 0x151   : > { %v7755_v46 = vpop.eup %7754  ;;  %7774 = vrcp.f32 %v3331_v43  ;;  %v3334_v15 = vadd.f32 1.0, %v7753_v45  ;;  %v9093_v3 = vpop.f32.mrb[37].mxu0  ;;  %v1481_v45 = vadd.f32 %v8869_v54, %v8988_v25  ;;  %v2004_v25 = vadd.f32 %v8994_v32, %v8869_v54 }
 0x152   : > { %v7757_v52 = vpop.eup %7756  ;;  %7776 = vrcp.f32 %v3206_v50  ;;  %v3204_v56 = vadd.f32 1.0, %v7755_v46  ;;  %v9095_v1 = vpop.f32.mrb[37].mxu1  ;;  %v5666_v32 = vmul.f32 -1.442695, %v1993_v19  ;;  %v2017_v19 = vadd.f32 %v9005_v55, %v8869_v54 }
 0x153   : > { %v7759_v61 = vpop.eup %7758  ;;  %7778 = vrcp.f32 %v3334_v15  ;;  %v3332_v57 = vadd.f32 1.0, %v7757_v52  ;;  %v9097_v9 = vpop.f32.mrb[38].mxu0  ;;  %v5663_v15 = vmul.f32 -1.442695, %v1980_v14  ;;  %v5538_v14 = vmul.f32 -1.442695, %v1481_v45 }
 0x154   : > { %v7761_v16 = vpop.eup %7760  ;;  %7780 = vrcp.f32 %v3204_v56  ;;  %v3209_v8 = vadd.f32 1.0, %v7759_v61  ;;  %v9101_v17 = vpop.f32.mrb[38].mxu1  ;;  %v5540_v61 = vmul.f32 -1.442695, %v1489_v27  ;;  %v5541_v45 = vmul.f32 -1.442695, %v1492_v20 }
 0x155   : > { %v7763_v22 = vpop.eup %7762  ;;  %7782 = vrcp.f32 %v3332_v57  ;;  %v3337_v12 = vadd.f32 1.0, %v7761_v16  ;;  %v9103_v18 = vpop.f32.mrb[39].mxu0  ;;  %v1497_v20 = vadd.f32 %v8869_v54, %v9007_v58 }
 0x156   : > { %v7765_v2 = vpop.eup %7764  ;;  %7784 = vrcp.f32 %v3209_v8  ;;  %v3207_v24 = vadd.f32 1.0, %v7763_v22  ;;  %v9107_v31 = vpop.f32.mrb[39].mxu1  ;;  %v5668_v8 = vmul.f32 -1.442695, %v2001_v49 }
 0x157   : > { %v7767_v42 = vpop.eup %7766  ;;  %7786 = vrcp.f32 %v3337_v12  ;;  %v3335_v11 = vadd.f32 1.0, %v7765_v2  ;;  %v9117_v57 = vpop.f32.mrb[40].mxu0  ;;  %v1484_v2 = vadd.f32 %v8869_v54, %v8997_v35 }
 0x158   : > { %v7769_v43 = vpop.eup %7768  ;;  %7788 = vrcp.f32 %v3207_v24  ;;  %v3210_v7 = vadd.f32 1.0, %v7767_v42  ;;  %v9121_v22 = vpop.f32.mrb[40].mxu1 }
 0x159   : > { %v7771_v50 = vpop.eup %7770  ;;  %7790 = vrcp.f32 %v3335_v11  ;;  %v3338_v46 = vadd.f32 1.0, %v7769_v43  ;;  %v9123_v12 = vpop.f32.mrb[41].mxu0  ;;  %v1996_v11 = vadd.f32 %v8869_v54, %v8999_v39  ;;  %v5669_v39 = vmul.f32 -1.442695, %v2004_v25 }
 0x15a   : > { %v7773_v52 = vpop.eup %7772  ;;  %7792 = vrcp.f32 %v3210_v7  ;;  %v3208_v56 = vadd.f32 1.0, %v7771_v50  ;;  %v9127_v24 = vpop.f32.mrb[41].mxu1  ;;  %v1505_v50 = vadd.f32 %v9001_v48, %v8869_v54 }
 0x15b   : > { %v7775_v16 = vpop.eup %7774  ;;  %7794 = vrcp.f32 %v3338_v46  ;;  %v9129_v29 = vpop.f32.mrb[42].mxu0 }
 0x15c   : > { %v7777_v26 = vpop.eup %7776  ;;  %7796 = vrcp.f32 %v3208_v56  ;;  %v9134_v49 = vpop.f32.mrb[42].mxu1  ;;  %v5544_v25 = vmul.f32 -1.442695, %v1505_v50 }
 0x15d   : > { %v7779_v27 = vpop.eup %7778  ;;  %v6329_v42 = vpack.c.bf16 %v7777_v26, %v9070_v6  ;;  %7798 = vpow2.f32 %v5663_v15  ;;  %v9136_v43 = vpop.f32.mrb[43].mxu0  ;;  %v5667_v26 = vmul.f32 -1.442695, %v1996_v11 }
 0x15e   : > { %v7781_v7 = vpop.eup %7780  ;;  %v6649_v35 = vpack.c.bf16 %v7779_v27, %v9077_v33  ;;  %7800 = vpow2.f32 %v5540_v61  ;;  %v9141_v6 = vpop.f32.mrb[43].mxu1  ;;  %v5539_v61 = vmul.f32 -1.442695, %v1484_v2 }
 0x15f   : > { %v7783_v46 = vpop.eup %7782  ;;  %6937 = vst [vmem:[%s8946_s28 + $0x38] sm:$0xff] %v6329_v42   ;;  %v6324_v15 = vpack.c.bf16 %v7781_v7, %v7773_v52  ;;  %7802 = vpow2.f32 %v5668_v8  ;;  %v2009_v52 = vadd.f32 %v8869_v54, %v9011_v62  ;;  %v9153_v55 = vpop.f32.mrb[44].mxu0  ;;  %v5542_v54 = vmul.f32 -1.442695, %v1497_v20 }
 0x160   : > { %v7785_v56 = vpop.eup %7784  ;;  %7001 = vst [vmem:[%s8946_s28 + $0x238] sm:$0xff] %v6649_v35   ;;  %v6644_v33 = vpack.c.bf16 %v7783_v46, %v7775_v16  ;;  %7804 = vpow2.f32 %v5538_v14  ;;  %v9155_v27 = vpop.f32.mrb[44].mxu1  ;;  %v5672_v14 = vmul.f32 -1.442695, %v2017_v19 }
 0x161   : > { %v7787_v48 = vpop.eup %7786  ;;  %6936 = vst [vmem:[%s8946_s28 + $0x30] sm:$0xff] %v6324_v15   ;;  %7806 = vpow2.f32 %v5666_v32  ;;  %v9159_v58 = vpop.f32.mrb[45].mxu0  ;;  %v5670_v35 = vmul.f32 -1.442695, %v2009_v52 }
 0x162   : > { %v7789_v8 = vpop.eup %7788  ;;  %7000 = vst [vmem:[%s8946_s28 + $0x230] sm:$0xff] %v6644_v33   ;;  %7808 = vpow2.f32 %v5541_v45  ;;  %v9161_v2 = vpop.f32.mrb[45].mxu1 }
 0x163   : > { %v9157_v16 = vpop.eup %7790  ;;  %7810 = vpow2.f32 %v5669_v39  ;;  %v9163_v62 = vpop.f32.mrb[46].mxu0 }
 0x164   : > { %v7793_v42 = vpop.eup %7792  ;;  %7812 = vpow2.f32 %v5539_v61  ;;  %v9165_v32 = vpop.f32.mrb[46].mxu1 }
 0x165   : > { %v7795_v11 = vpop.eup %7794  ;;  %v6339_v7 = vpack.c.bf16 %v7793_v42, %v7785_v56  ;;  %7814 = vpow2.f32 %v5667_v26  ;;  %v9167_v45 = vpop.f32.mrb[47].mxu0 }
 0x166   : > { %v9169_v50 = vpop.f32.mrb[47].mxu1  ;;  %v7797_v46 = vpop.eup %7796  ;;  %v6659_v15 = vpack.c.bf16 %v7795_v11, %v7787_v48  ;;  %7816 = vpow2.f32 %v5544_v25 }
 0x167   : > { %10135 = vst [vmem:[#allocation2_spill] sm:$0xff] %v9169_v50  ;;  %v7799_v39 = vpop.eup %7798  ;;  %6939 = vst [vmem:[%s8946_s28 + $0x48] sm:$0xff] %v6339_v7   ;;  %v6334_v19 = vpack.c.bf16 %v7797_v46, %v7789_v8  ;;  %7818 = vpow2.f32 %v5672_v14  ;;  %v9174_v42 = vpop.f32.mrb[48].mxu0 }
 0x168   : > { %v7801_v33 = vpop.eup %7800  ;;  %7003 = vst [vmem:[%s8946_s28 + $0x248] sm:$0xff] %v6659_v15   ;;  %v3336_v61 = vadd.f32 1.0, %v7799_v39  ;;  %7820 = vpow2.f32 %v5542_v54  ;;  %v9176_v25 = vpop.f32.mrb[48].mxu1 }
 0x169   : > { %v7803_v20 = vpop.eup %7802  ;;  %6938 = vst [vmem:[%s8946_s28 + $0x40] sm:$0xff] %v6334_v19   ;;  %v3213_v56 = vadd.f32 1.0, %v7801_v33  ;;  %7822 = vpow2.f32 %v5670_v35  ;;  %v9178_v8 = vpop.f32.mrb[49].mxu0 }
 0x16a   : > { %v7805_v26 = vpop.eup %7804  ;;  %7824 = vrcp.f32 %v3336_v61  ;;  %v3341_v52 = vadd.f32 1.0, %v7803_v20  ;;  %v9180_v54 = vpop.f32.mrb[49].mxu1 }
 0x16b   : > { %v7807_v50 = vpop.eup %7806  ;;  %7826 = vrcp.f32 %v3213_v56  ;;  %v3211_v48 = vadd.f32 1.0, %v7805_v26  ;;  %v9182_v7 = vpop.f32.mrb[50].mxu0 }
 0x16c   : > { %v7809_v14 = vpop.eup %7808  ;;  %7828 = vrcp.f32 %v3341_v52  ;;  %v3339_v11 = vadd.f32 1.0, %v7807_v50  ;;  %v9184_v15 = vpop.f32.mrb[50].mxu1  ;;  %v9193_v50 = vld [vmem:[%s10133_s2] ss:$0 sm:$0xff] }
 0x16d   : > { %v7811_v35 = vpop.eup %7810  ;;  %7830 = vrcp.f32 %v3211_v48  ;;  %v3214_v46 = vadd.f32 1.0, %v7809_v14  ;;  %10136 = vst [vmem:[#allocation3_spill] sm:$0xff] %v9184_v15  ;;  %v9186_v39 = vpop.f32.mrb[51].mxu0  ;;  %v1508_v26 = vadd.f32 %v9193_v50, %v9013_v63  ;;  %v2020_v14 = vadd.f32 %v9193_v50, %v9017_v4 }
 0x16e   : > { %10137 = vst [vmem:[#allocation4_spill] sm:$0xff] %v9186_v39  ;;  %v7813_v19 = vpop.eup %7812  ;;  %7832 = vrcp.f32 %v3339_v11  ;;  %v3342_v33 = vadd.f32 1.0, %v7811_v35  ;;  %v9188_v61 = vpop.f32.mrb[51].mxu1  ;;  %v2012_v39 = vadd.f32 %v9193_v50, %v9023_v10  ;;  %v1521_v4 = vadd.f32 %v9193_v50, %v9035_v41 }
 0x16f   : > { %10138 = vst [vmem:[#allocation5_spill] sm:$0xff] %v9188_v61  ;;  %v7815_v20 = vpop.eup %7814  ;;  %7834 = vrcp.f32 %v3214_v46  ;;  %v3212_v56 = vadd.f32 1.0, %v7813_v19  ;;  %v1500_v46 = vadd.f32 %v9193_v50, %v9019_v5  ;;  %v9203_v15 = vpop.f32.mrb[52].mxu0  ;;  %v2033_v10 = vadd.f32 %v9193_v50, %v9037_v36 }
 0x170   : > { %v7817_v52 = vpop.eup %7816  ;;  %7836 = vrcp.f32 %v3342_v33  ;;  %v3340_v48 = vadd.f32 1.0, %v7815_v20  ;;  %10139 = vst [vmem:[#allocation6_spill] sm:$0xff] %v9203_v15  ;;  %v5545_v20 = vmul.f32 -1.442695, %v1508_v26  ;;  %v5671_v36 = vmul.f32 -1.442695, %v2012_v39 }
 0x171   : > { %v7819_v11 = vpop.eup %7818  ;;  %7838 = vrcp.f32 %v3212_v56  ;;  %v3217_v35 = vadd.f32 1.0, %v7817_v52  ;;  %v9207_v56 = vpop.f32.mrb[52].mxu1  ;;  %v5543_v41 = vmul.f32 -1.442695, %v1500_v46  ;;  %v1524_v46 = vadd.f32 %v9193_v50, %v9050_v47 }
 0x172   : > { %v7821_v19 = vpop.eup %7820  ;;  %7840 = vrcp.f32 %v3340_v48  ;;  %v3345_v61 = vadd.f32 1.0, %v7819_v11  ;;  %10140 = vst [vmem:[#allocation7_spill] sm:$0xff] %v9207_v56  ;;  %v9209_v52 = vpop.f32.mrb[53].mxu0  ;;  %v5673_v11 = vmul.f32 -1.442695, %v2020_v14  ;;  %v2028_v47 = vadd.f32 %v9193_v50, %v9059_v59 }
 0x173   : > { %v7823_v63 = vpop.eup %7822  ;;  %7842 = vrcp.f32 %v3217_v35  ;;  %v3215_v33 = vadd.f32 1.0, %v7821_v19  ;;  %10141 = vst [vmem:[#allocation8_spill] sm:$0xff] %v9209_v52  ;;  %v9213_v15 = vpop.f32.mrb[53].mxu1  ;;  %v1513_v52 = vadd.f32 %v9193_v50, %v9043_v13 }
 0x174   : > { %v7825_v5 = vpop.eup %7824  ;;  %7844 = vrcp.f32 %v3345_v61  ;;  %v3343_v48 = vadd.f32 1.0, %v7823_v63  ;;  %10142 = vst [vmem:[#allocation9_spill] sm:$0xff] %v9213_v15  ;;  %v9215_v35 = vpop.f32.mrb[54].mxu0  ;;  %v2025_v63 = vadd.f32 %v9193_v50, %v9045_v44  ;;  %v1516_v44 = vadd.f32 %v9193_v50, %v9057_v53 }
 0x175   : > { %10143 = vst [vmem:[#allocation10_spill] sm:$0xff] %v9215_v35  ;;  %v7827_v26 = vpop.eup %7826  ;;  %v6654_v19 = vpack.c.bf16 %v7825_v5, %v9157_v16  ;;  %7846 = vrcp.f32 %v3215_v33  ;;  %v9220_v56 = vpop.f32.mrb[54].mxu1  ;;  %v5548_v16 = vmul.f32 -1.442695, %v1521_v4  ;;  %v5676_v33 = vmul.f32 -1.442695, %v2033_v10 }
 0x176   : > { %v9222_v61 = vpop.f32.mrb[55].mxu0  ;;  %v7829_v14 = vpop.eup %7828  ;;  %7848 = vrcp.f32 %v3343_v48  ;;  %v2036_v5 = vadd.f32 %v9193_v50, %v9052_v51  ;;  %v5546_v39 = vmul.f32 -1.442695, %v1513_v52  ;;  %v5549_v52 = vmul.f32 -1.442695, %v1524_v46 }
 0x177   : > { %v9226_v15 = vpop.f32.mrb[55].mxu1  ;;  %v7831_v35 = vpop.eup %7830  ;;  %7002 = vst [vmem:[%s8946_s28 + $0x240] sm:$0xff] %v6654_v19   ;;  %7850 = vpow2.f32 %v5545_v20  ;;  %v5674_v20 = vmul.f32 -1.442695, %v2025_v63  ;;  %v1537_v53 = vadd.f32 %v9193_v50, %v9066_v23  ;;  %v5547_v23 = vmul.f32 -1.442695, %v1516_v44 }
 0x178   : > { %10144 = vst [vmem:[#allocation11_spill] sm:$0xff] %v9226_v15  ;;  %v7833_v13 = vpop.eup %7832  ;;  %7852 = vpow2.f32 %v5673_v11  ;;  %v9237_v4 = vpop.f32.mrb[56].mxu0  ;;  %v5677_v63 = vmul.f32 -1.442695, %v2036_v5 }
 0x179   : > { %v7835_v48 = vpop.eup %7834  ;;  %7854 = vpow2.f32 %v5543_v41  ;;  %v9239_v11 = vpop.f32.mrb[56].mxu1  ;;  %v5552_v5 = vmul.f32 -1.442695, %v1537_v53 }
 0x17a   : > { %v7837_v15 = vpop.eup %7836  ;;  %v6349_v19 = vpack.c.bf16 %v7835_v48, %v7827_v26  ;;  %7856 = vpow2.f32 %v5671_v36  ;;  %10145 = vst [vmem:[#allocation12_spill] sm:$0xff] %v9239_v11  ;;  %v9243_v41 = vpop.f32.mrb[57].mxu0 }
 0x17b   : > { %v7839_v51 = vpop.eup %7838  ;;  %v6669_v10 = vpack.c.bf16 %v7837_v15, %v7829_v14  ;;  %7858 = vpow2.f32 %v5548_v16  ;;  %v9245_v26 = vpop.f32.mrb[57].mxu1 }
 0x17c   : > { %10146 = vst [vmem:[#allocation13_spill] sm:$0xff] %v9245_v26  ;;  %v7841_v36 = vpop.eup %7840  ;;  %6941 = vst [vmem:[%s8946_s28 + $0x58] sm:$0xff] %v6349_v19   ;;  %v6344_v59 = vpack.c.bf16 %v7839_v51, %v7831_v35  ;;  %7860 = vpow2.f32 %v5676_v33  ;;  %v9248_v48 = vpop.f32.mrb[58].mxu0  ;;  %v5675_v35 = vmul.f32 -1.442695, %v2028_v47 }
 0x17d   : > { %v9250_v11 = vpop.f32.mrb[58].mxu1  ;;  %v9252_v15 = vpop.eup %7842  ;;  %7005 = vst [vmem:[%s8946_s28 + $0x258] sm:$0xff] %v6669_v10   ;;  %v6664_v14 = vpack.c.bf16 %v7841_v36, %v7833_v13  ;;  %7862 = vpow2.f32 %v5546_v39 }
 0x17e   : > { %v9255_v16 = vpop.f32.mrb[59].mxu0  ;;  %v9257_v46 = vpop.f32.mrb[59].mxu1  ;;  %6940 = vst [vmem:[%s8946_s28 + $0x50] sm:$0xff] %v6344_v59   ;;  %7864 = vpow2.f32 %v5674_v20 }
 0x17f   : > { %v9259_v26 = vpop.eup %7844  ;;  %7004 = vst [vmem:[%s8946_s28 + $0x250] sm:$0xff] %v6664_v14   ;;  %7866 = vpow2.f32 %v5549_v52  ;;  %v9267_v51 = vpop.f32.mrb[60].mxu0 }
 0x180   : > { %v9262_v33 = vpop.eup %7846  ;;  %7868 = vpow2.f32 %v5677_v63  ;;  %10147 = vst [vmem:[#allocation14_spill] sm:$0xff] %v9267_v51  ;;  %v9269_v10 = vpop.f32.mrb[60].mxu1 }
 0x181   : > { %v9265_v19 = vpop.eup %7848  ;;  %7870 = vpow2.f32 %v5547_v23  ;;  %10148 = vst [vmem:[#allocation15_spill] sm:$0xff] %v9269_v10  ;;  %v9271_v47 = vpop.f32.mrb[61].mxu0 }
 0x182   : > { %v7851_v13 = vpop.eup %7850  ;;  %7872 = vpow2.f32 %v5675_v35  ;;  %10149 = vst [vmem:[#allocation16_spill] sm:$0xff] %v9271_v47  ;;  %v9273_v59 = vpop.f32.mrb[61].mxu1 }
 0x183   : > { %v7853_v39 = vpop.eup %7852  ;;  %v3218_v44 = vadd.f32 1.0, %v7851_v13  ;;  %7874 = vpow2.f32 %v5552_v5  ;;  %10150 = vst [vmem:[#allocation17_spill] sm:$0xff] %v9273_v59  ;;  %v9275_v63 = vpop.f32.mrb[62].mxu0 }
 0x184   : > { %v7855_v36 = vpop.eup %7854  ;;  %v3346_v20 = vadd.f32 1.0, %v7853_v39  ;;  %10151 = vst [vmem:[#allocation18_spill] sm:$0xff] %v9275_v63  ;;  %v9277_v14 = vpop.f32.mrb[62].mxu1 }
 0x185   : > { %v7857_v52 = vpop.eup %7856  ;;  %7876 = vrcp.f32 %v3218_v44  ;;  %v3216_v53 = vadd.f32 1.0, %v7855_v36  ;;  %v9279_v13 = vpop.f32.mrb[63].mxu0 }
 0x186   : > { %v7859_v23 = vpop.eup %7858  ;;  %7878 = vrcp.f32 %v3346_v20  ;;  %v3344_v35 = vadd.f32 1.0, %v7857_v52  ;;  %10152 = vst [vmem:[#allocation19_spill] sm:$0xff] %v9279_v13  ;;  %v9281_v5 = vpop.f32.mrb[63].mxu1  ;;  %v2049_v20 = vadd.f32 %v9193_v50, %v9068_v21 }
 0x187   : > { %v7861_v10 = vpop.eup %7860  ;;  %7880 = vrcp.f32 %v3216_v53  ;;  %v3221_v39 = vadd.f32 1.0, %v7859_v23  ;;  %10153 = vst [vmem:[#allocation20_spill] sm:$0xff] %v9281_v5  ;;  %v1529_v53 = vadd.f32 %v9193_v50, %v9073_v28  ;;  %v9287_v23 = vpop.f32.mrb[64].mxu0 }
 0x188   : > { %v7863_v47 = vpop.eup %7862  ;;  %7882 = vrcp.f32 %v3344_v35  ;;  %v3349_v59 = vadd.f32 1.0, %v7861_v10  ;;  %10154 = vst [vmem:[#allocation21_spill] sm:$0xff] %v9287_v23  ;;  %v9291_v35 = vpop.f32.mrb[64].mxu1 }
 0x189   : > { %v7865_v51 = vpop.eup %7864  ;;  %7884 = vrcp.f32 %v3221_v39  ;;  %v3219_v44 = vadd.f32 1.0, %v7863_v47  ;;  %v2041_v47 = vadd.f32 %v9193_v50, %v9075_v30  ;;  %v1540_v39 = vadd.f32 %v9193_v50, %v9080_v34 }
 0x18a   : > { %v7867_v36 = vpop.eup %7866  ;;  %7886 = vrcp.f32 %v3349_v59  ;;  %v3347_v63 = vadd.f32 1.0, %v7865_v51  ;;  %v9293_v51 = vpop.f32.mrb[65].mxu0  ;;  %v5550_v23 = vmul.f32 -1.442695, %v1529_v53 }
 0x18b   : > { %v7869_v52 = vpop.eup %7868  ;;  %7888 = vrcp.f32 %v3219_v44  ;;  %v3222_v13 = vadd.f32 1.0, %v7867_v36  ;;  %10155 = vst [vmem:[#allocation22_spill] sm:$0xff] %v9293_v51  ;;  %v5680_v36 = vmul.f32 -1.442695, %v2049_v20  ;;  %v1532_v51 = vadd.f32 %v9193_v50, %v9085_v38  ;;  %v9309_v38 = vpop.f32.mrb[66].mxu0 }
 0x18c   : > { %v7871_v5 = vpop.eup %7870  ;;  %7890 = vrcp.f32 %v3347_v63  ;;  %v3350_v10 = vadd.f32 1.0, %v7869_v52  ;;  %v2052_v63 = vadd.f32 %v9193_v50, %v9082_v37  ;;  %v2044_v20 = vadd.f32 %v9193_v50, %v9087_v40 }
 0x18d   : > { %v7873_v59 = vpop.eup %7872  ;;  %7892 = vrcp.f32 %v3222_v13  ;;  %v3220_v21 = vadd.f32 1.0, %v7871_v5  ;;  %v9301_v13 = vpop.f32.mrb[65].mxu1  ;;  %v5553_v53 = vmul.f32 -1.442695, %v1540_v39  ;;  %v2065_v40 = vadd.f32 %v9193_v50, %v9091_v0 }
 0x18e   : > { %v7875_v44 = vpop.eup %7874  ;;  %7894 = vrcp.f32 %v3350_v10  ;;  %v3348_v28 = vadd.f32 1.0, %v7873_v59  ;;  %v5678_v10 = vmul.f32 -1.442695, %v2041_v47  ;;  %v2057_v0 = vadd.f32 %v9193_v50, %v9095_v1 }
 0x18f   : > { %v7877_v52 = vpop.eup %7876  ;;  %7896 = vrcp.f32 %v3220_v21  ;;  %v3225_v30 = vadd.f32 1.0, %v7875_v44  ;;  %v1553_v21 = vadd.f32 %v9193_v50, %v9089_v60  ;;  %v9311_v44 = vpop.f32.mrb[66].mxu1  ;;  %v5551_v60 = vmul.f32 -1.442695, %v1532_v51 }
 0x190   : > { %v7879_v5 = vpop.eup %7878  ;;  %v6359_v34 = vpack.c.bf16 %v7877_v52, %v9252_v15  ;;  %7898 = vrcp.f32 %v3348_v28  ;;  %v5681_v28 = vmul.f32 -1.442695, %v2052_v63  ;;  %v1545_v52 = vadd.f32 %v9193_v50, %v9093_v3 }
 0x191   : > { %v7881_v37 = vpop.eup %7880  ;;  %v6679_v59 = vpack.c.bf16 %v7879_v5, %v9259_v26  ;;  %7900 = vrcp.f32 %v3225_v30  ;;  %v9321_v30 = vpop.f32.mrb[67].mxu0  ;;  %v5684_v3 = vmul.f32 -1.442695, %v2065_v40  ;;  %v5682_v1 = vmul.f32 -1.442695, %v2057_v0 }
 0x192   : > { %v7883_v15 = vpop.eup %7882  ;;  %6943 = vst [vmem:[%s8946_s28 + $0x68] sm:$0xff] %v6359_v34   ;;  %v6354_v47 = vpack.c.bf16 %v7881_v37, %v9262_v33  ;;  %7902 = vpow2.f32 %v5680_v36  ;;  %v9323_v5 = vpop.f32.mrb[67].mxu1  ;;  %v5679_v36 = vmul.f32 -1.442695, %v2044_v20  ;;  %v2068_v34 = vadd.f32 %v9193_v50, %v9101_v17 }
 0x193   : > { %v7885_v26 = vpop.eup %7884  ;;  %7007 = vst [vmem:[%s8946_s28 + $0x268] sm:$0xff] %v6679_v59   ;;  %v6674_v39 = vpack.c.bf16 %v7883_v15, %v9265_v19  ;;  %7904 = vpow2.f32 %v5550_v23  ;;  %v5556_v19 = vmul.f32 -1.442695, %v1553_v21  ;;  %v1556_v23 = vadd.f32 %v9193_v50, %v9097_v9  ;;  %v9333_v9 = vpop.f32.mrb[68].mxu0 }
 0x194   : > { %v7887_v33 = vpop.eup %7886  ;;  %6942 = vst [vmem:[%s8946_s28 + $0x60] sm:$0xff] %v6354_v47   ;;  %7906 = vpow2.f32 %v5678_v10  ;;  %v5554_v10 = vmul.f32 -1.442695, %v1545_v52  ;;  %v9335_v47 = vpop.f32.mrb[68].mxu1  ;;  %v5685_v40 = vmul.f32 -1.442695, %v2068_v34 }
 0x195   : > { %v7889_v63 = vpop.eup %7888  ;;  %7006 = vst [vmem:[%s8946_s28 + $0x260] sm:$0xff] %v6674_v39   ;;  %7908 = vpow2.f32 %v5553_v53  ;;  %v5557_v15 = vmul.f32 -1.442695, %v1556_v23  ;;  %v9338_v39 = vpop.f32.mrb[69].mxu0 }
 0x196   : > { %v7891_v51 = vpop.eup %7890  ;;  %7910 = vpow2.f32 %v5681_v28 }
 0x197   : > { %v7893_v37 = vpop.eup %7892  ;;  %7912 = vpow2.f32 %v5551_v60 }
 0x198   : > { %v7895_v20 = vpop.eup %7894  ;;  %v6369_v59 = vpack.c.bf16 %v7893_v37, %v7885_v26  ;;  %7914 = vpow2.f32 %v5679_v36  ;;  %v9340_v26 = vpop.f32.mrb[69].mxu1 }
 0x199   : > { %v7897_v53 = vpop.eup %7896  ;;  %v6689_v21 = vpack.c.bf16 %v7895_v20, %v7887_v33  ;;  %7916 = vpow2.f32 %v5556_v19  ;;  %v9345_v33 = vpop.f32.mrb[70].mxu0 }
 0x19a   : > { %v7899_v28 = vpop.eup %7898  ;;  %6945 = vst [vmem:[%s8946_s28 + $0x78] sm:$0xff] %v6369_v59   ;;  %v6364_v17 = vpack.c.bf16 %v7897_v53, %v7889_v63  ;;  %7918 = vpow2.f32 %v5684_v3  ;;  %v9347_v36 = vpop.f32.mrb[70].mxu1 }
 0x19b   : > { %v9342_v60 = vpop.eup %7900  ;;  %7009 = vst [vmem:[%s8946_s28 + $0x278] sm:$0xff] %v6689_v21   ;;  %v6684_v52 = vpack.c.bf16 %v7899_v28, %v7891_v51  ;;  %7920 = vpow2.f32 %v5554_v10  ;;  %v9350_v63 = vpop.f32.mrb[71].mxu0 }
 0x19c   : > { %v7903_v0 = vpop.eup %7902  ;;  %6944 = vst [vmem:[%s8946_s28 + $0x70] sm:$0xff] %v6364_v17   ;;  %7922 = vpow2.f32 %v5682_v1  ;;  %v9352_v19 = vpop.f32.mrb[71].mxu1 }
 0x19d   : > { %v7905_v23 = vpop.eup %7904  ;;  %7008 = vst [vmem:[%s8946_s28 + $0x270] sm:$0xff] %v6684_v52   ;;  %v3353_v3 = vadd.f32 1.0, %v7903_v0  ;;  %7924 = vpow2.f32 %v5557_v15 }
 0x19e   : > { %v7907_v34 = vpop.eup %7906  ;;  %v3223_v37 = vadd.f32 1.0, %v7905_v23  ;;  %7926 = vpow2.f32 %v5685_v40  ;;  %v1548_v40 = vadd.f32 %v9193_v50, %v9103_v18 }
 0x19f   : > { %v7909_v51 = vpop.eup %7908  ;;  %7928 = vrcp.f32 %v3353_v3  ;;  %v3351_v10 = vadd.f32 1.0, %v7907_v34  ;;  %v2060_v34 = vadd.f32 %v9193_v50, %v9107_v31 }
 0x1a0   : > { %v7911_v20 = vpop.eup %7910  ;;  %7930 = vrcp.f32 %v3223_v37  ;;  %v3226_v59 = vadd.f32 1.0, %v7909_v51 }
 0x1a1   : > { %v7913_v53 = vpop.eup %7912  ;;  %7932 = vrcp.f32 %v3351_v10  ;;  %v3354_v1 = vadd.f32 1.0, %v7911_v20  ;;  %v1569_v10 = vadd.f32 %v9193_v50, %v9117_v57  ;;  %v2073_v57 = vadd.f32 %v9193_v50, %v9127_v24 }
 0x1a2   : > { %v7915_v21 = vpop.eup %7914  ;;  %7934 = vrcp.f32 %v3226_v59  ;;  %v3224_v28 = vadd.f32 1.0, %v7913_v53  ;;  %v2081_v53 = vadd.f32 %v9193_v50, %v9121_v22  ;;  %v1572_v22 = vadd.f32 %v9193_v50, %v9129_v29 }
 0x1a3   : > { %v7917_v17 = vpop.eup %7916  ;;  %7936 = vrcp.f32 %v3354_v1  ;;  %v3352_v52 = vadd.f32 1.0, %v7915_v21  ;;  %v5555_v21 = vmul.f32 -1.442695, %v1548_v40  ;;  %v2084_v40 = vadd.f32 %v9193_v50, %v9134_v49 }
 0x1a4   : > { %v7919_v0 = vpop.eup %7918  ;;  %7938 = vrcp.f32 %v3224_v28  ;;  %v3229_v15 = vadd.f32 1.0, %v7917_v17  ;;  %v1561_v28 = vadd.f32 %v9193_v50, %v9123_v12  ;;  %v2076_v29 = vadd.f32 %v9193_v50, %v9141_v6 }
 0x1a5   : > { %v7921_v23 = vpop.eup %7920  ;;  %7940 = vrcp.f32 %v3352_v52  ;;  %v3357_v3 = vadd.f32 1.0, %v7919_v0  ;;  %v5683_v52 = vmul.f32 -1.442695, %v2060_v34  ;;  %v1564_v34 = vadd.f32 %v9193_v50, %v9136_v43 }
 0x1a6   : > { %v7923_v37 = vpop.eup %7922  ;;  %7942 = vrcp.f32 %v3229_v15  ;;  %v3227_v51 = vadd.f32 1.0, %v7921_v23  ;;  %v5560_v15 = vmul.f32 -1.442695, %v1569_v10  ;;  %v5686_v10 = vmul.f32 -1.442695, %v2073_v57 }
 0x1a7   : > { %v7925_v20 = vpop.eup %7924  ;;  %7944 = vrcp.f32 %v3357_v3  ;;  %v3355_v59 = vadd.f32 1.0, %v7923_v37  ;;  %v5688_v3 = vmul.f32 -1.442695, %v2081_v53  ;;  %v5558_v37 = vmul.f32 -1.442695, %v1561_v28 }
 0x1a8   : > { %v7927_v1 = vpop.eup %7926  ;;  %7946 = vrcp.f32 %v3227_v51  ;;  %v3230_v18 = vadd.f32 1.0, %v7925_v20  ;;  %v5561_v49 = vmul.f32 -1.442695, %v1572_v22  ;;  %v1585_v53 = vadd.f32 %v9193_v50, %v9153_v55 }
 0x1a9   : > { %v7929_v31 = vpop.eup %7928  ;;  %7948 = vrcp.f32 %v3355_v59  ;;  %v3358_v17 = vadd.f32 1.0, %v7927_v1  ;;  %v9378_v1 = vpop.f32.mrb[72].mxu0  ;;  %v2097_v6 = vadd.f32 %v9193_v50, %v9155_v27  ;;  %v1577_v57 = vadd.f32 %v9193_v50, %v9159_v58 }
 0x1aa   : > { %v7931_v0 = vpop.eup %7930  ;;  %7950 = vrcp.f32 %v3230_v18  ;;  %v9380_v18 = vpop.f32.mrb[72].mxu1  ;;  %v5687_v27 = vmul.f32 -1.442695, %v2076_v29 }
 0x1ab   : > { %v7933_v23 = vpop.eup %7932  ;;  %7952 = vrcp.f32 %v3358_v17  ;;  %v9385_v28 = vpop.f32.mrb[73].mxu0  ;;  %v5692_v58 = vmul.f32 -1.442695, %v2097_v6 }
 0x1ac   : > { %v7935_v12 = vpop.eup %7934  ;;  %7954 = vpow2.f32 %v5555_v21  ;;  %v5689_v21 = vmul.f32 -1.442695, %v2084_v40 }
 0x1ad   : > { %v7937_v24 = vpop.eup %7936  ;;  %v6379_v51 = vpack.c.bf16 %v7935_v12, %v9342_v60  ;;  %7956 = vpow2.f32 %v5683_v52  ;;  %v5559_v52 = vmul.f32 -1.442695, %v1564_v34 }
 0x1ae   : > { %v7939_v20 = vpop.eup %7938  ;;  %v6699_v59 = vpack.c.bf16 %v7937_v24, %v7929_v31  ;;  %7958 = vpow2.f32 %v5560_v15  ;;  %v9387_v31 = vpop.f32.mrb[73].mxu1  ;;  %v5562_v24 = vmul.f32 -1.442695, %v1577_v57 }
 0x1af   : > { %v7941_v43 = vpop.eup %7940  ;;  %6947 = vst [vmem:[%s8946_s28 + $0x88] sm:$0xff] %v6379_v51   ;;  %v6374_v60 = vpack.c.bf16 %v7939_v20, %v7931_v0  ;;  %7960 = vpow2.f32 %v5688_v3  ;;  %v9392_v15 = vpop.f32.mrb[74].mxu0 }
 0x1b0   : > { %v7943_v17 = vpop.eup %7942  ;;  %7011 = vst [vmem:[%s8946_s28 + $0x288] sm:$0xff] %v6699_v59   ;;  %v6694_v55 = vpack.c.bf16 %v7941_v43, %v7933_v23  ;;  %7962 = vpow2.f32 %v5558_v37  ;;  %v9394_v0 = vpop.f32.mrb[74].mxu1  ;;  %v5564_v23 = vmul.f32 -1.442695, %v1585_v53 }
 0x1b1   : > { %v7945_v22 = vpop.eup %7944  ;;  %6946 = vst [vmem:[%s8946_s28 + $0x80] sm:$0xff] %v6374_v60   ;;  %7964 = vpow2.f32 %v5686_v10  ;;  %v9397_v3 = vpop.f32.mrb[75].mxu0 }
 0x1b2   : > { %v9399_v40 = vpop.f32.mrb[75].mxu1  ;;  %v9401_v12 = vpop.eup %7946  ;;  %7010 = vst [vmem:[%s8946_s28 + $0x280] sm:$0xff] %v6694_v55   ;;  %7966 = vpow2.f32 %v5561_v49 }
 0x1b3   : > { %v9404_v37 = vpop.eup %7948  ;;  %7968 = vpow2.f32 %v5689_v21  ;;  %v9406_v59 = vpop.f32.mrb[76].mxu0 }
 0x1b4   : > { %v7951_v34 = vpop.eup %7950  ;;  %7970 = vpow2.f32 %v5559_v52  ;;  %v9408_v43 = vpop.f32.mrb[76].mxu1 }
 0x1b5   : > { %v7953_v51 = vpop.eup %7952  ;;  %v6389_v10 = vpack.c.bf16 %v7951_v34, %v7943_v17  ;;  %7972 = vpow2.f32 %v5687_v27  ;;  %v9411_v60 = vpop.f32.mrb[77].mxu0 }
 0x1b6   : > { %v7955_v29 = vpop.eup %7954  ;;  %v6709_v20 = vpack.c.bf16 %v7953_v51, %v7945_v22  ;;  %7974 = vpow2.f32 %v5564_v23  ;;  %v9413_v21 = vpop.f32.mrb[77].mxu1 }
 0x1b7   : > { %v7957_v49 = vpop.eup %7956  ;;  %6949 = vst [vmem:[%s8946_s28 + $0x98] sm:$0xff] %v6389_v10   ;;  %v3228_v53 = vadd.f32 1.0, %v7955_v29  ;;  %7976 = vpow2.f32 %v5692_v58  ;;  %v9416_v17 = vpop.f32.mrb[78].mxu0 }
 0x1b8   : > { %v7959_v6 = vpop.eup %7958  ;;  %7013 = vst [vmem:[%s8946_s28 + $0x298] sm:$0xff] %v6709_v20   ;;  %v3356_v55 = vadd.f32 1.0, %v7957_v49  ;;  %7978 = vpow2.f32 %v5562_v24  ;;  %v2089_v49 = vadd.f32 %v9193_v50, %v9161_v2 }
 0x1b9   : > { %v7961_v52 = vpop.eup %7960  ;;  %7980 = vrcp.f32 %v3228_v53  ;;  %v3233_v57 = vadd.f32 1.0, %v7959_v6 }
 0x1ba   : > { %v7963_v22 = vpop.eup %7962  ;;  %7982 = vrcp.f32 %v3356_v55  ;;  %v3361_v27 = vadd.f32 1.0, %v7961_v52  ;;  %v1588_v55 = vadd.f32 %v9193_v50, %v9163_v62 }
 0x1bb   : > { %v7965_v23 = vpop.eup %7964  ;;  %7984 = vrcp.f32 %v3233_v57  ;;  %v3231_v34 = vadd.f32 1.0, %v7963_v22  ;;  %v2100_v22 = vadd.f32 %v9193_v50, %v9165_v32  ;;  %v1601_v32 = vadd.f32 %v9193_v50, %v9174_v42  ;;  %v9438_v42 = vpop.f32.mrb[79].mxu0 }
 0x1bc   : > { %v7967_v58 = vpop.eup %7966  ;;  %7986 = vrcp.f32 %v3361_v27  ;;  %v3359_v51 = vadd.f32 1.0, %v7965_v23 }
 0x1bd   : > { %v7969_v10 = vpop.eup %7968  ;;  %7988 = vrcp.f32 %v3231_v34  ;;  %v3234_v29 = vadd.f32 1.0, %v7967_v58  ;;  %v1580_v34 = vadd.f32 %v9193_v50, %v9167_v45 }
 0x1be   : > { %v7971_v20 = vpop.eup %7970  ;;  %7990 = vrcp.f32 %v3359_v51  ;;  %v3362_v24 = vadd.f32 1.0, %v7969_v10  ;;  %v5690_v51 = vmul.f32 -1.442695, %v2089_v49  ;;  %v10156_v10 = vld [vmem:[#allocation2_spill] sm:$0xff]  ;;  %v2113_v49 = vadd.f32 %v9193_v50, %v9176_v25 }
 0x1bf   : > { %v7973_v53 = vpop.eup %7972  ;;  %7992 = vrcp.f32 %v3234_v29  ;;  %v3232_v6 = vadd.f32 1.0, %v7971_v20  ;;  %v2092_v29 = vadd.f32 %v9193_v50, %v10156_v10  ;;  %10157 = vst [vmem:[#allocation2_spill] sm:$0xff] %v9438_v42 }
 0x1c0   : > { %v7975_v52 = vpop.eup %7974  ;;  %7994 = vrcp.f32 %v3362_v24  ;;  %v3360_v57 = vadd.f32 1.0, %v7973_v53  ;;  %v5565_v24 = vmul.f32 -1.442695, %v1588_v55  ;;  %v9430_v53 = vpop.f32.mrb[78].mxu1  ;;  %v5563_v55 = vmul.f32 -1.442695, %v1580_v34 }
 0x1c1   : > { %v7977_v27 = vpop.eup %7976  ;;  %7996 = vrcp.f32 %v3232_v6  ;;  %v3237_v23 = vadd.f32 1.0, %v7975_v52  ;;  %v5693_v52 = vmul.f32 -1.442695, %v2100_v22  ;;  %v2105_v22 = vadd.f32 %v9193_v50, %v9180_v54 }
 0x1c2   : > { %v7979_v58 = vpop.eup %7978  ;;  %7998 = vrcp.f32 %v3360_v57  ;;  %v3365_v2 = vadd.f32 1.0, %v7977_v27  ;;  %v1604_v34 = vadd.f32 %v9193_v50, %v9182_v7 }
 0x1c3   : > { %v7981_v62 = vpop.eup %7980  ;;  %8000 = vrcp.f32 %v3237_v23  ;;  %v3235_v20 = vadd.f32 1.0, %v7979_v58  ;;  %v1593_v23 = vadd.f32 %v9193_v50, %v9178_v8  ;;  %v9440_v58 = vpop.f32.mrb[79].mxu1  ;;  %v5696_v8 = vmul.f32 -1.442695, %v2113_v49 }
 0x1c4   : > { %v7983_v6 = vpop.eup %7982  ;;  %v6384_v45 = vpack.c.bf16 %v7981_v62, %v9401_v12  ;;  %8002 = vrcp.f32 %v3365_v2  ;;  %10158 = vst [vmem:[#allocation23_spill] sm:$0xff] %v9440_v58  ;;  %v5691_v12 = vmul.f32 -1.442695, %v2092_v29  ;;  %v10159_v62 = vld [vmem:[#allocation3_spill] sm:$0xff]  ;;  %v10160_v29 = vld [vmem:[#allocation4_spill] sm:$0xff]  ;;  %v9456_v42 = vpop.f32.mrb[80].mxu1 }
 0x1c5   : > { %v7985_v57 = vpop.eup %7984  ;;  %v6704_v27 = vpack.c.bf16 %v7983_v6, %v9404_v37  ;;  %8004 = vrcp.f32 %v3235_v20  ;;  %v5568_v37 = vmul.f32 -1.442695, %v1601_v32  ;;  %v2116_v20 = vadd.f32 %v9193_v50, %v10159_v62  ;;  %v10161_v32 = vld [vmem:[#allocation5_spill] sm:$0xff]  ;;  %v9454_v62 = vpop.f32.mrb[80].mxu0 }
 0x1c6   : > { %v7987_v10 = vpop.eup %7986  ;;  %6948 = vst [vmem:[%s8946_s28 + $0x90] sm:$0xff] %v6384_v45   ;;  %8006 = vpow2.f32 %v5690_v51  ;;  %v5566_v51 = vmul.f32 -1.442695, %v1593_v23  ;;  %v1596_v54 = vadd.f32 %v9193_v50, %v10160_v29  ;;  %v2108_v7 = vadd.f32 %v9193_v50, %v10161_v32 }
 0x1c7   : > { %v7989_v25 = vpop.eup %7988  ;;  %7012 = vst [vmem:[%s8946_s28 + $0x290] sm:$0xff] %v6704_v27   ;;  %8008 = vpow2.f32 %v5565_v24  ;;  %v5694_v24 = vmul.f32 -1.442695, %v2105_v22  ;;  %v5569_v58 = vmul.f32 -1.442695, %v1604_v34  ;;  %v9461_v22 = vpop.f32.mrb[81].mxu1 }
 0x1c8   : > { %v7991_v2 = vpop.eup %7990  ;;  %8010 = vpow2.f32 %v5693_v52  ;;  %10162 = vst [vmem:[#allocation3_spill] sm:$0xff] %v9461_v22  ;;  %v9468_v29 = vpop.f32.mrb[82].mxu1 }
 0x1c9   : > { %v7993_v6 = vpop.eup %7992  ;;  %8012 = vpow2.f32 %v5563_v55  ;;  %10164 = vst [vmem:[#allocation5_spill] sm:$0xff] %v9468_v29 }
 0x1ca   : > { %v7995_v45 = vpop.eup %7994  ;;  %v6399_v27 = vpack.c.bf16 %v7993_v6, %v7985_v57  ;;  %8014 = vpow2.f32 %v5691_v12  ;;  %v5697_v57 = vmul.f32 -1.442695, %v2116_v20  ;;  %v9459_v12 = vpop.f32.mrb[81].mxu0 }
 0x1cb   : > { %v7997_v52 = vpop.eup %7996  ;;  %v6719_v49 = vpack.c.bf16 %v7995_v45, %v7987_v10  ;;  %8016 = vpow2.f32 %v5568_v37  ;;  %v5567_v37 = vmul.f32 -1.442695, %v1596_v54  ;;  %v9466_v34 = vpop.f32.mrb[82].mxu0 }
 0x1cc   : > { %v7999_v55 = vpop.eup %7998  ;;  %6951 = vst [vmem:[%s8946_s28 + $0xa8] sm:$0xff] %v6399_v27   ;;  %v6394_v23 = vpack.c.bf16 %v7997_v52, %v7989_v25  ;;  %8018 = vpow2.f32 %v5696_v8  ;;  %10163 = vst [vmem:[#allocation4_spill] sm:$0xff] %v9466_v34  ;;  %v5695_v25 = vmul.f32 -1.442695, %v2108_v7  ;;  %v9473_v8 = vpop.f32.mrb[83].mxu0 }
 0x1cd   : > { %v9463_v6 = vpop.eup %8000  ;;  %7015 = vst [vmem:[%s8946_s28 + $0x2a8] sm:$0xff] %v6719_v49   ;;  %v6714_v10 = vpack.c.bf16 %v7999_v55, %v7991_v2  ;;  %8020 = vpow2.f32 %v5566_v51  ;;  %10165 = vst [vmem:[#allocation24_spill] sm:$0xff] %v9473_v8  ;;  %v9475_v20 = vpop.f32.mrb[83].mxu1 }
 0x1ce   : > { %v9470_v45 = vpop.eup %8002  ;;  %6950 = vst [vmem:[%s8946_s28 + $0xa0] sm:$0xff] %v6394_v23   ;;  %8022 = vpow2.f32 %v5694_v24  ;;  %10166 = vst [vmem:[#allocation25_spill] sm:$0xff] %v9475_v20  ;;  %v9480_v7 = vpop.f32.mrb[84].mxu0 }
 0x1cf   : > { %v9477_v27 = vpop.eup %8004  ;;  %7014 = vst [vmem:[%s8946_s28 + $0x2a0] sm:$0xff] %v6714_v10   ;;  %8024 = vpow2.f32 %v5569_v58  ;;  %10167 = vst [vmem:[#allocation26_spill] sm:$0xff] %v9480_v7  ;;  %v9482_v55 = vpop.f32.mrb[84].mxu1 }
 0x1d0   : > { %v8007_v2 = vpop.eup %8006  ;;  %8026 = vpow2.f32 %v5697_v57  ;;  %10168 = vst [vmem:[#allocation27_spill] sm:$0xff] %v9482_v55 }
 0x1d1   : > { %v8009_v51 = vpop.eup %8008  ;;  %v3363_v54 = vadd.f32 1.0, %v8007_v2  ;;  %8028 = vpow2.f32 %v5567_v37 }
 0x1d2   : > { %v8011_v32 = vpop.eup %8010  ;;  %v3238_v52 = vadd.f32 1.0, %v8009_v51  ;;  %8030 = vpow2.f32 %v5695_v25 }
 0x1d3   : > { %v8013_v49 = vpop.eup %8012  ;;  %8032 = vrcp.f32 %v3363_v54  ;;  %v3366_v24 = vadd.f32 1.0, %v8011_v32  ;;  %v10169_v32 = vld [vmem:[#allocation6_spill] sm:$0xff] }
 0x1d4   : > { %v8015_v23 = vpop.eup %8014  ;;  %8034 = vrcp.f32 %v3238_v52  ;;  %v3236_v20 = vadd.f32 1.0, %v8013_v49  ;;  %v1617_v7 = vadd.f32 %v9193_v50, %v10169_v32  ;;  %v10170_v52 = vld [vmem:[#allocation7_spill] sm:$0xff] }
 0x1d5   : > { %v8017_v10 = vpop.eup %8016  ;;  %8036 = vrcp.f32 %v3366_v24  ;;  %v3364_v58 = vadd.f32 1.0, %v8015_v23  ;;  %v2129_v49 = vadd.f32 %v9193_v50, %v10170_v52 }
 0x1d6   : > { %v8019_v57 = vpop.eup %8018  ;;  %8038 = vrcp.f32 %v3236_v20  ;;  %v3241_v2 = vadd.f32 1.0, %v8017_v10  ;;  %v10171_v20 = vld [vmem:[#allocation8_spill] sm:$0xff] }
 0x1d7   : > { %v8021_v37 = vpop.eup %8020  ;;  %8040 = vrcp.f32 %v3364_v58  ;;  %v3369_v51 = vadd.f32 1.0, %v8019_v57  ;;  %v1609_v10 = vadd.f32 %v9193_v50, %v10171_v20  ;;  %v2132_v20 = vadd.f32 %v9193_v50, %v9220_v56  ;;  %v9506_v56 = vld [vmem:[%s10133_s2] ss:$0 sm:$0xff] }
 0x1d8   : > { %v8023_v25 = vpop.eup %8022  ;;  %8042 = vrcp.f32 %v3241_v2  ;;  %v3239_v54 = vadd.f32 1.0, %v8021_v37  ;;  %v10172_v2 = vld [vmem:[#allocation9_spill] sm:$0xff] }
 0x1d9   : > { %v8025_v8 = vpop.eup %8024  ;;  %8044 = vrcp.f32 %v3369_v51  ;;  %v3367_v55 = vadd.f32 1.0, %v8023_v25  ;;  %v2121_v37 = vadd.f32 %v9193_v50, %v10172_v2  ;;  %v5572_v51 = vmul.f32 -1.442695, %v1617_v7  ;;  %v10173_v25 = vld [vmem:[#allocation10_spill] sm:$0xff]  ;;  %v9498_v2 = vpop.f32.mrb[85].mxu0 }
 0x1da   : > { %v8027_v24 = vpop.eup %8026  ;;  %8046 = vrcp.f32 %v3239_v54  ;;  %v3242_v23 = vadd.f32 1.0, %v8025_v8  ;;  %v1620_v34 = vadd.f32 %v9193_v50, %v10173_v25  ;;  %v5700_v8 = vmul.f32 -1.442695, %v2129_v49  ;;  %v9500_v7 = vpop.f32.mrb[85].mxu1  ;;  %v10174_v49 = vld [vmem:[#allocation11_spill] sm:$0xff] }
 0x1db   : > { %v8029_v58 = vpop.eup %8028  ;;  %8048 = vrcp.f32 %v3367_v55  ;;  %v3370_v57 = vadd.f32 1.0, %v8027_v24  ;;  %v5570_v55 = vmul.f32 -1.442695, %v1609_v10  ;;  %v1612_v24 = vadd.f32 %v9193_v50, %v9222_v61 }
 0x1dc   : > { %v8031_v29 = vpop.eup %8030  ;;  %8050 = vrcp.f32 %v3242_v23  ;;  %v3240_v32 = vadd.f32 1.0, %v8029_v58  ;;  %v2124_v10 = vadd.f32 %v9506_v56, %v10174_v49  ;;  %v10177_v49 = vld [vmem:[#allocation12_spill] sm:$0xff] }
 0x1dd   : > { %v8033_v52 = vpop.eup %8032  ;;  %8052 = vrcp.f32 %v3370_v57  ;;  %v3368_v54 = vadd.f32 1.0, %v8031_v29  ;;  %v5698_v29 = vmul.f32 -1.442695, %v2121_v37  ;;  %v5573_v57 = vmul.f32 -1.442695, %v1620_v34 }
 0x1de   : > { %v8035_v22 = vpop.eup %8034  ;;  %8054 = vrcp.f32 %v3240_v32  ;;  %v1633_v32 = vadd.f32 %v9506_v56, %v9237_v4  ;;  %v5571_v4 = vmul.f32 -1.442695, %v1612_v24 }
 0x1df   : > { %v8037_v23 = vpop.eup %8036  ;;  %v6409_v58 = vpack.c.bf16 %v8035_v22, %v9463_v6  ;;  %8056 = vrcp.f32 %v3368_v54  ;;  %v9513_v22 = vpop.f32.mrb[86].mxu0  ;;  %v5701_v54 = vmul.f32 -1.442695, %v2132_v20 }
 0x1e0   : > { %v8039_v50 = vpop.eup %8038  ;;  %v6729_v61 = vpack.c.bf16 %v8037_v23, %v9470_v45  ;;  %8058 = vpow2.f32 %v5572_v51  ;;  %10175 = vst [vmem:[#allocation6_spill] sm:$0xff] %v9513_v22  ;;  %v9515_v6 = vpop.f32.mrb[86].mxu1  ;;  %v2145_v45 = vadd.f32 %v9506_v56, %v10177_v49  ;;  %v1625_v23 = vadd.f32 %v9506_v56, %v9243_v41 }
 0x1e1   : > { %10176 = vst [vmem:[#allocation7_spill] sm:$0xff] %v9515_v6  ;;  %v8041_v37 = vpop.eup %8040  ;;  %6953 = vst [vmem:[%s8946_s28 + $0xb8] sm:$0xff] %v6409_v58   ;;  %v6404_v25 = vpack.c.bf16 %v8039_v50, %v9477_v27  ;;  %8060 = vpow2.f32 %v5700_v8  ;;  %v9524_v6 = vpop.f32.mrb[87].mxu0  ;;  %v5699_v27 = vmul.f32 -1.442695, %v2124_v10  ;;  %v10178_v8 = vld [vmem:[#allocation13_spill] sm:$0xff] }
 0x1e2   : > { %v8043_v51 = vpop.eup %8042  ;;  %7017 = vst [vmem:[%s8946_s28 + $0x2b8] sm:$0xff] %v6729_v61   ;;  %v6724_v34 = vpack.c.bf16 %v8041_v37, %v8033_v52  ;;  %8062 = vpow2.f32 %v5570_v55  ;;  %v9526_v22 = vpop.f32.mrb[87].mxu1  ;;  %v2137_v20 = vadd.f32 %v9506_v56, %v10178_v8  ;;  %v5576_v52 = vmul.f32 -1.442695, %v1633_v32 }
 0x1e3   : > { %v8045_v58 = vpop.eup %8044  ;;  %6952 = vst [vmem:[%s8946_s28 + $0xb0] sm:$0xff] %v6404_v25   ;;  %8064 = vpow2.f32 %v5698_v29  ;;  %v1636_v55 = vadd.f32 %v9506_v56, %v9248_v48  ;;  %v5704_v41 = vmul.f32 -1.442695, %v2145_v45  ;;  %v5574_v37 = vmul.f32 -1.442695, %v1625_v23  ;;  %v9534_v32 = vpop.f32.mrb[88].mxu0 }
 0x1e4   : > { %v8047_v50 = vpop.eup %8046  ;;  %7016 = vst [vmem:[%s8946_s28 + $0x2b0] sm:$0xff] %v6724_v34   ;;  %8066 = vpow2.f32 %v5573_v57  ;;  %v5702_v10 = vmul.f32 -1.442695, %v2137_v20  ;;  %v9536_v48 = vpop.f32.mrb[88].mxu1 }
 0x1e5   : > { %v8049_v24 = vpop.eup %8048  ;;  %8068 = vpow2.f32 %v5701_v54  ;;  %v5577_v57 = vmul.f32 -1.442695, %v1636_v55  ;;  %v9539_v34 = vpop.f32.mrb[89].mxu0 }
 0x1e6   : > { %v8051_v61 = vpop.eup %8050  ;;  %8070 = vpow2.f32 %v5571_v4  ;;  %10179 = vst [vmem:[#allocation8_spill] sm:$0xff] %v9539_v34 }
 0x1e7   : > { %v8053_v25 = vpop.eup %8052  ;;  %v6419_v29 = vpack.c.bf16 %v8051_v61, %v8043_v51  ;;  %8072 = vpow2.f32 %v5699_v27  ;;  %v9541_v51 = vpop.f32.mrb[89].mxu1 }
 0x1e8   : > { %v8055_v49 = vpop.eup %8054  ;;  %v6739_v8 = vpack.c.bf16 %v8053_v25, %v8045_v58  ;;  %8074 = vpow2.f32 %v5576_v52  ;;  %10180 = vst [vmem:[#allocation9_spill] sm:$0xff] %v9541_v51  ;;  %v9544_v58 = vpop.f32.mrb[90].mxu0 }
 0x1e9   : > { %v8057_v54 = vpop.eup %8056  ;;  %6955 = vst [vmem:[%s8946_s28 + $0xc8] sm:$0xff] %v6419_v29   ;;  %v6414_v45 = vpack.c.bf16 %v8055_v49, %v8047_v50  ;;  %8076 = vpow2.f32 %v5704_v41  ;;  %10181 = vst [vmem:[#allocation10_spill] sm:$0xff] %v9544_v58  ;;  %v9546_v27 = vpop.f32.mrb[90].mxu1 }
 0x1ea   : > { %v8059_v4 = vpop.eup %8058  ;;  %7019 = vst [vmem:[%s8946_s28 + $0x2c8] sm:$0xff] %v6739_v8   ;;  %v6734_v23 = vpack.c.bf16 %v8057_v54, %v8049_v24  ;;  %8078 = vpow2.f32 %v5574_v37  ;;  %10182 = vst [vmem:[#allocation11_spill] sm:$0xff] %v9546_v27  ;;  %v9549_v55 = vpop.f32.mrb[91].mxu0  ;;  %v10189_v27 = vld [vmem:[#allocation18_spill] sm:$0xff] }
 0x1eb   : > { %v8061_v20 = vpop.eup %8060  ;;  %6954 = vst [vmem:[%s8946_s28 + $0xc0] sm:$0xff] %v6414_v45   ;;  %v3245_v52 = vadd.f32 1.0, %v8059_v4  ;;  %8080 = vpow2.f32 %v5702_v10  ;;  %10183 = vst [vmem:[#allocation12_spill] sm:$0xff] %v9549_v55  ;;  %v9564_v55 = vpop.f32.mrb[91].mxu1 }
 0x1ec   : > { %v8063_v50 = vpop.eup %8062  ;;  %7018 = vst [vmem:[%s8946_s28 + $0x2c0] sm:$0xff] %v6734_v23   ;;  %v3373_v41 = vadd.f32 1.0, %v8061_v20  ;;  %8082 = vpow2.f32 %v5577_v57  ;;  %v2148_v57 = vadd.f32 %v9506_v56, %v9250_v11  ;;  %10187 = vst [vmem:[#allocation13_spill] sm:$0xff] %v9564_v55  ;;  %v9578_v34 = vpop.f32.mrb[92].mxu0 }
 0x1ed   : > { %v8065_v61 = vpop.eup %8064  ;;  %8084 = vrcp.f32 %v3245_v52  ;;  %v3243_v25 = vadd.f32 1.0, %v8063_v50  ;;  %v1628_v50 = vadd.f32 %v9506_v56, %v9255_v16 }
 0x1ee   : > { %v8067_v29 = vpop.eup %8066  ;;  %8086 = vrcp.f32 %v3373_v41  ;;  %v3371_v24 = vadd.f32 1.0, %v8065_v61 }
 0x1ef   : > { %v8069_v37 = vpop.eup %8068  ;;  %8088 = vrcp.f32 %v3243_v25  ;;  %v3246_v49 = vadd.f32 1.0, %v8067_v29  ;;  %v2140_v25 = vadd.f32 %v9506_v56, %v9257_v46 }
 0x1f0   : > { %v8071_v8 = vpop.eup %8070  ;;  %8090 = vrcp.f32 %v3371_v24  ;;  %v3374_v54 = vadd.f32 1.0, %v8069_v37  ;;  %v10184_v37 = vld [vmem:[#allocation14_spill] sm:$0xff] }
 0x1f1   : > { %v8073_v45 = vpop.eup %8072  ;;  %8092 = vrcp.f32 %v3246_v49  ;;  %v3244_v10 = vadd.f32 1.0, %v8071_v8  ;;  %v1649_v49 = vadd.f32 %v9506_v56, %v10184_v37  ;;  %v10188_v37 = vld [vmem:[#allocation17_spill] sm:$0xff] }
 0x1f2   : > { %v8075_v4 = vpop.eup %8074  ;;  %8094 = vrcp.f32 %v3374_v54  ;;  %v3372_v23 = vadd.f32 1.0, %v8073_v45  ;;  %v5705_v54 = vmul.f32 -1.442695, %v2148_v57  ;;  %v10185_v45 = vld [vmem:[#allocation15_spill] sm:$0xff] }
 0x1f3   : > { %v8077_v20 = vpop.eup %8076  ;;  %8096 = vrcp.f32 %v3244_v10  ;;  %v3249_v52 = vadd.f32 1.0, %v8075_v4  ;;  %v2161_v10 = vadd.f32 %v9506_v56, %v10185_v45  ;;  %v5580_v57 = vmul.f32 -1.442695, %v1649_v49 }
 0x1f4   : > { %v8079_v41 = vpop.eup %8078  ;;  %8098 = vrcp.f32 %v3372_v23  ;;  %v3377_v61 = vadd.f32 1.0, %v8077_v20  ;;  %v5575_v23 = vmul.f32 -1.442695, %v1628_v50  ;;  %v10186_v20 = vld [vmem:[#allocation16_spill] sm:$0xff]  ;;  %v1652_v45 = vadd.f32 %v9506_v56, %v10189_v27 }
 0x1f5   : > { %v8081_v29 = vpop.eup %8080  ;;  %8100 = vrcp.f32 %v3249_v52  ;;  %v3247_v24 = vadd.f32 1.0, %v8079_v41  ;;  %v1641_v46 = vadd.f32 %v9506_v56, %v10186_v20  ;;  %v5703_v41 = vmul.f32 -1.442695, %v2140_v25  ;;  %v10190_v25 = vld [vmem:[#allocation19_spill] sm:$0xff] }
 0x1f6   : > { %v8083_v8 = vpop.eup %8082  ;;  %8102 = vrcp.f32 %v3377_v61  ;;  %v3375_v11 = vadd.f32 1.0, %v8081_v29  ;;  %v2153_v61 = vadd.f32 %v9506_v56, %v10188_v37  ;;  %v5708_v50 = vmul.f32 -1.442695, %v2161_v10 }
 0x1f7   : > { %v8085_v16 = vpop.eup %8084  ;;  %8104 = vrcp.f32 %v3247_v24  ;;  %v3250_v4 = vadd.f32 1.0, %v8083_v8  ;;  %v2164_v8 = vadd.f32 %v9506_v56, %v9277_v14  ;;  %v1644_v55 = vadd.f32 %v9506_v56, %v10190_v25  ;;  %v10192_v14 = vld [vmem:[#allocation21_spill] sm:$0xff] }
 0x1f8   : > { %v8087_v52 = vpop.eup %8086  ;;  %8106 = vrcp.f32 %v3375_v11  ;;  %v5578_v11 = vmul.f32 -1.442695, %v1641_v46  ;;  %v5706_v49 = vmul.f32 -1.442695, %v2153_v61  ;;  %v5581_v10 = vmul.f32 -1.442695, %v1652_v45 }
 0x1f9   : > { %v8089_v29 = vpop.eup %8088  ;;  %8108 = vrcp.f32 %v3250_v4  ;;  %v10191_v4 = vld [vmem:[#allocation20_spill] sm:$0xff]  ;;  %v9580_v46 = vpop.f32.mrb[92].mxu1  ;;  %v2177_v61 = vadd.f32 %v9506_v56, %v9291_v35 }
 0x1fa   : > { %v8091_v24 = vpop.eup %8090  ;;  %8110 = vpow2.f32 %v5705_v54  ;;  %v2156_v27 = vadd.f32 %v9506_v56, %v10191_v4 }
 0x1fb   : > { %v8093_v20 = vpop.eup %8092  ;;  %8112 = vpow2.f32 %v5575_v23  ;;  %v1665_v23 = vadd.f32 %v9506_v56, %v10192_v14 }
 0x1fc   : > { %v8095_v37 = vpop.eup %8094  ;;  %v6429_v58 = vpack.c.bf16 %v8093_v20, %v8085_v16  ;;  %8114 = vpow2.f32 %v5703_v41  ;;  %v5709_v41 = vmul.f32 -1.442695, %v2164_v8  ;;  %v9585_v20 = vpop.f32.mrb[93].mxu0  ;;  %v5712_v8 = vmul.f32 -1.442695, %v2177_v61 }
 0x1fd   : > { %v8097_v51 = vpop.eup %8096  ;;  %v6749_v54 = vpack.c.bf16 %v8095_v37, %v8087_v52  ;;  %8116 = vpow2.f32 %v5580_v57  ;;  %v9587_v52 = vpop.f32.mrb[93].mxu1  ;;  %v5579_v37 = vmul.f32 -1.442695, %v1644_v55 }
 0x1fe   : > { %v8099_v25 = vpop.eup %8098  ;;  %6957 = vst [vmem:[%s8946_s28 + $0xd8] sm:$0xff] %v6429_v58   ;;  %v6424_v16 = vpack.c.bf16 %v8097_v51, %v8089_v29  ;;  %8118 = vpow2.f32 %v5708_v50  ;;  %v9590_v4 = vpop.f32.mrb[94].mxu0  ;;  %v5707_v58 = vmul.f32 -1.442695, %v2156_v27 }
 0x1ff   : > { %v8101_v57 = vpop.eup %8100  ;;  %7021 = vst [vmem:[%s8946_s28 + $0x2d8] sm:$0xff] %v6749_v54   ;;  %v6744_v45 = vpack.c.bf16 %v8099_v25, %v8091_v24  ;;  %8120 = vpow2.f32 %v5578_v11  ;;  %v9592_v14 = vpop.f32.mrb[94].mxu1  ;;  %v5584_v24 = vmul.f32 -1.442695, %v1665_v23 }
 0x200   : > { %v9594_v51 = vpop.eup %8102  ;;  %6956 = vst [vmem:[%s8946_s28 + $0xd0] sm:$0xff] %v6424_v16   ;;  %8122 = vpow2.f32 %v5706_v49  ;;  %v9597_v35 = vpop.f32.mrb[95].mxu0 }
 0x201   : > { %v9599_v29 = vpop.f32.mrb[95].mxu1  ;;  %v9601_v50 = vpop.eup %8104  ;;  %7020 = vst [vmem:[%s8946_s28 + $0x2d0] sm:$0xff] %v6744_v45   ;;  %8124 = vpow2.f32 %v5581_v10 }
 0x202   : > { %10193 = vst [vmem:[#allocation14_spill] sm:$0xff] %v9599_v29  ;;  %v9604_v55 = vpop.eup %8106  ;;  %8126 = vpow2.f32 %v5709_v41  ;;  %v9606_v16 = vpop.f32.mrb[96].mxu0 }
 0x203   : > { %v8109_v11 = vpop.eup %8108  ;;  %8128 = vpow2.f32 %v5579_v37  ;;  %10194 = vst [vmem:[#allocation15_spill] sm:$0xff] %v9606_v16  ;;  %v9608_v29 = vpop.f32.mrb[96].mxu1 }
 0x204   : > { %v8111_v54 = vpop.eup %8110  ;;  %v6439_v25 = vpack.c.bf16 %v8109_v11, %v8101_v57  ;;  %8130 = vpow2.f32 %v5707_v58  ;;  %10195 = vst [vmem:[#allocation16_spill] sm:$0xff] %v9608_v29  ;;  %v9611_v23 = vpop.f32.mrb[97].mxu0 }
 0x205   : > { %v8113_v49 = vpop.eup %8112  ;;  %v3378_v27 = vadd.f32 1.0, %v8111_v54  ;;  %8132 = vpow2.f32 %v5584_v24  ;;  %10196 = vst [vmem:[#allocation17_spill] sm:$0xff] %v9611_v23  ;;  %v9613_v41 = vpop.f32.mrb[97].mxu1  ;;  %v10198_v23 = vld [vmem:[#allocation22_spill] sm:$0xff] }
 0x206   : > { %v8115_v45 = vpop.eup %8114  ;;  %6959 = vst [vmem:[%s8946_s28 + $0xe8] sm:$0xff] %v6439_v25   ;;  %v3248_v10 = vadd.f32 1.0, %v8113_v49  ;;  %8134 = vpow2.f32 %v5712_v8  ;;  %10197 = vst [vmem:[#allocation18_spill] sm:$0xff] %v9613_v41  ;;  %v1657_v41 = vadd.f32 %v9506_v56, %v10198_v23 }
 0x207   : > { %v8117_v61 = vpop.eup %8116  ;;  %8136 = vrcp.f32 %v3378_v27  ;;  %v3376_v37 = vadd.f32 1.0, %v8115_v45 }
 0x208   : > { %v8119_v57 = vpop.eup %8118  ;;  %8138 = vrcp.f32 %v3248_v10  ;;  %v3253_v58 = vadd.f32 1.0, %v8117_v61  ;;  %v2169_v10 = vadd.f32 %v9506_v56, %v9301_v13 }
 0x209   : > { %v8121_v11 = vpop.eup %8120  ;;  %8140 = vrcp.f32 %v3376_v37  ;;  %v3381_v24 = vadd.f32 1.0, %v8119_v57  ;;  %v1668_v57 = vadd.f32 %v9506_v56, %v9309_v38  ;;  %v2172_v38 = vadd.f32 %v9506_v56, %v9323_v5 }
 0x20a   : > { %v8123_v54 = vpop.eup %8122  ;;  %8142 = vrcp.f32 %v3253_v58  ;;  %v3251_v29 = vadd.f32 1.0, %v8121_v11  ;;  %v2193_v5 = vadd.f32 %v9506_v56, %v9335_v47  ;;  %v2185_v47 = vadd.f32 %v9506_v56, %v9340_v26 }
 0x20b   : > { %v8125_v16 = vpop.eup %8124  ;;  %8144 = vrcp.f32 %v3381_v24  ;;  %v3379_v25 = vadd.f32 1.0, %v8123_v54  ;;  %v5582_v24 = vmul.f32 -1.442695, %v1657_v41  ;;  %v1660_v54 = vadd.f32 %v9506_v56, %v9321_v30  ;;  %v9630_v41 = vpop.f32.mrb[98].mxu0 }
 0x20c   : > { %v8127_v8 = vpop.eup %8126  ;;  %8146 = vrcp.f32 %v3251_v29  ;;  %v3254_v49 = vadd.f32 1.0, %v8125_v16  ;;  %v2180_v29 = vadd.f32 %v9506_v56, %v9311_v44  ;;  %v5585_v44 = vmul.f32 -1.442695, %v1668_v57  ;;  %v9632_v30 = vpop.f32.mrb[98].mxu1 }
 0x20d   : > { %v8129_v27 = vpop.eup %8128  ;;  %8148 = vrcp.f32 %v3379_v25  ;;  %v3382_v45 = vadd.f32 1.0, %v8127_v8  ;;  %v5710_v8 = vmul.f32 -1.442695, %v2169_v10  ;;  %v1676_v26 = vadd.f32 %v9506_v56, %v9350_v63 }
 0x20e   : > { %v8131_v61 = vpop.eup %8130  ;;  %8150 = vrcp.f32 %v3254_v49  ;;  %v3252_v37 = vadd.f32 1.0, %v8129_v27  ;;  %v5713_v10 = vmul.f32 -1.442695, %v2180_v29  ;;  %v5711_v29 = vmul.f32 -1.442695, %v2172_v38 }
 0x20f   : > { %v8133_v58 = vpop.eup %8132  ;;  %8152 = vrcp.f32 %v3382_v45  ;;  %v3380_v11 = vadd.f32 1.0, %v8131_v61  ;;  %v1681_v45 = vadd.f32 %v9506_v56, %v9333_v9  ;;  %v5583_v9 = vmul.f32 -1.442695, %v1660_v54 }
 0x210   : > { %v8135_v16 = vpop.eup %8134  ;;  %8154 = vrcp.f32 %v3252_v37  ;;  %v3257_v23 = vadd.f32 1.0, %v8133_v58  ;;  %v1673_v58 = vadd.f32 %v9506_v56, %v9338_v39  ;;  %v5716_v39 = vmul.f32 -1.442695, %v2193_v5 }
 0x211   : > { %v8137_v13 = vpop.eup %8136  ;;  %8156 = vrcp.f32 %v3380_v11  ;;  %v3385_v25 = vadd.f32 1.0, %v8135_v16  ;;  %v9641_v11 = vpop.f32.mrb[99].mxu0 }
 0x212   : > { %v8139_v49 = vpop.eup %8138  ;;  %v6759_v27 = vpack.c.bf16 %v8137_v13, %v9594_v51  ;;  %8158 = vrcp.f32 %v3257_v23  ;;  %v9643_v16 = vpop.f32.mrb[99].mxu1  ;;  %v2196_v13 = vadd.f32 %v9506_v56, %v9347_v36 }
 0x213   : > { %v8141_v61 = vpop.eup %8140  ;;  %v6434_v37 = vpack.c.bf16 %v8139_v49, %v9601_v50  ;;  %8160 = vrcp.f32 %v3385_v25 }
 0x214   : > { %v8143_v51 = vpop.eup %8142  ;;  %7023 = vst [vmem:[%s8946_s28 + $0x2e8] sm:$0xff] %v6759_v27   ;;  %v6754_v57 = vpack.c.bf16 %v8141_v61, %v9604_v55  ;;  %8162 = vpow2.f32 %v5582_v24  ;;  %v5588_v55 = vmul.f32 -1.442695, %v1681_v45  ;;  %v1684_v24 = vadd.f32 %v9506_v56, %v9345_v33  ;;  %v9655_v61 = vpop.f32.mrb[100].mxu0 }
 0x215   : > { %v8145_v50 = vpop.eup %8144  ;;  %6958 = vst [vmem:[%s8946_s28 + $0xe0] sm:$0xff] %v6434_v37   ;;  %8164 = vpow2.f32 %v5710_v8  ;;  %v5586_v8 = vmul.f32 -1.442695, %v1673_v58  ;;  %v5714_v27 = vmul.f32 -1.442695, %v2185_v47  ;;  %v9657_v37 = vpop.f32.mrb[100].mxu1 }
 0x216   : > { %v8147_v23 = vpop.eup %8146  ;;  %7022 = vst [vmem:[%s8946_s28 + $0x2e0] sm:$0xff] %v6754_v57   ;;  %8166 = vpow2.f32 %v5585_v44  ;;  %v5589_v45 = vmul.f32 -1.442695, %v1684_v24  ;;  %v5717_v5 = vmul.f32 -1.442695, %v2196_v13  ;;  %v9660_v63 = vpop.f32.mrb[101].mxu0 }
 0x217   : > { %v8149_v54 = vpop.eup %8148  ;;  %8168 = vpow2.f32 %v5713_v10  ;;  %v5587_v58 = vmul.f32 -1.442695, %v1676_v26 }
 0x218   : > { %v8151_v25 = vpop.eup %8150  ;;  %8170 = vpow2.f32 %v5583_v9 }
 0x219   : > { %v8153_v38 = vpop.eup %8152  ;;  %v6449_v49 = vpack.c.bf16 %v8151_v25, %v8143_v51  ;;  %8172 = vpow2.f32 %v5711_v29  ;;  %v9662_v51 = vpop.f32.mrb[101].mxu1 }
 0x21a   : > { %v8155_v44 = vpop.eup %8154  ;;  %v6769_v33 = vpack.c.bf16 %v8153_v38, %v8145_v50  ;;  %8174 = vpow2.f32 %v5588_v55  ;;  %v9667_v50 = vpop.f32.mrb[102].mxu0 }
 0x21b   : > { %v8157_v36 = vpop.eup %8156  ;;  %6961 = vst [vmem:[%s8946_s28 + $0xf8] sm:$0xff] %v6449_v49   ;;  %v6444_v10 = vpack.c.bf16 %v8155_v44, %v8147_v23  ;;  %8176 = vpow2.f32 %v5716_v39  ;;  %v9669_v29 = vpop.f32.mrb[102].mxu1 }
 0x21c   : > { %v9664_v57 = vpop.eup %8158  ;;  %7025 = vst [vmem:[%s8946_s28 + $0x2f8] sm:$0xff] %v6769_v33   ;;  %v6764_v9 = vpack.c.bf16 %v8157_v36, %v8149_v54  ;;  %8178 = vpow2.f32 %v5586_v8  ;;  %v9674_v23 = vpop.f32.mrb[103].mxu0 }
 0x21d   : > { %v9671_v47 = vpop.eup %8160  ;;  %6960 = vst [vmem:[%s8946_s28 + $0xf0] sm:$0xff] %v6444_v10   ;;  %8180 = vpow2.f32 %v5714_v27  ;;  %v9676_v55 = vpop.f32.mrb[103].mxu1 }
 0x21e   : > { %v8163_v24 = vpop.eup %8162  ;;  %7024 = vst [vmem:[%s8946_s28 + $0x2f0] sm:$0xff] %v6764_v9   ;;  %8182 = vpow2.f32 %v5589_v45  ;;  %v9679_v27 = vpop.f32.mrb[104].mxu0 }
 0x21f   : > { %v8165_v39 = vpop.eup %8164  ;;  %v3255_v13 = vadd.f32 1.0, %v8163_v24  ;;  %8184 = vpow2.f32 %v5717_v5  ;;  %v2188_v24 = vadd.f32 %v9506_v56, %v9352_v19 }
 0x220   : > { %v8167_v54 = vpop.eup %8166  ;;  %v3383_v25 = vadd.f32 1.0, %v8165_v39  ;;  %8186 = vpow2.f32 %v5587_v58 }
 0x221   : > { %v8169_v8 = vpop.eup %8168  ;;  %8188 = vrcp.f32 %v3255_v13  ;;  %v3258_v26 = vadd.f32 1.0, %v8167_v54  ;;  %v1697_v54 = vadd.f32 %v9506_v56, %v9378_v1 }
 0x222   : > { %v8171_v38 = vpop.eup %8170  ;;  %8190 = vrcp.f32 %v3383_v25  ;;  %v3386_v49 = vadd.f32 1.0, %v8169_v8 }
 0x223   : > { %v8173_v44 = vpop.eup %8172  ;;  %8192 = vrcp.f32 %v3258_v26  ;;  %v3256_v33 = vadd.f32 1.0, %v8171_v38  ;;  %v2209_v26 = vadd.f32 %v9506_v56, %v9380_v18  ;;  %v1700_v18 = vadd.f32 %v9506_v56, %v9392_v15 }
 0x224   : > { %v8175_v36 = vpop.eup %8174  ;;  %8194 = vrcp.f32 %v3386_v49  ;;  %v3384_v45 = vadd.f32 1.0, %v8173_v44  ;;  %v1689_v44 = vadd.f32 %v9506_v56, %v9385_v28  ;;  %v2212_v28 = vadd.f32 %v9506_v56, %v9394_v0 }
 0x225   : > { %v8177_v10 = vpop.eup %8176  ;;  %8196 = vrcp.f32 %v3256_v33  ;;  %v3261_v5 = vadd.f32 1.0, %v8175_v36  ;;  %v5715_v36 = vmul.f32 -1.442695, %v2188_v24  ;;  %v2204_v0 = vadd.f32 %v9506_v56, %v9399_v40 }
 0x226   : > { %v8179_v9 = vpop.eup %8178  ;;  %8198 = vrcp.f32 %v3384_v45  ;;  %v3389_v58 = vadd.f32 1.0, %v8177_v10  ;;  %v2201_v45 = vadd.f32 %v9506_v56, %v9387_v31  ;;  %v5590_v24 = vmul.f32 -1.442695, %v1689_v44 }
 0x227   : > { %v8181_v39 = vpop.eup %8180  ;;  %8200 = vrcp.f32 %v3261_v5  ;;  %v3259_v13 = vadd.f32 1.0, %v8179_v9  ;;  %v5592_v5 = vmul.f32 -1.442695, %v1697_v54  ;;  %v9693_v9 = vpop.f32.mrb[104].mxu1  ;;  %v1692_v31 = vadd.f32 %v9506_v56, %v9397_v3 }
 0x228   : > { %v8183_v25 = vpop.eup %8182  ;;  %8202 = vrcp.f32 %v3389_v58  ;;  %v3387_v8 = vadd.f32 1.0, %v8181_v39  ;;  %v5720_v39 = vmul.f32 -1.442695, %v2209_v26  ;;  %v9701_v54 = vpop.f32.mrb[105].mxu1  ;;  %v5593_v44 = vmul.f32 -1.442695, %v1700_v18 }
 0x229   : > { %v8185_v38 = vpop.eup %8184  ;;  %8204 = vrcp.f32 %v3259_v13  ;;  %v3262_v49 = vadd.f32 1.0, %v8183_v25  ;;  %v9699_v25 = vpop.f32.mrb[105].mxu0  ;;  %v1713_v3 = vadd.f32 %v9506_v56, %v9406_v59  ;;  %v2225_v40 = vadd.f32 %v9506_v56, %v9408_v43 }
 0x22a   : > { %v8187_v33 = vpop.eup %8186  ;;  %8206 = vrcp.f32 %v3387_v8  ;;  %v3390_v19 = vadd.f32 1.0, %v8185_v38  ;;  %v5718_v38 = vmul.f32 -1.442695, %v2201_v45  ;;  %v5721_v45 = vmul.f32 -1.442695, %v2212_v28 }
 0x22b   : > { %v8189_v1 = vpop.eup %8188  ;;  %8208 = vrcp.f32 %v3262_v49  ;;  %v3260_v10 = vadd.f32 1.0, %v8187_v33  ;;  %v9709_v33 = vpop.f32.mrb[106].mxu0  ;;  %v1705_v59 = vadd.f32 %v9506_v56, %v9411_v60  ;;  %v5724_v60 = vmul.f32 -1.442695, %v2225_v40 }
 0x22c   : > { %v8191_v58 = vpop.eup %8190  ;;  %8210 = vrcp.f32 %v3390_v19  ;;  %v9711_v19 = vpop.f32.mrb[106].mxu1 }
 0x22d   : > { %v8193_v13 = vpop.eup %8192  ;;  %8212 = vrcp.f32 %v3260_v10  ;;  %v9719_v18 = vpop.f32.mrb[107].mxu0 }
 0x22e   : > { %v8195_v15 = vpop.eup %8194  ;;  %v6459_v8 = vpack.c.bf16 %v8193_v13, %v9664_v57  ;;  %8214 = vpow2.f32 %v5715_v36  ;;  %v9721_v13 = vpop.f32.mrb[107].mxu1 }
 0x22f   : > { %v8197_v26 = vpop.eup %8196  ;;  %v6779_v49 = vpack.c.bf16 %v8195_v15, %v9671_v47  ;;  %8216 = vpow2.f32 %v5592_v5  ;;  %v5591_v5 = vmul.f32 -1.442695, %v1692_v31  ;;  %v5594_v31 = vmul.f32 -1.442695, %v1705_v59 }
 0x230   : > { %v8199_v57 = vpop.eup %8198  ;;  %6963 = vst [vmem:[%s8946_s28 + $0x108] sm:$0xff] %v6459_v8   ;;  %v6454_v36 = vpack.c.bf16 %v8197_v26, %v8189_v1  ;;  %8218 = vpow2.f32 %v5720_v39  ;;  %v5719_v1 = vmul.f32 -1.442695, %v2204_v0  ;;  %v2217_v39 = vadd.f32 %v9506_v56, %v9413_v21  ;;  %v9729_v21 = vpop.f32.mrb[108].mxu0 }
 0x231   : > { %v8201_v47 = vpop.eup %8200  ;;  %7027 = vst [vmem:[%s8946_s28 + $0x308] sm:$0xff] %v6779_v49   ;;  %v6774_v10 = vpack.c.bf16 %v8199_v57, %v8191_v58  ;;  %8220 = vpow2.f32 %v5590_v24  ;;  %v5596_v58 = vmul.f32 -1.442695, %v1713_v3 }
 0x232   : > { %v8203_v15 = vpop.eup %8202  ;;  %6962 = vst [vmem:[%s8946_s28 + $0x100] sm:$0xff] %v6454_v36   ;;  %8222 = vpow2.f32 %v5718_v38  ;;  %v5722_v38 = vmul.f32 -1.442695, %v2217_v39  ;;  %v9734_v36 = vpop.f32.mrb[109].mxu0 }
 0x233   : > { %v8205_v43 = vpop.eup %8204  ;;  %7026 = vst [vmem:[%s8946_s28 + $0x300] sm:$0xff] %v6774_v10   ;;  %8224 = vpow2.f32 %v5593_v44  ;;  %v9731_v44 = vpop.f32.mrb[108].mxu1 }
 0x234   : > { %v9727_v28 = vpop.eup %8206  ;;  %8226 = vpow2.f32 %v5721_v45  ;;  %v9736_v45 = vpop.f32.mrb[109].mxu1 }
 0x235   : > { %v8209_v24 = vpop.eup %8208  ;;  %8228 = vpow2.f32 %v5591_v5  ;;  %v9739_v10 = vpop.f32.mrb[110].mxu0 }
 0x236   : > { %v8211_v8 = vpop.eup %8210  ;;  %v6469_v26 = vpack.c.bf16 %v8209_v24, %v8201_v47  ;;  %8230 = vpow2.f32 %v5719_v1  ;;  %10199 = vst [vmem:[#allocation19_spill] sm:$0xff] %v9739_v10  ;;  %v9741_v5 = vpop.f32.mrb[110].mxu1 }
 0x237   : > { %v8213_v0 = vpop.eup %8212  ;;  %v6789_v49 = vpack.c.bf16 %v8211_v8, %v8203_v15  ;;  %8232 = vpow2.f32 %v5596_v58  ;;  %10200 = vst [vmem:[#allocation20_spill] sm:$0xff] %v9741_v5 }
 0x238   : > { %v8215_v3 = vpop.eup %8214  ;;  %6965 = vst [vmem:[%s8946_s28 + $0x118] sm:$0xff] %v6469_v26   ;;  %v6464_v57 = vpack.c.bf16 %v8213_v0, %v8205_v43  ;;  %8234 = vpow2.f32 %v5724_v60 }
 0x239   : > { %v8217_v40 = vpop.eup %8216  ;;  %7029 = vst [vmem:[%s8946_s28 + $0x318] sm:$0xff] %v6789_v49   ;;  %v3388_v47 = vadd.f32 1.0, %v8215_v3  ;;  %8236 = vpow2.f32 %v5594_v31 }
 0x23a   : > { %v8219_v59 = vpop.eup %8218  ;;  %6964 = vst [vmem:[%s8946_s28 + $0x110] sm:$0xff] %v6464_v57   ;;  %v3265_v15 = vadd.f32 1.0, %v8217_v40  ;;  %8238 = vpow2.f32 %v5722_v38  ;;  %v1716_v38 = vadd.f32 %v9506_v56, %v9416_v17 }
 0x23b   : > { %v8221_v1 = vpop.eup %8220  ;;  %8240 = vrcp.f32 %v3388_v47  ;;  %v3393_v39 = vadd.f32 1.0, %v8219_v59  ;;  %v2228_v47 = vadd.f32 %v9506_v56, %v9430_v53 }
 0x23c   : > { %v8223_v43 = vpop.eup %8222  ;;  %8242 = vrcp.f32 %v3265_v15  ;;  %v3263_v58 = vadd.f32 1.0, %v8221_v1  ;;  %v10201_v1 = vld [vmem:[#allocation2_spill] sm:$0xff] }
 0x23d   : > { %v8225_v60 = vpop.eup %8224  ;;  %8244 = vrcp.f32 %v3393_v39  ;;  %v3391_v24 = vadd.f32 1.0, %v8223_v43  ;;  %v1708_v39 = vadd.f32 %v9506_v56, %v10201_v1  ;;  %v9761_v1 = vpop.f32.mrb[111].mxu1 }
 0x23e   : > { %v8227_v8 = vpop.eup %8226  ;;  %8246 = vrcp.f32 %v3263_v58  ;;  %v3266_v31 = vadd.f32 1.0, %v8225_v60  ;;  %v10202_v60 = vld [vmem:[#allocation23_spill] sm:$0xff]  ;;  %10204 = vst [vmem:[#allocation22_spill] sm:$0xff] %v9761_v1 }
 0x23f   : > { %v8229_v26 = vpop.eup %8228  ;;  %8248 = vrcp.f32 %v3391_v24  ;;  %v3394_v0 = vadd.f32 1.0, %v8227_v8  ;;  %v2220_v24 = vadd.f32 %v9506_v56, %v10202_v60 }
 0x240   : > { %v8231_v49 = vpop.eup %8230  ;;  %8250 = vrcp.f32 %v3266_v31  ;;  %v3264_v3 = vadd.f32 1.0, %v8229_v26  ;;  %v5597_v31 = vmul.f32 -1.442695, %v1716_v38  ;;  %v1729_v26 = vadd.f32 %v9506_v56, %v9454_v62  ;;  %v9759_v38 = vpop.f32.mrb[111].mxu0 }
 0x241   : > { %v8233_v57 = vpop.eup %8232  ;;  %8252 = vrcp.f32 %v3394_v0  ;;  %v3392_v40 = vadd.f32 1.0, %v8231_v49  ;;  %v5725_v49 = vmul.f32 -1.442695, %v2228_v47  ;;  %10203 = vst [vmem:[#allocation21_spill] sm:$0xff] %v9759_v38  ;;  %v9776_v10 = vpop.f32.mrb[112].mxu0 }
 0x242   : > { %v8235_v59 = vpop.eup %8234  ;;  %8254 = vrcp.f32 %v3264_v3  ;;  %v3269_v15 = vadd.f32 1.0, %v8233_v57  ;;  %v2241_v3 = vadd.f32 %v9506_v56, %v9456_v42  ;;  %v5600_v42 = vmul.f32 -1.442695, %v1729_v26  ;;  %v10209_v26 = vld [vmem:[#allocation25_spill] sm:$0xff] }
 0x243   : > { %v8237_v43 = vpop.eup %8236  ;;  %8256 = vrcp.f32 %v3392_v40  ;;  %v3397_v58 = vadd.f32 1.0, %v8235_v59  ;;  %v5595_v59 = vmul.f32 -1.442695, %v1708_v39 }
 0x244   : > { %v8239_v8 = vpop.eup %8238  ;;  %8258 = vrcp.f32 %v3269_v15  ;;  %v3267_v17 = vadd.f32 1.0, %v8237_v43  ;;  %v1721_v15 = vadd.f32 %v9506_v56, %v9459_v12  ;;  %v5723_v43 = vmul.f32 -1.442695, %v2220_v24 }
 0x245   : > { %v8241_v53 = vpop.eup %8240  ;;  %8260 = vrcp.f32 %v3397_v58  ;;  %v3395_v0 = vadd.f32 1.0, %v8239_v8  ;;  %v10205_v58 = vld [vmem:[#allocation3_spill] sm:$0xff]  ;;  %v5728_v12 = vmul.f32 -1.442695, %v2241_v3 }
 0x246   : > { %v8243_v57 = vpop.eup %8242  ;;  %v6784_v40 = vpack.c.bf16 %v8241_v53, %v9727_v28  ;;  %8262 = vrcp.f32 %v3267_v17  ;;  %v2233_v47 = vadd.f32 %v9506_v56, %v10205_v58  ;;  %v10206_v28 = vld [vmem:[#allocation4_spill] sm:$0xff]  ;;  %v10207_v17 = vld [vmem:[#allocation5_spill] sm:$0xff]  ;;  %v5598_v24 = vmul.f32 -1.442695, %v1721_v15  ;;  %v9778_v15 = vpop.f32.mrb[112].mxu1 }
 0x247   : > { %v8245_v62 = vpop.eup %8244  ;;  %8264 = vrcp.f32 %v3395_v0  ;;  %v1732_v39 = vadd.f32 %v9506_v56, %v10206_v28  ;;  %v2244_v53 = vadd.f32 %v9506_v56, %v10207_v17  ;;  %v10208_v0 = vld [vmem:[#allocation24_spill] sm:$0xff]  ;;  %v2236_v28 = vadd.f32 %v9506_v56, %v10209_v26  ;;  %v10210_v17 = vld [vmem:[#allocation26_spill] sm:$0xff] }
 0x248   : > { %v8247_v60 = vpop.eup %8246  ;;  %7028 = vst [vmem:[%s8946_s28 + $0x310] sm:$0xff] %v6784_v40   ;;  %8266 = vpow2.f32 %v5597_v31  ;;  %v1724_v58 = vadd.f32 %v9506_v56, %v10208_v0  ;;  %v5726_v31 = vmul.f32 -1.442695, %v2233_v47  ;;  %v9783_v47 = vpop.f32.mrb[113].mxu1 }
 0x249   : > { %v8249_v8 = vpop.eup %8248  ;;  %8268 = vpow2.f32 %v5725_v49  ;;  %v5601_v5 = vmul.f32 -1.442695, %v1732_v39  ;;  %v9790_v39 = vpop.f32.mrb[114].mxu1 }
 0x24a   : > { %v8251_v1 = vpop.eup %8250  ;;  %8270 = vpow2.f32 %v5595_v59  ;;  %v1745_v59 = vadd.f32 %v9506_v56, %v10210_v17  ;;  %v5599_v56 = vmul.f32 -1.442695, %v1724_v58  ;;  %10211 = vst [vmem:[#allocation2_spill] sm:$0xff] %v9790_v39 }
 0x24b   : > { %v8253_v38 = vpop.eup %8252  ;;  %v6479_v40 = vpack.c.bf16 %v8251_v1, %v8243_v57  ;;  %8272 = vpow2.f32 %v5723_v43  ;;  %v5729_v1 = vmul.f32 -1.442695, %v2244_v53  ;;  %v9781_v43 = vpop.f32.mrb[113].mxu0 }
 0x24c   : > { %v8255_v49 = vpop.eup %8254  ;;  %v6799_v3 = vpack.c.bf16 %v8253_v38, %v8245_v62  ;;  %8274 = vpow2.f32 %v5600_v42  ;;  %v9788_v42 = vpop.f32.mrb[114].mxu0 }
 0x24d   : > { %v8257_v0 = vpop.eup %8256  ;;  %6967 = vst [vmem:[%s8946_s28 + $0x128] sm:$0xff] %v6479_v40   ;;  %v6474_v57 = vpack.c.bf16 %v8255_v49, %v8247_v60  ;;  %8276 = vpow2.f32 %v5728_v12  ;;  %v5727_v60 = vmul.f32 -1.442695, %v2236_v28  ;;  %v9795_v12 = vpop.f32.mrb[115].mxu0 }
 0x24e   : > { %v9785_v38 = vpop.eup %8258  ;;  %7031 = vst [vmem:[%s8946_s28 + $0x328] sm:$0xff] %v6799_v3   ;;  %v6794_v62 = vpack.c.bf16 %v8257_v0, %v8249_v8  ;;  %8278 = vpow2.f32 %v5598_v24  ;;  %10212 = vst [vmem:[#allocation23_spill] sm:$0xff] %v9795_v12  ;;  %v9797_v53 = vpop.f32.mrb[115].mxu1  ;;  %v5604_v8 = vmul.f32 -1.442695, %v1745_v59 }
 0x24f   : > { %v9792_v26 = vpop.eup %8260  ;;  %6966 = vst [vmem:[%s8946_s28 + $0x120] sm:$0xff] %v6474_v57   ;;  %8280 = vpow2.f32 %v5726_v31  ;;  %10213 = vst [vmem:[#allocation3_spill] sm:$0xff] %v9797_v53  ;;  %v9804_v28 = vpop.f32.mrb[116].mxu0 }
 0x250   : > { %v9799_v40 = vpop.eup %8262  ;;  %7030 = vst [vmem:[%s8946_s28 + $0x320] sm:$0xff] %v6794_v62   ;;  %8282 = vpow2.f32 %v5601_v5  ;;  %10214 = vst [vmem:[#allocation4_spill] sm:$0xff] %v9804_v28  ;;  %v9806_v0 = vpop.f32.mrb[116].mxu1 }
 0x251   : > { %v9802_v24 = vpop.eup %8264  ;;  %8284 = vpow2.f32 %v5729_v1  ;;  %10215 = vst [vmem:[#allocation5_spill] sm:$0xff] %v9806_v0  ;;  %v9808_v5 = vpop.f32.mrb[117].mxu0 }
 0x252   : > { %v8267_v58 = vpop.eup %8266  ;;  %8286 = vpow2.f32 %v5599_v56  ;;  %10216 = vst [vmem:[#allocation24_spill] sm:$0xff] %v9808_v5 }
 0x253   : > { %v8269_v49 = vpop.eup %8268  ;;  %v3270_v3 = vadd.f32 1.0, %v8267_v58  ;;  %8288 = vpow2.f32 %v5727_v60 }
 0x254   : > { %v8271_v17 = vpop.eup %8270  ;;  %v3398_v31 = vadd.f32 1.0, %v8269_v49  ;;  %8290 = vpow2.f32 %v5604_v8 }
 0x255   : > { %v8273_v57 = vpop.eup %8272  ;;  %8292 = vrcp.f32 %v3270_v3  ;;  %v3268_v62 = vadd.f32 1.0, %v8271_v17  ;;  %v9813_v3 = vld [vmem:[%s10133_s2] ss:$0 sm:$0xff]  ;;  %v10217_v17 = vld [vmem:[#allocation27_spill] sm:$0xff] }
 0x256   : > { %v8275_v59 = vpop.eup %8274  ;;  %8294 = vrcp.f32 %v3398_v31  ;;  %v3396_v1 = vadd.f32 1.0, %v8273_v57  ;;  %v2257_v31 = vadd.f32 %v9813_v3, %v10217_v17 }
 0x257   : > { %v8277_v53 = vpop.eup %8276  ;;  %8296 = vrcp.f32 %v3268_v62  ;;  %v3273_v56 = vadd.f32 1.0, %v8275_v59 }
 0x258   : > { %v8279_v58 = vpop.eup %8278  ;;  %8298 = vrcp.f32 %v3396_v1  ;;  %v3401_v60 = vadd.f32 1.0, %v8277_v53  ;;  %v1737_v53 = vadd.f32 %v9813_v3, %v9498_v2 }
 0x259   : > { %v8281_v49 = vpop.eup %8280  ;;  %8300 = vrcp.f32 %v3273_v56  ;;  %v3271_v8 = vadd.f32 1.0, %v8279_v58  ;;  %v2249_v56 = vadd.f32 %v9813_v3, %v9500_v7  ;;  %v1740_v7 = vadd.f32 %v9813_v3, %v9524_v6  ;;  %v9835_v6 = vpop.f32.mrb[118].mxu0 }
 0x25a   : > { %v8283_v28 = vpop.eup %8282  ;;  %8302 = vrcp.f32 %v3401_v60  ;;  %v3399_v0 = vadd.f32 1.0, %v8281_v49  ;;  %v10218_v49 = vld [vmem:[#allocation6_spill] sm:$0xff] }
 0x25b   : > { %v8285_v57 = vpop.eup %8284  ;;  %8304 = vrcp.f32 %v3271_v8  ;;  %v3274_v62 = vadd.f32 1.0, %v8283_v28  ;;  %v1748_v5 = vadd.f32 %v9813_v3, %v10218_v49  ;;  %v5732_v8 = vmul.f32 -1.442695, %v2257_v31  ;;  %v10219_v28 = vld [vmem:[#allocation7_spill] sm:$0xff] }
 0x25c   : > { %v8287_v59 = vpop.eup %8286  ;;  %8306 = vrcp.f32 %v3399_v0  ;;  %v3402_v1 = vadd.f32 1.0, %v8285_v57  ;;  %v2260_v39 = vadd.f32 %v9813_v3, %v10219_v28  ;;  %v5602_v57 = vmul.f32 -1.442695, %v1737_v53 }
 0x25d   : > { %v8289_v58 = vpop.eup %8288  ;;  %8308 = vrcp.f32 %v3274_v62  ;;  %v3272_v60 = vadd.f32 1.0, %v8287_v59  ;;  %v9827_v62 = vpop.f32.mrb[117].mxu1  ;;  %v2252_v31 = vadd.f32 %v9813_v3, %v9526_v22  ;;  %v1761_v53 = vadd.f32 %v9813_v3, %v9534_v32 }
 0x25e   : > { %v8291_v12 = vpop.eup %8290  ;;  %8310 = vrcp.f32 %v3402_v1  ;;  %v3400_v17 = vadd.f32 1.0, %v8289_v58  ;;  %v5730_v1 = vmul.f32 -1.442695, %v2249_v56  ;;  %v9837_v28 = vpop.f32.mrb[118].mxu1  ;;  %v2273_v22 = vadd.f32 %v9813_v3, %v9536_v48 }
 0x25f   : > { %v8293_v2 = vpop.eup %8292  ;;  %8312 = vrcp.f32 %v3272_v60  ;;  %v3277_v0 = vadd.f32 1.0, %v8291_v12  ;;  %v5605_v12 = vmul.f32 -1.442695, %v1748_v5  ;;  %v5603_v32 = vmul.f32 -1.442695, %v1740_v7 }
 0x260   : > { %v8295_v59 = vpop.eup %8294  ;;  %v6489_v49 = vpack.c.bf16 %v8293_v2, %v9785_v38  ;;  %8314 = vrcp.f32 %v3400_v17  ;;  %v5733_v17 = vmul.f32 -1.442695, %v2260_v39  ;;  %v10220_v2 = vld [vmem:[#allocation8_spill] sm:$0xff]  ;;  %v5731_v39 = vmul.f32 -1.442695, %v2252_v31 }
 0x261   : > { %v8297_v58 = vpop.eup %8296  ;;  %v6809_v60 = vpack.c.bf16 %v8295_v59, %v9792_v26  ;;  %8316 = vrcp.f32 %v3277_v0  ;;  %v1753_v0 = vadd.f32 %v9813_v3, %v10220_v2  ;;  %v9847_v59 = vpop.f32.mrb[119].mxu0  ;;  %v10225_v2 = vld [vmem:[#allocation11_spill] sm:$0xff] }
 0x262   : > { %v8299_v38 = vpop.eup %8298  ;;  %6969 = vst [vmem:[%s8946_s28 + $0x138] sm:$0xff] %v6489_v49   ;;  %v6484_v56 = vpack.c.bf16 %v8297_v58, %v9799_v40  ;;  %8318 = vpow2.f32 %v5732_v8  ;;  %10221 = vst [vmem:[#allocation25_spill] sm:$0xff] %v9847_v59  ;;  %v9849_v49 = vpop.f32.mrb[119].mxu1  ;;  %v10223_v8 = vld [vmem:[#allocation9_spill] sm:$0xff] }
 0x263   : > { %v8301_v26 = vpop.eup %8300  ;;  %7033 = vst [vmem:[%s8946_s28 + $0x338] sm:$0xff] %v6809_v60   ;;  %v6804_v5 = vpack.c.bf16 %v8299_v38, %v9802_v24  ;;  %8320 = vpow2.f32 %v5602_v57  ;;  %10222 = vst [vmem:[#allocation26_spill] sm:$0xff] %v9849_v49  ;;  %v2265_v48 = vadd.f32 %v9813_v3, %v10223_v8  ;;  %v5608_v24 = vmul.f32 -1.442695, %v1761_v53  ;;  %v10224_v57 = vld [vmem:[#allocation10_spill] sm:$0xff] }
 0x264   : > { %v8303_v40 = vpop.eup %8302  ;;  %6968 = vst [vmem:[%s8946_s28 + $0x130] sm:$0xff] %v6484_v56   ;;  %8322 = vpow2.f32 %v5730_v1  ;;  %v1764_v7 = vadd.f32 %v9813_v3, %v10224_v57  ;;  %v5736_v38 = vmul.f32 -1.442695, %v2273_v22  ;;  %v2276_v49 = vadd.f32 %v9813_v3, %v10225_v2  ;;  %v9859_v57 = vpop.f32.mrb[120].mxu0 }
 0x265   : > { %v8305_v58 = vpop.eup %8304  ;;  %7032 = vst [vmem:[%s8946_s28 + $0x330] sm:$0xff] %v6804_v5   ;;  %8324 = vpow2.f32 %v5605_v12  ;;  %v5606_v1 = vmul.f32 -1.442695, %v1753_v0  ;;  %v5734_v5 = vmul.f32 -1.442695, %v2265_v48  ;;  %v9864_v0 = vpop.f32.mrb[121].mxu0 }
 0x266   : > { %v8307_v60 = vpop.eup %8306  ;;  %8326 = vpow2.f32 %v5733_v17  ;;  %v5609_v8 = vmul.f32 -1.442695, %v1764_v7  ;;  %v9861_v17 = vpop.f32.mrb[120].mxu1 }
 0x267   : > { %v8309_v56 = vpop.eup %8308  ;;  %8328 = vpow2.f32 %v5603_v32  ;;  %v5737_v32 = vmul.f32 -1.442695, %v2276_v49  ;;  %v9871_v48 = vpop.f32.mrb[122].mxu0 }
 0x268   : > { %v8311_v31 = vpop.eup %8310  ;;  %v6499_v59 = vpack.c.bf16 %v8309_v56, %v8301_v26  ;;  %8330 = vpow2.f32 %v5731_v39  ;;  %v9866_v26 = vpop.f32.mrb[121].mxu1 }
 0x269   : > { %v8313_v12 = vpop.eup %8312  ;;  %v6819_v53 = vpack.c.bf16 %v8311_v31, %v8303_v40  ;;  %8332 = vpow2.f32 %v5608_v24  ;;  %10226 = vst [vmem:[#allocation27_spill] sm:$0xff] %v9866_v26  ;;  %v9873_v24 = vpop.f32.mrb[122].mxu1 }
 0x26a   : > { %v8315_v22 = vpop.eup %8314  ;;  %6971 = vst [vmem:[%s8946_s28 + $0x148] sm:$0xff] %v6499_v59   ;;  %v6494_v2 = vpack.c.bf16 %v8313_v12, %v8305_v58  ;;  %8334 = vpow2.f32 %v5736_v38  ;;  %v9876_v59 = vpop.f32.mrb[123].mxu0 }
 0x26b   : > { %v9868_v39 = vpop.eup %8316  ;;  %7035 = vst [vmem:[%s8946_s28 + $0x348] sm:$0xff] %v6819_v53   ;;  %v6814_v40 = vpack.c.bf16 %v8315_v22, %v8307_v60  ;;  %8336 = vpow2.f32 %v5606_v1  ;;  %10227 = vst [vmem:[#allocation6_spill] sm:$0xff] %v9876_v59  ;;  %v9878_v58 = vpop.f32.mrb[123].mxu1 }
 0x26c   : > { %v8319_v7 = vpop.eup %8318  ;;  %6970 = vst [vmem:[%s8946_s28 + $0x140] sm:$0xff] %v6494_v2   ;;  %8338 = vpow2.f32 %v5734_v5  ;;  %10228 = vst [vmem:[#allocation7_spill] sm:$0xff] %v9878_v58  ;;  %v9906_v59 = vpop.f32.mrb[124].mxu1 }
 0x26d   : > { %v8321_v49 = vpop.eup %8320  ;;  %7034 = vst [vmem:[%s8946_s28 + $0x340] sm:$0xff] %v6814_v40   ;;  %v3405_v38 = vadd.f32 1.0, %v8319_v7  ;;  %8340 = vpow2.f32 %v5609_v8  ;;  %10233 = vst [vmem:[#allocation8_spill] sm:$0xff] %v9906_v59 }
 0x26e   : > { %v8323_v56 = vpop.eup %8322  ;;  %v3275_v31 = vadd.f32 1.0, %v8321_v49  ;;  %8342 = vpow2.f32 %v5737_v32  ;;  %v10229_v49 = vld [vmem:[#allocation12_spill] sm:$0xff] }
 0x26f   : > { %v8325_v60 = vpop.eup %8324  ;;  %8344 = vrcp.f32 %v3405_v38  ;;  %v3403_v1 = vadd.f32 1.0, %v8323_v56  ;;  %v1756_v32 = vadd.f32 %v9813_v3, %v10229_v49 }
 0x270   : > { %v8327_v12 = vpop.eup %8326  ;;  %8346 = vrcp.f32 %v3275_v31  ;;  %v3278_v53 = vadd.f32 1.0, %v8325_v60  ;;  %v10230_v31 = vld [vmem:[#allocation13_spill] sm:$0xff] }
 0x271   : > { %v8329_v22 = vpop.eup %8328  ;;  %8348 = vrcp.f32 %v3403_v1  ;;  %v3406_v5 = vadd.f32 1.0, %v8327_v12  ;;  %v2268_v60 = vadd.f32 %v9813_v3, %v10230_v31 }
 0x272   : > { %v8331_v2 = vpop.eup %8330  ;;  %8350 = vrcp.f32 %v3278_v53  ;;  %v3276_v26 = vadd.f32 1.0, %v8329_v22  ;;  %v1777_v53 = vadd.f32 %v9813_v3, %v9578_v34  ;;  %v2281_v34 = vadd.f32 %v9813_v3, %v9587_v52 }
 0x273   : > { %v8333_v58 = vpop.eup %8332  ;;  %8352 = vrcp.f32 %v3406_v5  ;;  %v3404_v40 = vadd.f32 1.0, %v8331_v2 }
 0x274   : > { %v8335_v7 = vpop.eup %8334  ;;  %8354 = vrcp.f32 %v3276_v26  ;;  %v3281_v8 = vadd.f32 1.0, %v8333_v58  ;;  %v2289_v26 = vadd.f32 %v9813_v3, %v9580_v46  ;;  %v1780_v46 = vadd.f32 %v9813_v3, %v9590_v4 }
 0x275   : > { %v8337_v38 = vpop.eup %8336  ;;  %8356 = vrcp.f32 %v3404_v40  ;;  %v3409_v56 = vadd.f32 1.0, %v8335_v7  ;;  %v5607_v40 = vmul.f32 -1.442695, %v1756_v32  ;;  %v1769_v7 = vadd.f32 %v9813_v3, %v9585_v20 }
 0x276   : > { %v8339_v1 = vpop.eup %8338  ;;  %8358 = vrcp.f32 %v3281_v8  ;;  %v3279_v12 = vadd.f32 1.0, %v8337_v38  ;;  %v5735_v38 = vmul.f32 -1.442695, %v2268_v60  ;;  %v2292_v32 = vadd.f32 %v9813_v3, %v9592_v14 }
 0x277   : > { %v8341_v22 = vpop.eup %8340  ;;  %8360 = vrcp.f32 %v3409_v56  ;;  %v3407_v5 = vadd.f32 1.0, %v8339_v1  ;;  %v5612_v56 = vmul.f32 -1.442695, %v1777_v53  ;;  %v1772_v60 = vadd.f32 %v9813_v3, %v9597_v35 }
 0x278   : > { %v8343_v58 = vpop.eup %8342  ;;  %8362 = vrcp.f32 %v3279_v12  ;;  %v3282_v2 = vadd.f32 1.0, %v8341_v22  ;;  %v5740_v12 = vmul.f32 -1.442695, %v2289_v26  ;;  %v5610_v22 = vmul.f32 -1.442695, %v1769_v7  ;;  %v9904_v7 = vpop.f32.mrb[124].mxu0 }
 0x279   : > { %v8345_v49 = vpop.eup %8344  ;;  %8364 = vrcp.f32 %v3407_v5  ;;  %v3410_v8 = vadd.f32 1.0, %v8343_v58  ;;  %v5738_v53 = vmul.f32 -1.442695, %v2281_v34  ;;  %v10231_v58 = vld [vmem:[#allocation14_spill] sm:$0xff]  ;;  %v5613_v14 = vmul.f32 -1.442695, %v1780_v46 }
 0x27a   : > { %v8347_v31 = vpop.eup %8346  ;;  %8366 = vrcp.f32 %v3282_v2  ;;  %v2284_v4 = vadd.f32 %v9813_v3, %v10231_v58  ;;  %v10234_v34 = vld [vmem:[#allocation16_spill] sm:$0xff]  ;;  %v9911_v58 = vpop.f32.mrb[125].mxu0 }
 0x27b   : > { %v8349_v1 = vpop.eup %8348  ;;  %8368 = vrcp.f32 %v3410_v8  ;;  %v10232_v8 = vld [vmem:[#allocation15_spill] sm:$0xff]  ;;  %v9918_v59 = vpop.f32.mrb[126].mxu0 }
 0x27c   : > { %v8351_v20 = vpop.eup %8350  ;;  %8370 = vpow2.f32 %v5607_v40  ;;  %v1793_v40 = vadd.f32 %v9813_v3, %v10232_v8  ;;  %v10236_v8 = vld [vmem:[#allocation17_spill] sm:$0xff] }
 0x27d   : > { %v8353_v52 = vpop.eup %8352  ;;  %v6509_v5 = vpack.c.bf16 %v8351_v20, %v9868_v39  ;;  %8372 = vpow2.f32 %v5735_v38  ;;  %v5741_v38 = vmul.f32 -1.442695, %v2292_v32  ;;  %v2305_v20 = vadd.f32 %v9813_v3, %v10234_v34 }
 0x27e   : > { %v8355_v2 = vpop.eup %8354  ;;  %v6829_v26 = vpack.c.bf16 %v8353_v52, %v8345_v49  ;;  %8374 = vpow2.f32 %v5612_v56  ;;  %v9913_v49 = vpop.f32.mrb[125].mxu1  ;;  %v5611_v52 = vmul.f32 -1.442695, %v1772_v60  ;;  %v5739_v32 = vmul.f32 -1.442695, %v2284_v4 }
 0x27f   : > { %v8357_v35 = vpop.eup %8356  ;;  %6973 = vst [vmem:[%s8946_s28 + $0x158] sm:$0xff] %v6509_v5   ;;  %v6504_v39 = vpack.c.bf16 %v8355_v2, %v8347_v31  ;;  %8376 = vpow2.f32 %v5740_v12  ;;  %10235 = vst [vmem:[#allocation9_spill] sm:$0xff] %v9913_v49  ;;  %v1785_v5 = vadd.f32 %v9813_v3, %v10236_v8  ;;  %v9920_v31 = vpop.f32.mrb[126].mxu1  ;;  %v5744_v60 = vmul.f32 -1.442695, %v2305_v20 }
 0x280   : > { %v8359_v56 = vpop.eup %8358  ;;  %7037 = vst [vmem:[%s8946_s28 + $0x358] sm:$0xff] %v6829_v26   ;;  %v6824_v46 = vpack.c.bf16 %v8357_v35, %v8349_v1  ;;  %8378 = vpow2.f32 %v5610_v22  ;;  %v9923_v2 = vpop.f32.mrb[127].mxu0  ;;  %v5616_v1 = vmul.f32 -1.442695, %v1793_v40 }
 0x281   : > { %v8361_v12 = vpop.eup %8360  ;;  %6972 = vst [vmem:[%s8946_s28 + $0x150] sm:$0xff] %v6504_v39   ;;  %8380 = vpow2.f32 %v5738_v53  ;;  %10237 = vst [vmem:[#allocation10_spill] sm:$0xff] %v9923_v2  ;;  %v9925_v34 = vpop.f32.mrb[127].mxu1  ;;  %v5614_v35 = vmul.f32 -1.442695, %v1785_v5 }
 0x282   : > { %10238 = vst [vmem:[#allocation11_spill] sm:$0xff] %v9925_v34  ;;  %v9927_v49 = vpop.eup %8362  ;;  %7036 = vst [vmem:[%s8946_s28 + $0x350] sm:$0xff] %v6824_v46   ;;  %8382 = vpow2.f32 %v5613_v14 }
 0x283   : > { %v9930_v22 = vpop.eup %8364  ;;  %8384 = vpow2.f32 %v5741_v38 }
 0x284   : > { %v8367_v26 = vpop.eup %8366  ;;  %8386 = vpow2.f32 %v5611_v52 }
 0x285   : > { %v8369_v53 = vpop.eup %8368  ;;  %v6519_v4 = vpack.c.bf16 %v8367_v26, %v8359_v56  ;;  %8388 = vpow2.f32 %v5739_v32 }
 0x286   : > { %v8371_v39 = vpop.eup %8370  ;;  %v6839_v8 = vpack.c.bf16 %v8369_v53, %v8361_v12  ;;  %8390 = vpow2.f32 %v5616_v1 }
 0x287   : > { %v8373_v34 = vpop.eup %8372  ;;  %6975 = vst [vmem:[%s8946_s28 + $0x168] sm:$0xff] %v6519_v4   ;;  %v3280_v46 = vadd.f32 1.0, %v8371_v39  ;;  %8392 = vpow2.f32 %v5744_v60 }
 0x288   : > { %v8375_v14 = vpop.eup %8374  ;;  %7039 = vst [vmem:[%s8946_s28 + $0x368] sm:$0xff] %v6839_v8   ;;  %v3408_v40 = vadd.f32 1.0, %v8373_v34  ;;  %8394 = vpow2.f32 %v5614_v35  ;;  %v10239_v34 = vld [vmem:[#allocation18_spill] sm:$0xff]  ;;  %v1796_v8 = vadd.f32 %v9813_v3, %v9630_v41 }
 0x289   : > { %v8377_v38 = vpop.eup %8376  ;;  %8396 = vrcp.f32 %v3280_v46  ;;  %v3285_v20 = vadd.f32 1.0, %v8375_v14  ;;  %v2297_v35 = vadd.f32 %v9813_v3, %v10239_v34  ;;  %v2308_v14 = vadd.f32 %v9813_v3, %v9632_v30 }
 0x28a   : > { %v8379_v2 = vpop.eup %8378  ;;  %8398 = vrcp.f32 %v3408_v40  ;;  %v3413_v52 = vadd.f32 1.0, %v8377_v38  ;;  %v1809_v30 = vadd.f32 %v9813_v3, %v9655_v61 }
 0x28b   : > { %v8381_v5 = vpop.eup %8380  ;;  %8400 = vrcp.f32 %v3285_v20  ;;  %v3283_v56 = vadd.f32 1.0, %v8379_v2  ;;  %v1788_v20 = vadd.f32 %v9813_v3, %v9641_v11  ;;  %v5745_v11 = vmul.f32 -1.442695, %v2308_v14 }
 0x28c   : > { %v8383_v32 = vpop.eup %8382  ;;  %8402 = vrcp.f32 %v3413_v52  ;;  %v3411_v12 = vadd.f32 1.0, %v8381_v5 }
 0x28d   : > { %v8385_v1 = vpop.eup %8384  ;;  %8404 = vrcp.f32 %v3283_v56  ;;  %v3286_v26 = vadd.f32 1.0, %v8383_v32  ;;  %v5742_v56 = vmul.f32 -1.442695, %v2297_v35  ;;  %v2300_v32 = vadd.f32 %v9813_v3, %v9643_v16 }
 0x28e   : > { %v8387_v60 = vpop.eup %8386  ;;  %8406 = vrcp.f32 %v3411_v12  ;;  %v3414_v53 = vadd.f32 1.0, %v8385_v1  ;;  %v5617_v1 = vmul.f32 -1.442695, %v1796_v8  ;;  %v5615_v35 = vmul.f32 -1.442695, %v1788_v20 }
 0x28f   : > { %v8389_v4 = vpop.eup %8388  ;;  %8408 = vrcp.f32 %v3286_v26  ;;  %v3284_v39 = vadd.f32 1.0, %v8387_v60  ;;  %v5743_v61 = vmul.f32 -1.442695, %v2300_v32 }
 0x290   : > { %v8391_v46 = vpop.eup %8390  ;;  %8410 = vrcp.f32 %v3414_v53  ;;  %v3412_v2 = vadd.f32 1.0, %v8389_v4  ;;  %v2321_v53 = vadd.f32 %v9813_v3, %v9657_v37  ;;  %v1801_v4 = vadd.f32 %v9813_v3, %v9660_v63 }
 0x291   : > { %v8393_v40 = vpop.eup %8392  ;;  %8412 = vrcp.f32 %v3284_v39  ;;  %v3289_v38 = vadd.f32 1.0, %v8391_v46  ;;  %v5620_v46 = vmul.f32 -1.442695, %v1809_v30  ;;  %v1812_v37 = vadd.f32 %v9813_v3, %v9667_v50 }
 0x292   : > { %v8395_v52 = vpop.eup %8394  ;;  %8414 = vrcp.f32 %v3412_v2  ;;  %v3417_v5 = vadd.f32 1.0, %v8393_v40  ;;  %v5748_v2 = vmul.f32 -1.442695, %v2321_v53  ;;  %v2324_v63 = vadd.f32 %v9813_v3, %v9669_v29 }
 0x293   : > { %v8397_v41 = vpop.eup %8396  ;;  %8416 = vrcp.f32 %v3289_v38  ;;  %v3287_v12 = vadd.f32 1.0, %v8395_v52  ;;  %v5618_v40 = vmul.f32 -1.442695, %v1801_v4  ;;  %v2316_v50 = vadd.f32 %v9813_v3, %v9676_v55 }
 0x294   : > { %v8399_v26 = vpop.eup %8398  ;;  %v6514_v60 = vpack.c.bf16 %v8397_v41, %v9927_v49  ;;  %8418 = vrcp.f32 %v3417_v5  ;;  %v2313_v49 = vadd.f32 %v9813_v3, %v9662_v51  ;;  %v1804_v51 = vadd.f32 %v9813_v3, %v9674_v23 }
 0x295   : > { %v8401_v34 = vpop.eup %8400  ;;  %v6834_v16 = vpack.c.bf16 %v8399_v26, %v9930_v22  ;;  %8420 = vrcp.f32 %v3287_v12  ;;  %v5621_v32 = vmul.f32 -1.442695, %v1812_v37  ;;  %v5749_v12 = vmul.f32 -1.442695, %v2324_v63 }
 0x296   : > { %v8403_v39 = vpop.eup %8402  ;;  %6974 = vst [vmem:[%s8946_s28 + $0x160] sm:$0xff] %v6514_v60   ;;  %8422 = vpow2.f32 %v5742_v56  ;;  %v5746_v52 = vmul.f32 -1.442695, %v2313_v49  ;;  %v5619_v30 = vmul.f32 -1.442695, %v1804_v51  ;;  %v1825_v51 = vadd.f32 %v9813_v3, %v9679_v27 }
 0x297   : > { %v8405_v8 = vpop.eup %8404  ;;  %7038 = vst [vmem:[%s8946_s28 + $0x360] sm:$0xff] %v6834_v16   ;;  %8424 = vpow2.f32 %v5617_v1  ;;  %v5747_v55 = vmul.f32 -1.442695, %v2316_v50 }
 0x298   : > { %v8407_v22 = vpop.eup %8406  ;;  %8426 = vpow2.f32 %v5745_v11 }
 0x299   : > { %v8409_v14 = vpop.eup %8408  ;;  %8428 = vpow2.f32 %v5615_v35 }
 0x29a   : > { %v8411_v38 = vpop.eup %8410  ;;  %v6529_v20 = vpack.c.bf16 %v8409_v14, %v8401_v34  ;;  %8430 = vpow2.f32 %v5743_v61 }
 0x29b   : > { %v8413_v5 = vpop.eup %8412  ;;  %v6849_v56 = vpack.c.bf16 %v8411_v38, %v8403_v39  ;;  %8432 = vpow2.f32 %v5620_v46 }
 0x29c   : > { %v8415_v29 = vpop.eup %8414  ;;  %6977 = vst [vmem:[%s8946_s28 + $0x178] sm:$0xff] %v6529_v20   ;;  %v6524_v41 = vpack.c.bf16 %v8413_v5, %v8405_v8  ;;  %8434 = vpow2.f32 %v5748_v2 }
 0x29d   : > { %v9965_v23 = vpop.eup %8416  ;;  %7041 = vst [vmem:[%s8946_s28 + $0x378] sm:$0xff] %v6849_v56   ;;  %v6844_v1 = vpack.c.bf16 %v8415_v29, %v8407_v22  ;;  %8436 = vpow2.f32 %v5618_v40  ;;  %v1817_v56 = vadd.f32 %v9813_v3, %v9699_v25  ;;  %v2340_v25 = vadd.f32 %v9813_v3, %v9711_v19 }
 0x29e   : > { %v9968_v26 = vpop.eup %8418  ;;  %6976 = vst [vmem:[%s8946_s28 + $0x170] sm:$0xff] %v6524_v41   ;;  %8438 = vpow2.f32 %v5746_v52  ;;  %v2337_v52 = vadd.f32 %v9813_v3, %v9693_v9  ;;  %v2329_v41 = vadd.f32 %v9813_v3, %v9701_v54  ;;  %v1820_v54 = vadd.f32 %v9813_v3, %v9719_v18 }
 0x29f   : > { %v9971_v60 = vpop.eup %8420  ;;  %7040 = vst [vmem:[%s8946_s28 + $0x370] sm:$0xff] %v6844_v1   ;;  %8440 = vpow2.f32 %v5621_v32  ;;  %v5624_v1 = vmul.f32 -1.442695, %v1825_v51 }
 0x2a0   : > { %v8423_v11 = vpop.eup %8422  ;;  %8442 = vpow2.f32 %v5749_v12 }
 0x2a1   : > { %v8425_v53 = vpop.eup %8424  ;;  %v3415_v34 = vadd.f32 1.0, %v8423_v11  ;;  %8444 = vpow2.f32 %v5619_v30  ;;  %v1828_v30 = vadd.f32 %v9813_v3, %v9709_v33  ;;  %v5752_v11 = vmul.f32 -1.442695, %v2337_v52 }
 0x2a2   : > { %v8427_v16 = vpop.eup %8426  ;;  %v3290_v35 = vadd.f32 1.0, %v8425_v53  ;;  %8446 = vpow2.f32 %v5747_v55  ;;  %v5750_v33 = vmul.f32 -1.442695, %v2329_v41 }
 0x2a3   : > { %v8429_v4 = vpop.eup %8428  ;;  %8448 = vrcp.f32 %v3415_v34  ;;  %v3418_v39 = vadd.f32 1.0, %v8427_v16  ;;  %v5622_v34 = vmul.f32 -1.442695, %v1817_v56  ;;  %v5625_v19 = vmul.f32 -1.442695, %v1828_v30 }
 0x2a4   : > { %v8431_v61 = vpop.eup %8430  ;;  %8450 = vrcp.f32 %v3290_v35  ;;  %v3288_v49 = vadd.f32 1.0, %v8429_v4  ;;  %v2332_v4 = vadd.f32 %v9813_v3, %v9721_v13 }
 0x2a5   : > { %v8433_v8 = vpop.eup %8432  ;;  %8452 = vrcp.f32 %v3418_v39  ;;  %v3416_v46 = vadd.f32 1.0, %v8431_v61 }
 0x2a6   : > { %v8435_v37 = vpop.eup %8434  ;;  %8454 = vrcp.f32 %v3288_v49  ;;  %v3293_v22 = vadd.f32 1.0, %v8433_v8  ;;  %v1841_v49 = vadd.f32 %v9813_v3, %v9729_v21  ;;  %v5751_v21 = vmul.f32 -1.442695, %v2332_v4 }
 0x2a7   : > { %v8437_v2 = vpop.eup %8436  ;;  %8456 = vrcp.f32 %v3416_v46  ;;  %v3421_v63 = vadd.f32 1.0, %v8435_v37  ;;  %v2353_v46 = vadd.f32 %v9813_v3, %v9731_v44  ;;  %v10240_v44 = vld [vmem:[#allocation19_spill] sm:$0xff] }
 0x2a8   : > { %v8439_v14 = vpop.eup %8438  ;;  %8458 = vrcp.f32 %v3293_v22  ;;  %v3291_v40 = vadd.f32 1.0, %v8437_v2  ;;  %v1833_v22 = vadd.f32 %v9813_v3, %v9734_v36 }
 0x2a9   : > { %v8441_v38 = vpop.eup %8440  ;;  %8460 = vrcp.f32 %v3421_v63  ;;  %v3419_v20 = vadd.f32 1.0, %v8439_v14  ;;  %v5628_v14 = vmul.f32 -1.442695, %v1841_v49  ;;  %v10241_v49 = vld [vmem:[#allocation20_spill] sm:$0xff] }
 0x2aa   : > { %v8443_v50 = vpop.eup %8442  ;;  %8462 = vrcp.f32 %v3291_v40  ;;  %v3294_v5 = vadd.f32 1.0, %v8441_v38  ;;  %v1844_v40 = vadd.f32 %v9813_v3, %v10240_v44  ;;  %v5756_v38 = vmul.f32 -1.442695, %v2353_v46  ;;  %v10242_v46 = vld [vmem:[#allocation21_spill] sm:$0xff] }
 0x2ab   : > { %v8445_v32 = vpop.eup %8444  ;;  %8464 = vrcp.f32 %v3419_v20  ;;  %v3422_v29 = vadd.f32 1.0, %v8443_v50  ;;  %v5626_v36 = vmul.f32 -1.442695, %v1833_v22  ;;  %v10243_v22 = vld [vmem:[#allocation22_spill] sm:$0xff] }
 0x2ac   : > { %v8447_v12 = vpop.eup %8446  ;;  %8466 = vrcp.f32 %v3294_v5  ;;  %v3292_v27 = vadd.f32 1.0, %v8445_v32  ;;  %v5629_v32 = vmul.f32 -1.442695, %v1844_v40 }
 0x2ad   : > { %v8449_v9 = vpop.eup %8448  ;;  %8468 = vrcp.f32 %v3422_v29  ;;  %v3420_v55 = vadd.f32 1.0, %v8447_v12 }
 0x2ae   : > { %v8451_v53 = vpop.eup %8450  ;;  %8470 = vrcp.f32 %v3292_v27 }
 0x2af   : > { %v8453_v16 = vpop.eup %8452  ;;  %v6539_v35 = vpack.c.bf16 %v8451_v53, %v9965_v23  ;;  %8472 = vrcp.f32 %v3420_v55  ;;  %v5753_v23 = vmul.f32 -1.442695, %v2340_v25 }
 0x2b0   : > { %v8455_v39 = vpop.eup %8454  ;;  %v6859_v61 = vpack.c.bf16 %v8453_v16, %v9968_v26  ;;  %8474 = vpow2.f32 %v5624_v1  ;;  %v5623_v26 = vmul.f32 -1.442695, %v1820_v54 }
 0x2b1   : > { %v8457_v8 = vpop.eup %8456  ;;  %6979 = vst [vmem:[%s8946_s28 + $0x188] sm:$0xff] %v6539_v35   ;;  %v6534_v18 = vpack.c.bf16 %v8455_v39, %v9971_v60  ;;  %8476 = vpow2.f32 %v5752_v11  ;;  %v2345_v60 = vadd.f32 %v9813_v3, %v9736_v45 }
 0x2b2   : > { %v8459_v13 = vpop.eup %8458  ;;  %7043 = vst [vmem:[%s8946_s28 + $0x388] sm:$0xff] %v6859_v61   ;;  %v6854_v37 = vpack.c.bf16 %v8457_v8, %v8449_v9  ;;  %8478 = vpow2.f32 %v5622_v34  ;;  %v2356_v8 = vadd.f32 %v9813_v3, %v10241_v49 }
 0x2b3   : > { %v8461_v2 = vpop.eup %8460  ;;  %6978 = vst [vmem:[%s8946_s28 + $0x180] sm:$0xff] %v6534_v18   ;;  %8480 = vpow2.f32 %v5750_v33  ;;  %v5754_v45 = vmul.f32 -1.442695, %v2345_v60 }
 0x2b4   : > { %v8463_v63 = vpop.eup %8462  ;;  %7042 = vst [vmem:[%s8946_s28 + $0x380] sm:$0xff] %v6854_v37   ;;  %8482 = vpow2.f32 %v5625_v19  ;;  %v5757_v40 = vmul.f32 -1.442695, %v2356_v8 }
 0x2b5   : > { %v8465_v51 = vpop.eup %8464  ;;  %8484 = vpow2.f32 %v5753_v23 }
 0x2b6   : > { %v8467_v20 = vpop.eup %8466  ;;  %8486 = vpow2.f32 %v5623_v26 }
 0x2b7   : > { %v8469_v52 = vpop.eup %8468  ;;  %v6549_v50 = vpack.c.bf16 %v8467_v20, %v8459_v13  ;;  %8488 = vpow2.f32 %v5751_v21  ;;  %v1836_v13 = vadd.f32 %v9813_v3, %v10242_v46 }
 0x2b8   : > { %v8471_v5 = vpop.eup %8470  ;;  %v6869_v56 = vpack.c.bf16 %v8469_v52, %v8461_v2  ;;  %8490 = vpow2.f32 %v5628_v14  ;;  %v2348_v2 = vadd.f32 %v9813_v3, %v10243_v22  ;;  %v1849_v52 = vadd.f32 %v9813_v3, %v9781_v43 }
 0x2b9   : > { %v8473_v29 = vpop.eup %8472  ;;  %6981 = vst [vmem:[%s8946_s28 + $0x198] sm:$0xff] %v6549_v50   ;;  %v6544_v41 = vpack.c.bf16 %v8471_v5, %v8463_v63  ;;  %8492 = vpow2.f32 %v5756_v38  ;;  %v1857_v63 = vadd.f32 %v9813_v3, %v9776_v10  ;;  %v2361_v10 = vadd.f32 %v9813_v3, %v9783_v47 }
 0x2ba   : > { %v8475_v12 = vpop.eup %8474  ;;  %7045 = vst [vmem:[%s8946_s28 + $0x398] sm:$0xff] %v6869_v56   ;;  %v6864_v27 = vpack.c.bf16 %v8473_v29, %v8465_v51  ;;  %8494 = vpow2.f32 %v5626_v36  ;;  %v2369_v51 = vadd.f32 %v9813_v3, %v9778_v15  ;;  %v5627_v36 = vmul.f32 -1.442695, %v1836_v13 }
 0x2bb   : > { %v8477_v1 = vpop.eup %8476  ;;  %6980 = vst [vmem:[%s8946_s28 + $0x190] sm:$0xff] %v6544_v41   ;;  %v3297_v30 = vadd.f32 1.0, %v8475_v12  ;;  %8496 = vpow2.f32 %v5754_v45  ;;  %v5755_v45 = vmul.f32 -1.442695, %v2348_v2  ;;  %v5632_v56 = vmul.f32 -1.442695, %v1857_v63 }
 0x2bc   : > { %v8479_v9 = vpop.eup %8478  ;;  %7044 = vst [vmem:[%s8946_s28 + $0x390] sm:$0xff] %v6864_v27   ;;  %v3425_v55 = vadd.f32 1.0, %v8477_v1  ;;  %8498 = vpow2.f32 %v5629_v32  ;;  %v1860_v32 = vadd.f32 %v9813_v3, %v9788_v42  ;;  %v5760_v29 = vmul.f32 -1.442695, %v2369_v51  ;;  %v10244_v41 = vld [vmem:[#allocation2_spill] sm:$0xff]  ;;  %v10245_v1 = vld [vmem:[#allocation23_spill] sm:$0xff] }
 0x2bd   : > { %v8481_v11 = vpop.eup %8480  ;;  %8500 = vrcp.f32 %v3297_v30  ;;  %v3295_v25 = vadd.f32 1.0, %v8479_v9  ;;  %v2372_v12 = vadd.f32 %v9813_v3, %v10244_v41  ;;  %v5630_v27 = vmul.f32 -1.442695, %v1849_v52 }
 0x2be   : > { %v8483_v53 = vpop.eup %8482  ;;  %8502 = vrcp.f32 %v3425_v55  ;;  %v3423_v34 = vadd.f32 1.0, %v8481_v11  ;;  %v1852_v30 = vadd.f32 %v9813_v3, %v10245_v1  ;;  %v5758_v55 = vmul.f32 -1.442695, %v2361_v10  ;;  %v10246_v11 = vld [vmem:[#allocation3_spill] sm:$0xff] }
 0x2bf   : > { %v8485_v54 = vpop.eup %8484  ;;  %8504 = vrcp.f32 %v3295_v25  ;;  %v3298_v16 = vadd.f32 1.0, %v8483_v53  ;;  %v2364_v42 = vadd.f32 %v9813_v3, %v10246_v11 }
 0x2c0   : > { %v8487_v35 = vpop.eup %8486  ;;  %8506 = vrcp.f32 %v3423_v34  ;;  %v3426_v33 = vadd.f32 1.0, %v8485_v54  ;;  %v5633_v34 = vmul.f32 -1.442695, %v1860_v32  ;;  %v10247_v54 = vld [vmem:[#allocation4_spill] sm:$0xff]  ;;  %v5631_v8 = vmul.f32 -1.442695, %v1852_v30 }
 0x2c1   : > { %v8489_v4 = vpop.eup %8488  ;;  %8508 = vrcp.f32 %v3298_v16  ;;  %v3296_v39 = vadd.f32 1.0, %v8487_v35  ;;  %v1873_v16 = vadd.f32 %v9813_v3, %v10247_v54  ;;  %v10051_v32 = vld [vmem:[%s10133_s2] ss:$0 sm:$0xff] }
 0x2c2   : > { %v8491_v61 = vpop.eup %8490  ;;  %8510 = vrcp.f32 %v3426_v33  ;;  %v3424_v19 = vadd.f32 1.0, %v8489_v4  ;;  %v5761_v4 = vmul.f32 -1.442695, %v2372_v12  ;;  %v1876_v30 = vadd.f32 %v10051_v32, %v9835_v6 }
 0x2c3   : > { %v8493_v18 = vpop.eup %8492  ;;  %8512 = vrcp.f32 %v3296_v39  ;;  %v3301_v23 = vadd.f32 1.0, %v8491_v61  ;;  %v10248_v39 = vld [vmem:[#allocation5_spill] sm:$0xff]  ;;  %v5636_v13 = vmul.f32 -1.442695, %v1873_v16  ;;  %v10251_v16 = vld [vmem:[#allocation26_spill] sm:$0xff] }
 0x2c4   : > { %v8495_v37 = vpop.eup %8494  ;;  %8514 = vrcp.f32 %v3424_v19  ;;  %v3429_v26 = vadd.f32 1.0, %v8493_v18  ;;  %v2385_v61 = vadd.f32 %v9813_v3, %v10248_v39  ;;  %v2380_v6 = vadd.f32 %v10051_v32, %v10251_v16 }
 0x2c5   : > { %v8497_v21 = vpop.eup %8496  ;;  %8516 = vrcp.f32 %v3301_v23  ;;  %v3299_v60 = vadd.f32 1.0, %v8495_v37  ;;  %v5759_v23 = vmul.f32 -1.442695, %v2364_v42 }
 0x2c6   : > { %v8499_v14 = vpop.eup %8498  ;;  %8518 = vrcp.f32 %v3429_v26  ;;  %v3427_v44 = vadd.f32 1.0, %v8497_v21  ;;  %v5764_v3 = vmul.f32 -1.442695, %v2385_v61 }
 0x2c7   : > { %v8501_v38 = vpop.eup %8500  ;;  %8520 = vrcp.f32 %v3299_v60  ;;  %v3302_v20 = vadd.f32 1.0, %v8499_v14 }
 0x2c8   : > { %v8503_v50 = vpop.eup %8502  ;;  %8522 = vrcp.f32 %v3427_v44 }
 0x2c9   : > { %v8505_v5 = vpop.eup %8504  ;;  %8524 = vrcp.f32 %v3302_v20 }
 0x2ca   : > { %v8507_v15 = vpop.eup %8506  ;;  %8526 = vpow2.f32 %v5757_v40 }
 0x2cb   : > { %v8509_v43 = vpop.eup %8508  ;;  %8528 = vpow2.f32 %v5627_v36 }
 0x2cc   : > { %v8511_v47 = vpop.eup %8510  ;;  %v6559_v9 = vpack.c.bf16 %v8509_v43, %v8501_v38  ;;  %8530 = vpow2.f32 %v5755_v45  ;;  %v2377_v43 = vadd.f32 %v10051_v32, %v9827_v62 }
 0x2cd   : > { %v8513_v25 = vpop.eup %8512  ;;  %v6879_v53 = vpack.c.bf16 %v8511_v47, %v8503_v50  ;;  %8532 = vpow2.f32 %v5632_v56 }
 0x2ce   : > { %v8515_v35 = vpop.eup %8514  ;;  %6983 = vst [vmem:[%s8946_s28 + $0x1a8] sm:$0xff] %v6559_v9   ;;  %v6554_v33 = vpack.c.bf16 %v8513_v25, %v8505_v5  ;;  %8534 = vpow2.f32 %v5760_v29  ;;  %v5762_v54 = vmul.f32 -1.442695, %v2377_v43 }
 0x2cf   : > { %v8517_v19 = vpop.eup %8516  ;;  %7047 = vst [vmem:[%s8946_s28 + $0x3a8] sm:$0xff] %v6879_v53   ;;  %v6874_v49 = vpack.c.bf16 %v8515_v35, %v8507_v15  ;;  %8536 = vpow2.f32 %v5630_v27  ;;  %v10249_v15 = vld [vmem:[#allocation24_spill] sm:$0xff]  ;;  %v10250_v53 = vld [vmem:[#allocation25_spill] sm:$0xff] }
 0x2d0   : > { %v10039_v18 = vpop.eup %8518  ;;  %6982 = vst [vmem:[%s8946_s28 + $0x1a0] sm:$0xff] %v6554_v33   ;;  %8538 = vpow2.f32 %v5758_v55  ;;  %v1865_v29 = vadd.f32 %v10051_v32, %v10249_v15  ;;  %v2388_v55 = vadd.f32 %v10051_v32, %v9837_v28  ;;  %v1868_v62 = vadd.f32 %v10051_v32, %v10250_v53  ;;  %v10253_v15 = vld [vmem:[#allocation27_spill] sm:$0xff] }
 0x2d1   : > { %v10042_v46 = vpop.eup %8520  ;;  %7046 = vst [vmem:[%s8946_s28 + $0x3a0] sm:$0xff] %v6874_v49   ;;  %8540 = vpow2.f32 %v5633_v34  ;;  %v1889_v28 = vadd.f32 %v10051_v32, %v9859_v57  ;;  %v2401_v49 = vadd.f32 %v10051_v32, %v9861_v17  ;;  %v5763_v57 = vmul.f32 -1.442695, %v2380_v6 }
 0x2d2   : > { %v10045_v37 = vpop.eup %8522  ;;  %8542 = vpow2.f32 %v5761_v4  ;;  %v5634_v25 = vmul.f32 -1.442695, %v1865_v29  ;;  %v5637_v4 = vmul.f32 -1.442695, %v1876_v30  ;;  %v1892_v17 = vadd.f32 %v10051_v32, %v9871_v48 }
 0x2d3   : > { %v8525_v26 = vpop.eup %8524  ;;  %8544 = vpow2.f32 %v5631_v8  ;;  %v2393_v29 = vadd.f32 %v10051_v32, %v10253_v15 }
 0x2d4   : > { %v8527_v22 = vpop.eup %8526  ;;  %v6569_v2 = vpack.c.bf16 %v8525_v26, %v8517_v19  ;;  %8546 = vpow2.f32 %v5759_v23  ;;  %v5765_v19 = vmul.f32 -1.442695, %v2388_v55 }
 0x2d5   : > { %v8529_v21 = vpop.eup %8528  ;;  %v3430_v60 = vadd.f32 1.0, %v8527_v22  ;;  %8548 = vpow2.f32 %v5636_v13  ;;  %v5635_v13 = vmul.f32 -1.442695, %v1868_v62  ;;  %v5766_v55 = vmul.f32 -1.442695, %v2393_v29 }
 0x2d6   : > { %v8531_v63 = vpop.eup %8530  ;;  %6985 = vst [vmem:[%s8946_s28 + $0x1b8] sm:$0xff] %v6569_v2   ;;  %v3300_v14 = vadd.f32 1.0, %v8529_v21  ;;  %8550 = vpow2.f32 %v5764_v3  ;;  %v2404_v2 = vadd.f32 %v10051_v32, %v9873_v24 }
 0x2d7   : > { %v8533_v44 = vpop.eup %8532  ;;  %8552 = vrcp.f32 %v3430_v60  ;;  %v3428_v40 = vadd.f32 1.0, %v8531_v63  ;;  %v10252_v60 = vld [vmem:[#allocation6_spill] sm:$0xff] }
 0x2d8   : > { %v8535_v51 = vpop.eup %8534  ;;  %8554 = vrcp.f32 %v3300_v14  ;;  %v3305_v38 = vadd.f32 1.0, %v8533_v44  ;;  %v1884_v63 = vadd.f32 %v10051_v32, %v10252_v60 }
 0x2d9   : > { %v8537_v20 = vpop.eup %8536  ;;  %8556 = vrcp.f32 %v3428_v40  ;;  %v3433_v36 = vadd.f32 1.0, %v8535_v51 }
 0x2da   : > { %v8539_v52 = vpop.eup %8538  ;;  %8558 = vrcp.f32 %v3305_v38  ;;  %v3303_v50 = vadd.f32 1.0, %v8537_v20  ;;  %v5641_v38 = vmul.f32 -1.442695, %v1892_v17 }
 0x2db   : > { %v8541_v45 = vpop.eup %8540  ;;  %8560 = vrcp.f32 %v3433_v36  ;;  %v3431_v10 = vadd.f32 1.0, %v8539_v52  ;;  %v5769_v36 = vmul.f32 -1.442695, %v2404_v2 }
 0x2dc   : > { %v8543_v5 = vpop.eup %8542  ;;  %8562 = vrcp.f32 %v3303_v50  ;;  %v3306_v56 = vadd.f32 1.0, %v8541_v45  ;;  %v5639_v50 = vmul.f32 -1.442695, %v1884_v63 }
 0x2dd   : > { %v8545_v41 = vpop.eup %8544  ;;  %8564 = vrcp.f32 %v3431_v10  ;;  %v3434_v12 = vadd.f32 1.0, %v8543_v5 }
 0x2de   : > { %v8547_v27 = vpop.eup %8546  ;;  %8566 = vrcp.f32 %v3306_v56  ;;  %v3304_v1 = vadd.f32 1.0, %v8545_v41 }
 0x2df   : > { %v8549_v47 = vpop.eup %8548  ;;  %8568 = vrcp.f32 %v3434_v12  ;;  %v3432_v9 = vadd.f32 1.0, %v8547_v27 }
 0x2e0   : > { %v8551_v11 = vpop.eup %8550  ;;  %8570 = vrcp.f32 %v3304_v1  ;;  %v3309_v42 = vadd.f32 1.0, %v8549_v47 }
 0x2e1   : > { %v8553_v34 = vpop.eup %8552  ;;  %8572 = vrcp.f32 %v3432_v9  ;;  %v3437_v40 = vadd.f32 1.0, %v8551_v11 }
 0x2e2   : > { %v8555_v35 = vpop.eup %8554  ;;  %v6889_v33 = vpack.c.bf16 %v8553_v34, %v10039_v18  ;;  %8574 = vrcp.f32 %v3309_v42  ;;  %v1881_v18 = vadd.f32 %v10051_v32, %v9864_v0 }
 0x2e3   : > { %v8557_v39 = vpop.eup %8556  ;;  %v6564_v61 = vpack.c.bf16 %v8555_v35, %v10042_v46  ;;  %8576 = vpow2.f32 %v5634_v25  ;;  %v5640_v46 = vmul.f32 -1.442695, %v1889_v28  ;;  %v10255_v28 = vld [vmem:[#allocation8_spill] sm:$0xff] }
 0x2e4   : > { %v8559_v8 = vpop.eup %8558  ;;  %7049 = vst [vmem:[%s8946_s28 + $0x3b8] sm:$0xff] %v6889_v33   ;;  %v6884_v23 = vpack.c.bf16 %v8557_v39, %v10045_v37  ;;  %8578 = vpow2.f32 %v5762_v54  ;;  %v5768_v37 = vmul.f32 -1.442695, %v2401_v49  ;;  %v5638_v0 = vmul.f32 -1.442695, %v1881_v18  ;;  %v10254_v54 = vld [vmem:[#allocation7_spill] sm:$0xff] }
 0x2e5   : > { %v8561_v3 = vpop.eup %8560  ;;  %6984 = vst [vmem:[%s8946_s28 + $0x1b0] sm:$0xff] %v6564_v61   ;;  %8580 = vpow2.f32 %v5637_v4  ;;  %v2396_v16 = vadd.f32 %v10051_v32, %v10254_v54  ;;  %v1905_v33 = vadd.f32 %v10051_v32, %v9904_v7  ;;  %v2417_v39 = vadd.f32 %v10051_v32, %v10255_v28  ;;  %v10256_v18 = vld [vmem:[#allocation9_spill] sm:$0xff] }
 0x2e6   : > { %v8563_v26 = vpop.eup %8562  ;;  %7048 = vst [vmem:[%s8946_s28 + $0x3b0] sm:$0xff] %v6884_v23   ;;  %8582 = vpow2.f32 %v5765_v19  ;;  %v1897_v49 = vadd.f32 %v10051_v32, %v9911_v58  ;;  %v2420_v58 = vadd.f32 %v10051_v32, %v9920_v31 }
 0x2e7   : > { %v8565_v22 = vpop.eup %8564  ;;  %8584 = vpow2.f32 %v5635_v13  ;;  %v5767_v13 = vmul.f32 -1.442695, %v2396_v16 }
 0x2e8   : > { %v8567_v21 = vpop.eup %8566  ;;  %8586 = vpow2.f32 %v5763_v57  ;;  %v5642_v2 = vmul.f32 -1.442695, %v1897_v49 }
 0x2e9   : > { %v8569_v14 = vpop.eup %8568  ;;  %v6579_v44 = vpack.c.bf16 %v8567_v21, %v8559_v8  ;;  %8588 = vpow2.f32 %v5640_v46  ;;  %v1908_v46 = vadd.f32 %v10051_v32, %v9918_v59  ;;  %v10257_v21 = vld [vmem:[#allocation10_spill] sm:$0xff]  ;;  %v10258_v59 = vld [vmem:[#allocation11_spill] sm:$0xff] }
 0x2ea   : > { %v8571_v48 = vpop.eup %8570  ;;  %v6899_v51 = vpack.c.bf16 %v8569_v14, %v8561_v3  ;;  %8590 = vpow2.f32 %v5768_v37  ;;  %v2409_v3 = vadd.f32 %v10051_v32, %v10256_v18 }
 0x2eb   : > { %v8573_v20 = vpop.eup %8572  ;;  %6987 = vst [vmem:[%s8946_s28 + $0x1c8] sm:$0xff] %v6579_v44   ;;  %v6574_v24 = vpack.c.bf16 %v8571_v48, %v8563_v26  ;;  %8592 = vpow2.f32 %v5638_v0  ;;  %v5644_v26 = vmul.f32 -1.442695, %v1905_v33  ;;  %v1900_v0 = vadd.f32 %v10051_v32, %v10257_v21 }
 0x2ec   : > { %7051 = vst [vmem:[%s8946_s28 + $0x3c8] sm:$0xff] %v6899_v51   ;;  %v6894_v52 = vpack.c.bf16 %v8573_v20, %v8565_v22  ;;  %v10085_v45 = vpop.eup %8574  ;;  %8594 = vrcp.f32 %v3437_v40  ;;  %v5772_v22 = vmul.f32 -1.442695, %v2417_v39  ;;  %v5770_v14 = vmul.f32 -1.442695, %v2409_v3 }
 0x2ed   : > { %6986 = vst [vmem:[%s8946_s28 + $0x1c0] sm:$0xff] %v6574_v24   ;;  %v8577_v10 = vpop.eup %8576  ;;  %8596 = vpow2.f32 %v5641_v38  ;;  %v2412_v44 = vadd.f32 %v10051_v32, %v10258_v59  ;;  %v5645_v31 = vmul.f32 -1.442695, %v1908_v46  ;;  %v5773_v20 = vmul.f32 -1.442695, %v2420_v58 }
 0x2ee   : > { %7050 = vst [vmem:[%s8946_s28 + $0x3c0] sm:$0xff] %v6894_v52   ;;  %v8579_v5 = vpop.eup %8578  ;;  %v3307_v56 = vadd.f32 1.0, %v8577_v10  ;;  %8598 = vpow2.f32 %v5769_v36  ;;  %v5643_v52 = vmul.f32 -1.442695, %v1900_v0 }
 0x2ef   : > { %v8581_v41 = vpop.eup %8580  ;;  %v3435_v12 = vadd.f32 1.0, %v8579_v5  ;;  %8600 = vpow2.f32 %v5639_v50  ;;  %v5771_v32 = vmul.f32 -1.442695, %v2412_v44 }
 0x2f0   : > { %v8583_v43 = vpop.eup %8582  ;;  %8602 = vrcp.f32 %v3307_v56  ;;  %v3310_v27 = vadd.f32 1.0, %v8581_v41 }
 0x2f1   : > { %v8585_v1 = vpop.eup %8584  ;;  %8604 = vrcp.f32 %v3435_v12  ;;  %v3438_v30 = vadd.f32 1.0, %v8583_v43 }
 0x2f2   : > { %v8587_v47 = vpop.eup %8586  ;;  %8606 = vrcp.f32 %v3310_v27  ;;  %v3308_v9 = vadd.f32 1.0, %v8585_v1 }
 0x2f3   : > { %v8589_v11 = vpop.eup %8588  ;;  %8608 = vrcp.f32 %v3438_v30  ;;  %v3436_v42 = vadd.f32 1.0, %v8587_v47 }
 0x2f4   : > { %v8591_v25 = vpop.eup %8590  ;;  %8610 = vrcp.f32 %v3308_v9  ;;  %v3313_v53 = vadd.f32 1.0, %v8589_v11 }
 0x2f5   : > { %v8593_v62 = vpop.eup %8592  ;;  %8612 = vrcp.f32 %v3436_v42  ;;  %v3441_v34 = vadd.f32 1.0, %v8591_v25 }
 0x2f6   : > { %v8595_v6 = vpop.eup %8594  ;;  %v3311_v35 = vadd.f32 1.0, %v8593_v62  ;;  %8614 = vpow2.f32 %v5766_v55 }
 0x2f7   : > { %v8597_v4 = vpop.eup %8596  ;;  %8616 = vrcp.f32 %v3313_v53 }
 0x2f8   : > { %v8599_v61 = vpop.eup %8598  ;;  %8618 = vrcp.f32 %v3441_v34  ;;  %v3314_v19 = vadd.f32 1.0, %v8597_v4 }
 0x2f9   : > { %v8601_v8 = vpop.eup %8600  ;;  %8620 = vrcp.f32 %v3311_v35  ;;  %v3442_v23 = vadd.f32 1.0, %v8599_v61 }
 0x2fa   : > { %v8603_v57 = vpop.eup %8602  ;;  %8622 = vrcp.f32 %v3314_v19  ;;  %v3312_v7 = vadd.f32 1.0, %v8601_v8 }
 0x2fb   : > { %v8605_v17 = vpop.eup %8604  ;;  %8624 = vrcp.f32 %v3442_v23 }
 0x2fc   : > { %v8607_v37 = vpop.eup %8606  ;;  %8626 = vrcp.f32 %v3312_v7 }
 0x2fd   : > { %v8609_v60 = vpop.eup %8608  ;;  %v6589_v63 = vpack.c.bf16 %v8607_v37, %v10085_v45  ;;  %8628 = vpow2.f32 %v5767_v13 }
 0x2fe   : > { %v8611_v40 = vpop.eup %8610  ;;  %v6909_v48 = vpack.c.bf16 %v8609_v60, %v8595_v6  ;;  %8630 = vpow2.f32 %v5644_v26 }
 0x2ff   : > { %v8613_v51 = vpop.eup %8612  ;;  %6989 = vst [vmem:[%s8946_s28 + $0x1d8] sm:$0xff] %v6589_v63   ;;  %v6584_v38 = vpack.c.bf16 %v8611_v40, %v8603_v57  ;;  %8632 = vpow2.f32 %v5772_v22 }
 0x300   : > { %v8615_v24 = vpop.eup %8614  ;;  %7053 = vst [vmem:[%s8946_s28 + $0x3d8] sm:$0xff] %v6909_v48   ;;  %v6904_v36 = vpack.c.bf16 %v8613_v51, %v8605_v17  ;;  %8634 = vpow2.f32 %v5642_v2 }
 0x301   : > { %v8617_v50 = vpop.eup %8616  ;;  %6988 = vst [vmem:[%s8946_s28 + $0x1d0] sm:$0xff] %v6584_v38   ;;  %8636 = vpow2.f32 %v5770_v14  ;;  %v3439_v15 = vadd.f32 1.0, %v8615_v24 }
 0x302   : > { %v8619_v45 = vpop.eup %8618  ;;  %7052 = vst [vmem:[%s8946_s28 + $0x3d0] sm:$0xff] %v6904_v36   ;;  %8638 = vpow2.f32 %v5645_v31 }
 0x303   : > { %v8621_v10 = vpop.eup %8620  ;;  %8640 = vpow2.f32 %v5773_v20 }
 0x304   : > { %v8623_v5 = vpop.eup %8622  ;;  %8642 = vpow2.f32 %v5643_v52 }
 0x305   : > { %v8625_v56 = vpop.eup %8624  ;;  %v6599_v29 = vpack.c.bf16 %v8623_v5, %v8617_v50  ;;  %8644 = vpow2.f32 %v5771_v32 }
 0x306   : > { %v8627_v41 = vpop.eup %8626  ;;  %v6919_v12 = vpack.c.bf16 %v8625_v56, %v8619_v45  ;;  %8646 = vrcp.f32 %v3439_v15 }
 0x307   : > { %v8629_v43 = vpop.eup %8628  ;;  %6991 = vst [vmem:[%s8946_s28 + $0x1e8] sm:$0xff] %v6599_v29   ;;  %v6594_v27 = vpack.c.bf16 %v8627_v41, %v8621_v10 }
 0x308   : > { %v8631_v1 = vpop.eup %8630  ;;  %7055 = vst [vmem:[%s8946_s28 + $0x3e8] sm:$0xff] %v6919_v12   ;;  %v3440_v30 = vadd.f32 1.0, %v8629_v43 }
 0x309   : > { %v8633_v47 = vpop.eup %8632  ;;  %6990 = vst [vmem:[%s8946_s28 + $0x1e0] sm:$0xff] %v6594_v27   ;;  %v3317_v9 = vadd.f32 1.0, %v8631_v1 }
 0x30a   : > { %v8635_v55 = vpop.eup %8634  ;;  %8648 = vrcp.f32 %v3440_v30  ;;  %v3445_v11 = vadd.f32 1.0, %v8633_v47 }
 0x30b   : > { %v8637_v42 = vpop.eup %8636  ;;  %8650 = vrcp.f32 %v3317_v9  ;;  %v3315_v25 = vadd.f32 1.0, %v8635_v55 }
 0x30c   : > { %v8639_v53 = vpop.eup %8638  ;;  %8652 = vrcp.f32 %v3445_v11  ;;  %v3443_v62 = vadd.f32 1.0, %v8637_v42 }
 0x30d   : > { %v8641_v34 = vpop.eup %8640  ;;  %8654 = vrcp.f32 %v3315_v25  ;;  %v3318_v54 = vadd.f32 1.0, %v8639_v53 }
 0x30e   : > { %v8643_v16 = vpop.eup %8642  ;;  %8656 = vrcp.f32 %v3443_v62  ;;  %v3446_v6 = vadd.f32 1.0, %v8641_v34 }
 0x30f   : > { %v8645_v35 = vpop.eup %8644  ;;  %8658 = vrcp.f32 %v3318_v54  ;;  %v3316_v33 = vadd.f32 1.0, %v8643_v16 }
 0x310   : > { %8660 = vrcp.f32 %v3446_v6  ;;  %v3444_v4 = vadd.f32 1.0, %v8645_v35  ;;  %v8647_v28 = vpop.eup %8646 }
 0x311   : > { %8662 = vrcp.f32 %v3316_v33 }
 0x312   : > { %8664 = vrcp.f32 %v3444_v4 }
 0x314   : > { %v8649_v39 = vpop.eup %8648 }
 0x315   : > { %v8651_v61 = vpop.eup %8650  ;;  %v6914_v19 = vpack.c.bf16 %v8649_v39, %v8647_v28 }
 0x316   : > { %v8653_v49 = vpop.eup %8652 }
 0x317   : > { %v8655_v8 = vpop.eup %8654  ;;  %7054 = vst [vmem:[%s8946_s28 + $0x3e0] sm:$0xff] %v6914_v19  }
 0x318   : > { %v8657_v23 = vpop.eup %8656 }
 0x319   : > { %v8659_v13 = vpop.eup %8658 }
 0x31a   : > { %v8661_v18 = vpop.eup %8660  ;;  %v6609_v3 = vpack.c.bf16 %v8659_v13, %v8651_v61 }
 0x31b   : > { %v8663_v57 = vpop.eup %8662  ;;  %v6929_v7 = vpack.c.bf16 %v8661_v18, %v8653_v49 }
 0x31c   : > { %v8665_v26 = vpop.eup %8664  ;;  %6993 = vst [vmem:[%s8946_s28 + $0x1f8] sm:$0xff] %v6609_v3   ;;  %v6604_v46 = vpack.c.bf16 %v8663_v57, %v8655_v8 }
 0x31d   : > { %7057 = vst [vmem:[%s8946_s28 + $0x3f8] sm:$0xff] %v6929_v7   ;;  %v6924_v17 = vpack.c.bf16 %v8665_v26, %v8657_v23 }
 0x31e   : > { %6992 = vst [vmem:[%s8946_s28 + $0x1f0] sm:$0xff] %v6604_v46  }
 0x31f   : > { %7056 = vst [vmem:[%s8946_s28 + $0x3f0] sm:$0xff] %v6924_v17  }
 0x320 PF: > { %s13_s14 = sadd.s32 1, %s8692_s14   ;;  %s10259_s12 = smov %s8688_s13 }
 0x321   : > { %p10_p5 = scmp.ge.s32.totalorder %s13_s14, 6   ;;  %s10260_s13 = smov %s10262_s15 }
 0x323   :  { %12 = sbr.rel (!%p10_p5) target bundleno = 2 (0x2), region = 68 }

</bundles_post_ra>
